<compile_context>
chip_gen: v6e
topology: v6e:2x2x1
jax: 0.10.0
libtpu: 0.0.40
codegen_flags: <defaults>
</compile_context>

<pallas_src>
import jax
import jax.numpy as jnp
from jax.experimental import pallas as pl
from jax.experimental.pallas import tpu as pltpu


# -----------------------------------------------------------------------------
# Fused backbone kernel: stem conv -> residual block (2 convs + skip) -> GAP
# -----------------------------------------------------------------------------
def _ssl_backbone_kernel(x_ref, ws_ref, bs_ref, w1_ref, b1_ref, w2_ref, b2_ref,
                         o_ref, hpad_ref, bpad_ref):
    # x_ref   : [1, H+2, W+2, Cin_pad]  f32  (spatially zero-padded input)
    # w*_ref  : [9, Cin, C]             bf16 (BN scale folded in)
    # b*_ref  : [1, C]                  f32  (folded BN bias)
    # o_ref   : [1, 1, C]               f32  (pooled features)
    # hpad/bpad: VMEM scratch [H+2, W+2, C] f32 (padded intermediate activations)
    Hp, Wp, C = hpad_ref.shape
    H, W = Hp - 2, Wp - 2
    HW = H * W

    def conv3x3(window, w_ref):
        # 3x3 conv (stride 1, pad 1) as 9 shifted matmuls accumulated in f32.
        acc = jnp.zeros((HW, C), jnp.float32)
        for k in range(9):
            dh, dw = k // 3, k % 3
            win = window(dh, dw)                              # (H, W, cin) f32
            win = win.reshape(HW, win.shape[-1]).astype(jnp.bfloat16)
            acc = acc + jnp.dot(win, w_ref[k],
                                preferred_element_type=jnp.float32)
        return acc

    # ---- stem: conv + folded-BN bias + ReLU ----
    h = conv3x3(lambda dh, dw: x_ref[0, dh:dh + H, dw:dw + W, :], ws_ref)
    h = jnp.maximum(h + bs_ref[...], 0.0)                     # (HW, C)

    # stash stem output into a zero-padded VMEM buffer (halo for next conv)
    hpad_ref[...] = jnp.zeros(hpad_ref.shape, hpad_ref.dtype)
    hpad_ref[1:H + 1, 1:W + 1, :] = h.reshape(H, W, C)

    # ---- residual block, conv 1 ----
    b = conv3x3(lambda dh, dw: hpad_ref[dh:dh + H, dw:dw + W, :], w1_ref)
    b = jnp.maximum(b + b1_ref[...], 0.0)

    bpad_ref[...] = jnp.zeros(bpad_ref.shape, bpad_ref.dtype)
    bpad_ref[1:H + 1, 1:W + 1, :] = b.reshape(H, W, C)

    # ---- residual block, conv 2 + skip + ReLU, fused global average pool ----
    y = conv3x3(lambda dh, dw: bpad_ref[dh:dh + H, dw:dw + W, :], w2_ref)
    skip = hpad_ref[1:H + 1, 1:W + 1, :].reshape(HW, C)
    y = jnp.maximum(y + b2_ref[...] + skip, 0.0)

    # pooled features ("pooler_output" / mean over spatial dims)
    o_ref[...] = jnp.mean(y, axis=0, keepdims=True).reshape(1, 1, C)


# -----------------------------------------------------------------------------
# Parameter construction & BN folding (host side)
# -----------------------------------------------------------------------------
def init_params(key, c_in=3, c_hidden=128):
    """Synthetic deterministic backbone params.

    Conv weights use layout (kh*kw, Cin, Cout); real PyTorch conv weights of
    shape (Cout, Cin, kh, kw) map via w.transpose(2, 3, 1, 0).reshape(9, Cin, Cout).
    """
    ks = jax.random.split(key, 9)

    def conv_w(k, cin, cout):
        fan_in = 9 * cin
        return (jax.random.normal(k, (9, cin, cout), jnp.float32)
                * (2.0 / fan_in) ** 0.5)

    def bn_params(kg, kb, cout):
        return {
            "gamma": 1.0 + 0.1 * jax.random.normal(kg, (cout,), jnp.float32),
            "beta": 0.1 * jax.random.normal(kb, (cout,), jnp.float32),
            "mean": jnp.zeros((cout,), jnp.float32),
            "var": jnp.ones((cout,), jnp.float32),
        }

    return {
        "stem_w": conv_w(ks[0], c_in, c_hidden),
        "stem_bn": bn_params(ks[1], ks[2], c_hidden),
        "b1_w": conv_w(ks[3], c_hidden, c_hidden),
        "b1_bn": bn_params(ks[4], ks[5], c_hidden),
        "b2_w": conv_w(ks[6], c_hidden, c_hidden),
        "b2_bn": bn_params(ks[7], ks[8], c_hidden),
    }


def fold_bn_params(params, eps=1e-5):
    """Fold BN scale into the conv weights (bf16) and keep an f32 bias."""
    def fold(w, bn, cin_pad=None):
        scale = bn["gamma"] / jnp.sqrt(bn["var"] + eps)
        bias = bn["beta"] - bn["mean"] * scale
        w_eff = w * scale[None, None, :]
        if cin_pad is not None and w_eff.shape[1] < cin_pad:
            w_eff = jnp.pad(w_eff,
                            ((0, 0), (0, cin_pad - w_eff.shape[1]), (0, 0)))
        return w_eff.astype(jnp.bfloat16), bias.reshape(1, -1).astype(jnp.float32)

    cin = params["stem_w"].shape[1]
    cin_pad = ((cin + 7) // 8) * 8
    sw, sb = fold(params["stem_w"], params["stem_bn"], cin_pad)
    w1, b1 = fold(params["b1_w"], params["b1_bn"])
    w2, b2 = fold(params["b2_w"], params["b2_bn"])
    return {"stem_w": sw, "stem_b": sb,
            "b1_w": w1, "b1_b": b1,
            "b2_w": w2, "b2_b": b2}


# -----------------------------------------------------------------------------
# Forward pass (== LightlySSLModel.forward -> backbone feature extraction)
# -----------------------------------------------------------------------------
def lightly_ssl_forward(kparams, x_nchw):
    """x_nchw: [B, C, H, W] float32 (PyTorch layout) -> features [B, num_ftrs]."""
    x = jnp.transpose(x_nchw, (0, 2, 3, 1)).astype(jnp.float32)   # NCHW -> NHWC
    B, H, W, cin = x.shape
    cin_pad = kparams["stem_w"].shape[1]
    C = kparams["stem_w"].shape[2]

    # spatial zero-pad (conv halo) + channel pad to a sublane-friendly width
    xp = jnp.pad(x, ((0, 0), (1, 1), (1, 1), (0, cin_pad - cin)))

    weight_args = (kparams["stem_w"], kparams["stem_b"],
                   kparams["b1_w"], kparams["b1_b"],
                   kparams["b2_w"], kparams["b2_b"])

    flops = int(2 * B * H * W * 9 * (cin_pad * C + 2 * C * C))
    bytes_accessed = int(xp.size * 4
                         + sum(a.size * a.dtype.itemsize for a in weight_args)
                         + B * C * 4)

    feats = pl.pallas_call(
        _ssl_backbone_kernel,
        out_shape=jax.ShapeDtypeStruct((B, 1, C), jnp.float32),
        grid_spec=pltpu.PrefetchScalarGridSpec(
            num_scalar_prefetch=0,
            grid=(B,),
            in_specs=[
                pl.BlockSpec((1, H + 2, W + 2, cin_pad),
                             lambda b: (b, 0, 0, 0)),            # padded image
                pl.BlockSpec((9, cin_pad, C), lambda b: (0, 0, 0)),  # stem w
                pl.BlockSpec((1, C), lambda b: (0, 0)),              # stem bias
                pl.BlockSpec((9, C, C), lambda b: (0, 0, 0)),        # block w1
                pl.BlockSpec((1, C), lambda b: (0, 0)),              # block b1
                pl.BlockSpec((9, C, C), lambda b: (0, 0, 0)),        # block w2
                pl.BlockSpec((1, C), lambda b: (0, 0)),              # block b2
            ],
            out_specs=pl.BlockSpec((1, 1, C), lambda b: (b, 0, 0)),
            scratch_shapes=[
                pltpu.VMEM((H + 2, W + 2, C), jnp.float32),   # padded stem act
                pltpu.VMEM((H + 2, W + 2, C), jnp.float32),   # padded block act
            ],
        ),
        compiler_params=pltpu.CompilerParams(
            dimension_semantics=("parallel",),
            vmem_limit_bytes=32 * 1024 * 1024,
        ),
        cost_estimate=pl.CostEstimate(
            flops=flops, transcendentals=0, bytes_accessed=bytes_accessed),
    )(xp, *weight_args)

    return feats.reshape(B, C)


if __name__ == "__main__":
    key = jax.random.PRNGKey(0)
    pkey, xkey = jax.random.split(key)

    B, C_IN, H, W = 2, 3, 16, 16
    C_HIDDEN = 128   # num_ftrs; 128-multiple so all output lane dims are dense

    raw_params = init_params(pkey, c_in=C_IN, c_hidden=C_HIDDEN)
    kparams = fold_bn_params(raw_params)
    x = jax.random.normal(xkey, (B, C_IN, H, W), dtype=jnp.float32)

    feats = jax.jit(lightly_ssl_forward)(kparams, x)
    feats = jax.block_until_ready(feats)
    assert feats.shape == (B, C_HIDDEN), feats.shape
    assert bool(jnp.all(jnp.isfinite(feats)))
    print("KERNEL_OK")
</pallas_src>

<mosaic_0001>
module attributes {stable_mosaic.version = 11 : i64} {
  func.func @_ssl_backbone_kernel(%arg0: i32, %arg1: memref<1x18x18x8xf32, #tpu.memory_space<vmem>>, %arg2: memref<9x8x128xbf16, #tpu.memory_space<vmem>>, %arg3: memref<1x128xf32, #tpu.memory_space<vmem>>, %arg4: memref<9x128x128xbf16, #tpu.memory_space<vmem>>, %arg5: memref<1x128xf32, #tpu.memory_space<vmem>>, %arg6: memref<9x128x128xbf16, #tpu.memory_space<vmem>>, %arg7: memref<1x128xf32, #tpu.memory_space<vmem>>, %arg8: memref<1x1x128xf32, #tpu.memory_space<vmem>>, %arg9: memref<18x18x128xf32, #tpu.memory_space<vmem>>, %arg10: memref<18x18x128xf32, #tpu.memory_space<vmem>>) attributes {dimension_semantics = [#tpu.dimension_semantics<parallel>], iteration_bounds = array<i64: 2>, scalar_prefetch = 0 : i64, scratch_operands = 2 : i64, tpu.core_type = #tpu.core_type<tc>, window_params = [{transform_indices = @transform_0, window_bounds = array<i64: 1, 18, 18, 8>}, {pipeline_mode = #tpu.pipeline_mode<synchronous>, transform_indices = @transform_1, window_bounds = array<i64: 9, 8, 128>}, {pipeline_mode = #tpu.pipeline_mode<synchronous>, transform_indices = @transform_2, window_bounds = array<i64: 1, 128>}, {pipeline_mode = #tpu.pipeline_mode<synchronous>, transform_indices = @transform_3, window_bounds = array<i64: 9, 128, 128>}, {pipeline_mode = #tpu.pipeline_mode<synchronous>, transform_indices = @transform_4, window_bounds = array<i64: 1, 128>}, {pipeline_mode = #tpu.pipeline_mode<synchronous>, transform_indices = @transform_5, window_bounds = array<i64: 9, 128, 128>}, {pipeline_mode = #tpu.pipeline_mode<synchronous>, transform_indices = @transform_6, window_bounds = array<i64: 1, 128>}, {transform_indices = @transform_7, window_bounds = array<i64: 1, 1, 128>}]} {
    %cst = arith.constant 0.000000e+00 : f32
    %0 = vector.broadcast %cst : f32 to vector<256x128xf32>
    %c0 = arith.constant 0 : index
    %c0_0 = arith.constant 0 : index
    %c0_1 = arith.constant 0 : index
    %c0_2 = arith.constant 0 : index
    %1 = vector.load %arg1[%c0, %c0_0, %c0_1, %c0_2] : memref<1x18x18x8xf32, #tpu.memory_space<vmem>>, vector<1x16x16x8xf32>
    %2 = vector.shape_cast %1 : vector<1x16x16x8xf32> to vector<16x16x8xf32>
    %3 = vector.shape_cast %2 : vector<16x16x8xf32> to vector<256x8xf32>
    %4 = arith.truncf %3 : vector<256x8xf32> to vector<256x8xbf16>
    %c0_3 = arith.constant 0 : index
    %c0_4 = arith.constant 0 : index
    %c0_5 = arith.constant 0 : index
    %5 = vector.load %arg2[%c0_3, %c0_4, %c0_5] : memref<9x8x128xbf16, #tpu.memory_space<vmem>>, vector<1x8x128xbf16>
    %6 = vector.shape_cast %5 : vector<1x8x128xbf16> to vector<8x128xbf16>
    %cst_6 = arith.constant dense<0.000000e+00> : vector<256x128xf32>
    %7 = tpu.matmul %4, %6, %cst_6 {dimension_numbers = #tpu.dot_dimension_numbers<[1], [0], [0], [1], [0, 0, 1, 1], [], []>} : vector<256x8xbf16>, vector<8x128xbf16>, vector<256x128xf32> -> vector<256x128xf32>
    %8 = arith.addf %0, %7 : vector<256x128xf32>
    %c0_7 = arith.constant 0 : index
    %c0_8 = arith.constant 0 : index
    %c1 = arith.constant 1 : index
    %c0_9 = arith.constant 0 : index
    %9 = vector.load %arg1[%c0_7, %c0_8, %c1, %c0_9] : memref<1x18x18x8xf32, #tpu.memory_space<vmem>>, vector<1x16x16x8xf32>
    %10 = vector.shape_cast %9 : vector<1x16x16x8xf32> to vector<16x16x8xf32>
    %11 = vector.shape_cast %10 : vector<16x16x8xf32> to vector<256x8xf32>
    %12 = arith.truncf %11 : vector<256x8xf32> to vector<256x8xbf16>
    %c1_10 = arith.constant 1 : index
    %c0_11 = arith.constant 0 : index
    %c0_12 = arith.constant 0 : index
    %13 = vector.load %arg2[%c1_10, %c0_11, %c0_12] : memref<9x8x128xbf16, #tpu.memory_space<vmem>>, vector<1x8x128xbf16>
    %14 = vector.shape_cast %13 : vector<1x8x128xbf16> to vector<8x128xbf16>
    %cst_13 = arith.constant dense<0.000000e+00> : vector<256x128xf32>
    %15 = tpu.matmul %12, %14, %cst_13 {dimension_numbers = #tpu.dot_dimension_numbers<[1], [0], [0], [1], [0, 0, 1, 1], [], []>} : vector<256x8xbf16>, vector<8x128xbf16>, vector<256x128xf32> -> vector<256x128xf32>
    %16 = arith.addf %8, %15 : vector<256x128xf32>
    %c0_14 = arith.constant 0 : index
    %c0_15 = arith.constant 0 : index
    %c2 = arith.constant 2 : index
    %c0_16 = arith.constant 0 : index
    %17 = vector.load %arg1[%c0_14, %c0_15, %c2, %c0_16] : memref<1x18x18x8xf32, #tpu.memory_space<vmem>>, vector<1x16x16x8xf32>
    %18 = vector.shape_cast %17 : vector<1x16x16x8xf32> to vector<16x16x8xf32>
    %19 = vector.shape_cast %18 : vector<16x16x8xf32> to vector<256x8xf32>
    %20 = arith.truncf %19 : vector<256x8xf32> to vector<256x8xbf16>
    %c2_17 = arith.constant 2 : index
    %c0_18 = arith.constant 0 : index
    %c0_19 = arith.constant 0 : index
    %21 = vector.load %arg2[%c2_17, %c0_18, %c0_19] : memref<9x8x128xbf16, #tpu.memory_space<vmem>>, vector<1x8x128xbf16>
    %22 = vector.shape_cast %21 : vector<1x8x128xbf16> to vector<8x128xbf16>
    %cst_20 = arith.constant dense<0.000000e+00> : vector<256x128xf32>
    %23 = tpu.matmul %20, %22, %cst_20 {dimension_numbers = #tpu.dot_dimension_numbers<[1], [0], [0], [1], [0, 0, 1, 1], [], []>} : vector<256x8xbf16>, vector<8x128xbf16>, vector<256x128xf32> -> vector<256x128xf32>
    %24 = arith.addf %16, %23 : vector<256x128xf32>
    %c0_21 = arith.constant 0 : index
    %c1_22 = arith.constant 1 : index
    %c0_23 = arith.constant 0 : index
    %c0_24 = arith.constant 0 : index
    %25 = vector.load %arg1[%c0_21, %c1_22, %c0_23, %c0_24] : memref<1x18x18x8xf32, #tpu.memory_space<vmem>>, vector<1x16x16x8xf32>
    %26 = vector.shape_cast %25 : vector<1x16x16x8xf32> to vector<16x16x8xf32>
    %27 = vector.shape_cast %26 : vector<16x16x8xf32> to vector<256x8xf32>
    %28 = arith.truncf %27 : vector<256x8xf32> to vector<256x8xbf16>
    %c3 = arith.constant 3 : index
    %c0_25 = arith.constant 0 : index
    %c0_26 = arith.constant 0 : index
    %29 = vector.load %arg2[%c3, %c0_25, %c0_26] : memref<9x8x128xbf16, #tpu.memory_space<vmem>>, vector<1x8x128xbf16>
    %30 = vector.shape_cast %29 : vector<1x8x128xbf16> to vector<8x128xbf16>
    %cst_27 = arith.constant dense<0.000000e+00> : vector<256x128xf32>
    %31 = tpu.matmul %28, %30, %cst_27 {dimension_numbers = #tpu.dot_dimension_numbers<[1], [0], [0], [1], [0, 0, 1, 1], [], []>} : vector<256x8xbf16>, vector<8x128xbf16>, vector<256x128xf32> -> vector<256x128xf32>
    %32 = arith.addf %24, %31 : vector<256x128xf32>
    %c0_28 = arith.constant 0 : index
    %c1_29 = arith.constant 1 : index
    %c1_30 = arith.constant 1 : index
    %c0_31 = arith.constant 0 : index
    %33 = vector.load %arg1[%c0_28, %c1_29, %c1_30, %c0_31] : memref<1x18x18x8xf32, #tpu.memory_space<vmem>>, vector<1x16x16x8xf32>
    %34 = vector.shape_cast %33 : vector<1x16x16x8xf32> to vector<16x16x8xf32>
    %35 = vector.shape_cast %34 : vector<16x16x8xf32> to vector<256x8xf32>
    %36 = arith.truncf %35 : vector<256x8xf32> to vector<256x8xbf16>
    %c4 = arith.constant 4 : index
    %c0_32 = arith.constant 0 : index
    %c0_33 = arith.constant 0 : index
    %37 = vector.load %arg2[%c4, %c0_32, %c0_33] : memref<9x8x128xbf16, #tpu.memory_space<vmem>>, vector<1x8x128xbf16>
    %38 = vector.shape_cast %37 : vector<1x8x128xbf16> to vector<8x128xbf16>
    %cst_34 = arith.constant dense<0.000000e+00> : vector<256x128xf32>
    %39 = tpu.matmul %36, %38, %cst_34 {dimension_numbers = #tpu.dot_dimension_numbers<[1], [0], [0], [1], [0, 0, 1, 1], [], []>} : vector<256x8xbf16>, vector<8x128xbf16>, vector<256x128xf32> -> vector<256x128xf32>
    %40 = arith.addf %32, %39 : vector<256x128xf32>
    %c0_35 = arith.constant 0 : index
    %c1_36 = arith.constant 1 : index
    %c2_37 = arith.constant 2 : index
    %c0_38 = arith.constant 0 : index
    %41 = vector.load %arg1[%c0_35, %c1_36, %c2_37, %c0_38] : memref<1x18x18x8xf32, #tpu.memory_space<vmem>>, vector<1x16x16x8xf32>
    %42 = vector.shape_cast %41 : vector<1x16x16x8xf32> to vector<16x16x8xf32>
    %43 = vector.shape_cast %42 : vector<16x16x8xf32> to vector<256x8xf32>
    %44 = arith.truncf %43 : vector<256x8xf32> to vector<256x8xbf16>
    %c5 = arith.constant 5 : index
    %c0_39 = arith.constant 0 : index
    %c0_40 = arith.constant 0 : index
    %45 = vector.load %arg2[%c5, %c0_39, %c0_40] : memref<9x8x128xbf16, #tpu.memory_space<vmem>>, vector<1x8x128xbf16>
    %46 = vector.shape_cast %45 : vector<1x8x128xbf16> to vector<8x128xbf16>
    %cst_41 = arith.constant dense<0.000000e+00> : vector<256x128xf32>
    %47 = tpu.matmul %44, %46, %cst_41 {dimension_numbers = #tpu.dot_dimension_numbers<[1], [0], [0], [1], [0, 0, 1, 1], [], []>} : vector<256x8xbf16>, vector<8x128xbf16>, vector<256x128xf32> -> vector<256x128xf32>
    %48 = arith.addf %40, %47 : vector<256x128xf32>
    %c0_42 = arith.constant 0 : index
    %c2_43 = arith.constant 2 : index
    %c0_44 = arith.constant 0 : index
    %c0_45 = arith.constant 0 : index
    %49 = vector.load %arg1[%c0_42, %c2_43, %c0_44, %c0_45] : memref<1x18x18x8xf32, #tpu.memory_space<vmem>>, vector<1x16x16x8xf32>
    %50 = vector.shape_cast %49 : vector<1x16x16x8xf32> to vector<16x16x8xf32>
    %51 = vector.shape_cast %50 : vector<16x16x8xf32> to vector<256x8xf32>
    %52 = arith.truncf %51 : vector<256x8xf32> to vector<256x8xbf16>
    %c6 = arith.constant 6 : index
    %c0_46 = arith.constant 0 : index
    %c0_47 = arith.constant 0 : index
    %53 = vector.load %arg2[%c6, %c0_46, %c0_47] : memref<9x8x128xbf16, #tpu.memory_space<vmem>>, vector<1x8x128xbf16>
    %54 = vector.shape_cast %53 : vector<1x8x128xbf16> to vector<8x128xbf16>
    %cst_48 = arith.constant dense<0.000000e+00> : vector<256x128xf32>
    %55 = tpu.matmul %52, %54, %cst_48 {dimension_numbers = #tpu.dot_dimension_numbers<[1], [0], [0], [1], [0, 0, 1, 1], [], []>} : vector<256x8xbf16>, vector<8x128xbf16>, vector<256x128xf32> -> vector<256x128xf32>
    %56 = arith.addf %48, %55 : vector<256x128xf32>
    %c0_49 = arith.constant 0 : index
    %c2_50 = arith.constant 2 : index
    %c1_51 = arith.constant 1 : index
    %c0_52 = arith.constant 0 : index
    %57 = vector.load %arg1[%c0_49, %c2_50, %c1_51, %c0_52] : memref<1x18x18x8xf32, #tpu.memory_space<vmem>>, vector<1x16x16x8xf32>
    %58 = vector.shape_cast %57 : vector<1x16x16x8xf32> to vector<16x16x8xf32>
    %59 = vector.shape_cast %58 : vector<16x16x8xf32> to vector<256x8xf32>
    %60 = arith.truncf %59 : vector<256x8xf32> to vector<256x8xbf16>
    %c7 = arith.constant 7 : index
    %c0_53 = arith.constant 0 : index
    %c0_54 = arith.constant 0 : index
    %61 = vector.load %arg2[%c7, %c0_53, %c0_54] : memref<9x8x128xbf16, #tpu.memory_space<vmem>>, vector<1x8x128xbf16>
    %62 = vector.shape_cast %61 : vector<1x8x128xbf16> to vector<8x128xbf16>
    %cst_55 = arith.constant dense<0.000000e+00> : vector<256x128xf32>
    %63 = tpu.matmul %60, %62, %cst_55 {dimension_numbers = #tpu.dot_dimension_numbers<[1], [0], [0], [1], [0, 0, 1, 1], [], []>} : vector<256x8xbf16>, vector<8x128xbf16>, vector<256x128xf32> -> vector<256x128xf32>
    %64 = arith.addf %56, %63 : vector<256x128xf32>
    %c0_56 = arith.constant 0 : index
    %c2_57 = arith.constant 2 : index
    %c2_58 = arith.constant 2 : index
    %c0_59 = arith.constant 0 : index
    %65 = vector.load %arg1[%c0_56, %c2_57, %c2_58, %c0_59] : memref<1x18x18x8xf32, #tpu.memory_space<vmem>>, vector<1x16x16x8xf32>
    %66 = vector.shape_cast %65 : vector<1x16x16x8xf32> to vector<16x16x8xf32>
    %67 = vector.shape_cast %66 : vector<16x16x8xf32> to vector<256x8xf32>
    %68 = arith.truncf %67 : vector<256x8xf32> to vector<256x8xbf16>
    %c8 = arith.constant 8 : index
    %c0_60 = arith.constant 0 : index
    %c0_61 = arith.constant 0 : index
    %69 = vector.load %arg2[%c8, %c0_60, %c0_61] : memref<9x8x128xbf16, #tpu.memory_space<vmem>>, vector<1x8x128xbf16>
    %70 = vector.shape_cast %69 : vector<1x8x128xbf16> to vector<8x128xbf16>
    %cst_62 = arith.constant dense<0.000000e+00> : vector<256x128xf32>
    %71 = tpu.matmul %68, %70, %cst_62 {dimension_numbers = #tpu.dot_dimension_numbers<[1], [0], [0], [1], [0, 0, 1, 1], [], []>} : vector<256x8xbf16>, vector<8x128xbf16>, vector<256x128xf32> -> vector<256x128xf32>
    %72 = arith.addf %64, %71 : vector<256x128xf32>
    %c0_63 = arith.constant 0 : index
    %c0_64 = arith.constant 0 : index
    %73 = vector.load %arg3[%c0_63, %c0_64] : memref<1x128xf32, #tpu.memory_space<vmem>>, vector<1x128xf32>
    %74 = vector.broadcast %73 : vector<1x128xf32> to vector<256x128xf32>
    %75 = arith.addf %72, %74 : vector<256x128xf32>
    %cst_65 = arith.constant 0.000000e+00 : f32
    %76 = vector.broadcast %cst_65 : f32 to vector<256x128xf32>
    %77 = arith.maximumf %75, %76 : vector<256x128xf32>
    %cst_66 = arith.constant 0.000000e+00 : f32
    %78 = vector.broadcast %cst_66 : f32 to vector<18x18x128xf32>
    %c0_67 = arith.constant 0 : index
    %c0_68 = arith.constant 0 : index
    %c0_69 = arith.constant 0 : index
    %79 = vector.load %arg9[%c0_67, %c0_68, %c0_69] : memref<18x18x128xf32, #tpu.memory_space<vmem>>, vector<18x18x128xf32>
    tpu.vector_store %arg9[%c0_67, %c0_68, %c0_69], %78 {strides = array<i32>} : memref<18x18x128xf32, #tpu.memory_space<vmem>>, vector<18x18x128xf32>,
    %80 = vector.shape_cast %77 : vector<256x128xf32> to vector<16x16x128xf32>
    %c1_70 = arith.constant 1 : index
    %c1_71 = arith.constant 1 : index
    %c0_72 = arith.constant 0 : index
    %81 = vector.load %arg9[%c1_70, %c1_71, %c0_72] : memref<18x18x128xf32, #tpu.memory_space<vmem>>, vector<16x16x128xf32>
    tpu.vector_store %arg9[%c1_70, %c1_71, %c0_72], %80 {strides = array<i32>} : memref<18x18x128xf32, #tpu.memory_space<vmem>>, vector<16x16x128xf32>,
    %cst_73 = arith.constant 0.000000e+00 : f32
    %82 = vector.broadcast %cst_73 : f32 to vector<256x128xf32>
    %c0_74 = arith.constant 0 : index
    %c0_75 = arith.constant 0 : index
    %c0_76 = arith.constant 0 : index
    %83 = vector.load %arg9[%c0_74, %c0_75, %c0_76] : memref<18x18x128xf32, #tpu.memory_space<vmem>>, vector<16x16x128xf32>
    %84 = vector.shape_cast %83 : vector<16x16x128xf32> to vector<256x128xf32>
    %85 = arith.truncf %84 : vector<256x128xf32> to vector<256x128xbf16>
    %c0_77 = arith.constant 0 : index
    %c0_78 = arith.constant 0 : index
    %c0_79 = arith.constant 0 : index
    %86 = vector.load %arg4[%c0_77, %c0_78, %c0_79] : memref<9x128x128xbf16, #tpu.memory_space<vmem>>, vector<1x128x128xbf16>
    %87 = vector.shape_cast %86 : vector<1x128x128xbf16> to vector<128x128xbf16>
    %cst_80 = arith.constant dense<0.000000e+00> : vector<256x128xf32>
    %88 = tpu.matmul %85, %87, %cst_80 {dimension_numbers = #tpu.dot_dimension_numbers<[1], [0], [0], [1], [0, 0, 1, 1], [], []>} : vector<256x128xbf16>, vector<128x128xbf16>, vector<256x128xf32> -> vector<256x128xf32>
    %89 = arith.addf %82, %88 : vector<256x128xf32>
    %c0_81 = arith.constant 0 : index
    %c1_82 = arith.constant 1 : index
    %c0_83 = arith.constant 0 : index
    %90 = vector.load %arg9[%c0_81, %c1_82, %c0_83] : memref<18x18x128xf32, #tpu.memory_space<vmem>>, vector<16x16x128xf32>
    %91 = vector.shape_cast %90 : vector<16x16x128xf32> to vector<256x128xf32>
    %92 = arith.truncf %91 : vector<256x128xf32> to vector<256x128xbf16>
    %c1_84 = arith.constant 1 : index
    %c0_85 = arith.constant 0 : index
    %c0_86 = arith.constant 0 : index
    %93 = vector.load %arg4[%c1_84, %c0_85, %c0_86] : memref<9x128x128xbf16, #tpu.memory_space<vmem>>, vector<1x128x128xbf16>
    %94 = vector.shape_cast %93 : vector<1x128x128xbf16> to vector<128x128xbf16>
    %cst_87 = arith.constant dense<0.000000e+00> : vector<256x128xf32>
    %95 = tpu.matmul %92, %94, %cst_87 {dimension_numbers = #tpu.dot_dimension_numbers<[1], [0], [0], [1], [0, 0, 1, 1], [], []>} : vector<256x128xbf16>, vector<128x128xbf16>, vector<256x128xf32> -> vector<256x128xf32>
    %96 = arith.addf %89, %95 : vector<256x128xf32>
    %c0_88 = arith.constant 0 : index
    %c2_89 = arith.constant 2 : index
    %c0_90 = arith.constant 0 : index
    %97 = vector.load %arg9[%c0_88, %c2_89, %c0_90] : memref<18x18x128xf32, #tpu.memory_space<vmem>>, vector<16x16x128xf32>
    %98 = vector.shape_cast %97 : vector<16x16x128xf32> to vector<256x128xf32>
    %99 = arith.truncf %98 : vector<256x128xf32> to vector<256x128xbf16>
    %c2_91 = arith.constant 2 : index
    %c0_92 = arith.constant 0 : index
    %c0_93 = arith.constant 0 : index
    %100 = vector.load %arg4[%c2_91, %c0_92, %c0_93] : memref<9x128x128xbf16, #tpu.memory_space<vmem>>, vector<1x128x128xbf16>
    %101 = vector.shape_cast %100 : vector<1x128x128xbf16> to vector<128x128xbf16>
    %cst_94 = arith.constant dense<0.000000e+00> : vector<256x128xf32>
    %102 = tpu.matmul %99, %101, %cst_94 {dimension_numbers = #tpu.dot_dimension_numbers<[1], [0], [0], [1], [0, 0, 1, 1], [], []>} : vector<256x128xbf16>, vector<128x128xbf16>, vector<256x128xf32> -> vector<256x128xf32>
    %103 = arith.addf %96, %102 : vector<256x128xf32>
    %c1_95 = arith.constant 1 : index
    %c0_96 = arith.constant 0 : index
    %c0_97 = arith.constant 0 : index
    %104 = vector.load %arg9[%c1_95, %c0_96, %c0_97] : memref<18x18x128xf32, #tpu.memory_space<vmem>>, vector<16x16x128xf32>
    %105 = vector.shape_cast %104 : vector<16x16x128xf32> to vector<256x128xf32>
    %106 = arith.truncf %105 : vector<256x128xf32> to vector<256x128xbf16>
    %c3_98 = arith.constant 3 : index
    %c0_99 = arith.constant 0 : index
    %c0_100 = arith.constant 0 : index
    %107 = vector.load %arg4[%c3_98, %c0_99, %c0_100] : memref<9x128x128xbf16, #tpu.memory_space<vmem>>, vector<1x128x128xbf16>
    %108 = vector.shape_cast %107 : vector<1x128x128xbf16> to vector<128x128xbf16>
    %cst_101 = arith.constant dense<0.000000e+00> : vector<256x128xf32>
    %109 = tpu.matmul %106, %108, %cst_101 {dimension_numbers = #tpu.dot_dimension_numbers<[1], [0], [0], [1], [0, 0, 1, 1], [], []>} : vector<256x128xbf16>, vector<128x128xbf16>, vector<256x128xf32> -> vector<256x128xf32>
    %110 = arith.addf %103, %109 : vector<256x128xf32>
    %c1_102 = arith.constant 1 : index
    %c1_103 = arith.constant 1 : index
    %c0_104 = arith.constant 0 : index
    %111 = vector.load %arg9[%c1_102, %c1_103, %c0_104] : memref<18x18x128xf32, #tpu.memory_space<vmem>>, vector<16x16x128xf32>
    %112 = vector.shape_cast %111 : vector<16x16x128xf32> to vector<256x128xf32>
    %113 = arith.truncf %112 : vector<256x128xf32> to vector<256x128xbf16>
    %c4_105 = arith.constant 4 : index
    %c0_106 = arith.constant 0 : index
    %c0_107 = arith.constant 0 : index
    %114 = vector.load %arg4[%c4_105, %c0_106, %c0_107] : memref<9x128x128xbf16, #tpu.memory_space<vmem>>, vector<1x128x128xbf16>
    %115 = vector.shape_cast %114 : vector<1x128x128xbf16> to vector<128x128xbf16>
    %cst_108 = arith.constant dense<0.000000e+00> : vector<256x128xf32>
    %116 = tpu.matmul %113, %115, %cst_108 {dimension_numbers = #tpu.dot_dimension_numbers<[1], [0], [0], [1], [0, 0, 1, 1], [], []>} : vector<256x128xbf16>, vector<128x128xbf16>, vector<256x128xf32> -> vector<256x128xf32>
    %117 = arith.addf %110, %116 : vector<256x128xf32>
    %c1_109 = arith.constant 1 : index
    %c2_110 = arith.constant 2 : index
    %c0_111 = arith.constant 0 : index
    %118 = vector.load %arg9[%c1_109, %c2_110, %c0_111] : memref<18x18x128xf32, #tpu.memory_space<vmem>>, vector<16x16x128xf32>
    %119 = vector.shape_cast %118 : vector<16x16x128xf32> to vector<256x128xf32>
    %120 = arith.truncf %119 : vector<256x128xf32> to vector<256x128xbf16>
    %c5_112 = arith.constant 5 : index
    %c0_113 = arith.constant 0 : index
    %c0_114 = arith.constant 0 : index
    %121 = vector.load %arg4[%c5_112, %c0_113, %c0_114] : memref<9x128x128xbf16, #tpu.memory_space<vmem>>, vector<1x128x128xbf16>
    %122 = vector.shape_cast %121 : vector<1x128x128xbf16> to vector<128x128xbf16>
    %cst_115 = arith.constant dense<0.000000e+00> : vector<256x128xf32>
    %123 = tpu.matmul %120, %122, %cst_115 {dimension_numbers = #tpu.dot_dimension_numbers<[1], [0], [0], [1], [0, 0, 1, 1], [], []>} : vector<256x128xbf16>, vector<128x128xbf16>, vector<256x128xf32> -> vector<256x128xf32>
    %124 = arith.addf %117, %123 : vector<256x128xf32>
    %c2_116 = arith.constant 2 : index
    %c0_117 = arith.constant 0 : index
    %c0_118 = arith.constant 0 : index
    %125 = vector.load %arg9[%c2_116, %c0_117, %c0_118] : memref<18x18x128xf32, #tpu.memory_space<vmem>>, vector<16x16x128xf32>
    %126 = vector.shape_cast %125 : vector<16x16x128xf32> to vector<256x128xf32>
    %127 = arith.truncf %126 : vector<256x128xf32> to vector<256x128xbf16>
    %c6_119 = arith.constant 6 : index
    %c0_120 = arith.constant 0 : index
    %c0_121 = arith.constant 0 : index
    %128 = vector.load %arg4[%c6_119, %c0_120, %c0_121] : memref<9x128x128xbf16, #tpu.memory_space<vmem>>, vector<1x128x128xbf16>
    %129 = vector.shape_cast %128 : vector<1x128x128xbf16> to vector<128x128xbf16>
    %cst_122 = arith.constant dense<0.000000e+00> : vector<256x128xf32>
    %130 = tpu.matmul %127, %129, %cst_122 {dimension_numbers = #tpu.dot_dimension_numbers<[1], [0], [0], [1], [0, 0, 1, 1], [], []>} : vector<256x128xbf16>, vector<128x128xbf16>, vector<256x128xf32> -> vector<256x128xf32>
    %131 = arith.addf %124, %130 : vector<256x128xf32>
    %c2_123 = arith.constant 2 : index
    %c1_124 = arith.constant 1 : index
    %c0_125 = arith.constant 0 : index
    %132 = vector.load %arg9[%c2_123, %c1_124, %c0_125] : memref<18x18x128xf32, #tpu.memory_space<vmem>>, vector<16x16x128xf32>
    %133 = vector.shape_cast %132 : vector<16x16x128xf32> to vector<256x128xf32>
    %134 = arith.truncf %133 : vector<256x128xf32> to vector<256x128xbf16>
    %c7_126 = arith.constant 7 : index
    %c0_127 = arith.constant 0 : index
    %c0_128 = arith.constant 0 : index
    %135 = vector.load %arg4[%c7_126, %c0_127, %c0_128] : memref<9x128x128xbf16, #tpu.memory_space<vmem>>, vector<1x128x128xbf16>
    %136 = vector.shape_cast %135 : vector<1x128x128xbf16> to vector<128x128xbf16>
    %cst_129 = arith.constant dense<0.000000e+00> : vector<256x128xf32>
    %137 = tpu.matmul %134, %136, %cst_129 {dimension_numbers = #tpu.dot_dimension_numbers<[1], [0], [0], [1], [0, 0, 1, 1], [], []>} : vector<256x128xbf16>, vector<128x128xbf16>, vector<256x128xf32> -> vector<256x128xf32>
    %138 = arith.addf %131, %137 : vector<256x128xf32>
    %c2_130 = arith.constant 2 : index
    %c2_131 = arith.constant 2 : index
    %c0_132 = arith.constant 0 : index
    %139 = vector.load %arg9[%c2_130, %c2_131, %c0_132] : memref<18x18x128xf32, #tpu.memory_space<vmem>>, vector<16x16x128xf32>
    %140 = vector.shape_cast %139 : vector<16x16x128xf32> to vector<256x128xf32>
    %141 = arith.truncf %140 : vector<256x128xf32> to vector<256x128xbf16>
    %c8_133 = arith.constant 8 : index
    %c0_134 = arith.constant 0 : index
    %c0_135 = arith.constant 0 : index
    %142 = vector.load %arg4[%c8_133, %c0_134, %c0_135] : memref<9x128x128xbf16, #tpu.memory_space<vmem>>, vector<1x128x128xbf16>
    %143 = vector.shape_cast %142 : vector<1x128x128xbf16> to vector<128x128xbf16>
    %cst_136 = arith.constant dense<0.000000e+00> : vector<256x128xf32>
    %144 = tpu.matmul %141, %143, %cst_136 {dimension_numbers = #tpu.dot_dimension_numbers<[1], [0], [0], [1], [0, 0, 1, 1], [], []>} : vector<256x128xbf16>, vector<128x128xbf16>, vector<256x128xf32> -> vector<256x128xf32>
    %145 = arith.addf %138, %144 : vector<256x128xf32>
    %c0_137 = arith.constant 0 : index
    %c0_138 = arith.constant 0 : index
    %146 = vector.load %arg5[%c0_137, %c0_138] : memref<1x128xf32, #tpu.memory_space<vmem>>, vector<1x128xf32>
    %147 = vector.broadcast %146 : vector<1x128xf32> to vector<256x128xf32>
    %148 = arith.addf %145, %147 : vector<256x128xf32>
    %cst_139 = arith.constant 0.000000e+00 : f32
    %149 = vector.broadcast %cst_139 : f32 to vector<256x128xf32>
    %150 = arith.maximumf %148, %149 : vector<256x128xf32>
    %cst_140 = arith.constant 0.000000e+00 : f32
    %151 = vector.broadcast %cst_140 : f32 to vector<18x18x128xf32>
    %c0_141 = arith.constant 0 : index
    %c0_142 = arith.constant 0 : index
    %c0_143 = arith.constant 0 : index
    %152 = vector.load %arg10[%c0_141, %c0_142, %c0_143] : memref<18x18x128xf32, #tpu.memory_space<vmem>>, vector<18x18x128xf32>
    tpu.vector_store %arg10[%c0_141, %c0_142, %c0_143], %151 {strides = array<i32>} : memref<18x18x128xf32, #tpu.memory_space<vmem>>, vector<18x18x128xf32>,
    %153 = vector.shape_cast %150 : vector<256x128xf32> to vector<16x16x128xf32>
    %c1_144 = arith.constant 1 : index
    %c1_145 = arith.constant 1 : index
    %c0_146 = arith.constant 0 : index
    %154 = vector.load %arg10[%c1_144, %c1_145, %c0_146] : memref<18x18x128xf32, #tpu.memory_space<vmem>>, vector<16x16x128xf32>
    tpu.vector_store %arg10[%c1_144, %c1_145, %c0_146], %153 {strides = array<i32>} : memref<18x18x128xf32, #tpu.memory_space<vmem>>, vector<16x16x128xf32>,
    %cst_147 = arith.constant 0.000000e+00 : f32
    %155 = vector.broadcast %cst_147 : f32 to vector<256x128xf32>
    %c0_148 = arith.constant 0 : index
    %c0_149 = arith.constant 0 : index
    %c0_150 = arith.constant 0 : index
    %156 = vector.load %arg10[%c0_148, %c0_149, %c0_150] : memref<18x18x128xf32, #tpu.memory_space<vmem>>, vector<16x16x128xf32>
    %157 = vector.shape_cast %156 : vector<16x16x128xf32> to vector<256x128xf32>
    %158 = arith.truncf %157 : vector<256x128xf32> to vector<256x128xbf16>
    %c0_151 = arith.constant 0 : index
    %c0_152 = arith.constant 0 : index
    %c0_153 = arith.constant 0 : index
    %159 = vector.load %arg6[%c0_151, %c0_152, %c0_153] : memref<9x128x128xbf16, #tpu.memory_space<vmem>>, vector<1x128x128xbf16>
    %160 = vector.shape_cast %159 : vector<1x128x128xbf16> to vector<128x128xbf16>
    %cst_154 = arith.constant dense<0.000000e+00> : vector<256x128xf32>
    %161 = tpu.matmul %158, %160, %cst_154 {dimension_numbers = #tpu.dot_dimension_numbers<[1], [0], [0], [1], [0, 0, 1, 1], [], []>} : vector<256x128xbf16>, vector<128x128xbf16>, vector<256x128xf32> -> vector<256x128xf32>
    %162 = arith.addf %155, %161 : vector<256x128xf32>
    %c0_155 = arith.constant 0 : index
    %c1_156 = arith.constant 1 : index
    %c0_157 = arith.constant 0 : index
    %163 = vector.load %arg10[%c0_155, %c1_156, %c0_157] : memref<18x18x128xf32, #tpu.memory_space<vmem>>, vector<16x16x128xf32>
    %164 = vector.shape_cast %163 : vector<16x16x128xf32> to vector<256x128xf32>
    %165 = arith.truncf %164 : vector<256x128xf32> to vector<256x128xbf16>
    %c1_158 = arith.constant 1 : index
    %c0_159 = arith.constant 0 : index
    %c0_160 = arith.constant 0 : index
    %166 = vector.load %arg6[%c1_158, %c0_159, %c0_160] : memref<9x128x128xbf16, #tpu.memory_space<vmem>>, vector<1x128x128xbf16>
    %167 = vector.shape_cast %166 : vector<1x128x128xbf16> to vector<128x128xbf16>
    %cst_161 = arith.constant dense<0.000000e+00> : vector<256x128xf32>
    %168 = tpu.matmul %165, %167, %cst_161 {dimension_numbers = #tpu.dot_dimension_numbers<[1], [0], [0], [1], [0, 0, 1, 1], [], []>} : vector<256x128xbf16>, vector<128x128xbf16>, vector<256x128xf32> -> vector<256x128xf32>
    %169 = arith.addf %162, %168 : vector<256x128xf32>
    %c0_162 = arith.constant 0 : index
    %c2_163 = arith.constant 2 : index
    %c0_164 = arith.constant 0 : index
    %170 = vector.load %arg10[%c0_162, %c2_163, %c0_164] : memref<18x18x128xf32, #tpu.memory_space<vmem>>, vector<16x16x128xf32>
    %171 = vector.shape_cast %170 : vector<16x16x128xf32> to vector<256x128xf32>
    %172 = arith.truncf %171 : vector<256x128xf32> to vector<256x128xbf16>
    %c2_165 = arith.constant 2 : index
    %c0_166 = arith.constant 0 : index
    %c0_167 = arith.constant 0 : index
    %173 = vector.load %arg6[%c2_165, %c0_166, %c0_167] : memref<9x128x128xbf16, #tpu.memory_space<vmem>>, vector<1x128x128xbf16>
    %174 = vector.shape_cast %173 : vector<1x128x128xbf16> to vector<128x128xbf16>
    %cst_168 = arith.constant dense<0.000000e+00> : vector<256x128xf32>
    %175 = tpu.matmul %172, %174, %cst_168 {dimension_numbers = #tpu.dot_dimension_numbers<[1], [0], [0], [1], [0, 0, 1, 1], [], []>} : vector<256x128xbf16>, vector<128x128xbf16>, vector<256x128xf32> -> vector<256x128xf32>
    %176 = arith.addf %169, %175 : vector<256x128xf32>
    %c1_169 = arith.constant 1 : index
    %c0_170 = arith.constant 0 : index
    %c0_171 = arith.constant 0 : index
    %177 = vector.load %arg10[%c1_169, %c0_170, %c0_171] : memref<18x18x128xf32, #tpu.memory_space<vmem>>, vector<16x16x128xf32>
    %178 = vector.shape_cast %177 : vector<16x16x128xf32> to vector<256x128xf32>
    %179 = arith.truncf %178 : vector<256x128xf32> to vector<256x128xbf16>
    %c3_172 = arith.constant 3 : index
    %c0_173 = arith.constant 0 : index
    %c0_174 = arith.constant 0 : index
    %180 = vector.load %arg6[%c3_172, %c0_173, %c0_174] : memref<9x128x128xbf16, #tpu.memory_space<vmem>>, vector<1x128x128xbf16>
    %181 = vector.shape_cast %180 : vector<1x128x128xbf16> to vector<128x128xbf16>
    %cst_175 = arith.constant dense<0.000000e+00> : vector<256x128xf32>
    %182 = tpu.matmul %179, %181, %cst_175 {dimension_numbers = #tpu.dot_dimension_numbers<[1], [0], [0], [1], [0, 0, 1, 1], [], []>} : vector<256x128xbf16>, vector<128x128xbf16>, vector<256x128xf32> -> vector<256x128xf32>
    %183 = arith.addf %176, %182 : vector<256x128xf32>
    %c1_176 = arith.constant 1 : index
    %c1_177 = arith.constant 1 : index
    %c0_178 = arith.constant 0 : index
    %184 = vector.load %arg10[%c1_176, %c1_177, %c0_178] : memref<18x18x128xf32, #tpu.memory_space<vmem>>, vector<16x16x128xf32>
    %185 = vector.shape_cast %184 : vector<16x16x128xf32> to vector<256x128xf32>
    %186 = arith.truncf %185 : vector<256x128xf32> to vector<256x128xbf16>
    %c4_179 = arith.constant 4 : index
    %c0_180 = arith.constant 0 : index
    %c0_181 = arith.constant 0 : index
    %187 = vector.load %arg6[%c4_179, %c0_180, %c0_181] : memref<9x128x128xbf16, #tpu.memory_space<vmem>>, vector<1x128x128xbf16>
    %188 = vector.shape_cast %187 : vector<1x128x128xbf16> to vector<128x128xbf16>
    %cst_182 = arith.constant dense<0.000000e+00> : vector<256x128xf32>
    %189 = tpu.matmul %186, %188, %cst_182 {dimension_numbers = #tpu.dot_dimension_numbers<[1], [0], [0], [1], [0, 0, 1, 1], [], []>} : vector<256x128xbf16>, vector<128x128xbf16>, vector<256x128xf32> -> vector<256x128xf32>
    %190 = arith.addf %183, %189 : vector<256x128xf32>
    %c1_183 = arith.constant 1 : index
    %c2_184 = arith.constant 2 : index
    %c0_185 = arith.constant 0 : index
    %191 = vector.load %arg10[%c1_183, %c2_184, %c0_185] : memref<18x18x128xf32, #tpu.memory_space<vmem>>, vector<16x16x128xf32>
    %192 = vector.shape_cast %191 : vector<16x16x128xf32> to vector<256x128xf32>
    %193 = arith.truncf %192 : vector<256x128xf32> to vector<256x128xbf16>
    %c5_186 = arith.constant 5 : index
    %c0_187 = arith.constant 0 : index
    %c0_188 = arith.constant 0 : index
    %194 = vector.load %arg6[%c5_186, %c0_187, %c0_188] : memref<9x128x128xbf16, #tpu.memory_space<vmem>>, vector<1x128x128xbf16>
    %195 = vector.shape_cast %194 : vector<1x128x128xbf16> to vector<128x128xbf16>
    %cst_189 = arith.constant dense<0.000000e+00> : vector<256x128xf32>
    %196 = tpu.matmul %193, %195, %cst_189 {dimension_numbers = #tpu.dot_dimension_numbers<[1], [0], [0], [1], [0, 0, 1, 1], [], []>} : vector<256x128xbf16>, vector<128x128xbf16>, vector<256x128xf32> -> vector<256x128xf32>
    %197 = arith.addf %190, %196 : vector<256x128xf32>
    %c2_190 = arith.constant 2 : index
    %c0_191 = arith.constant 0 : index
    %c0_192 = arith.constant 0 : index
    %198 = vector.load %arg10[%c2_190, %c0_191, %c0_192] : memref<18x18x128xf32, #tpu.memory_space<vmem>>, vector<16x16x128xf32>
    %199 = vector.shape_cast %198 : vector<16x16x128xf32> to vector<256x128xf32>
    %200 = arith.truncf %199 : vector<256x128xf32> to vector<256x128xbf16>
    %c6_193 = arith.constant 6 : index
    %c0_194 = arith.constant 0 : index
    %c0_195 = arith.constant 0 : index
    %201 = vector.load %arg6[%c6_193, %c0_194, %c0_195] : memref<9x128x128xbf16, #tpu.memory_space<vmem>>, vector<1x128x128xbf16>
    %202 = vector.shape_cast %201 : vector<1x128x128xbf16> to vector<128x128xbf16>
    %cst_196 = arith.constant dense<0.000000e+00> : vector<256x128xf32>
    %203 = tpu.matmul %200, %202, %cst_196 {dimension_numbers = #tpu.dot_dimension_numbers<[1], [0], [0], [1], [0, 0, 1, 1], [], []>} : vector<256x128xbf16>, vector<128x128xbf16>, vector<256x128xf32> -> vector<256x128xf32>
    %204 = arith.addf %197, %203 : vector<256x128xf32>
    %c2_197 = arith.constant 2 : index
    %c1_198 = arith.constant 1 : index
    %c0_199 = arith.constant 0 : index
    %205 = vector.load %arg10[%c2_197, %c1_198, %c0_199] : memref<18x18x128xf32, #tpu.memory_space<vmem>>, vector<16x16x128xf32>
    %206 = vector.shape_cast %205 : vector<16x16x128xf32> to vector<256x128xf32>
    %207 = arith.truncf %206 : vector<256x128xf32> to vector<256x128xbf16>
    %c7_200 = arith.constant 7 : index
    %c0_201 = arith.constant 0 : index
    %c0_202 = arith.constant 0 : index
    %208 = vector.load %arg6[%c7_200, %c0_201, %c0_202] : memref<9x128x128xbf16, #tpu.memory_space<vmem>>, vector<1x128x128xbf16>
    %209 = vector.shape_cast %208 : vector<1x128x128xbf16> to vector<128x128xbf16>
    %cst_203 = arith.constant dense<0.000000e+00> : vector<256x128xf32>
    %210 = tpu.matmul %207, %209, %cst_203 {dimension_numbers = #tpu.dot_dimension_numbers<[1], [0], [0], [1], [0, 0, 1, 1], [], []>} : vector<256x128xbf16>, vector<128x128xbf16>, vector<256x128xf32> -> vector<256x128xf32>
    %211 = arith.addf %204, %210 : vector<256x128xf32>
    %c2_204 = arith.constant 2 : index
    %c2_205 = arith.constant 2 : index
    %c0_206 = arith.constant 0 : index
    %212 = vector.load %arg10[%c2_204, %c2_205, %c0_206] : memref<18x18x128xf32, #tpu.memory_space<vmem>>, vector<16x16x128xf32>
    %213 = vector.shape_cast %212 : vector<16x16x128xf32> to vector<256x128xf32>
    %214 = arith.truncf %213 : vector<256x128xf32> to vector<256x128xbf16>
    %c8_207 = arith.constant 8 : index
    %c0_208 = arith.constant 0 : index
    %c0_209 = arith.constant 0 : index
    %215 = vector.load %arg6[%c8_207, %c0_208, %c0_209] : memref<9x128x128xbf16, #tpu.memory_space<vmem>>, vector<1x128x128xbf16>
    %216 = vector.shape_cast %215 : vector<1x128x128xbf16> to vector<128x128xbf16>
    %cst_210 = arith.constant dense<0.000000e+00> : vector<256x128xf32>
    %217 = tpu.matmul %214, %216, %cst_210 {dimension_numbers = #tpu.dot_dimension_numbers<[1], [0], [0], [1], [0, 0, 1, 1], [], []>} : vector<256x128xbf16>, vector<128x128xbf16>, vector<256x128xf32> -> vector<256x128xf32>
    %218 = arith.addf %211, %217 : vector<256x128xf32>
    %c1_211 = arith.constant 1 : index
    %c1_212 = arith.constant 1 : index
    %c0_213 = arith.constant 0 : index
    %219 = vector.load %arg9[%c1_211, %c1_212, %c0_213] : memref<18x18x128xf32, #tpu.memory_space<vmem>>, vector<16x16x128xf32>
    %220 = vector.shape_cast %219 : vector<16x16x128xf32> to vector<256x128xf32>
    %c0_214 = arith.constant 0 : index
    %c0_215 = arith.constant 0 : index
    %221 = vector.load %arg7[%c0_214, %c0_215] : memref<1x128xf32, #tpu.memory_space<vmem>>, vector<1x128xf32>
    %222 = vector.broadcast %221 : vector<1x128xf32> to vector<256x128xf32>
    %223 = arith.addf %218, %222 : vector<256x128xf32>
    %224 = arith.addf %223, %220 : vector<256x128xf32>
    %cst_216 = arith.constant 0.000000e+00 : f32
    %225 = vector.broadcast %cst_216 : f32 to vector<256x128xf32>
    %226 = arith.maximumf %224, %225 : vector<256x128xf32>
    %cst_217 = arith.constant dense<0.000000e+00> : vector<128xf32>
    %227 = vector.multi_reduction <add>, %226, %cst_217 [0] : vector<256x128xf32> to vector<128xf32>
    %228 = vector.shape_cast %227 : vector<128xf32> to vector<1x128xf32>
    %cst_218 = arith.constant 2.560000e+02 : f32
    %229 = vector.broadcast %cst_218 : f32 to vector<1x128xf32>
    %230 = arith.divf %228, %229 : vector<1x128xf32>
    %231 = vector.shape_cast %230 : vector<1x128xf32> to vector<1x1x128xf32>
    %c0_219 = arith.constant 0 : index
    %c0_220 = arith.constant 0 : index
    %c0_221 = arith.constant 0 : index
    %232 = vector.load %arg8[%c0_219, %c0_220, %c0_221] : memref<1x1x128xf32, #tpu.memory_space<vmem>>, vector<1x1x128xf32>
    tpu.vector_store %arg8[%c0_219, %c0_220, %c0_221], %231 {strides = array<i32>} : memref<1x1x128xf32, #tpu.memory_space<vmem>>, vector<1x1x128xf32>,
    return
  }
  func.func @transform_0(%arg0: i32) -> (i32, i32, i32, i32) {
    %c0_i32 = arith.constant 0 : i32
    %c0_i32_0 = arith.constant 0 : i32
    %c0_i32_1 = arith.constant 0 : i32
    %c0_i32_2 = arith.constant 0 : i32
    return %arg0, %c0_i32, %c0_i32_0, %c0_i32_1 : i32, i32, i32, i32
  }
  func.func @transform_1(%arg0: i32) -> (i32, i32, i32) {
    %c0_i32 = arith.constant 0 : i32
    %c0_i32_0 = arith.constant 0 : i32
    %c0_i32_1 = arith.constant 0 : i32
    %c0_i32_2 = arith.constant 0 : i32
    return %c0_i32, %c0_i32_0, %c0_i32_1 : i32, i32, i32
  }
  func.func @transform_2(%arg0: i32) -> (i32, i32) {
    %c0_i32 = arith.constant 0 : i32
    %c0_i32_0 = arith.constant 0 : i32
    %c0_i32_1 = arith.constant 0 : i32
    return %c0_i32, %c0_i32_0 : i32, i32
  }
  func.func @transform_3(%arg0: i32) -> (i32, i32, i32) {
    %c0_i32 = arith.constant 0 : i32
    %c0_i32_0 = arith.constant 0 : i32
    %c0_i32_1 = arith.constant 0 : i32
    %c0_i32_2 = arith.constant 0 : i32
    return %c0_i32, %c0_i32_0, %c0_i32_1 : i32, i32, i32
  }
  func.func @transform_4(%arg0: i32) -> (i32, i32) {
    %c0_i32 = arith.constant 0 : i32
    %c0_i32_0 = arith.constant 0 : i32
    %c0_i32_1 = arith.constant 0 : i32
    return %c0_i32, %c0_i32_0 : i32, i32
  }
  func.func @transform_5(%arg0: i32) -> (i32, i32, i32) {
    %c0_i32 = arith.constant 0 : i32
    %c0_i32_0 = arith.constant 0 : i32
    %c0_i32_1 = arith.constant 0 : i32
    %c0_i32_2 = arith.constant 0 : i32
    return %c0_i32, %c0_i32_0, %c0_i32_1 : i32, i32, i32
  }
  func.func @transform_6(%arg0: i32) -> (i32, i32) {
    %c0_i32 = arith.constant 0 : i32
    %c0_i32_0 = arith.constant 0 : i32
    %c0_i32_1 = arith.constant 0 : i32
    return %c0_i32, %c0_i32_0 : i32, i32
  }
  func.func @transform_7(%arg0: i32) -> (i32, i32, i32) {
    %c0_i32 = arith.constant 0 : i32
    %c0_i32_0 = arith.constant 0 : i32
    %c0_i32_1 = arith.constant 0 : i32
    return %arg0, %c0_i32, %c0_i32_0 : i32, i32, i32
  }
}

</mosaic_0001>

<bundles_post_ra>
// kernel: lightly_ssl_forward.1
= control target key start
LH: loop header
LB: loop body
LE: loop exit
PB: predicated region body
PF: predicated region fallthrough
CT: control target
= control target key end

     0   :  { %12 = vsyncpa [#allocation5], 0  ;;  %s15029_s0 = inlined_call_operand.vmem [shape: f32[2,18,18,8], index: 0, kind: input, shape index: {}]   ;;  %s15030_s1 = inlined_call_operand.vmem [shape: bf16[9,8,128], index: 1, kind: input, shape index: {}]   ;;  %s15031_s2 = inlined_call_operand.vmem [shape: f32[1,128], index: 2, kind: input, shape index: {}]   ;;  %s15032_s3 = inlined_call_operand.vmem [shape: bf16[9,128,128], index: 3, kind: input, shape index: {}]   ;;  %s15033_s4 = inlined_call_operand.vmem [shape: f32[1,128], index: 4, kind: input, shape index: {}]   ;;  %s15034_s5 = inlined_call_operand.vmem [shape: bf16[9,128,128], index: 5, kind: input, shape index: {}]   ;;  %s15035_s6 = inlined_call_operand.vmem [shape: f32[1,128], index: 6, kind: input, shape index: {}]   ;;  %s15036_s7 = inlined_call_operand.hbm [shape: f32[2,1,128], index: 7, kind: output, shape index: {}]  }
   0x1   :  { %14 = vsyncpa [#allocation5 + $0x1], 0  ;;  %s11615_s24 = smov 0   ;;  %s11617_s25 = smov 0  }
   0x2   :  { %s11619_s26 = smov 0   ;;  %s11621_s27 = smov 0  }
   0x3 LB: > { %s11636_s28 = sadd.s32 4294967295, %s11570_s27   ;;  %s8801_s29 = sadd.s32 4294967294, %s11570_s27   ;;  %s11570_s27 = sphi %s11621_s27, %s15398_s27   ;;  %s11566_s26 = sphi %s11619_s26, %s15397_s26   ;;  %s11562_s25 = sphi %s11617_s25, %s15396_s25   ;;  %s11558_s24 = sphi %s11615_s24, %s15395_s24  }
   0x4   : > { %s11640_s30 = sadd.s32 1, %s11570_s27   ;;  %s179_s8 = sadd.s32 1, %s11566_s26 }
   0x5   : > { %s176_s9 = ssub.s32 %s11570_s27, %s11640_s30  ;;  %p189_p0 = scmp.ne.s32.totalorder %s11566_s26, %s11562_s25 }
   0x6   : > { %p177_p1 = scmp.eq.s32.totalorder %s176_s9, 0  ;;  %p190_p2 = scmp.eq.s32.totalorder %s11636_s28, 1 }
   0x7   : > { %p195_p3 = scmp.ne.s32.totalorder %s11562_s25, %s11558_s24  ;;  %p196_p4 = scmp.eq.s32.totalorder %s8801_s29, 1 }
   0x8   : > { %s11651_s10 = scalar_select %p177_p1, %s11566_s26, %s179_s8  }
   0x9   : > { %p11653_p5 = por %p190_p2, %p189_p0  ;;  %p11657_p6 = por %p196_p4, %p195_p3 }
   0xa   : > { %p8804_p7 = scmp.ge.s32.totalorder %s11570_s27, 1  ;;  %p240_p8 = scmp.lt.s32.totalorder %s11570_s27, 3 }
   0xc   : > { %p241_p9 = pnand %p8804_p7, %p240_p8 }
   0xe   : > { %244 = sbr.rel (%p241_p9) target bundleno = 1517 (0x5ed), region = 48 }
  0x13   : > { %v8806_v0 = vld [vmem:[%s15030_s1 + $0x4] sm:$0xf]  ;;  %vm425_vm0 = vcmask 1043456   ;;  %p271_p10 = scmp.lt.s32.totalorder %s11636_s28, 1  ;;  %v325_v2 = vld [vmem:[%s15030_s1] sm:$0xf] }
  0x14   : > { %11314 = vmatprep.subr.msk.bf16.mxu1 %vm425_vm0, %v8806_v0  ;;  %11313 = vmatprep.subr.msk.bf16.mxu0 %vm425_vm0, %v8806_v0  ;;  %v427_v1 = vsel %vm425_vm0, %v8806_v0, 0  ;;  %v8839_v3 = vld [vmem:[%s15030_s1 + $0x8] sm:$0xf]  ;;  %vm376_vm1 = vcmask 64512   ;;  %v639_v18 = vsel %vm425_vm0, %v325_v2, 0  ;;  %s269_s22 = sand.u32 1, %s11562_s25  }
  0x15   : > { %11312 = vmatpush3.bf16.msra.mxu1 %v427_v1  ;;  %10142 = vmatpush3.bf16.msra.mxu0 %v427_v1  ;;  %s272_s19 = scalar_select %p271_p10, %s11636_s28, 1  ;;  %v901_v15 = vsel %vm425_vm0, %v8839_v3, 0  ;;  %v11716_v24 = vld [vmem:[%s15030_s1 + $0xc] sm:$0xf]  ;;  %v11721_v25 = vld [vmem:[%s15030_s1 + $0x10] sm:$0xf] }
  0x16   : > { %11315 = vmatprep.subr.msk.bf16.mxu1 %vm425_vm0, %v325_v2  ;;  %11316 = vmatprep.subr.msk.bf16.mxu0 %vm425_vm0, %v8839_v3  ;;  %s9553_s29 = sshll.u32 %s11636_s28, 4  ;;  %s270_s8 = scalar_lea.vmem [#allocation4], %s269_s22 }
  0x17   : > { %s11323_s20 = smul.u32 432, %s272_s19  ;;  %s8746_s9 = sshll.u32 %s270_s8, 4  ;;  %s8747_s9 = int_to_ptr.vmem [resolvable:$true] %s8746_s9 }
  0x18   : > { %s8744_s15 = scalar_lea.hbm %s15036_s7, %s9553_s29  ;;  %s8734_s16 = scalar_lea.sflag [#allocation5], %s269_s22 }
  0x19   : > { %s11682_s23 = scalar_lea.vmem %s15029_s0, %s11323_s20  ;;  %s11574_s17 = smov [#allocation4]  }
  0x1a   : > { %v326_v4 = vld [vmem:[%s11682_s23 + $0x1] sm:$0xff]  ;;  %v327_v5 = vld [vmem:[%s11682_s23 + $0x9] sm:$0xff]  ;;  %v328_v9 = vld [vmem:[%s11682_s23 + $0x19] sm:$0xff]  ;;  %s11514_s18 = sshll.u32 %s11574_s17, 4  ;;  %s11515_s18 = int_to_ptr.vmem [resolvable:$false] %s11514_s18 }
  0x1b   : > { %v342_v6 = vld [vmem:[%s11682_s23 + $0xc1] sm:$0xff]  ;;  %v358_v7 = vpack.c.bf16 %v327_v5, %v326_v4  ;;  %v343_v8 = vld [vmem:[%s11682_s23 + $0xc9] sm:$0xff]  ;;  %v344_v13 = vld [vmem:[%s11682_s23 + $0xd9] sm:$0xff]  ;;  %s11516_s28 = scalar_lea.vmem %s11515_s18, 32  ;;  %p11517_p0 = scmp.lt.s32.totalorder %s8747_s9, %s11515_s18 }
  0x1c   : > { %v329_v10 = vld [vmem:[%s11682_s23 + $0x21] sm:$0xff]  ;;  %v11690_v11 = vpack.c.bf16 %v343_v8, %v342_v6  ;;  %v330_v16 = vld [vmem:[%s11682_s23 + $0x31] sm:$0xff]  ;;  %v331_v19 = vld [vmem:[%s11682_s23 + $0x39] sm:$0xff]  ;;  %v1196_v8 = vsel %vm425_vm0, %v11716_v24, 0 }
  0x1d   : > { %v11692_v12 = vpack.c.bf16 %v329_v10, %v328_v9  ;;  %v345_v14 = vld [vmem:[%s11682_s23 + $0xe1] sm:$0xff]  ;;  %10143 = vmatprep.mubr.msk.bf16.mxu0 %vm376_vm1, %v358_v7  ;;  %v346_v20 = vld [vmem:[%s11682_s23 + $0xf1] sm:$0xff]  ;;  %v347_v21 = vld [vmem:[%s11682_s23 + $0xf9] sm:$0xff]  ;;  %v11709_v22 = vpack.c.bf16 %v331_v19, %v330_v16  ;;  %v1490_v9 = vsel %vm425_vm0, %v11721_v25, 0 }
  0x1e   : > { %v11699_v17 = vpack.c.bf16 %v345_v14, %v344_v13  ;;  %10159 = vmatprep.mubr.msk.bf16.mxu1 %vm376_vm1, %v11690_v11  ;;  %v11711_v23 = vpack.c.bf16 %v347_v21, %v346_v20  ;;  %v332_v26 = vld [vmem:[%s11682_s23 + $0x49] sm:$0xff]  ;;  %v333_v27 = vld [vmem:[%s11682_s23 + $0x51] sm:$0xff]  ;;  %v334_v30 = vld [vmem:[%s11682_s23 + $0x61] sm:$0xff] }
  0x1f   : > { %10144 = vmatmul.mubr.msk.bf16.vlgmr.msra.gmra.mxu0 %vm376_vm1, %v11692_v12  ;;  %v348_v28 = vld [vmem:[%s11682_s23 + $0x109] sm:$0xff]  ;;  %v349_v29 = vld [vmem:[%s11682_s23 + $0x111] sm:$0xff]  ;;  %v350_v32 = vld [vmem:[%s11682_s23 + $0x121] sm:$0xff]  ;;  %v11739_v34 = vpack.c.bf16 %v333_v27, %v332_v26 }
  0x20   : > { %10160 = vmatmul.mubr.msk.bf16.vlgmr.msra.gmra.mxu1 %vm376_vm1, %v11699_v17  ;;  %10210 = vmatpush3.bf16.msra.mxu0 %v901_v15  ;;  %v335_v31 = vld [vmem:[%s11682_s23 + $0x69] sm:$0xff]  ;;  %v11743_v35 = vpack.c.bf16 %v349_v29, %v348_v28  ;;  %v336_v38 = vld [vmem:[%s11682_s23 + $0x79] sm:$0xff]  ;;  %v337_v39 = vld [vmem:[%s11682_s23 + $0x81] sm:$0xff] }
  0x21   : > { %10176 = vmatpush3.bf16.msra.mxu1 %v639_v18  ;;  %10147 = vmatprep.mubr.msk.bf16.mxu0 %vm376_vm1, %v11709_v22  ;;  %v351_v33 = vld [vmem:[%s11682_s23 + $0x129] sm:$0xff]  ;;  %v11745_v36 = vpack.c.bf16 %v335_v31, %v334_v30  ;;  %v352_v40 = vld [vmem:[%s11682_s23 + $0x139] sm:$0xff]  ;;  %v353_v41 = vld [vmem:[%s11682_s23 + $0x141] sm:$0xff]  ;;  %v11765_v46 = vpack.c.bf16 %v337_v39, %v336_v38 }
  0x22   : > { %10163 = vmatprep.mubr.msk.bf16.mxu1 %vm376_vm1, %v11711_v23  ;;  %11317 = vmatprep.subr.msk.bf16.mxu1 %vm425_vm0, %v11716_v24  ;;  %v11747_v37 = vpack.c.bf16 %v351_v33, %v350_v32  ;;  %v338_v42 = vld [vmem:[%s11682_s23 + $0x91] sm:$0xff]  ;;  %v339_v43 = vld [vmem:[%s11682_s23 + $0x99] sm:$0xff]  ;;  %v11767_v47 = vpack.c.bf16 %v353_v41, %v352_v40  ;;  %v340_v50 = vld [vmem:[%s11682_s23 + $0xa9] sm:$0xff] }
  0x23   : > { %11318 = vmatprep.subr.msk.bf16.mxu0 %vm425_vm0, %v11721_v25  ;;  %v354_v44 = vld [vmem:[%s11682_s23 + $0x151] sm:$0xff]  ;;  %v355_v45 = vld [vmem:[%s11682_s23 + $0x159] sm:$0xff]  ;;  %v11769_v48 = vpack.c.bf16 %v339_v43, %v338_v42  ;;  %v356_v52 = vld [vmem:[%s11682_s23 + $0x169] sm:$0xff] }
  0x24   : > { %v11771_v49 = vpack.c.bf16 %v355_v45, %v354_v44  ;;  %v341_v51 = vld [vmem:[%s11682_s23 + $0xb1] sm:$0xff]  ;;  %v802_v54 = vld [vmem:[%s11682_s23 + $0x2] sm:$0xff]  ;;  %v804_v62 = vld [vmem:[%s11682_s23 + $0x1a] sm:$0xff] }
  0x25   : > { %v357_v53 = vld [vmem:[%s11682_s23 + $0x171] sm:$0xff]  ;;  %v277_v56 = vld [vmem:[%s11682_s23] sm:$0xff]  ;;  %v278_v57 = vld [vmem:[%s11682_s23 + $0x8] sm:$0xff]  ;;  %v11789_v58 = vpack.c.bf16 %v341_v51, %v340_v50 }
  0x26   : > { %v803_v55 = vld [vmem:[%s11682_s23 + $0xa] sm:$0xff]  ;;  %v11791_v59 = vpack.c.bf16 %v357_v53, %v356_v52  ;;  %v309_v61 = vpack.c.bf16 %v278_v57, %v277_v56  ;;  %v805_v63 = vld [vmem:[%s11682_s23 + $0x22] sm:$0xff]  ;;  %v279_v0 = vld [vmem:[%s11682_s23 + $0x18] sm:$0xff] }
  0x27   : > { %10148 = vmatmul.mubr.msk.bf16.gmra.mxu0 %vm376_vm1, %v11739_v34  ;;  %v834_v60 = vpack.c.bf16 %v803_v55, %v802_v54  ;;  %v280_v1 = vld [vmem:[%s11682_s23 + $0x20] sm:$0xff]  ;;  %v281_v2 = vld [vmem:[%s11682_s23 + $0x30] sm:$0xff]  ;;  %v282_v3 = vld [vmem:[%s11682_s23 + $0x38] sm:$0xff]  ;;  %v11805_v4 = vpack.c.bf16 %v805_v63, %v804_v62 }
  0x28   : > { %10164 = vmatmul.mubr.msk.bf16.gmra.mxu1 %vm376_vm1, %v11743_v35  ;;  %10151 = vmatprep.mubr.msk.bf16.mxu0 %vm376_vm1, %v11745_v36  ;;  %v806_v5 = vld [vmem:[%s11682_s23 + $0x32] sm:$0xff]  ;;  %v807_v6 = vld [vmem:[%s11682_s23 + $0x3a] sm:$0xff]  ;;  %v11809_v7 = vpack.c.bf16 %v280_v1, %v279_v0  ;;  %v11815_v10 = vpack.c.bf16 %v282_v3, %v281_v2  ;;  %v808_v15 = vld [vmem:[%s11682_s23 + $0x4a] sm:$0xff] }
  0x29   : > { %10167 = vmatprep.mubr.msk.bf16.mxu1 %vm376_vm1, %v11747_v37  ;;  %v11820_v13 = vld [vmem:[%s15030_s1 + $0x14] sm:$0xf]  ;;  %v11822_v14 = vpack.c.bf16 %v807_v6, %v806_v5  ;;  %v11829_v18 = vld [vmem:[%s15030_s1 + $0x18] sm:$0xf]  ;;  %v283_v19 = vld [vmem:[%s11682_s23 + $0x48] sm:$0xff] }
  0x2a   : > { %v809_v16 = vld [vmem:[%s11682_s23 + $0x52] sm:$0xff]  ;;  %v285_v21 = vld [vmem:[%s11682_s23 + $0x60] sm:$0xff]  ;;  %v811_v25 = vld [vmem:[%s11682_s23 + $0x6a] sm:$0xff] }
  0x2b   : > { %v284_v20 = vld [vmem:[%s11682_s23 + $0x50] sm:$0xff]  ;;  %v810_v24 = vld [vmem:[%s11682_s23 + $0x62] sm:$0xff]  ;;  %v11847_v27 = vpack.c.bf16 %v809_v16, %v808_v15  ;;  %v812_v31 = vld [vmem:[%s11682_s23 + $0x7a] sm:$0xff] }
  0x2c   : > { %v286_v26 = vld [vmem:[%s11682_s23 + $0x68] sm:$0xff]  ;;  %v11851_v28 = vpack.c.bf16 %v284_v20, %v283_v19  ;;  %v11853_v29 = vpack.c.bf16 %v811_v25, %v810_v24  ;;  %v287_v33 = vld [vmem:[%s11682_s23 + $0x78] sm:$0xff]  ;;  %v288_v38 = vld [vmem:[%s11682_s23 + $0x80] sm:$0xff] }
  0x2d   : > { %v11855_v30 = vpack.c.bf16 %v286_v26, %v285_v21  ;;  %v813_v32 = vld [vmem:[%s11682_s23 + $0x82] sm:$0xff]  ;;  %v814_v39 = vld [vmem:[%s11682_s23 + $0x92] sm:$0xff]  ;;  %v815_v40 = vld [vmem:[%s11682_s23 + $0x9a] sm:$0xff]  ;;  %v11875_v44 = vpack.c.bf16 %v288_v38, %v287_v33 }
  0x2e   : > { %v289_v41 = vld [vmem:[%s11682_s23 + $0x90] sm:$0xff]  ;;  %v290_v42 = vld [vmem:[%s11682_s23 + $0x98] sm:$0xff]  ;;  %v11873_v43 = vpack.c.bf16 %v813_v32, %v812_v31  ;;  %v11877_v45 = vpack.c.bf16 %v815_v40, %v814_v39  ;;  %v291_v53 = vld [vmem:[%s11682_s23 + $0xa8] sm:$0xff] }
  0x2f   : > { %10152 = vmatmul.mubr.msk.bf16.gmra.mxu0 %vm376_vm1, %v11765_v46  ;;  %v11879_v50 = vpack.c.bf16 %v290_v42, %v289_v41  ;;  %v816_v51 = vld [vmem:[%s11682_s23 + $0xaa] sm:$0xff]  ;;  %v817_v52 = vld [vmem:[%s11682_s23 + $0xb2] sm:$0xff]  ;;  %v818_v55 = vld [vmem:[%s11682_s23 + $0xc2] sm:$0xff] }
  0x30   : > { %10168 = vmatmul.mubr.msk.bf16.gmra.mxu1 %vm376_vm1, %v11767_v47  ;;  %10155 = vmatprep.mubr.msk.bf16.mxu0 %vm376_vm1, %v11769_v48  ;;  %v292_v54 = vld [vmem:[%s11682_s23 + $0xb0] sm:$0xff]  ;;  %v293_v57 = vld [vmem:[%s11682_s23 + $0xc0] sm:$0xff]  ;;  %v295_v3 = vld [vmem:[%s11682_s23 + $0xd8] sm:$0xff] }
  0x31   : > { %10171 = vmatprep.mubr.msk.bf16.mxu1 %vm376_vm1, %v11771_v49  ;;  %v819_v56 = vld [vmem:[%s11682_s23 + $0xca] sm:$0xff]  ;;  %v11899_v62 = vpack.c.bf16 %v292_v54, %v291_v53  ;;  %v820_v1 = vld [vmem:[%s11682_s23 + $0xda] sm:$0xff]  ;;  %v821_v2 = vld [vmem:[%s11682_s23 + $0xe2] sm:$0xff] }
  0x32   : > { %v11901_v63 = vpack.c.bf16 %v819_v56, %v818_v55  ;;  %v296_v5 = vld [vmem:[%s11682_s23 + $0xe0] sm:$0xff]  ;;  %v822_v6 = vld [vmem:[%s11682_s23 + $0xf2] sm:$0xff]  ;;  %v11921_v16 = vpack.c.bf16 %v821_v2, %v820_v1  ;;  %v824_v24 = vld [vmem:[%s11682_s23 + $0x10a] sm:$0xff] }
  0x33   : > { %v298_v15 = vld [vmem:[%s11682_s23 + $0xf8] sm:$0xff]  ;;  %v11923_v19 = vpack.c.bf16 %v296_v5, %v295_v3  ;;  %v299_v26 = vld [vmem:[%s11682_s23 + $0x108] sm:$0xff]  ;;  %v300_v31 = vld [vmem:[%s11682_s23 + $0x110] sm:$0xff] }
  0x34   : > { %v825_v25 = vld [vmem:[%s11682_s23 + $0x112] sm:$0xff]  ;;  %v826_v32 = vld [vmem:[%s11682_s23 + $0x122] sm:$0xff]  ;;  %v827_v33 = vld [vmem:[%s11682_s23 + $0x12a] sm:$0xff]  ;;  %v11947_v41 = vpack.c.bf16 %v300_v31, %v299_v26  ;;  %v1784_v31 = vsel %vm425_vm0, %v11820_v13, 0 }
  0x35   : > { %v301_v38 = vld [vmem:[%s11682_s23 + $0x120] sm:$0xff]  ;;  %v302_v39 = vld [vmem:[%s11682_s23 + $0x128] sm:$0xff]  ;;  %v11945_v40 = vpack.c.bf16 %v825_v25, %v824_v24  ;;  %v11949_v42 = vpack.c.bf16 %v827_v33, %v826_v32  ;;  %v303_v54 = vld [vmem:[%s11682_s23 + $0x138] sm:$0xff]  ;;  %v2079_v32 = vsel %vm425_vm0, %v11829_v18, 0 }
  0x36   : > { %v829_v53 = vld [vmem:[%s11682_s23 + $0x142] sm:$0xff]  ;;  %v830_v56 = vld [vmem:[%s11682_s23 + $0x152] sm:$0xff]  ;;  %v9084_v33 = vld [vmem:[%s15030_s1 + $0x1c] sm:$0xf] }
  0x37   : > { %10156 = vmatmul.mubr.msk.bf16.gmra.mxu0 %vm376_vm1, %v11789_v58  ;;  %v304_v55 = vld [vmem:[%s11682_s23 + $0x140] sm:$0xff]  ;;  %v306_v1 = vld [vmem:[%s11682_s23 + $0x158] sm:$0xff]  ;;  %v308_v24 = vld [vmem:[%s11682_s23 + $0x170] sm:$0xff] }
  0x38   : > { %10172 = vmatmul.mubr.msk.bf16.gmra.mxu1 %vm376_vm1, %v11791_v59  ;;  %10211 = vmatprep.mubr.msk.bf16.mxu0 %vm376_vm1, %v834_v60  ;;  %v294_v60 = vld [vmem:[%s11682_s23 + $0xc8] sm:$0xff]  ;;  %v11971_v3 = vpack.c.bf16 %v304_v55, %v303_v54 }
  0x39   : > { %10177 = vmatprep.mubr.msk.bf16.mxu1 %vm376_vm1, %v309_v61  ;;  %v11897_v61 = vpack.c.bf16 %v817_v52, %v816_v51  ;;  %v11903_v0 = vpack.c.bf16 %v294_v60, %v293_v57  ;;  %v11951_v51 = vpack.c.bf16 %v302_v39, %v301_v38  ;;  %v828_v52 = vld [vmem:[%s11682_s23 + $0x13a] sm:$0xff]  ;;  %v305_v60 = vld [vmem:[%s11682_s23 + $0x150] sm:$0xff]  ;;  %v8984_v54 = vld [vmem:[%s11682_s23 + $0x182] sm:$0xff] }
  0x3a   : > { %v831_v57 = vld [vmem:[%s11682_s23 + $0x15a] sm:$0xff]  ;;  %v11969_v2 = vpack.c.bf16 %v829_v53, %v828_v52  ;;  %v8985_v55 = vld [vmem:[%s11682_s23 + $0x18a] sm:$0xff] }
  0x3b   : > { %v11973_v5 = vpack.c.bf16 %v831_v57, %v830_v56  ;;  %v9034_v52 = vld [vmem:[%s11682_s23 + $0x1a0] sm:$0xff] }
  0x3f   : > { %10212 = vmatmul.mubr.msk.bf16.vlgmr.msra.gmra.mxu0 %vm376_vm1, %v11805_v4 }
  0x40   : > { %10178 = vmatmul.mubr.msk.bf16.vlgmr.msra.gmra.mxu1 %vm376_vm1, %v11809_v7  ;;  %10278 = vmatpush3.bf16.msra.mxu0 %v1490_v9  ;;  %v297_v9 = vld [vmem:[%s11682_s23 + $0xf0] sm:$0xff] }
  0x41   : > { %10244 = vmatpush3.bf16.msra.mxu1 %v1196_v8  ;;  %10181 = vmatprep.mubr.msk.bf16.mxu1 %vm376_vm1, %v11815_v10  ;;  %v823_v8 = vld [vmem:[%s11682_s23 + $0xfa] sm:$0xff]  ;;  %v11927_v21 = vpack.c.bf16 %v298_v15, %v297_v9  ;;  %v833_v9 = vld [vmem:[%s11682_s23 + $0x172] sm:$0xff]  ;;  %v307_v15 = vld [vmem:[%s11682_s23 + $0x168] sm:$0xff] }
  0x42   : > { %10215 = vmatprep.mubr.msk.bf16.mxu0 %vm376_vm1, %v11822_v14  ;;  %11319 = vmatprep.subr.msk.bf16.mxu1 %vm425_vm0, %v11820_v13  ;;  %v11925_v20 = vpack.c.bf16 %v823_v8, %v822_v6  ;;  %v11975_v6 = vpack.c.bf16 %v306_v1, %v305_v60  ;;  %v832_v8 = vld [vmem:[%s11682_s23 + $0x16a] sm:$0xff]  ;;  %v11991_v26 = vpack.c.bf16 %v308_v24, %v307_v15  ;;  %v9133_v13 = vld [vmem:[%s15030_s1 + $0x20] sm:$0xf] }
  0x43   : > { %11320 = vmatprep.subr.msk.bf16.mxu0 %vm425_vm0, %v11829_v18  ;;  %v11989_v25 = vpack.c.bf16 %v833_v9, %v832_v8 }
  0x47   : > { %10216 = vmatmul.mubr.msk.bf16.gmra.mxu0 %vm376_vm1, %v11847_v27 }
  0x48   : > { %10182 = vmatmul.mubr.msk.bf16.gmra.mxu1 %vm376_vm1, %v11851_v28  ;;  %10219 = vmatprep.mubr.msk.bf16.mxu0 %vm376_vm1, %v11853_v29 }
  0x49   : > { %10185 = vmatprep.mubr.msk.bf16.mxu1 %vm376_vm1, %v11855_v30 }
  0x4f   : > { %10220 = vmatmul.mubr.msk.bf16.gmra.mxu0 %vm376_vm1, %v11873_v43 }
  0x50   : > { %10186 = vmatmul.mubr.msk.bf16.gmra.mxu1 %vm376_vm1, %v11875_v44  ;;  %10223 = vmatprep.mubr.msk.bf16.mxu0 %vm376_vm1, %v11877_v45 }
  0x51   : > { %10189 = vmatprep.mubr.msk.bf16.mxu1 %vm376_vm1, %v11879_v50 }
  0x57   : > { %10224 = vmatmul.mubr.msk.bf16.gmra.mxu0 %vm376_vm1, %v11897_v61 }
  0x58   : > { %10190 = vmatmul.mubr.msk.bf16.gmra.mxu1 %vm376_vm1, %v11899_v62  ;;  %10227 = vmatprep.mubr.msk.bf16.mxu0 %vm376_vm1, %v11901_v63 }
  0x59   : > { %10193 = vmatprep.mubr.msk.bf16.mxu1 %vm376_vm1, %v11903_v0 }
  0x5f   : > { %10228 = vmatmul.mubr.msk.bf16.gmra.mxu0 %vm376_vm1, %v11921_v16 }
  0x60   : > { %10194 = vmatmul.mubr.msk.bf16.gmra.mxu1 %vm376_vm1, %v11923_v19  ;;  %10231 = vmatprep.mubr.msk.bf16.mxu0 %vm376_vm1, %v11925_v20 }
  0x61   : > { %10197 = vmatprep.mubr.msk.bf16.mxu1 %vm376_vm1, %v11927_v21 }
  0x67   : > { %10232 = vmatmul.mubr.msk.bf16.gmra.mxu0 %vm376_vm1, %v11945_v40 }
  0x68   : > { %10198 = vmatmul.mubr.msk.bf16.gmra.mxu1 %vm376_vm1, %v11947_v41  ;;  %10235 = vmatprep.mubr.msk.bf16.mxu0 %vm376_vm1, %v11949_v42 }
  0x69   : > { %10201 = vmatprep.mubr.msk.bf16.mxu1 %vm376_vm1, %v11951_v51 }
  0x6f   : > { %10236 = vmatmul.mubr.msk.bf16.gmra.mxu0 %vm376_vm1, %v11969_v2 }
  0x70   : > { %10202 = vmatmul.mubr.msk.bf16.gmra.mxu1 %vm376_vm1, %v11971_v3  ;;  %10239 = vmatprep.mubr.msk.bf16.mxu0 %vm376_vm1, %v11973_v5 }
  0x71   : > { %10205 = vmatprep.mubr.msk.bf16.mxu1 %vm376_vm1, %v11975_v6 }
  0x77   : > { %10240 = vmatmul.mubr.msk.bf16.gmra.mxu0 %vm376_vm1, %v11989_v25 }
  0x78   : > { %10206 = vmatmul.mubr.msk.bf16.gmra.mxu1 %vm376_vm1, %v11991_v26  ;;  %10279 = vmatprep.mubr.msk.bf16.mxu0 %vm376_vm1, %v11692_v12  ;;  %v8936_v12 = vld [vmem:[%s11682_s23 + $0x189] sm:$0xff] }
  0x79   : > { %10245 = vmatprep.mubr.msk.bf16.mxu1 %vm376_vm1, %v11809_v7 }
  0x7f   : > { %10280 = vmatmul.mubr.msk.bf16.vlgmr.msra.gmra.mxu0 %vm376_vm1, %v11709_v22 }
  0x80   : > { %10246 = vmatmul.mubr.msk.bf16.vlgmr.msra.gmra.mxu1 %vm376_vm1, %v11815_v10  ;;  %10346 = vmatpush3.bf16.msra.mxu0 %v2079_v32 }
  0x81   : > { %10312 = vmatpush3.bf16.msra.mxu1 %v1784_v31  ;;  %10249 = vmatprep.mubr.msk.bf16.mxu1 %vm376_vm1, %v11851_v28 }
  0x82   : > { %10283 = vmatprep.mubr.msk.bf16.mxu0 %vm376_vm1, %v11739_v34  ;;  %11321 = vmatprep.subr.msk.bf16.mxu1 %vm425_vm0, %v9084_v33 }
  0x83   : > { %11322 = vmatprep.subr.msk.bf16.mxu0 %vm425_vm0, %v9133_v13 }
  0x87   : > { %10284 = vmatmul.mubr.msk.bf16.gmra.mxu0 %vm376_vm1, %v11745_v36 }
  0x88   : > { %10250 = vmatmul.mubr.msk.bf16.gmra.mxu1 %vm376_vm1, %v11855_v30  ;;  %10287 = vmatprep.mubr.msk.bf16.mxu0 %vm376_vm1, %v11765_v46 }
  0x89   : > { %10253 = vmatprep.mubr.msk.bf16.mxu1 %vm376_vm1, %v11875_v44 }
  0x8f   : > { %10288 = vmatmul.mubr.msk.bf16.gmra.mxu0 %vm376_vm1, %v11769_v48  ;;  %v2373_v48 = vsel %vm425_vm0, %v9084_v33, 0 }
  0x90   : > { %10254 = vmatmul.mubr.msk.bf16.gmra.mxu1 %vm376_vm1, %v11879_v50  ;;  %10291 = vmatprep.mubr.msk.bf16.mxu0 %vm376_vm1, %v11789_v58 }
  0x91   : > { %10257 = vmatprep.mubr.msk.bf16.mxu1 %vm376_vm1, %v11899_v62 }
  0x97   : > { %10292 = vmatmul.mubr.msk.bf16.gmra.mxu0 %vm376_vm1, %v11690_v11  ;;  %v8935_v11 = vld [vmem:[%s11682_s23 + $0x181] sm:$0xff] }
  0x98   : > { %10258 = vmatmul.mubr.msk.bf16.gmra.mxu1 %vm376_vm1, %v11903_v0  ;;  %10295 = vmatprep.mubr.msk.bf16.mxu0 %vm376_vm1, %v11699_v17  ;;  %v8886_v17 = vld [vmem:[%s11682_s23 + $0x180] sm:$0xff] }
  0x99   : > { %10261 = vmatprep.mubr.msk.bf16.mxu1 %vm376_vm1, %v11923_v19 }
  0x9f   : > { %10296 = vmatmul.mubr.msk.bf16.gmra.mxu0 %vm376_vm1, %v11711_v23  ;;  %v8887_v23 = vld [vmem:[%s11682_s23 + $0x188] sm:$0xff] }
  0xa0   : > { %10262 = vmatmul.mubr.msk.bf16.gmra.mxu1 %vm376_vm1, %v11927_v21  ;;  %10299 = vmatprep.mubr.msk.bf16.mxu0 %vm376_vm1, %v11743_v35  ;;  %v12073_v35 = vpack.c.bf16 %v8936_v12, %v8935_v11 }
  0xa1   : > { %10265 = vmatprep.mubr.msk.bf16.mxu1 %vm376_vm1, %v11947_v41 }
  0xa7   : > { %10300 = vmatmul.mubr.msk.bf16.gmra.mxu0 %vm376_vm1, %v11747_v37  ;;  %v1144_v37 = vpack.c.bf16 %v8887_v23, %v8886_v17  ;;  %v9060_v17 = vld [vmem:[%s11682_s23 + $0x91] sm:$0xff]  ;;  %v9061_v23 = vld [vmem:[%s11682_s23 + $0x99] sm:$0xff] }
  0xa8   : > { %10266 = vmatmul.mubr.msk.bf16.gmra.mxu1 %vm376_vm1, %v11951_v51  ;;  %10303 = vmatprep.mubr.msk.bf16.mxu0 %vm376_vm1, %v11767_v47  ;;  %v2667_v47 = vsel %vm425_vm0, %v9133_v13, 0 }
  0xa9   : > { %10269 = vmatprep.mubr.msk.bf16.mxu1 %vm376_vm1, %v11971_v3 }
  0xaf   : > { %10304 = vmatmul.mubr.msk.bf16.gmra.mxu0 %vm376_vm1, %v11771_v49 }
  0xb0   : > { %10270 = vmatmul.mubr.msk.bf16.gmra.mxu1 %vm376_vm1, %v11975_v6  ;;  %10307 = vmatprep.mubr.msk.bf16.mxu0 %vm376_vm1, %v11791_v59 }
  0xb1   : > { %10273 = vmatprep.mubr.msk.bf16.mxu1 %vm376_vm1, %v11991_v26 }
  0xb7   : > { %10308 = vmatmul.mubr.msk.bf16.gmra.mxu0 %vm376_vm1, %v12073_v35 }
  0xb8   : > { %10274 = vmatmul.mubr.msk.bf16.gmra.mxu1 %vm376_vm1, %v1144_v37  ;;  %10347 = vmatprep.mubr.msk.bf16.mxu0 %vm376_vm1, %v11815_v10 }
  0xb9   : > { %10313 = vmatprep.mubr.msk.bf16.mxu1 %vm376_vm1, %v11805_v4 }
  0xbf   : > { %10348 = vmatmul.mubr.msk.bf16.vlgmr.msra.gmra.mxu0 %vm376_vm1, %v11851_v28 }
  0xc0   : > { %10314 = vmatmul.mubr.msk.bf16.vlgmr.msra.gmra.mxu1 %vm376_vm1, %v11822_v14  ;;  %10414 = vmatpush3.bf16.msra.mxu0 %v2667_v47 }
  0xc1   : > { %10380 = vmatpush3.bf16.msra.mxu1 %v2373_v48  ;;  %10317 = vmatprep.mubr.msk.bf16.mxu1 %vm376_vm1, %v11847_v27 }
  0xc2   : > { %10351 = vmatprep.mubr.msk.bf16.mxu0 %vm376_vm1, %v11855_v30 }
  0xc7   : > { %10352 = vmatmul.mubr.msk.bf16.gmra.mxu0 %vm376_vm1, %v11875_v44 }
  0xc8   : > { %10318 = vmatmul.mubr.msk.bf16.gmra.mxu1 %vm376_vm1, %v11853_v29  ;;  %10355 = vmatprep.mubr.msk.bf16.mxu0 %vm376_vm1, %v11879_v50 }
  0xc9   : > { %10321 = vmatprep.mubr.msk.bf16.mxu1 %vm376_vm1, %v11873_v43 }
  0xcf   : > { %10356 = vmatmul.mubr.msk.bf16.gmra.mxu0 %vm376_vm1, %v11899_v62 }
  0xd0   : > { %10322 = vmatmul.mubr.msk.bf16.gmra.mxu1 %vm376_vm1, %v11877_v45  ;;  %10359 = vmatprep.mubr.msk.bf16.mxu0 %vm376_vm1, %v11903_v0 }
  0xd1   : > { %10325 = vmatprep.mubr.msk.bf16.mxu1 %vm376_vm1, %v11897_v61 }
  0xd7   : > { %10360 = vmatmul.mubr.msk.bf16.gmra.mxu0 %vm376_vm1, %v11923_v19 }
  0xd8   : > { %10326 = vmatmul.mubr.msk.bf16.gmra.mxu1 %vm376_vm1, %v11901_v63  ;;  %10363 = vmatprep.mubr.msk.bf16.mxu0 %vm376_vm1, %v11927_v21 }
  0xd9   : > { %10329 = vmatprep.mubr.msk.bf16.mxu1 %vm376_vm1, %v11921_v16 }
  0xdf   : > { %v10145_v49 = vpop.f32.mrf.mxu0  ;;  %10364 = vmatmul.mubr.msk.bf16.gmra.mxu0 %vm376_vm1, %v11947_v41 }
  0xe0   : > { %v12118_v58 = vpop.f32.mrf.mxu1  ;;  %10330 = vmatmul.mubr.msk.bf16.gmra.mxu1 %vm376_vm1, %v11925_v20  ;;  %10367 = vmatprep.mubr.msk.bf16.mxu0 %vm376_vm1, %v11951_v51  ;;  %v9033_v51 = vld [vmem:[%s11682_s23 + $0x198] sm:$0xff] }
  0xe1   : > { %v463_v59 = vpop.f32.mrf.mxu0  ;;  %10333 = vmatprep.mubr.msk.bf16.mxu1 %vm376_vm1, %v11945_v40  ;;  %v2027_v60 = vpack.c.bf16 %v9034_v52, %v9033_v51 }
  0xe2   : > { %v12126_v4 = vpop.f32.mrf.mxu1 }
  0xe3   : > { %v10146_v7 = vpop.f32.mrf.mxu0 }
  0xe4   : > { %v12128_v10 = vpop.f32.mrf.mxu1 }
  0xe5   : > { %v12130_v18 = vpop.f32.mrf.mxu0 }
  0xe6   : > { %v12132_v28 = vpop.f32.mrf.mxu1 }
  0xe7   : > { %v12134_v30 = vpop.f32.mrf.mxu0  ;;  %10368 = vmatmul.mubr.msk.bf16.gmra.mxu0 %vm376_vm1, %v11971_v3  ;;  %v12181_v3 = vpack.c.bf16 %v8985_v55, %v8984_v54 }
  0xe8   : > { %v12138_v44 = vpop.f32.mrf.mxu1  ;;  %10334 = vmatmul.mubr.msk.bf16.gmra.mxu1 %vm376_vm1, %v11949_v42  ;;  %10371 = vmatprep.mubr.msk.bf16.mxu0 %vm376_vm1, %v11975_v6 }
  0xe9   : > { %v12144_v50 = vpop.f32.mrf.mxu0  ;;  %10337 = vmatprep.mubr.msk.bf16.mxu1 %vm376_vm1, %v11969_v2 }
  0xea   : > { %v12148_v62 = vpop.f32.mrf.mxu1 }
  0xeb   : > { %v12150_v0 = vpop.f32.mrf.mxu0 }
  0xec   : > { %v12152_v19 = vpop.f32.mrf.mxu1 }
  0xed   : > { %v12154_v21 = vpop.f32.mrf.mxu0 }
  0xee   : > { %v12156_v38 = vpop.f32.mrf.mxu1 }
  0xef   : > { %v12158_v39 = vpop.f32.mrf.mxu0  ;;  %10372 = vmatmul.mubr.msk.bf16.gmra.mxu0 %vm376_vm1, %v11991_v26 }
  0xf0   : > { %v12162_v41 = vpop.f32.mrf.mxu1  ;;  %10338 = vmatmul.mubr.msk.bf16.gmra.mxu1 %vm376_vm1, %v11973_v5  ;;  %10375 = vmatprep.mubr.msk.bf16.mxu0 %vm376_vm1, %v1144_v37 }
  0xf1   : > { %v12169_v53 = vpop.f32.mrf.mxu0  ;;  %10341 = vmatprep.mubr.msk.bf16.mxu1 %vm376_vm1, %v11989_v25 }
  0xf2   : > { %v12175_v56 = vpop.f32.mrf.mxu1 }
  0xf3   : > { %v12177_v57 = vpop.f32.mrf.mxu0 }
  0xf4   : > { %v12179_v1 = vpop.f32.mrf.mxu1 }
  0xf5   : > { %v12183_v6 = vpop.f32.mrf.mxu0 }
  0xf6   : > { %v12185_v8 = vpop.f32.mrf.mxu1 }
  0xf7   : > { %v12187_v9 = vpop.f32.mrf.mxu0  ;;  %10376 = vmatmul.mubr.msk.bf16.gmra.mxu0 %vm376_vm1, %v2027_v60 }
  0xf8   : > { %v12190_v15 = vpop.f32.mrf.mxu1  ;;  %10342 = vmatmul.mubr.msk.bf16.gmra.mxu1 %vm376_vm1, %v12181_v3  ;;  %10415 = vmatprep.mubr.msk.bf16.mxu0 %vm376_vm1, %v11822_v14 }
  0xf9   : > { %v12196_v24 = vpop.f32.mrf.mxu0  ;;  %10381 = vmatprep.mubr.msk.bf16.mxu1 %vm376_vm1, %v11709_v22 }
  0xfa   : > { %v12200_v25 = vpop.f32.mrf.mxu1 }
  0xfb   : > { %v12202_v26 = vpop.f32.mrf.mxu0 }
  0xfc   : > { %v12204_v31 = vpop.f32.mrf.mxu1 }
  0xfd   : > { %v12206_v32 = vpop.f32.mrf.mxu0 }
  0xfe   : > { %v12208_v33 = vpop.f32.mrf.mxu1 }
  0xff   : > { %v10213_v13 = vpop.f32.mrf.mxu0  ;;  %10416 = vmatmul.mubr.msk.bf16.vlgmr.msra.gmra.mxu0 %vm376_vm1, %v11847_v27 }
 0x100   : > { %v10179_v14 = vpop.f32.mrf.mxu1  ;;  %10382 = vmatmul.mubr.msk.bf16.vlgmr.msra.gmra.mxu1 %vm376_vm1, %v11739_v34  ;;  %10419 = vmatprep.mubr.msk.bf16.mxu0 %vm376_vm1, %v11853_v29  ;;  %v2310_v29 = vpack.c.bf16 %v9061_v23, %v9060_v17 }
 0x101   : > { %v684_v22 = vadd.f32 %v10179_v14, %v10145_v49  ;;  %v937_v11 = vpop.f32.mrf.mxu0  ;;  %10385 = vmatprep.mubr.msk.bf16.mxu1 %vm376_vm1, %v11745_v36  ;;  %v9062_v14 = vld [vmem:[%s11682_s23 + $0xa9] sm:$0xff] }
 0x102   : > { %v675_v12 = vpop.f32.mrf.mxu1 }
 0x103   : > { %v12220_v37 = vadd.f32 %v10213_v13, %v684_v22  ;;  %v676_v47 = vadd.f32 %v675_v12, %v463_v59  ;;  %v10214_v48 = vpop.f32.mrf.mxu0  ;;  %v9065_v12 = vld [vmem:[%s11682_s23 + $0xc9] sm:$0xff] }
 0x104   : > { %v10180_v27 = vpop.f32.mrf.mxu1 }
 0x105   : > { %v12222_v51 = vadd.f32 %v937_v11, %v676_v47  ;;  %v687_v34 = vadd.f32 %v10180_v27, %v10146_v7  ;;  %v940_v52 = vpop.f32.mrf.mxu0  ;;  %v9064_v11 = vld [vmem:[%s11682_s23 + $0xc1] sm:$0xff] }
 0x106   : > { %v678_v49 = vpop.f32.mrf.mxu1  ;;  %v2312_v27 = vpack.c.bf16 %v9065_v12, %v9064_v11 }
 0x107   : > { %v12224_v54 = vadd.f32 %v10214_v48, %v687_v34  ;;  %v679_v36 = vadd.f32 %v678_v49, %v12130_v18  ;;  %v10217_v55 = vpop.f32.mrf.mxu0  ;;  %10420 = vmatmul.mubr.msk.bf16.gmra.mxu0 %vm376_vm1, %v11873_v43  ;;  %v9063_v18 = vld [vmem:[%s11682_s23 + $0xb1] sm:$0xff] }
 0x108   : > { %v10183_v59 = vpop.f32.mrf.mxu1  ;;  %10386 = vmatmul.mubr.msk.bf16.gmra.mxu1 %vm376_vm1, %v11765_v46  ;;  %10423 = vmatprep.mubr.msk.bf16.mxu0 %vm376_vm1, %v11877_v45  ;;  %v2311_v47 = vpack.c.bf16 %v9063_v18, %v9062_v14  ;;  %v9069_v14 = vld [vmem:[%s11682_s23 + $0xf9] sm:$0xff] }
 0x109   : > { %v12233_v7 = vadd.f32 %v940_v52, %v679_v36  ;;  %v700_v60 = vadd.f32 %v10183_v59, %v12134_v30  ;;  %v953_v13 = vpop.f32.mrf.mxu0  ;;  %10389 = vmatprep.mubr.msk.bf16.mxu1 %vm376_vm1, %v2310_v29  ;;  %v9066_v59 = vld [vmem:[%s11682_s23 + $0xd9] sm:$0xff] }
 0x10a   : > { %v691_v22 = vpop.f32.mrf.mxu1 }
 0x10b   : > { %v12241_v43 = vadd.f32 %v10217_v55, %v700_v60  ;;  %v692_v17 = vadd.f32 %v691_v22, %v12144_v50  ;;  %v10218_v46 = vpop.f32.mrf.mxu0  ;;  %v9067_v60 = vld [vmem:[%s11682_s23 + $0xe1] sm:$0xff] }
 0x10c   : > { %v10184_v23 = vpop.f32.mrf.mxu1  ;;  %v2313_v12 = vpack.c.bf16 %v9067_v60, %v9066_v59 }
 0x10d   : > { %v12244_v45 = vadd.f32 %v953_v13, %v692_v17  ;;  %v703_v30 = vadd.f32 %v10184_v23, %v12150_v0  ;;  %v956_v48 = vpop.f32.mrf.mxu0  ;;  %v9068_v13 = vld [vmem:[%s11682_s23 + $0xf1] sm:$0xff] }
 0x10e   : > { %v694_v34 = vpop.f32.mrf.mxu1 }
 0x10f   : > { %v12247_v52 = vadd.f32 %v10218_v46, %v703_v30  ;;  %v695_v29 = vadd.f32 %v694_v34, %v12154_v21  ;;  %v10221_v49 = vpop.f32.mrf.mxu0  ;;  %10424 = vmatmul.mubr.msk.bf16.gmra.mxu0 %vm376_vm1, %v11897_v61  ;;  %v2314_v46 = vpack.c.bf16 %v9069_v14, %v9068_v13 }
 0x110   : > { %v10187_v50 = vpop.f32.mrf.mxu1  ;;  %10390 = vmatmul.mubr.msk.bf16.gmra.mxu1 %vm376_vm1, %v2311_v47  ;;  %10427 = vmatprep.mubr.msk.bf16.mxu0 %vm376_vm1, %v11901_v63 }
 0x111   : > { %v12255_v0 = vadd.f32 %v956_v48, %v695_v29  ;;  %v716_v36 = vadd.f32 %v10187_v50, %v12158_v39  ;;  %v969_v55 = vpop.f32.mrf.mxu0  ;;  %10393 = vmatprep.mubr.msk.bf16.mxu1 %vm376_vm1, %v2312_v27  ;;  %v9070_v29 = vld [vmem:[%s11682_s23 + $0x109] sm:$0xff]  ;;  %v9072_v50 = vld [vmem:[%s11682_s23 + $0x121] sm:$0xff] }
 0x112   : > { %v707_v21 = vpop.f32.mrf.mxu1 }
 0x113   : > { %v12263_v18 = vadd.f32 %v10221_v49, %v716_v36  ;;  %v708_v61 = vadd.f32 %v707_v21, %v12169_v53  ;;  %v10222_v22 = vpop.f32.mrf.mxu0  ;;  %v9071_v49 = vld [vmem:[%s11682_s23 + $0x111] sm:$0xff]  ;;  %v9073_v36 = vld [vmem:[%s11682_s23 + $0x129] sm:$0xff] }
 0x114   : > { %v10188_v11 = vpop.f32.mrf.mxu1  ;;  %v2315_v21 = vpack.c.bf16 %v9071_v49, %v9070_v29 }
 0x115   : > { %v12266_v63 = vadd.f32 %v969_v55, %v708_v61  ;;  %v719_v39 = vadd.f32 %v10188_v11, %v12177_v57  ;;  %v972_v17 = vpop.f32.mrf.mxu0  ;;  %v2316_v61 = vpack.c.bf16 %v9073_v36, %v9072_v50 }
 0x116   : > { %v710_v23 = vpop.f32.mrf.mxu1 }
 0x117   : > { %v12269_v47 = vadd.f32 %v10222_v22, %v719_v39  ;;  %v711_v30 = vadd.f32 %v710_v23, %v12183_v6  ;;  %v10225_v48 = vpop.f32.mrf.mxu0  ;;  %10428 = vmatmul.mubr.msk.bf16.gmra.mxu0 %vm376_vm1, %v11921_v16  ;;  %v9074_v23 = vld [vmem:[%s11682_s23 + $0x139] sm:$0xff] }
 0x118   : > { %v10191_v53 = vpop.f32.mrf.mxu1  ;;  %10394 = vmatmul.mubr.msk.bf16.gmra.mxu1 %vm376_vm1, %v2313_v12  ;;  %10431 = vmatprep.mubr.msk.bf16.mxu0 %vm376_vm1, %v11925_v20  ;;  %v11364_v20 = vld [vmem:[%s15032_s3 + $0x78] sm:$0xff]  }
 0x119   : > { %v12277_v57 = vadd.f32 %v972_v17, %v711_v30  ;;  %v732_v27 = vadd.f32 %v10191_v53, %v12187_v9  ;;  %v985_v34 = vpop.f32.mrf.mxu0  ;;  %10397 = vmatprep.mubr.msk.bf16.mxu1 %vm376_vm1, %v2314_v46  ;;  %10447 = vmatprep.subr.bf16.mxu1 %v11364_v20  ;;  %v9075_v30 = vld [vmem:[%s11682_s23 + $0x141] sm:$0xff]  ;;  %v9077_v53 = vld [vmem:[%s11682_s23 + $0x159] sm:$0xff] }
 0x11a   : > { %v723_v6 = vpop.f32.mrf.mxu1  ;;  %10448 = vmatpush3.bf16.msra.mxu1 %v11364_v20 }
 0x11b   : > { %v12285_v55 = vadd.f32 %v10225_v48, %v732_v27  ;;  %v724_v16 = vadd.f32 %v723_v6, %v12196_v24  ;;  %v10226_v59 = vpop.f32.mrf.mxu0  ;;  %v9076_v48 = vld [vmem:[%s11682_s23 + $0x151] sm:$0xff] }
 0x11c   : > { %v10192_v60 = vpop.f32.mrf.mxu1  ;;  %v2318_v36 = vpack.c.bf16 %v9077_v53, %v9076_v48 }
 0x11d   : > { %v12291_v9 = vadd.f32 %v985_v34, %v724_v16  ;;  %v735_v13 = vadd.f32 %v10192_v60, %v12202_v26  ;;  %v988_v14 = vpop.f32.mrf.mxu0  ;;  %v9128_v60 = vld [vmem:[%s11682_s23 + $0x172] sm:$0xff] }
 0x11e   : > { %v726_v22 = vpop.f32.mrf.mxu1 }
 0x11f   : > { %v12294_v24 = vadd.f32 %v10226_v59, %v735_v13  ;;  %v727_v11 = vadd.f32 %v726_v22, %v12206_v32  ;;  %v10229_v12 = vpop.f32.mrf.mxu0  ;;  %10432 = vmatmul.mubr.msk.bf16.gmra.mxu0 %vm376_vm1, %v11945_v40 }
 0x120   : > { %v10195_v39 = vpop.f32.mrf.mxu1  ;;  %10398 = vmatmul.mubr.msk.bf16.gmra.mxu1 %vm376_vm1, %v2315_v21  ;;  %10435 = vmatprep.mubr.msk.bf16.mxu0 %vm376_vm1, %v11949_v42  ;;  %v11365_v42 = vld [vmem:[%s15032_s3 + $0x70] sm:$0xff]  }
 0x121   : > { %v12302_v26 = vadd.f32 %v988_v14, %v727_v11  ;;  %v748_v17 = vadd.f32 %v10195_v39, %v12118_v58  ;;  %v1001_v46 = vpop.f32.mrf.mxu0  ;;  %10401 = vmatprep.mubr.msk.bf16.mxu1 %vm376_vm1, %v2316_v61  ;;  %v2317_v58 = vpack.c.bf16 %v9075_v30, %v9074_v23  ;;  %10449 = vmatprep.subr.bf16.mxu1 %v11365_v42  ;;  %v9078_v14 = vld [vmem:[%s11682_s23 + $0x169] sm:$0xff]  ;;  %v9079_v61 = vld [vmem:[%s11682_s23 + $0x171] sm:$0xff] }
 0x122   : > { %v739_v32 = vpop.f32.mrf.mxu1  ;;  %10450 = vmatpush3.bf16.msra.mxu1 %v11365_v42 }
 0x123   : > { %v12310_v27 = vadd.f32 %v10229_v12, %v748_v17  ;;  %v740_v40 = vadd.f32 %v739_v32, %v12126_v4  ;;  %v10230_v34 = vpop.f32.mrf.mxu0 }
 0x124   : > { %v10196_v29 = vpop.f32.mrf.mxu1 }
 0x125   : > { %v12316_v49 = vadd.f32 %v1001_v46, %v740_v40  ;;  %v751_v6 = vadd.f32 %v10196_v29, %v12128_v10  ;;  %v12319_v50 = vpop.f32.mrf.mxu0  ;;  %v9127_v10 = vld [vmem:[%s11682_s23 + $0x16a] sm:$0xff]  ;;  %v9132_v40 = vld [vmem:[%s11682_s23 + $0x1a2] sm:$0xff]  ;;  %v9082_v29 = vld [vmem:[%s11682_s23 + $0x199] sm:$0xff] }
 0x126   : > { %v12321_v4 = vpop.f32.mrf.mxu1  ;;  %v2613_v39 = vpack.c.bf16 %v9128_v60, %v9127_v10 }
 0x127   : > { %v12323_v16 = vadd.f32 %v10230_v34, %v751_v6  ;;  %v10233_v59 = vpop.f32.mrf.mxu0  ;;  %10436 = vmatmul.mubr.msk.bf16.gmra.mxu0 %vm376_vm1, %v11969_v2 }
 0x128   : > { %v10199_v20 = vpop.f32.mrf.mxu1  ;;  %10402 = vmatmul.mubr.msk.bf16.gmra.mxu1 %vm376_vm1, %v2317_v58  ;;  %10439 = vmatprep.mubr.msk.bf16.mxu0 %vm376_vm1, %v11973_v5  ;;  %v11366_v5 = vld [vmem:[%s15032_s3 + $0x68] sm:$0xff]  }
 0x129   : > { %v764_v21 = vadd.f32 %v10199_v20, %v12138_v44  ;;  %v1017_v13 = vpop.f32.mrf.mxu0  ;;  %10405 = vmatprep.mubr.msk.bf16.mxu1 %vm376_vm1, %v2318_v36  ;;  %v2319_v44 = vpack.c.bf16 %v9079_v61, %v9078_v14  ;;  %10451 = vmatprep.subr.bf16.mxu1 %v11366_v5  ;;  %v9083_v58 = vld [vmem:[%s11682_s23 + $0x1a1] sm:$0xff] }
 0x12a   : > { %v755_v22 = vpop.f32.mrf.mxu1  ;;  %10452 = vmatpush3.bf16.msra.mxu1 %v11366_v5 }
 0x12b   : > { %v12336_v11 = vadd.f32 %v10233_v59, %v764_v21  ;;  %v756_v2 = vadd.f32 %v755_v22, %v12148_v62  ;;  %v10234_v12 = vpop.f32.mrf.mxu0  ;;  %v2321_v21 = vpack.c.bf16 %v9083_v58, %v9082_v29  ;;  %v11369_v22 = vld [vmem:[%s15032_s3 + $0x38] sm:$0xff]   ;;  %v11372_v29 = vld [vmem:[%s15032_s3 + $0x28] sm:$0xff]  }
 0x12c   : > { %v10200_v17 = vpop.f32.mrf.mxu1  ;;  %10495 = vmatprep.subr.bf16.mxu0 %v11369_v22 }
 0x12d   : > { %v12342_v46 = vadd.f32 %v1017_v13, %v756_v2  ;;  %v767_v23 = vadd.f32 %v10200_v17, %v12152_v19  ;;  %v12345_v30 = vpop.f32.mrf.mxu0  ;;  %v9131_v19 = vld [vmem:[%s11682_s23 + $0x19a] sm:$0xff]  ;;  %10496 = vmatpush3.bf16.msra.mxu0 %v11369_v22  ;;  %s11510_s23 = scalar_lea.vmem %s8747_s9, 16 }
 0x12e   : > { %v12347_v62 = vpop.f32.mrf.mxu1  ;;  %v2615_v10 = vpack.c.bf16 %v9132_v40, %v9131_v19  ;;  %p11511_p11 = scmp.ne.s32.totalorder %s8747_s9, %s11510_s23  ;;  %p11518_p1 = scmp.lt.s32.totalorder %s11516_s28, %s11510_s23 }
 0x12f   : > { %v12349_v32 = vadd.f32 %v10234_v12, %v767_v23  ;;  %v10237_v48 = vpop.f32.mrf.mxu0  ;;  %10440 = vmatmul.mubr.msk.bf16.gmra.mxu0 %vm376_vm1, %v2613_v39  ;;  %v11368_v23 = vld [vmem:[%s15032_s3 + $0x58] sm:$0xff]  }
 0x130   : > { %v10203_v53 = vpop.f32.mrf.mxu1  ;;  %10406 = vmatmul.mubr.msk.bf16.gmra.mxu1 %vm376_vm1, %v2319_v44  ;;  %10443 = vmatprep.mubr.msk.bf16.mxu0 %vm376_vm1, %v12181_v3  ;;  %v11367_v3 = vld [vmem:[%s15032_s3 + $0x60] sm:$0xff]   ;;  %p11512_p12 = pnand %p11511_p11, %p11653_p5  ;;  %p11519_p2 = por %p11518_p1, %p11517_p0 }
 0x131   : > { %v780_v34 = vadd.f32 %v10203_v53, %v12162_v41  ;;  %v1033_v42 = vpop.f32.mrf.mxu0  ;;  %10409 = vmatprep.mubr.msk.bf16.mxu1 %vm376_vm1, %v12073_v35  ;;  %10453 = vmatprep.subr.bf16.mxu1 %v11367_v3 }
 0x132   : > { %v771_v6 = vpop.f32.mrf.mxu1  ;;  %10454 = vmatpush3.bf16.msra.mxu1 %v11367_v3  ;;  %p11513_p13 = pneg %p11512_p12 }
 0x133   : > { %v12362_v36 = vadd.f32 %v10237_v48, %v780_v34  ;;  %v772_v59 = vadd.f32 %v771_v6, %v12175_v56  ;;  %v10238_v20 = vpop.f32.mrf.mxu0  ;;  %v11370_v48 = vld [vmem:[%s15032_s3 + $0x30] sm:$0xff]   ;;  %10455 = vmatprep.subr.bf16.mxu1 %v11368_v23 }
 0x134   : > { %v10204_v60 = vpop.f32.mrf.mxu1  ;;  %10497 = vmatprep.subr.bf16.mxu0 %v11370_v48  ;;  %p11520_p3 = pnand %p11519_p2, %p11513_p13 }
 0x135   : > { %v12368_v41 = vadd.f32 %v1033_v42, %v772_v59  ;;  %v783_v13 = vadd.f32 %v10204_v60, %v12179_v1  ;;  %v12371_v35 = vpop.f32.mrf.mxu0  ;;  %10498 = vmatpush3.bf16.msra.mxu0 %v11370_v48  ;;  %v12413_v60 = vld [vmem:[%s15032_s3 + $0x50] sm:$0xff]  }
 0x136   : > { %15043 = vst [vmem:[#allocation7_spill] sm:$0xff] %v12371_v35  ;;  %v12373_v14 = vpop.f32.mrf.mxu1  ;;  %10456 = vmatpush3.bf16.msra.mxu1 %v11368_v23  ;;  %10499 = vmatprep.subr.bf16.mxu0 %v11372_v29 }
 0x137   : > { %v12375_v61 = vadd.f32 %v10238_v20, %v783_v13  ;;  %v10241_v56 = vpop.f32.mrf.mxu0  ;;  %10444 = vmatmul.mubr.msk.bf16.gmra.mxu0 %vm376_vm1, %v2615_v10  ;;  %10457 = vmatprep.subr.bf16.mxu1 %v12413_v60 }
 0x138   : > { %v10207_v2 = vpop.f32.mrf.mxu1  ;;  %10410 = vmatmul.mubr.msk.bf16.gmra.mxu1 %vm376_vm1, %v2321_v21  ;;  %v12418_v21 = vld [vmem:[%s15032_s3 + $0x20] sm:$0xff]  }
 0x139   : > { %v796_v1 = vadd.f32 %v10207_v2, %v12190_v15  ;;  %v1049_v12 = vpop.f32.mrf.mxu0  ;;  %10500 = vmatpush3.bf16.msra.mxu0 %v11372_v29  ;;  %v11572_v2 = vmov 0.0   ;;  %v11376_v29 = vld [vmem:[%s15032_s3 + $0x10] sm:$0xff]  }
 0x13a   : > { %v787_v39 = vpop.f32.mrf.mxu1  ;;  %10501 = vmatprep.subr.bf16.mxu0 %v12418_v21  ;;  %2939 = vst [vmem:[#allocation2 + $0x30] sm:$0xff] %v11572_v2  ;;  %2940 = vst [vmem:[#allocation2 + $0x38] sm:$0xff] %v11572_v2  ;;  %10458 = vmatpush3.bf16.msra.mxu1 %v12413_v60 }
 0x13b   : > { %v12383_v5 = vadd.f32 %v10241_v56, %v796_v1  ;;  %v788_v17 = vadd.f32 %v787_v39, %v12200_v25  ;;  %v10242_v44 = vpop.f32.mrf.mxu0  ;;  %2933 = vst [vmem:[#allocation2] sm:$0xff] %v11572_v2  ;;  %2934 = vst [vmem:[#allocation2 + $0x8] sm:$0xff] %v11572_v2  ;;  %v11375_v39 = vld [vmem:[%s15032_s3 + $0x18] sm:$0xff]  }
 0x13c   : > { %v10208_v53 = vpop.f32.mrf.mxu1  ;;  %2935 = vst [vmem:[#allocation2 + $0x10] sm:$0x3] %v11572_v2  ;;  %2936 = vst [vmem:[#allocation2 + $0x18] sm:$0xff] %v11572_v2 }
 0x13d   : > { %v12392_v19 = vadd.f32 %v1049_v12, %v788_v17  ;;  %v799_v15 = vadd.f32 %v10208_v53, %v12204_v31  ;;  %v12395_v40 = vpop.f32.mrf.mxu0  ;;  %2937 = vst [vmem:[#allocation2 + $0x20] sm:$0xff] %v11572_v2  ;;  %2938 = vst [vmem:[#allocation2 + $0x28] sm:$0x3] %v11572_v2  ;;  %10502 = vmatpush3.bf16.msra.mxu0 %v12418_v21  ;;  %v11374_v12 = vld [vmem:[%s15032_s3 + $0x48] sm:$0xff]  }
 0x13e   : > { %15044 = vst [vmem:[#allocation8_spill] sm:$0xff] %v12395_v40  ;;  %v12397_v34 = vpop.f32.mrf.mxu1  ;;  %2941 = vst [vmem:[#allocation2 + $0x40] sm:$0x3] %v11572_v2  ;;  %10459 = vmatprep.subr.bf16.mxu1 %v11374_v12  ;;  %10503 = vmatprep.subr.bf16.mxu0 %v11375_v39 }
 0x13f   : > { %v12399_v25 = vadd.f32 %v10242_v44, %v799_v15  ;;  %v10281_v42 = vpop.f32.mrf.mxu0  ;;  %2942 = vst [vmem:[#allocation2 + $0x48] sm:$0xff] %v11572_v2  ;;  %2943 = vst [vmem:[#allocation2 + $0x50] sm:$0xff] %v11572_v2  ;;  %10460 = vmatpush3.bf16.msra.mxu1 %v11374_v12 }
 0x140   : > { %v10247_v58 = vpop.f32.mrf.mxu1  ;;  %2944 = vst [vmem:[#allocation2 + $0x58] sm:$0x3] %v11572_v2  ;;  %2945 = vst [vmem:[#allocation2 + $0x60] sm:$0xff] %v11572_v2 }
 0x141   : > { %v1361_v6 = vadd.f32 %v10247_v58, %v12220_v37  ;;  %v1526_v59 = vpop.f32.mrf.mxu0  ;;  %2946 = vst [vmem:[#allocation2 + $0x68] sm:$0xff] %v11572_v2  ;;  %2947 = vst [vmem:[#allocation2 + $0x70] sm:$0x3] %v11572_v2  ;;  %10504 = vmatpush3.bf16.msra.mxu0 %v11375_v39  ;;  %v11377_v58 = vld [vmem:[%s15032_s3 + $0x40] sm:$0xff]  }
 0x142   : > { %v1232_v31 = vpop.f32.mrf.mxu1  ;;  %2948 = vst [vmem:[#allocation2 + $0x78] sm:$0xff] %v11572_v2  ;;  %2949 = vst [vmem:[#allocation2 + $0x80] sm:$0xff] %v11572_v2  ;;  %10505 = vmatprep.subr.bf16.mxu0 %v11376_v29  ;;  %10461 = vmatprep.subr.bf16.mxu1 %v11377_v58 }
 0x143   : > { %v12405_v20 = vadd.f32 %v10281_v42, %v1361_v6  ;;  %v1359_v10 = vadd.f32 %v1232_v31, %v12222_v51  ;;  %v12408_v3 = vpop.f32.mrf.mxu0  ;;  %2950 = vst [vmem:[#allocation2 + $0x88] sm:$0x3] %v11572_v2  ;;  %2951 = vst [vmem:[#allocation2 + $0x90] sm:$0xff] %v11572_v2  ;;  %10462 = vmatpush3.bf16.msra.mxu1 %v11377_v58 }
 0x144   : > { %v10248_v37 = vpop.f32.mrf.mxu1  ;;  %2952 = vst [vmem:[#allocation2 + $0x98] sm:$0xff] %v11572_v2  ;;  %2953 = vst [vmem:[#allocation2 + $0xa0] sm:$0x3] %v11572_v2 }
 0x145   : > { %v12420_v13 = vadd.f32 %v1526_v59, %v1359_v10  ;;  %v12423_v56 = vadd.f32 %v10248_v37, %v12224_v54  ;;  %v12425_v22 = vpop.f32.mrf.mxu0  ;;  %2954 = vst [vmem:[#allocation2 + $0xa8] sm:$0xff] %v11572_v2  ;;  %2955 = vst [vmem:[#allocation2 + $0xb0] sm:$0xff] %v11572_v2  ;;  %v3084_v10 = vld [vmem:[#allocation2 + $0x1] sm:$0xff]  ;;  %10506 = vmatpush3.bf16.msra.mxu0 %v11376_v29 }
 0x146   : > { %v12429_v51 = vpop.f32.mrf.mxu1  ;;  %2956 = vst [vmem:[#allocation2 + $0xb8] sm:$0x3] %v11572_v2  ;;  %2957 = vst [vmem:[#allocation2 + $0xc0] sm:$0xff] %v11572_v2 }
 0x147   : > { %2958 = vst [vmem:[#allocation2 + $0xc8] sm:$0xff] %v11572_v2  ;;  %2959 = vst [vmem:[#allocation2 + $0xd0] sm:$0x3] %v11572_v2  ;;  %v12543_v54 = vadd.f32 %v12408_v3, %v12423_v56  ;;  %v10285_v1 = vpop.f32.mrf.mxu0  ;;  %v11378_v56 = vld [vmem:[%s15032_s3 + $0x8] sm:$0xff]  }
 0x148   : > { %2960 = vst [vmem:[#allocation2 + $0xd8] sm:$0xff] %v11572_v2  ;;  %2961 = vst [vmem:[#allocation2 + $0xe0] sm:$0xff] %v11572_v2  ;;  %v10251_v17 = vpop.f32.mrf.mxu1  ;;  %10507 = vmatprep.subr.bf16.mxu0 %v11378_v56 }
 0x149   : > { %2962 = vst [vmem:[#allocation2 + $0xe8] sm:$0x3] %v11572_v2  ;;  %2963 = vst [vmem:[#allocation2 + $0xf0] sm:$0xff] %v11572_v2  ;;  %v1365_v44 = vadd.f32 %v10251_v17, %v12241_v43  ;;  %v1542_v23 = vpop.f32.mrf.mxu0  ;;  %10508 = vmatpush3.bf16.msra.mxu0 %v11378_v56 }
 0x14a   : > { %2964 = vst [vmem:[#allocation2 + $0xf8] sm:$0xff] %v11572_v2  ;;  %2965 = vst [vmem:[#allocation2 + $0x100] sm:$0x3] %v11572_v2  ;;  %v1248_v48 = vpop.f32.mrf.mxu1 }
 0x14b   : > { %2966 = vst [vmem:[#allocation2 + $0x108] sm:$0xff] %v11572_v2  ;;  %2967 = vst [vmem:[#allocation2 + $0x110] sm:$0xff] %v11572_v2  ;;  %v12552_v53 = vadd.f32 %v10285_v1, %v1365_v44  ;;  %v1363_v15 = vadd.f32 %v1248_v48, %v12244_v45  ;;  %v10286_v42 = vpop.f32.mrf.mxu0  ;;  %v3085_v45 = vld [vmem:[#allocation2 + $0x9] sm:$0xff] }
 0x14c   : > { %2968 = vst [vmem:[#allocation2 + $0x118] sm:$0x3] %v11572_v2  ;;  %2969 = vst [vmem:[#allocation2 + $0x120] sm:$0xff] %v11572_v2  ;;  %v10252_v43 = vpop.f32.mrf.mxu1  ;;  %v3116_v60 = vpack.c.bf16 %v3085_v45, %v3084_v10 }
 0x14d   : > { %2970 = vst [vmem:[#allocation2 + $0x128] sm:$0xff] %v11572_v2  ;;  %2971 = vst [vmem:[#allocation2 + $0x130] sm:$0x3] %v11572_v2  ;;  %v12561_v6 = vadd.f32 %v1542_v23, %v1363_v15  ;;  %v1366_v59 = vadd.f32 %v10252_v43, %v12247_v52  ;;  %v12564_v31 = vpop.f32.mrf.mxu0  ;;  %v11379_v23 = vld [vmem:[%s15032_s3] sm:$0xff]  }
 0x14e   : > { %2972 = vst [vmem:[#allocation2 + $0x138] sm:$0xff] %v11572_v2  ;;  %2973 = vst [vmem:[#allocation2 + $0x140] sm:$0xff] %v11572_v2  ;;  %v12566_v3 = vpop.f32.mrf.mxu1  ;;  %10463 = vmatprep.mubr.bf16.mxu1 %v3116_v60  ;;  %10509 = vmatprep.subr.bf16.mxu0 %v11379_v23 }
 0x14f   : > { %2974 = vst [vmem:[#allocation2 + $0x148] sm:$0x3] %v11572_v2  ;;  %2975 = vst [vmem:[#allocation2 + $0x150] sm:$0xff] %v11572_v2  ;;  %v12568_v21 = vadd.f32 %v10286_v42, %v1366_v59  ;;  %v10289_v37 = vpop.f32.mrf.mxu0  ;;  %10510 = vmatpush3.bf16.msra.mxu0 %v11379_v23  ;;  %v11573_v59 = vmov 0.0|0.0  }
 0x150   : > { %2976 = vst [vmem:[#allocation2 + $0x158] sm:$0xff] %v11572_v2  ;;  %2977 = vst [vmem:[#allocation2 + $0x160] sm:$0x3] %v11572_v2  ;;  %10511 = vmatprep.mubr.bf16.mxu0 %v11573_v59 }
 0x151   : > { %2978 = vst [vmem:[#allocation2 + $0x168] sm:$0xff] %v11572_v2  ;;  %2979 = vst [vmem:[#allocation2 + $0x170] sm:$0xff] %v11572_v2  ;;  %v1558_v1 = vpop.f32.mrf.mxu0 }
 0x152   : > { %2980 = vst [vmem:[#allocation2 + $0x178] sm:$0x3] %v11572_v2  ;;  %2981 = vst [vmem:[#allocation2 + $0x180] sm:$0xff] %v11572_v2 }
 0x153   : > { %2982 = vst [vmem:[#allocation2 + $0x188] sm:$0xff] %v11572_v2  ;;  %2983 = vst [vmem:[#allocation2 + $0x190] sm:$0x3] %v11572_v2  ;;  %v10290_v44 = vpop.f32.mrf.mxu0 }
 0x154   : > { %2984 = vst [vmem:[#allocation2 + $0x198] sm:$0xff] %v11572_v2  ;;  %2985 = vst [vmem:[#allocation2 + $0x1a0] sm:$0xff] %v11572_v2 }
 0x155   : > { %2986 = vst [vmem:[#allocation2 + $0x1a8] sm:$0x3] %v11572_v2  ;;  %5781 = vst [vmem:[#allocation3] sm:$0xff] %v11572_v2  ;;  %v12583_v29 = vpop.f32.mrf.mxu0 }
 0x156   : > { %5782 = vst [vmem:[#allocation3 + $0x8] sm:$0xff] %v11572_v2  ;;  %5783 = vst [vmem:[#allocation3 + $0x10] sm:$0x3] %v11572_v2 }
 0x157   : > { %5784 = vst [vmem:[#allocation3 + $0x18] sm:$0xff] %v11572_v2  ;;  %5785 = vst [vmem:[#allocation3 + $0x20] sm:$0xff] %v11572_v2  ;;  %v10293_v43 = vpop.f32.mrf.mxu0 }
 0x158   : > { %5786 = vst [vmem:[#allocation3 + $0x28] sm:$0x3] %v11572_v2  ;;  %5787 = vst [vmem:[#allocation3 + $0x30] sm:$0xff] %v11572_v2 }
 0x159   : > { %5788 = vst [vmem:[#allocation3 + $0x38] sm:$0xff] %v11572_v2  ;;  %5789 = vst [vmem:[#allocation3 + $0x40] sm:$0x3] %v11572_v2  ;;  %v1574_v45 = vpop.f32.mrf.mxu0 }
 0x15a   : > { %5790 = vst [vmem:[#allocation3 + $0x48] sm:$0xff] %v11572_v2  ;;  %5791 = vst [vmem:[#allocation3 + $0x50] sm:$0xff] %v11572_v2 }
 0x15b   : > { %5792 = vst [vmem:[#allocation3 + $0x58] sm:$0x3] %v11572_v2  ;;  %5793 = vst [vmem:[#allocation3 + $0x60] sm:$0xff] %v11572_v2  ;;  %v10294_v56 = vpop.f32.mrf.mxu0 }
 0x15c   : > { %5794 = vst [vmem:[#allocation3 + $0x68] sm:$0xff] %v11572_v2  ;;  %5795 = vst [vmem:[#allocation3 + $0x70] sm:$0x3] %v11572_v2 }
 0x15d   : > { %5796 = vst [vmem:[#allocation3 + $0x78] sm:$0xff] %v11572_v2  ;;  %5797 = vst [vmem:[#allocation3 + $0x80] sm:$0xff] %v11572_v2 }
 0x15e   : > { %5798 = vst [vmem:[#allocation3 + $0x88] sm:$0x3] %v11572_v2  ;;  %5799 = vst [vmem:[#allocation3 + $0x90] sm:$0xff] %v11572_v2 }
 0x15f   : > { %5800 = vst [vmem:[#allocation3 + $0x98] sm:$0xff] %v11572_v2  ;;  %5801 = vst [vmem:[#allocation3 + $0xa0] sm:$0x3] %v11572_v2 }
 0x160   : > { %5802 = vst [vmem:[#allocation3 + $0xa8] sm:$0xff] %v11572_v2  ;;  %5803 = vst [vmem:[#allocation3 + $0xb0] sm:$0xff] %v11572_v2 }
 0x161   : > { %5804 = vst [vmem:[#allocation3 + $0xb8] sm:$0x3] %v11572_v2  ;;  %5805 = vst [vmem:[#allocation3 + $0xc0] sm:$0xff] %v11572_v2 }
 0x162   : > { %5806 = vst [vmem:[#allocation3 + $0xc8] sm:$0xff] %v11572_v2  ;;  %5807 = vst [vmem:[#allocation3 + $0xd0] sm:$0x3] %v11572_v2 }
 0x163   : > { %5808 = vst [vmem:[#allocation3 + $0xd8] sm:$0xff] %v11572_v2  ;;  %5809 = vst [vmem:[#allocation3 + $0xe0] sm:$0xff] %v11572_v2 }
 0x164   : > { %5810 = vst [vmem:[#allocation3 + $0xe8] sm:$0x3] %v11572_v2  ;;  %5811 = vst [vmem:[#allocation3 + $0xf0] sm:$0xff] %v11572_v2 }
 0x165   : > { %5812 = vst [vmem:[#allocation3 + $0xf8] sm:$0xff] %v11572_v2  ;;  %5813 = vst [vmem:[#allocation3 + $0x100] sm:$0x3] %v11572_v2 }
 0x166   : > { %5814 = vst [vmem:[#allocation3 + $0x108] sm:$0xff] %v11572_v2  ;;  %5815 = vst [vmem:[#allocation3 + $0x110] sm:$0xff] %v11572_v2 }
 0x167   : > { %5816 = vst [vmem:[#allocation3 + $0x118] sm:$0x3] %v11572_v2  ;;  %5817 = vst [vmem:[#allocation3 + $0x120] sm:$0xff] %v11572_v2 }
 0x168   : > { %5818 = vst [vmem:[#allocation3 + $0x128] sm:$0xff] %v11572_v2  ;;  %5819 = vst [vmem:[#allocation3 + $0x130] sm:$0x3] %v11572_v2 }
 0x169   : > { %5820 = vst [vmem:[#allocation3 + $0x138] sm:$0xff] %v11572_v2  ;;  %5821 = vst [vmem:[#allocation3 + $0x140] sm:$0xff] %v11572_v2 }
 0x16a   : > { %5822 = vst [vmem:[#allocation3 + $0x148] sm:$0x3] %v11572_v2  ;;  %5823 = vst [vmem:[#allocation3 + $0x150] sm:$0xff] %v11572_v2 }
 0x16b   : > { %5824 = vst [vmem:[#allocation3 + $0x158] sm:$0xff] %v11572_v2  ;;  %5825 = vst [vmem:[#allocation3 + $0x160] sm:$0x3] %v11572_v2 }
 0x16c   : > { %5826 = vst [vmem:[#allocation3 + $0x168] sm:$0xff] %v11572_v2  ;;  %5827 = vst [vmem:[#allocation3 + $0x170] sm:$0xff] %v11572_v2 }
 0x16d   : > { %5828 = vst [vmem:[#allocation3 + $0x178] sm:$0x3] %v11572_v2  ;;  %5829 = vst [vmem:[#allocation3 + $0x180] sm:$0xff] %v11572_v2 }
 0x16e   : > { %5830 = vst [vmem:[#allocation3 + $0x188] sm:$0xff] %v11572_v2  ;;  %5831 = vst [vmem:[#allocation3 + $0x190] sm:$0x3] %v11572_v2 }
 0x16f   : > { %5832 = vst [vmem:[#allocation3 + $0x198] sm:$0xff] %v11572_v2  ;;  %5833 = vst [vmem:[#allocation3 + $0x1a0] sm:$0xff] %v11572_v2 }
 0x170   : > { %5834 = vst [vmem:[#allocation3 + $0x1a8] sm:$0x3] %v11572_v2  ;;  %v10255_v2 = vpop.f32.mrf.mxu1 }
 0x171   : > { %v1369_v52 = vadd.f32 %v10255_v2, %v12263_v18 }
 0x172   : > { %v1264_v12 = vpop.f32.mrf.mxu1 }
 0x173   : > { %v12574_v39 = vadd.f32 %v10289_v37, %v1369_v52  ;;  %v1367_v17 = vadd.f32 %v1264_v12, %v12266_v63  ;;  %v12596_v12 = vpop.f32.mrf.mxu0 }
 0x174   : > { %v10256_v48 = vpop.f32.mrf.mxu1  ;;  %15047 = vst [vmem:[#allocation11_spill] sm:$0xff] %v12596_v12 }
 0x175   : > { %v12580_v15 = vadd.f32 %v1558_v1, %v1367_v17  ;;  %v1370_v42 = vadd.f32 %v10256_v48, %v12269_v47  ;;  %v10297_v23 = vpop.f32.mrf.mxu0 }
 0x176   : > { %v12585_v18 = vpop.f32.mrf.mxu1 }
 0x177   : > { %v12587_v58 = vadd.f32 %v10290_v44, %v1370_v42  ;;  %v1590_v42 = vpop.f32.mrf.mxu0 }
 0x178   : > { %v10259_v63 = vpop.f32.mrf.mxu1 }
 0x179   : > { %v1373_v10 = vadd.f32 %v10259_v63, %v12285_v55  ;;  %v10298_v59 = vpop.f32.mrf.mxu0 }
 0x17a   : > { %v1280_v60 = vpop.f32.mrf.mxu1 }
 0x17b   : > { %v12590_v37 = vadd.f32 %v10293_v43, %v1373_v10  ;;  %v1371_v47 = vadd.f32 %v1280_v60, %v12291_v9  ;;  %v12606_v9 = vld [vmem:[%s15032_s3 + $0xb8] sm:$0xff]  }
 0x17c   : > { %v10260_v2 = vpop.f32.mrf.mxu1  ;;  %15049 = vst [vmem:[#allocation13_spill] sm:$0xff] %v12606_v9  ;;  %10543 = vmatprep.subr.bf16.mxu1 %v12606_v9 }
 0x17d   : > { %15045 = vst [vmem:[#allocation9_spill] sm:$0xff] %v12590_v37  ;;  %v12593_v52 = vadd.f32 %v1574_v45, %v1371_v47  ;;  %v1374_v1 = vadd.f32 %v10260_v2, %v12294_v24 }
 0x17e   : > { %v12598_v17 = vpop.f32.mrf.mxu1 }
 0x17f   : > { %15046 = vst [vmem:[#allocation10_spill] sm:$0xff] %v12593_v52  ;;  %v12600_v44 = vadd.f32 %v10294_v56, %v1374_v1 }
 0x180   : > { %v10263_v55 = vpop.f32.mrf.mxu1 }
 0x181   : > { %15048 = vst [vmem:[#allocation12_spill] sm:$0xff] %v12600_v44  ;;  %v1377_v48 = vadd.f32 %v10263_v55, %v12310_v27  ;;  %v12615_v27 = vpop.f32.mrf.mxu0 }
 0x182   : > { %v1296_v43 = vpop.f32.mrf.mxu1  ;;  %15052 = vst [vmem:[#allocation16_spill] sm:$0xff] %v12615_v27 }
 0x183   : > { %v12608_v63 = vadd.f32 %v10297_v23, %v1377_v48  ;;  %v1375_v24 = vadd.f32 %v1296_v43, %v12316_v49  ;;  %v10301_v2 = vpop.f32.mrf.mxu0 }
 0x184   : > { %v10264_v10 = vpop.f32.mrf.mxu1 }
 0x185   : > { %15050 = vst [vmem:[#allocation14_spill] sm:$0xff] %v12608_v63  ;;  %v12612_v45 = vadd.f32 %v1590_v42, %v1375_v24  ;;  %v1378_v60 = vadd.f32 %v10264_v10, %v12323_v16  ;;  %v1606_v55 = vpop.f32.mrf.mxu0 }
 0x186   : > { %v12617_v47 = vpop.f32.mrf.mxu1 }
 0x187   : > { %15051 = vst [vmem:[#allocation15_spill] sm:$0xff] %v12612_v45  ;;  %v12619_v56 = vadd.f32 %v10298_v59, %v1378_v60  ;;  %v10302_v42 = vpop.f32.mrf.mxu0 }
 0x188   : > { %v10267_v1 = vpop.f32.mrf.mxu1 }
 0x189   : > { %15053 = vst [vmem:[#allocation17_spill] sm:$0xff] %v12619_v56  ;;  %v1381_v23 = vadd.f32 %v10267_v1, %v12336_v11  ;;  %v12628_v10 = vpop.f32.mrf.mxu0 }
 0x18a   : > { %v1312_v49 = vpop.f32.mrf.mxu1  ;;  %15056 = vst [vmem:[#allocation20_spill] sm:$0xff] %v12628_v10 }
 0x18b   : > { %v12622_v48 = vadd.f32 %v10301_v2, %v1381_v23  ;;  %v1379_v43 = vadd.f32 %v1312_v49, %v12342_v46  ;;  %v10305_v56 = vpop.f32.mrf.mxu0 }
 0x18c   : > { %v10268_v24 = vpop.f32.mrf.mxu1 }
 0x18d   : > { %15054 = vst [vmem:[#allocation18_spill] sm:$0xff] %v12622_v48  ;;  %v12625_v45 = vadd.f32 %v1606_v55, %v1379_v43  ;;  %v1382_v16 = vadd.f32 %v10268_v24, %v12349_v32  ;;  %v1622_v2 = vpop.f32.mrf.mxu0 }
 0x18e   : > { %v12630_v59 = vpop.f32.mrf.mxu1 }
 0x18f   : > { %15055 = vst [vmem:[#allocation19_spill] sm:$0xff] %v12625_v45  ;;  %15057 = vst [vmem:[#allocation21_spill] sm:$0xff] %v12630_v59  ;;  %v12632_v60 = vadd.f32 %v10302_v42, %v1382_v16  ;;  %v10306_v55 = vpop.f32.mrf.mxu0 }
 0x190   : > { %v10271_v11 = vpop.f32.mrf.mxu1 }
 0x191   : > { %15058 = vst [vmem:[#allocation22_spill] sm:$0xff] %v12632_v60  ;;  %v1385_v1 = vadd.f32 %v10271_v11, %v12362_v36  ;;  %v12641_v24 = vpop.f32.mrf.mxu0 }
 0x192   : > { %v1328_v23 = vpop.f32.mrf.mxu1  ;;  %15061 = vst [vmem:[#allocation25_spill] sm:$0xff] %v12641_v24 }
 0x193   : > { %v12635_v48 = vadd.f32 %v10305_v56, %v1385_v1  ;;  %v1383_v46 = vadd.f32 %v1328_v23, %v12368_v41  ;;  %v10309_v60 = vpop.f32.mrf.mxu0  ;;  %v12650_v56 = vld [vmem:[%s15032_s3 + $0xf8] sm:$0xff]  }
 0x194   : > { %v10272_v49 = vpop.f32.mrf.mxu1  ;;  %15064 = vst [vmem:[#allocation28_spill] sm:$0xff] %v12650_v56  ;;  %10591 = vmatprep.subr.bf16.mxu0 %v12650_v56 }
 0x195   : > { %15059 = vst [vmem:[#allocation23_spill] sm:$0xff] %v12635_v48  ;;  %v12638_v43 = vadd.f32 %v1622_v2, %v1383_v46  ;;  %v1386_v32 = vadd.f32 %v10272_v49, %v12375_v61  ;;  %v1638_v11 = vpop.f32.mrf.mxu0 }
 0x196   : > { %v12643_v42 = vpop.f32.mrf.mxu1 }
 0x197   : > { %15060 = vst [vmem:[#allocation24_spill] sm:$0xff] %v12638_v43  ;;  %15062 = vst [vmem:[#allocation26_spill] sm:$0xff] %v12643_v42  ;;  %v12645_v16 = vadd.f32 %v10306_v55, %v1386_v32  ;;  %v10310_v23 = vpop.f32.mrf.mxu0 }
 0x198   : > { %v10275_v36 = vpop.f32.mrf.mxu1 }
 0x199   : > { %15063 = vst [vmem:[#allocation27_spill] sm:$0xff] %v12645_v16  ;;  %v1389_v41 = vadd.f32 %v10275_v36, %v12383_v5  ;;  %v12660_v32 = vpop.f32.mrf.mxu0 }
 0x19a   : > { %v1344_v1 = vpop.f32.mrf.mxu1  ;;  %15067 = vst [vmem:[#allocation31_spill] sm:$0xff] %v12660_v32 }
 0x19b   : > { %v12654_v61 = vadd.f32 %v10309_v60, %v1389_v41  ;;  %v1387_v2 = vadd.f32 %v1344_v1, %v12392_v19  ;;  %v12666_v5 = vpop.f32.mrf.mxu0 }
 0x19c   : > { %v10276_v46 = vpop.f32.mrf.mxu1 }
 0x19d   : > { %15065 = vst [vmem:[#allocation29_spill] sm:$0xff] %v12654_v61  ;;  %v12657_v55 = vadd.f32 %v1638_v11, %v1387_v2  ;;  %v1390_v49 = vadd.f32 %v10276_v46, %v12399_v25  ;;  %v12668_v24 = vpop.f32.mrf.mxu0 }
 0x19e   : > { %v12662_v16 = vpop.f32.mrf.mxu1 }
 0x19f   : > { %15066 = vst [vmem:[#allocation30_spill] sm:$0xff] %v12657_v55  ;;  %15068 = vst [vmem:[#allocation32_spill] sm:$0xff] %v12662_v16  ;;  %v12664_v43 = vadd.f32 %v10310_v23, %v1390_v49  ;;  %v12670_v41 = vpop.f32.mrf.mxu0 }
 0x1a0   : > { %v10315_v36 = vpop.f32.mrf.mxu1 }
 0x1a1   : > { %15069 = vst [vmem:[#allocation33_spill] sm:$0xff] %v12664_v43  ;;  %v12674_v11 = vpop.f32.mrf.mxu0 }
 0x1a2   : > { %v1820_v60 = vpop.f32.mrf.mxu1 }
 0x1a3   : > { %v12678_v25 = vpop.f32.mrf.mxu0 }
 0x1a4   : > { %v12672_v19 = vpop.f32.mrf.mxu1 }
 0x1a5   : > { %v12682_v23 = vpop.f32.mrf.mxu0 }
 0x1a6   : > { %v12676_v1 = vpop.f32.mrf.mxu1 }
 0x1a7   : > { %v12686_v49 = vpop.f32.mrf.mxu0 }
 0x1a8   : > { %v12680_v2 = vpop.f32.mrf.mxu1 }
 0x1a9   : > { %v12690_v32 = vpop.f32.mrf.mxu0 }
 0x1aa   : > { %v12684_v46 = vpop.f32.mrf.mxu1 }
 0x1ab   : > { %v12694_v61 = vpop.f32.mrf.mxu0 }
 0x1ac   : > { %v12688_v43 = vpop.f32.mrf.mxu1 }
 0x1ad   : > { %v12698_v48 = vpop.f32.mrf.mxu0 }
 0x1ae   : > { %v12692_v55 = vpop.f32.mrf.mxu1 }
 0x1af   : > { %v12702_v10 = vpop.f32.mrf.mxu0 }
 0x1b0   : > { %v12696_v16 = vpop.f32.mrf.mxu1  ;;  %15070 = vst [vmem:[#allocation34_spill] sm:$0xff] %v12702_v10 }
 0x1b1   : > { %v12706_v56 = vpop.f32.mrf.mxu0 }
 0x1b2   : > { %v12700_v42 = vpop.f32.mrf.mxu1  ;;  %15071 = vst [vmem:[#allocation35_spill] sm:$0xff] %v12706_v56 }
 0x1b3   : > { %v12710_v63 = vpop.f32.mrf.mxu0 }
 0x1b4   : > { %v12704_v45 = vpop.f32.mrf.mxu1  ;;  %15072 = vst [vmem:[#allocation36_spill] sm:$0xff] %v12710_v63 }
 0x1b5   : > { %v12714_v27 = vpop.f32.mrf.mxu0 }
 0x1b6   : > { %v12708_v59 = vpop.f32.mrf.mxu1  ;;  %15074 = vst [vmem:[#allocation38_spill] sm:$0xff] %v12714_v27 }
 0x1b7   : > { %v12718_v12 = vpop.f32.mrf.mxu0 }
 0x1b8   : > { %v12712_v44 = vpop.f32.mrf.mxu1  ;;  %15076 = vst [vmem:[#allocation40_spill] sm:$0xff] %v12718_v12 }
 0x1b9   : > { %15073 = vst [vmem:[#allocation37_spill] sm:$0xff] %v12712_v44  ;;  %v12722_v35 = vpop.f32.mrf.mxu0 }
 0x1ba   : > { %v12716_v9 = vpop.f32.mrf.mxu1  ;;  %15078 = vst [vmem:[#allocation42_spill] sm:$0xff] %v12722_v35 }
 0x1bb   : > { %15075 = vst [vmem:[#allocation39_spill] sm:$0xff] %v12716_v9  ;;  %v12726_v52 = vpop.f32.mrf.mxu0 }
 0x1bc   : > { %v12720_v40 = vpop.f32.mrf.mxu1  ;;  %15080 = vst [vmem:[#allocation44_spill] sm:$0xff] %v12726_v52 }
 0x1bd   : > { %15077 = vst [vmem:[#allocation41_spill] sm:$0xff] %v12720_v40  ;;  %v12730_v37 = vpop.f32.mrf.mxu0 }
 0x1be   : > { %v12724_v10 = vpop.f32.mrf.mxu1  ;;  %15082 = vst [vmem:[#allocation46_spill] sm:$0xff] %v12730_v37 }
 0x1bf   : > { %15079 = vst [vmem:[#allocation43_spill] sm:$0xff] %v12724_v10  ;;  %v12734_v44 = vpop.f32.mrf.mxu0 }
 0x1c0   : > { %v12728_v56 = vpop.f32.mrf.mxu1  ;;  %15084 = vst [vmem:[#allocation48_spill] sm:$0xff] %v12734_v44 }
 0x1c1   : > { %15081 = vst [vmem:[#allocation45_spill] sm:$0xff] %v12728_v56  ;;  %v12738_v9 = vpop.f32.mrf.mxu0 }
 0x1c2   : > { %v12732_v63 = vpop.f32.mrf.mxu1  ;;  %15086 = vst [vmem:[#allocation50_spill] sm:$0xff] %v12738_v9 }
 0x1c3   : > { %15083 = vst [vmem:[#allocation47_spill] sm:$0xff] %v12732_v63  ;;  %v12742_v40 = vpop.f32.mrf.mxu0 }
 0x1c4   : > { %v12736_v27 = vpop.f32.mrf.mxu1  ;;  %15088 = vst [vmem:[#allocation52_spill] sm:$0xff] %v12742_v40 }
 0x1c5   : > { %15085 = vst [vmem:[#allocation49_spill] sm:$0xff] %v12736_v27  ;;  %v12746_v10 = vpop.f32.mrf.mxu0 }
 0x1c6   : > { %v12740_v12 = vpop.f32.mrf.mxu1  ;;  %15090 = vst [vmem:[#allocation54_spill] sm:$0xff] %v12746_v10 }
 0x1c7   : > { %15087 = vst [vmem:[#allocation51_spill] sm:$0xff] %v12740_v12  ;;  %v12750_v56 = vpop.f32.mrf.mxu0 }
 0x1c8   : > { %v12744_v35 = vpop.f32.mrf.mxu1  ;;  %15092 = vst [vmem:[#allocation56_spill] sm:$0xff] %v12750_v56 }
 0x1c9   : > { %15089 = vst [vmem:[#allocation53_spill] sm:$0xff] %v12744_v35  ;;  %v12754_v63 = vpop.f32.mrf.mxu0 }
 0x1ca   : > { %v12748_v52 = vpop.f32.mrf.mxu1  ;;  %15094 = vst [vmem:[#allocation58_spill] sm:$0xff] %v12754_v63 }
 0x1cb   : > { %15091 = vst [vmem:[#allocation55_spill] sm:$0xff] %v12748_v52  ;;  %v12758_v27 = vpop.f32.mrf.mxu0 }
 0x1cc   : > { %v12752_v37 = vpop.f32.mrf.mxu1  ;;  %15096 = vst [vmem:[#allocation60_spill] sm:$0xff] %v12758_v27 }
 0x1cd   : > { %15093 = vst [vmem:[#allocation57_spill] sm:$0xff] %v12752_v37  ;;  %v12762_v12 = vpop.f32.mrf.mxu0 }
 0x1ce   : > { %v12756_v44 = vpop.f32.mrf.mxu1  ;;  %15097 = vst [vmem:[#allocation61_spill] sm:$0xff] %v12762_v12  ;;  %v1360_v12 = vadd.f32 %v12429_v51, %v12233_v7 }
 0x1cf   : > { %15095 = vst [vmem:[#allocation59_spill] sm:$0xff] %v12756_v44  ;;  %v12766_v35 = vpop.f32.mrf.mxu0 }
 0x1d0   : > { %v12760_v9 = vpop.f32.mrf.mxu1  ;;  %15099 = vst [vmem:[#allocation63_spill] sm:$0xff] %v12766_v35 }
 0x1d1   : > { %v12770_v52 = vpop.f32.mrf.mxu0 }
 0x1d2   : > { %v12764_v40 = vpop.f32.mrf.mxu1  ;;  %15101 = vst [vmem:[#allocation65_spill] sm:$0xff] %v12770_v52  ;;  %v1947_v52 = vadd.f32 %v1820_v60, %v12420_v13 }
 0x1d3   : > { %15098 = vst [vmem:[#allocation62_spill] sm:$0xff] %v12764_v40  ;;  %v12774_v37 = vpop.f32.mrf.mxu0  ;;  %v1949_v40 = vadd.f32 %v10315_v36, %v12405_v20  ;;  %v743_v20 = vadd.f32 %v12321_v4, %v12132_v28  ;;  %v12811_v28 = vld [vmem:[%s15031_s2] ss:$0 sm:$0xff] }
 0x1d4   : > { %v12768_v10 = vpop.f32.mrf.mxu1  ;;  %15103 = vst [vmem:[#allocation67_spill] sm:$0xff] %v12774_v37  ;;  %v2242_v36 = vadd.f32 %v12668_v24, %v1947_v52 }
 0x1d5   : > { %15100 = vst [vmem:[#allocation64_spill] sm:$0xff] %v12768_v10  ;;  %v12778_v44 = vpop.f32.mrf.mxu0 }
 0x1d6   : > { %v12772_v56 = vpop.f32.mrf.mxu1  ;;  %15105 = vst [vmem:[#allocation69_spill] sm:$0xff] %v12778_v44  ;;  %v2244_v44 = vadd.f32 %v12666_v5, %v1949_v40  ;;  %v1364_v40 = vadd.f32 %v12566_v3, %v12255_v0 }
 0x1d7   : > { %15102 = vst [vmem:[#allocation66_spill] sm:$0xff] %v12772_v56  ;;  %v12785_v35 = vpop.f32.mrf.mxu0 }
 0x1d8   : > { %v12776_v63 = vpop.f32.mrf.mxu1  ;;  %15107 = vst [vmem:[#allocation71_spill] sm:$0xff] %v12785_v35  ;;  %v759_v35 = vadd.f32 %v12347_v62, %v12156_v38  ;;  %v1951_v38 = vadd.f32 %v12684_v46, %v12561_v6 }
 0x1d9   : > { %15104 = vst [vmem:[#allocation68_spill] sm:$0xff] %v12776_v63  ;;  %v12790_v56 = vpop.f32.mrf.mxu0  ;;  %v1654_v63 = vadd.f32 %v12425_v22, %v1360_v12  ;;  %v1953_v22 = vadd.f32 %v12680_v2, %v12552_v53 }
 0x1da   : > { %v12780_v27 = vpop.f32.mrf.mxu1  ;;  %15108 = vst [vmem:[#allocation72_spill] sm:$0xff] %v12790_v56 }
 0x1db   : > { %15106 = vst [vmem:[#allocation70_spill] sm:$0xff] %v12780_v27  ;;  %v1950_v27 = vadd.f32 %v12672_v19, %v12543_v54  ;;  %v10417_v7 = vpop.f32.mrf.mxu0  ;;  %v1948_v13 = vadd.f32 %v12676_v1, %v1654_v63  ;;  %v1081_v63 = vadd.f32 %v12319_v50, %v743_v20  ;;  %v12820_v19 = vadd.f32 %v12345_v30, %v759_v35 }
 0x1dc   : > { %v12787_v10 = vpop.f32.mrf.mxu1  ;;  %v1954_v50 = vadd.f32 %v12688_v43, %v12568_v21  ;;  %v1368_v30 = vadd.f32 %v12585_v18, %v12277_v57  ;;  %v2246_v35 = vadd.f32 %v12682_v23, %v1951_v38  ;;  %v1957_v57 = vadd.f32 %v12696_v16, %v12574_v39 }
 0x1dd   : > { %v2703_v56 = vpop.f32.mrf.mxu0  ;;  %v2245_v54 = vadd.f32 %v12670_v41, %v1950_v27  ;;  %v2243_v62 = vadd.f32 %v12674_v11, %v1948_v13  ;;  %v1658_v27 = vadd.f32 %v12564_v31, %v1364_v40  ;;  %v2248_v41 = vadd.f32 %v12678_v25, %v1953_v22 }
 0x1de   : > { %v12792_v37 = vpop.f32.mrf.mxu1  ;;  %v791_v13 = vadd.f32 %v12397_v34, %v12208_v33  ;;  %v1372_v33 = vadd.f32 %v12598_v17, %v12302_v26  ;;  %v1376_v34 = vadd.f32 %v12617_v47, %v1081_v63 }
 0x1df   : > { %v1952_v31 = vadd.f32 %v12692_v55, %v1658_v27 }
 0x1e0   : > { %v10383_v51 = vpop.f32.mrf.mxu1 }
 0x1e1   : > { %v2538_v60 = vadd.f32 %v10383_v51, %v2244_v44  ;;  %v10418_v44 = vpop.f32.mrf.mxu0  ;;  %v2247_v39 = vadd.f32 %v12690_v32, %v1952_v31  ;;  %v15116_v31 = vld [vmem:[#allocation34_spill] sm:$0xff] }
 0x1e2   : > { %v2409_v4 = vpop.f32.mrf.mxu1 }
 0x1e3   : > { %v2832_v52 = vadd.f32 %v10417_v7, %v2538_v60  ;;  %v2536_v12 = vadd.f32 %v2409_v4, %v2242_v36  ;;  %v2706_v5 = vpop.f32.mrf.mxu0  ;;  %v1662_v4 = vadd.f32 %v12583_v29, %v1368_v30  ;;  %v1958_v29 = vadd.f32 %v12704_v45, %v12587_v58  ;;  %v11381_v45 = vld [vmem:[%s15032_s3 + $0xb0] sm:$0xff]   ;;  %v15115_v30 = vld [vmem:[#allocation11_spill] sm:$0xff] }
 0x1e4   : > { %v10384_v0 = vpop.f32.mrf.mxu1 }
 0x1e5   : > { %v2871_v53 = vadd.f32 %v12811_v28, %v2832_v52  ;;  %v2830_v3 = vadd.f32 %v2703_v56, %v2536_v12  ;;  %v2539_v24 = vadd.f32 %v10384_v0, %v2245_v54  ;;  %v10421_v7 = vpop.f32.mrf.mxu0  ;;  %v775_v56 = vadd.f32 %v12373_v14, %v12185_v8 }
 0x1e6   : > { %v2412_v1 = vpop.f32.mrf.mxu1  ;;  %v2249_v8 = vadd.f32 %v12686_v49, %v1954_v50  ;;  %v1955_v14 = vadd.f32 %v12700_v42, %v12580_v15  ;;  %v2252_v12 = vadd.f32 %v12694_v61, %v1957_v57  ;;  %v15117_v57 = vld [vmem:[#allocation13_spill] sm:$0xff] }
 0x1e7   : > { %v2903_v6 = vmax.f32 %v2871_v53, 0.0  ;;  %v2869_v2 = vadd.f32 %v12811_v28, %v2830_v3  ;;  %v2833_v11 = vadd.f32 %v10418_v44, %v2539_v24  ;;  %v2537_v46 = vadd.f32 %v2412_v1, %v2243_v62  ;;  %v2719_v36 = vpop.f32.mrf.mxu0  ;;  %v15109_v53 = vld [vmem:[#allocation9_spill] sm:$0xff]  ;;  %v15111_v24 = vld [vmem:[#allocation10_spill] sm:$0xff] }
 0x1e8   : > { %v10387_v25 = vpop.f32.mrf.mxu1  ;;  %v2250_v44 = vadd.f32 %v12698_v48, %v1955_v14  ;;  %v1956_v62 = vadd.f32 %v12708_v59, %v1662_v4  ;;  %v15110_v3 = vld [vmem:[#allocation37_spill] sm:$0xff]  ;;  %v15112_v48 = vld [vmem:[#allocation39_spill] sm:$0xff] }
 0x1e9   : > { %2990 = vst [vmem:[#allocation2 + $0x31] sm:$0xff] %v2903_v6  ;;  %v2901_v21 = vmax.f32 %v2869_v2, 0.0  ;;  %v2872_v43 = vadd.f32 %v12811_v28, %v2833_v11  ;;  %v2831_v20 = vadd.f32 %v2706_v5, %v2537_v46  ;;  %v2542_v51 = vadd.f32 %v10387_v25, %v2248_v41  ;;  %v10422_v22 = vpop.f32.mrf.mxu0  ;;  %v15113_v2 = vld [vmem:[#allocation7_spill] sm:$0xff]  ;;  %v15114_v46 = vld [vmem:[#allocation8_spill] sm:$0xff] }
 0x1ea   : > { %v2425_v18 = vpop.f32.mrf.mxu1  ;;  %v1961_v61 = vadd.f32 %v15110_v3, %v15109_v53  ;;  %v1959_v5 = vadd.f32 %v15112_v48, %v15111_v24  ;;  %v12866_v11 = vadd.f32 %v15113_v2, %v775_v56  ;;  %v2253_v25 = vadd.f32 %v15116_v31, %v1958_v29  ;;  %v15118_v56 = vld [vmem:[#allocation16_spill] sm:$0xff]  ;;  %v15125_v29 = vld [vmem:[#allocation14_spill] sm:$0xff] }
 0x1eb   : > { %2988 = vst [vmem:[#allocation2 + $0x19] sm:$0xff] %v2901_v21  ;;  %v2904_v55 = vmax.f32 %v2872_v43, 0.0  ;;  %v2870_v23 = vadd.f32 %v12811_v28, %v2831_v20  ;;  %v2836_v60 = vadd.f32 %v10421_v7, %v2542_v51  ;;  %v2540_v40 = vadd.f32 %v2425_v18, %v2246_v35  ;;  %v2722_v52 = vpop.f32.mrf.mxu0  ;;  %v11382_v4 = vld [vmem:[%s15032_s3 + $0xa8] sm:$0xff]   ;;  %v11386_v31 = vld [vmem:[%s15032_s3 + $0xf0] sm:$0xff]  }
 0x1ec   : > { %v10388_v16 = vpop.f32.mrf.mxu1  ;;  %v12869_v7 = vadd.f32 %v15114_v46, %v791_v13  ;;  %v1666_v35 = vadd.f32 %v15115_v30, %v1372_v33  ;;  %v12876_v14 = vadd.f32 %v15118_v56, %v1376_v34  ;;  %v15119_v13 = vld [vmem:[#allocation35_spill] sm:$0xff] }
 0x1ed   : > { %2991 = vst [vmem:[#allocation2 + $0x39] sm:$0xff] %v2904_v55  ;;  %v2902_v15 = vmax.f32 %v2870_v23, 0.0  ;;  %v2875_v42 = vadd.f32 %v12811_v28, %v2836_v60  ;;  %v2834_v49 = vadd.f32 %v2719_v36, %v2540_v40  ;;  %v2543_v54 = vadd.f32 %v10388_v16, %v2249_v8  ;;  %v10425_v0 = vpop.f32.mrf.mxu0  ;;  %v15121_v60 = vld [vmem:[#allocation38_spill] sm:$0xff] }
 0x1ee   : > { %v2428_v26 = vpop.f32.mrf.mxu1  ;;  %v3118_v17 = vpack.c.bf16 %v2904_v55, %v2903_v6  ;;  %v2251_v18 = vadd.f32 %v15119_v13, %v1956_v62  ;;  %v15120_v55 = vld [vmem:[#allocation36_spill] sm:$0xff]  ;;  %v2254_v40 = vadd.f32 %v15121_v60, %v1959_v5  ;;  %v15127_v5 = vld [vmem:[#allocation15_spill] sm:$0xff] }
 0x1ef   : > { %2989 = vst [vmem:[#allocation2 + $0x21] sm:$0xff] %v2902_v15  ;;  %v2907_v47 = vmax.f32 %v2875_v42, 0.0  ;;  %v12853_v32 = vadd.f32 %v12811_v28, %v2834_v49  ;;  %v2837_v63 = vadd.f32 %v10422_v22, %v2543_v54  ;;  %v2541_v38 = vadd.f32 %v2428_v26, %v2247_v39  ;;  %v2735_v59 = vpop.f32.mrf.mxu0  ;;  %v15122_v49 = vld [vmem:[#allocation12_spill] sm:$0xff]  ;;  %v15123_v54 = vld [vmem:[#allocation41_spill] sm:$0xff] }
 0x1f0   : > { %v10391_v27 = vpop.f32.mrf.mxu1  ;;  %v3117_v58 = vpack.c.bf16 %v2902_v15, %v2901_v21  ;;  %v2256_v23 = vadd.f32 %v15120_v55, %v1961_v61  ;;  %v15126_v26 = vld [vmem:[#allocation45_spill] sm:$0xff]  ;;  %v15132_v55 = vld [vmem:[#allocation44_spill] sm:$0xff] }
 0x1f1   : > { %2994 = vst [vmem:[#allocation2 + $0x61] sm:$0xff] %v2907_v47  ;;  %v2905_v41 = vmax.f32 %v12853_v32, 0.0  ;;  %v2876_v50 = vadd.f32 %v12811_v28, %v2837_v63  ;;  %v2835_v1 = vadd.f32 %v2722_v52, %v2541_v38  ;;  %v2546_v6 = vadd.f32 %v10391_v27, %v2252_v12  ;;  %v10426_v8 = vpop.f32.mrf.mxu0  ;;  %v15124_v12 = vld [vmem:[#allocation43_spill] sm:$0xff]  ;;  %v3024_v48 = vld [vmem:[#allocation2 + $0x30] sm:$0xff] }
 0x1f2   : > { %v2441_v21 = vpop.f32.mrf.mxu1  ;;  %10464 = vmatmul.mubr.bf16.vlgmr.msra.gmra.mxu1 %v3117_v58  ;;  %v1962_v52 = vadd.f32 %v15123_v54, %v15122_v49  ;;  %v3022_v24 = vld [vmem:[#allocation2 + $0x18] sm:$0xff]  ;;  %v15128_v27 = vld [vmem:[#allocation47_spill] sm:$0xff] }
 0x1f3   : > { %2992 = vst [vmem:[#allocation2 + $0x49] sm:$0xff] %v2905_v41  ;;  %v2908_v43 = vmax.f32 %v2876_v50, 0.0  ;;  %v2874_v20 = vadd.f32 %v12811_v28, %v2835_v1  ;;  %v2840_v51 = vadd.f32 %v10425_v0, %v2546_v6  ;;  %v2544_v36 = vadd.f32 %v2441_v21, %v2250_v44  ;;  %10544 = vmatpush3.bf16.msra.mxu1 %v15117_v57  ;;  %v2738_v15 = vpop.f32.mrf.mxu0  ;;  %v15130_v21 = vld [vmem:[#allocation40_spill] sm:$0xff] }
 0x1f4   : > { %10467 = vmatprep.mubr.bf16.mxu1 %v3118_v17  ;;  %v10392_v22 = vpop.f32.mrf.mxu1  ;;  %10545 = vmatprep.subr.bf16.mxu1 %v11381_v45  ;;  %v3025_v42 = vld [vmem:[#allocation2 + $0x38] sm:$0xff]  ;;  %v1960_v44 = vadd.f32 %v15124_v12, %v1666_v35  ;;  %v1965_v17 = vadd.f32 %v15126_v26, %v15125_v29  ;;  %v1963_v58 = vadd.f32 %v15128_v27, %v15127_v5 }
 0x1f5   : > { %2995 = vst [vmem:[#allocation2 + $0x69] sm:$0xff] %v2908_v43  ;;  %v2906_v33 = vmax.f32 %v2874_v20, 0.0  ;;  %v12885_v39 = vadd.f32 %v12811_v28, %v2840_v51  ;;  %v2838_v16 = vadd.f32 %v2735_v59, %v2544_v36  ;;  %v2547_v34 = vadd.f32 %v10392_v22, %v2253_v25  ;;  %v10429_v61 = vpop.f32.mrf.mxu0  ;;  %v15129_v25 = vld [vmem:[#allocation21_spill] sm:$0xff]  ;;  %v15131_v20 = vld [vmem:[#allocation42_spill] sm:$0xff] }
 0x1f6   : > { %v2444_v32 = vpop.f32.mrf.mxu1  ;;  %v3023_v63 = vld [vmem:[#allocation2 + $0x20] sm:$0xff]  ;;  %v3120_v38 = vpack.c.bf16 %v2908_v43, %v2907_v47  ;;  %v12900_v6 = vpack.c.bf16 %v3025_v42, %v3024_v48  ;;  %v2257_v43 = vadd.f32 %v15130_v21, %v1962_v52  ;;  %v2255_v51 = vadd.f32 %v15131_v20, %v1960_v44  ;;  %v15134_v22 = vld [vmem:[#allocation17_spill] sm:$0xff] }
 0x1f7   : > { %2993 = vst [vmem:[#allocation2 + $0x51] sm:$0xff] %v2906_v33  ;;  %v2911_v0 = vmax.f32 %v12885_v39, 0.0  ;;  %v12894_v62 = vadd.f32 %v12811_v28, %v2838_v16  ;;  %v2841_v53 = vadd.f32 %v10426_v8, %v2547_v34  ;;  %v2545_v3 = vadd.f32 %v2444_v32, %v2251_v18  ;;  %10546 = vmatpush3.bf16.msra.mxu1 %v11381_v45  ;;  %v2751_v35 = vpop.f32.mrf.mxu0  ;;  %v11383_v45 = vld [vmem:[%s15032_s3 + $0xa0] sm:$0xff]   ;;  %v15136_v34 = vld [vmem:[#allocation28_spill] sm:$0xff]  ;;  %v11384_v12 = vld [vmem:[%s15032_s3 + $0x98] sm:$0xff]  }
 0x1f8   : > { %v10395_v50 = vpop.f32.mrf.mxu1  ;;  %v12898_v1 = vpack.c.bf16 %v3023_v63, %v3022_v24  ;;  %v3119_v47 = vpack.c.bf16 %v2906_v33, %v2905_v41  ;;  %10547 = vmatprep.subr.bf16.mxu1 %v11382_v4  ;;  %v1380_v41 = vadd.f32 %v15129_v25, %v12820_v19  ;;  %v2260_v19 = vadd.f32 %v15132_v55, %v1965_v17  ;;  %v15135_v33 = vld [vmem:[#allocation49_spill] sm:$0xff]  ;;  %v15137_v44 = vld [vmem:[#allocation51_spill] sm:$0xff]  ;;  %v15138_v26 = vld [vmem:[#allocation18_spill] sm:$0xff] }
 0x1f9   : > { %2998 = vst [vmem:[#allocation2 + $0x91] sm:$0xff] %v2911_v0  ;;  %v2909_v59 = vmax.f32 %v12894_v62, 0.0  ;;  %v2880_v2 = vadd.f32 %v12811_v28, %v2841_v53  ;;  %v2839_v46 = vadd.f32 %v2738_v15, %v2545_v3  ;;  %v2550_v30 = vadd.f32 %v10395_v50, %v2256_v23  ;;  %v10430_v18 = vpop.f32.mrf.mxu0  ;;  %v15133_v23 = vld [vmem:[#allocation46_spill] sm:$0xff]  ;;  %v15139_v17 = vld [vmem:[#allocation53_spill] sm:$0xff]  ;;  %v15140_v63 = vld [vmem:[#allocation19_spill] sm:$0xff] }
 0x1fa   : > { %10512 = vmatmul.mubr.bf16.vlgmr.msra.gmra.mxu0 %v12898_v1  ;;  %v2457_v36 = vpop.f32.mrf.mxu1  ;;  %10468 = vmatmul.mubr.bf16.gmra.mxu1 %v3119_v47  ;;  %v2258_v60 = vadd.f32 %v15133_v23, %v1963_v58  ;;  %v1966_v39 = vadd.f32 %v15135_v33, %v15134_v22  ;;  %v1964_v29 = vadd.f32 %v15137_v44, %v12876_v14  ;;  %v3026_v50 = vld [vmem:[#allocation2 + $0x48] sm:$0xff]  ;;  %v3028_v14 = vld [vmem:[#allocation2 + $0x60] sm:$0xff]  ;;  %v11387_v20 = vld [vmem:[%s15032_s3 + $0x90] sm:$0xff]  }
 0x1fb   : > { %2996 = vst [vmem:[#allocation2 + $0x79] sm:$0xff] %v2909_v59  ;;  %v2912_v8 = vmax.f32 %v2880_v2, 0.0  ;;  %v2878_v57 = vadd.f32 %v12811_v28, %v2839_v46  ;;  %v2844_v56 = vadd.f32 %v10429_v61, %v2550_v30  ;;  %v2548_v13 = vadd.f32 %v2457_v36, %v2254_v40  ;;  %10515 = vmatprep.mubr.bf16.mxu0 %v12900_v6  ;;  %v2754_v54 = vpop.f32.mrf.mxu0  ;;  %v15146_v33 = vld [vmem:[#allocation52_spill] sm:$0xff]  ;;  %v15149_v44 = vld [vmem:[#allocation57_spill] sm:$0xff] }
 0x1fc   : > { %10471 = vmatprep.mubr.bf16.mxu1 %v3120_v38  ;;  %v10396_v16 = vpop.f32.mrf.mxu1  ;;  %10548 = vmatpush3.bf16.msra.mxu1 %v11382_v4  ;;  %v3029_v52 = vld [vmem:[#allocation2 + $0x68] sm:$0xff]  ;;  %v1969_v32 = vadd.f32 %v15139_v17, %v15138_v26 }
 0x1fd   : > { %10592 = vmatpush3.bf16.msra.mxu0 %v15136_v34  ;;  %2999 = vst [vmem:[#allocation2 + $0x99] sm:$0xff] %v2912_v8  ;;  %v2910_v15 = vmax.f32 %v2878_v57, 0.0  ;;  %v12923_v42 = vadd.f32 %v12811_v28, %v2844_v56  ;;  %v2842_v40 = vadd.f32 %v2751_v35, %v2548_v13  ;;  %v2551_v49 = vadd.f32 %v10396_v16, %v2257_v43  ;;  %v11388_v4 = vld [vmem:[%s15032_s3 + $0xe8] sm:$0xff]   ;;  %v10433_v58 = vpop.f32.mrf.mxu0  ;;  %v15147_v16 = vld [vmem:[#allocation54_spill] sm:$0xff] }
 0x1fe   : > { %10549 = vmatprep.subr.bf16.mxu1 %v11383_v45  ;;  %10593 = vmatprep.subr.bf16.mxu0 %v11386_v31  ;;  %v15141_v38 = vld [vmem:[#allocation55_spill] sm:$0xff]  ;;  %v2460_v53 = vpop.f32.mrf.mxu1  ;;  %v3027_v3 = vld [vmem:[#allocation2 + $0x50] sm:$0xff]  ;;  %v3122_v61 = vpack.c.bf16 %v2912_v8, %v2911_v0  ;;  %v12943_v46 = vpack.c.bf16 %v3029_v52, %v3028_v14 }
 0x1ff   : > { %v1967_v62 = vadd.f32 %v15141_v38, %v15140_v63  ;;  %2997 = vst [vmem:[#allocation2 + $0x81] sm:$0xff] %v2910_v15  ;;  %v2915_v24 = vmax.f32 %v12923_v42, 0.0  ;;  %v12939_v48 = vadd.f32 %v12811_v28, %v2842_v40  ;;  %v2845_v5 = vadd.f32 %v10430_v18, %v2551_v49  ;;  %v2767_v43 = vpop.f32.mrf.mxu0  ;;  %v15144_v8 = vld [vmem:[#allocation48_spill] sm:$0xff]  ;;  %v15150_v26 = vld [vmem:[#allocation59_spill] sm:$0xff] }
 0x200   : > { %v2549_v27 = vadd.f32 %v2460_v53, %v2255_v51  ;;  %v10399_v47 = vpop.f32.mrf.mxu1  ;;  %v12941_v2 = vpack.c.bf16 %v3027_v3, %v3026_v50  ;;  %v3121_v30 = vpack.c.bf16 %v2910_v15, %v2909_v59  ;;  %10550 = vmatpush3.bf16.msra.mxu1 %v11383_v45  ;;  %v11389_v59 = vld [vmem:[%s15032_s3 + $0xe0] sm:$0xff]   ;;  %v15142_v45 = vld [vmem:[#allocation20_spill] sm:$0xff]  ;;  %v2261_v57 = vadd.f32 %v15144_v8, %v1966_v39 }
 0x201   : > { %10594 = vmatpush3.bf16.msra.mxu0 %v11386_v31  ;;  %3002 = vst [vmem:[#allocation2 + $0xc1] sm:$0xff] %v2915_v24  ;;  %v2913_v0 = vmax.f32 %v12939_v48, 0.0  ;;  %v2884_v35 = vadd.f32 %v12811_v28, %v2845_v5  ;;  %v2554_v21 = vadd.f32 %v10399_v47, %v2260_v19  ;;  %10551 = vmatprep.subr.bf16.mxu1 %v11384_v12  ;;  %v15143_v51 = vld [vmem:[#allocation26_spill] sm:$0xff]  ;;  %v10434_v23 = vpop.f32.mrf.mxu0  ;;  %v11390_v52 = vld [vmem:[%s15032_s3 + $0x88] sm:$0xff]   ;;  %v3032_v50 = vld [vmem:[#allocation2 + $0x90] sm:$0xff] }
 0x202   : > { %v2843_v25 = vadd.f32 %v2754_v54, %v2549_v27  ;;  %10595 = vmatprep.subr.bf16.mxu0 %v11388_v4  ;;  %v1674_v31 = vadd.f32 %v15142_v45, %v1380_v41  ;;  %v1384_v36 = vadd.f32 %v15143_v51, %v12866_v11  ;;  %10516 = vmatmul.mubr.bf16.gmra.mxu0 %v12941_v2  ;;  %v2473_v56 = vpop.f32.mrf.mxu1  ;;  %v15145_v41 = vld [vmem:[#allocation50_spill] sm:$0xff]  ;;  %v11392_v45 = vld [vmem:[%s15032_s3 + $0xd0] sm:$0xff]  }
 0x203   : > { %10472 = vmatmul.mubr.bf16.gmra.mxu1 %v3121_v30  ;;  %3000 = vst [vmem:[#allocation2 + $0xa9] sm:$0xff] %v2913_v0  ;;  %v2916_v13 = vmax.f32 %v2884_v35, 0.0  ;;  %v2848_v55 = vadd.f32 %v10433_v58, %v2554_v21  ;;  %v2552_v19 = vadd.f32 %v2473_v56, %v2258_v60  ;;  %10519 = vmatprep.mubr.bf16.mxu0 %v12943_v46  ;;  %v2770_v49 = vpop.f32.mrf.mxu0  ;;  %v3030_v58 = vld [vmem:[#allocation2 + $0x78] sm:$0xff]  ;;  %v15154_v8 = vld [vmem:[#allocation24_spill] sm:$0xff] }
 0x204   : > { %v2882_v18 = vadd.f32 %v12811_v28, %v2843_v25  ;;  %10475 = vmatprep.mubr.bf16.mxu1 %v3122_v61  ;;  %v2259_v22 = vadd.f32 %v15145_v41, %v1964_v29  ;;  %v2264_v11 = vadd.f32 %v15146_v33, %v1969_v32  ;;  %v2262_v39 = vadd.f32 %v15147_v16, %v1967_v62  ;;  %v10400_v34 = vpop.f32.mrf.mxu1  ;;  %v3033_v54 = vld [vmem:[#allocation2 + $0x98] sm:$0xff]  ;;  %v15151_v32 = vld [vmem:[#allocation23_spill] sm:$0xff]  ;;  %v15158_v16 = vld [vmem:[#allocation60_spill] sm:$0xff] }
 0x205   : > { %10552 = vmatpush3.bf16.msra.mxu1 %v11384_v12  ;;  %10596 = vmatpush3.bf16.msra.mxu0 %v11388_v4  ;;  %3003 = vst [vmem:[#allocation2 + $0xc9] sm:$0xff] %v2916_v13  ;;  %v12964_v42 = vadd.f32 %v12811_v28, %v2848_v55  ;;  %v2846_v40 = vadd.f32 %v2767_v43, %v2552_v19  ;;  %v11391_v12 = vld [vmem:[%s15032_s3 + $0xd8] sm:$0xff]   ;;  %v10437_v27 = vpop.f32.mrf.mxu0 }
 0x206   : > { %v2914_v15 = vmax.f32 %v2882_v18, 0.0  ;;  %v2555_v60 = vadd.f32 %v10400_v34, %v2261_v57  ;;  %10553 = vmatprep.subr.bf16.mxu1 %v11387_v20  ;;  %10597 = vmatprep.subr.bf16.mxu0 %v11389_v59  ;;  %v15148_v4 = vld [vmem:[#allocation22_spill] sm:$0xff]  ;;  %v1968_v17 = vadd.f32 %v15150_v26, %v1674_v31  ;;  %v1973_v63 = vadd.f32 %v12760_v9, %v15151_v32  ;;  %v2476_v38 = vpop.f32.mrf.mxu1  ;;  %v15153_v31 = vld [vmem:[#allocation56_spill] sm:$0xff] }
 0x207   : > { %v1970_v29 = vadd.f32 %v15149_v44, %v15148_v4  ;;  %v3031_v62 = vld [vmem:[#allocation2 + $0x80] sm:$0xff]  ;;  %v3124_v53 = vpack.c.bf16 %v2916_v13, %v2915_v24  ;;  %v2919_v3 = vmax.f32 %v12964_v42, 0.0  ;;  %v12979_v61 = vadd.f32 %v12811_v28, %v2846_v40  ;;  %v2783_v43 = vpop.f32.mrf.mxu0 }
 0x208   : > { %3001 = vst [vmem:[#allocation2 + $0xb1] sm:$0xff] %v2914_v15  ;;  %v2849_v48 = vadd.f32 %v10434_v23, %v2555_v60  ;;  %v2553_v5 = vadd.f32 %v2476_v38, %v2259_v22  ;;  %v10403_v14 = vpop.f32.mrf.mxu1  ;;  %v12981_v47 = vpack.c.bf16 %v3031_v62, %v3030_v58  ;;  %v12983_v30 = vpack.c.bf16 %v3033_v54, %v3032_v50  ;;  %v15155_v57 = vld [vmem:[#allocation62_spill] sm:$0xff]  ;;  %v15160_v44 = vld [vmem:[#allocation27_spill] sm:$0xff] }
 0x209   : > { %v3123_v9 = vpack.c.bf16 %v2914_v15, %v2913_v0  ;;  %10554 = vmatpush3.bf16.msra.mxu1 %v11387_v20  ;;  %10598 = vmatpush3.bf16.msra.mxu0 %v11389_v59  ;;  %3006 = vst [vmem:[#allocation2 + $0xf1] sm:$0xff] %v2919_v3  ;;  %v2917_v24 = vmax.f32 %v12979_v61, 0.0  ;;  %v2558_v21 = vadd.f32 %v10403_v14, %v2264_v11  ;;  %v11393_v0 = vld [vmem:[%s15032_s3 + $0x80] sm:$0xff]   ;;  %v15152_v20 = vld [vmem:[#allocation25_spill] sm:$0xff]  ;;  %v10438_v41 = vpop.f32.mrf.mxu0 }
 0x20a   : > { %v2888_v35 = vadd.f32 %v12811_v28, %v2849_v48  ;;  %v2847_v25 = vadd.f32 %v2770_v49, %v2553_v5  ;;  %10555 = vmatprep.subr.bf16.mxu1 %v11390_v52  ;;  %10599 = vmatprep.subr.bf16.mxu0 %v11391_v12  ;;  %v1678_v59 = vadd.f32 %v15152_v20, %v1384_v36  ;;  %v2489_v13 = vpop.f32.mrf.mxu1  ;;  %v15156_v36 = vld [vmem:[#allocation32_spill] sm:$0xff]  ;;  %v15157_v33 = vld [vmem:[#allocation58_spill] sm:$0xff] }
 0x20b   : > { %v2265_v51 = vadd.f32 %v15153_v31, %v1970_v29  ;;  %v1971_v56 = vadd.f32 %v15155_v57, %v15154_v8  ;;  %10520 = vmatmul.mubr.bf16.gmra.mxu0 %v12981_v47  ;;  %10476 = vmatmul.mubr.bf16.gmra.mxu1 %v3123_v9  ;;  %3004 = vst [vmem:[#allocation2 + $0xd9] sm:$0xff] %v2917_v24  ;;  %v2786_v49 = vpop.f32.mrf.mxu0  ;;  %v15161_v29 = vld [vmem:[#allocation64_spill] sm:$0xff]  ;;  %v3036_v50 = vld [vmem:[#allocation2 + $0xc0] sm:$0xff] }
 0x20c   : > { %v2920_v18 = vmax.f32 %v2888_v35, 0.0  ;;  %v2886_v55 = vadd.f32 %v12811_v28, %v2847_v25  ;;  %v2852_v19 = vadd.f32 %v10437_v27, %v2558_v21  ;;  %v2556_v23 = vadd.f32 %v2489_v13, %v2262_v39  ;;  %10523 = vmatprep.mubr.bf16.mxu0 %v12983_v30  ;;  %10479 = vmatprep.mubr.bf16.mxu1 %v3124_v53  ;;  %v10404_v15 = vpop.f32.mrf.mxu1  ;;  %v3037_v54 = vld [vmem:[#allocation2 + $0xc8] sm:$0xff]  ;;  %v11395_v31 = vld [vmem:[%s15032_s3 + $0xc0] sm:$0xff]  }
 0x20d   : > { %v1388_v22 = vadd.f32 %v15156_v36, %v12869_v7  ;;  %v2263_v11 = vadd.f32 %v15157_v33, %v1968_v17  ;;  %v2268_v34 = vadd.f32 %v15158_v16, %v1973_v63  ;;  %10556 = vmatpush3.bf16.msra.mxu1 %v11390_v52  ;;  %10600 = vmatpush3.bf16.msra.mxu0 %v11391_v12  ;;  %v11394_v7 = vld [vmem:[%s15032_s3 + $0xc8] sm:$0xff]   ;;  %v13013_v52 = vld [vmem:[%s15032_s3 + $0x138] sm:$0xff]   ;;  %v10441_v27 = vpop.f32.mrf.mxu0 }
 0x20e   : > { %3007 = vst [vmem:[#allocation2 + $0xf9] sm:$0xff] %v2920_v18  ;;  %v2918_v42 = vmax.f32 %v2886_v55, 0.0  ;;  %v13005_v40 = vadd.f32 %v12811_v28, %v2852_v19  ;;  %v2850_v39 = vadd.f32 %v2783_v43, %v2556_v23  ;;  %v2559_v60 = vadd.f32 %v10404_v15, %v2265_v51  ;;  %10601 = vmatprep.subr.bf16.mxu0 %v11392_v45  ;;  %v15159_v12 = vld [vmem:[#allocation61_spill] sm:$0xff]  ;;  %v15162_v17 = vld [vmem:[#allocation66_spill] sm:$0xff]  ;;  %v2492_v63 = vpop.f32.mrf.mxu1  ;;  %v3034_v58 = vld [vmem:[#allocation2 + $0xa8] sm:$0xff] }
 0x20f   : > { %10557 = vmatprep.subr.bf16.mxu1 %v11393_v0  ;;  %v2266_v4 = vadd.f32 %v15159_v12, %v1971_v56  ;;  %v1974_v26 = vadd.f32 %v15161_v29, %v15160_v44  ;;  %v1972_v32 = vadd.f32 %v15162_v17, %v1678_v59  ;;  %v3035_v38 = vld [vmem:[#allocation2 + $0xb0] sm:$0xff]  ;;  %v3126_v62 = vpack.c.bf16 %v2920_v18, %v2919_v3  ;;  %v2799_v59 = vpop.f32.mrf.mxu0  ;;  %v15163_v51 = vld [vmem:[#allocation63_spill] sm:$0xff]  ;;  %v15166_v57 = vld [vmem:[#allocation30_spill] sm:$0xff] }
 0x210   : > { %3005 = vst [vmem:[#allocation2 + $0xe1] sm:$0xff] %v2918_v42  ;;  %v2923_v53 = vmax.f32 %v13005_v40, 0.0  ;;  %v13021_v61 = vadd.f32 %v12811_v28, %v2850_v39  ;;  %v2853_v48 = vadd.f32 %v10438_v41, %v2559_v60  ;;  %v2557_v5 = vadd.f32 %v2492_v63, %v2263_v11  ;;  %v10407_v14 = vpop.f32.mrf.mxu1  ;;  %v15167_v56 = vld [vmem:[#allocation70_spill] sm:$0xff]  ;;  %v15168_v33 = vld [vmem:[#allocation31_spill] sm:$0xff]  ;;  %v15169_v16 = vld [vmem:[#allocation65_spill] sm:$0xff] }
 0x211   : > { %v13023_v9 = vpack.c.bf16 %v3035_v38, %v3034_v58  ;;  %v13025_v35 = vpack.c.bf16 %v3037_v54, %v3036_v50  ;;  %v3125_v25 = vpack.c.bf16 %v2918_v42, %v2917_v24  ;;  %10602 = vmatpush3.bf16.msra.mxu0 %v11392_v45  ;;  %10558 = vmatpush3.bf16.msra.mxu1 %v11393_v0  ;;  %v15164_v24 = vld [vmem:[#allocation29_spill] sm:$0xff]  ;;  %v15165_v45 = vld [vmem:[#allocation68_spill] sm:$0xff]  ;;  %v10442_v36 = vpop.f32.mrf.mxu0 }
 0x212   : > { %3010 = vst [vmem:[#allocation2 + $0x121] sm:$0xff] %v2923_v53  ;;  %v2921_v3 = vmax.f32 %v13021_v61, 0.0  ;;  %v2892_v21 = vadd.f32 %v12811_v28, %v2853_v48  ;;  %v2851_v43 = vadd.f32 %v2786_v49, %v2557_v5  ;;  %v2562_v20 = vadd.f32 %v10407_v14, %v2268_v34  ;;  %10603 = vmatprep.subr.bf16.mxu0 %v11394_v7  ;;  %v2505_v18 = vpop.f32.mrf.mxu1  ;;  %v13049_v12 = vld [vmem:[%s15032_s3 + $0x178] sm:$0xff]   ;;  %v3040_v58 = vld [vmem:[#allocation2 + $0xf0] sm:$0xff] }
 0x213   : > { %10639 = vmatprep.subr.bf16.mxu1 %v13013_v52  ;;  %v2269_v8 = vadd.f32 %v15163_v51, %v1974_v26  ;;  %v1977_v0 = vadd.f32 %v15165_v45, %v15164_v24  ;;  %v1975_v13 = vadd.f32 %v15167_v56, %v15166_v57  ;;  %10524 = vmatmul.mubr.bf16.gmra.mxu0 %v13023_v9  ;;  %v2802_v49 = vpop.f32.mrf.mxu0  ;;  %v15171_v44 = vld [vmem:[#allocation69_spill] sm:$0xff]  ;;  %v15174_v57 = vld [vmem:[#allocation72_spill] sm:$0xff] }
 0x214   : > { %10480 = vmatmul.mubr.bf16.gmra.mxu1 %v3125_v25  ;;  %3008 = vst [vmem:[#allocation2 + $0x109] sm:$0xff] %v2921_v3  ;;  %v2924_v55 = vmax.f32 %v2892_v21, 0.0  ;;  %v2890_v19 = vadd.f32 %v12811_v28, %v2851_v43  ;;  %v2856_v23 = vadd.f32 %v10441_v27, %v2562_v20  ;;  %v2560_v41 = vadd.f32 %v2505_v18, %v2266_v4  ;;  %v10408_v15 = vpop.f32.mrf.mxu1  ;;  %v3038_v27 = vld [vmem:[#allocation2 + $0xd8] sm:$0xff] }
 0x215   : > { %10527 = vmatprep.mubr.bf16.mxu0 %v13025_v35  ;;  %10483 = vmatprep.mubr.bf16.mxu1 %v3126_v62  ;;  %v1682_v11 = vadd.f32 %v15168_v33, %v1388_v22  ;;  %v2267_v34 = vadd.f32 %v15169_v16, %v1972_v32  ;;  %v2563_v60 = vadd.f32 %v10408_v15, %v2269_v8  ;;  %v3041_v54 = vld [vmem:[#allocation2 + $0xf8] sm:$0xff]  ;;  %v15170_v22 = vld [vmem:[#allocation67_spill] sm:$0xff]  ;;  %v10445_v5 = vpop.f32.mrf.mxu0 }
 0x216   : > { %10604 = vmatpush3.bf16.msra.mxu0 %v11394_v7  ;;  %3011 = vst [vmem:[#allocation2 + $0x129] sm:$0xff] %v2924_v55  ;;  %v13043_v42 = vmax.f32 %v2890_v19, 0.0  ;;  %v2895_v40 = vadd.f32 %v12811_v28, %v2856_v23  ;;  %v2854_v39 = vadd.f32 %v2799_v59, %v2560_v41  ;;  %v2272_v4 = vadd.f32 %v15170_v22, %v1977_v0  ;;  %v15172_v7 = vld [vmem:[#allocation33_spill] sm:$0xff]  ;;  %v2508_v17 = vpop.f32.mrf.mxu1  ;;  %v15173_v8 = vld [vmem:[#allocation71_spill] sm:$0xff] }
 0x217   : > { %10605 = vmatprep.subr.bf16.mxu0 %v11395_v31  ;;  %v2270_v29 = vadd.f32 %v15171_v44, %v1975_v13  ;;  %v1978_v26 = vadd.f32 %v12787_v10, %v15172_v7  ;;  %v3039_v32 = vld [vmem:[#allocation2 + $0xe0] sm:$0xff]  ;;  %v3128_v63 = vpack.c.bf16 %v2924_v55, %v2923_v53  ;;  %v2857_v61 = vadd.f32 %v10442_v36, %v2563_v60  ;;  %v2815_v51 = vpop.f32.mrf.mxu0 }
 0x218   : > { %3009 = vst [vmem:[#allocation2 + $0x111] sm:$0xff] %v13043_v42  ;;  %v2927_v38 = vmax.f32 %v2895_v40, 0.0  ;;  %v2893_v62 = vadd.f32 %v12811_v28, %v2854_v39  ;;  %v2561_v48 = vadd.f32 %v2508_v17, %v2267_v34  ;;  %v1976_v50 = vadd.f32 %v12792_v37, %v1682_v11  ;;  %v10411_v14 = vpop.f32.mrf.mxu1 }
 0x219   : > { %v13058_v25 = vpack.c.bf16 %v3039_v32, %v3038_v27  ;;  %v13060_v21 = vpack.c.bf16 %v3041_v54, %v3040_v58  ;;  %v3127_v10 = vpack.c.bf16 %v13043_v42, %v2921_v3  ;;  %v2896_v43 = vadd.f32 %v12811_v28, %v2857_v61  ;;  %v10446_v18 = vpop.f32.mrf.mxu0  ;;  %v3044_v22 = vld [vmem:[#allocation2 + $0x120] sm:$0xff] }
 0x21a   : > { %10606 = vmatpush3.bf16.msra.mxu0 %v11395_v31  ;;  %3014 = vst [vmem:[#allocation2 + $0x151] sm:$0xff] %v2927_v38  ;;  %v2925_v53 = vmax.f32 %v2893_v62, 0.0  ;;  %v2855_v20 = vadd.f32 %v2802_v49, %v2561_v48  ;;  %v2566_v59 = vadd.f32 %v10411_v14, %v2272_v4  ;;  %v2273_v24 = vadd.f32 %v15173_v8, %v1978_v26  ;;  %v2521_v37 = vpop.f32.mrf.mxu1  ;;  %v3572_v8 = vld [vmem:[#allocation2 + $0x3a] sm:$0xff] }
 0x21b   : > { %10687 = vmatprep.subr.bf16.mxu0 %v13049_v12  ;;  %10528 = vmatmul.mubr.bf16.gmra.mxu0 %v13058_v25  ;;  %v2928_v45 = vmax.f32 %v2896_v43, 0.0  ;;  %v2564_v0 = vadd.f32 %v2521_v37, %v2270_v29  ;;  %v2271_v56 = vadd.f32 %v15174_v57, %v1976_v50  ;;  %v3042_v60 = vld [vmem:[#allocation2 + $0x108] sm:$0xff]  ;;  %v2818_v49 = vpop.f32.mrf.mxu0  ;;  %v11397_v37 = vld [vmem:[%s15032_s3 + $0x130] sm:$0xff]  }
 0x21c   : > { %10484 = vmatmul.mubr.bf16.gmra.mxu1 %v3127_v10  ;;  %3012 = vst [vmem:[#allocation2 + $0x139] sm:$0xff] %v2925_v53  ;;  %v2894_v3 = vadd.f32 %v12811_v28, %v2855_v20  ;;  %v2860_v31 = vadd.f32 %v10445_v5, %v2566_v59  ;;  %10531 = vmatprep.mubr.bf16.mxu0 %v13060_v21  ;;  %v10412_v13 = vpop.f32.mrf.mxu1  ;;  %v3569_v10 = vld [vmem:[#allocation2 + $0x1a] sm:$0xff]  ;;  %v3575_v57 = vld [vmem:[#allocation2 + $0x62] sm:$0xff] }
 0x21d   : > { %10487 = vmatprep.mubr.bf16.mxu1 %v3128_v63  ;;  %3015 = vst [vmem:[#allocation2 + $0x159] sm:$0xff] %v2928_v45  ;;  %v2858_v23 = vadd.f32 %v2815_v51, %v2564_v0  ;;  %v2567_v41 = vadd.f32 %v10412_v13, %v2273_v24  ;;  %v3045_v11 = vld [vmem:[#allocation2 + $0x128] sm:$0xff]  ;;  %v3130_v16 = vpack.c.bf16 %v2928_v45, %v2927_v38  ;;  %v3571_v51 = vld [vmem:[#allocation2 + $0x32] sm:$0xff] }
 0x21e   : > { %v13070_v55 = vmax.f32 %v2894_v3, 0.0  ;;  %v2899_v19 = vadd.f32 %v12811_v28, %v2860_v31  ;;  %v2524_v36 = vpop.f32.mrf.mxu1  ;;  %v13081_v26 = vpack.c.bf16 %v3045_v11, %v3044_v22  ;;  %v3567_v63 = vld [vmem:[#allocation2 + $0x2] sm:$0xff]  ;;  %v3568_v38 = vld [vmem:[#allocation2 + $0xa] sm:$0xff]  ;;  %v13107_v45 = vpack.c.bf16 %v3572_v8, %v3571_v51  ;;  %v3574_v0 = vld [vmem:[#allocation2 + $0x52] sm:$0xff] }
 0x21f   : > { %v3043_v33 = vld [vmem:[#allocation2 + $0x110] sm:$0xff]  ;;  %v2897_v15 = vadd.f32 %v12811_v28, %v2858_v23  ;;  %v2861_v40 = vadd.f32 %v10446_v18, %v2567_v41  ;;  %v2565_v39 = vadd.f32 %v2524_v36, %v2271_v56  ;;  %v3599_v50 = vpack.c.bf16 %v3568_v38, %v3567_v63  ;;  %v11398_v3 = vld [vmem:[%s15032_s3 + $0x128] sm:$0xff]   ;;  %v3577_v23 = vld [vmem:[#allocation2 + $0x7a] sm:$0xff] }
 0x220   : > { %3013 = vst [vmem:[#allocation2 + $0x141] sm:$0xff] %v13070_v55  ;;  %v2931_v34 = vmax.f32 %v2899_v19, 0.0  ;;  %v13075_v54 = vpack.c.bf16 %v3043_v33, %v3042_v60  ;;  %v3129_v4 = vpack.c.bf16 %v13070_v55, %v2925_v53  ;;  %v3570_v53 = vld [vmem:[#allocation2 + $0x22] sm:$0xff]  ;;  %v3573_v31 = vld [vmem:[#allocation2 + $0x4a] sm:$0xff]  ;;  %v11400_v19 = vld [vmem:[%s15032_s3 + $0x118] sm:$0xff]  }
 0x221   : > { %v2929_v44 = vmax.f32 %v2897_v15, 0.0  ;;  %v13079_v29 = vadd.f32 %v12811_v28, %v2861_v40  ;;  %v2859_v7 = vadd.f32 %v2818_v49, %v2565_v39  ;;  %v3048_v14 = vld [vmem:[#allocation2 + $0x150] sm:$0xff]  ;;  %v13100_v24 = vpack.c.bf16 %v3570_v53, %v3569_v10  ;;  %v3578_v41 = vld [vmem:[#allocation2 + $0x82] sm:$0xff]  ;;  %v3580_v33 = vld [vmem:[#allocation2 + $0x9a] sm:$0xff] }
 0x222   : > { %3018 = vst [vmem:[#allocation2 + $0x181] sm:$0xff] %v2931_v34  ;;  %v3576_v56 = vld [vmem:[#allocation2 + $0x6a] sm:$0xff]  ;;  %v13115_v13 = vpack.c.bf16 %v3574_v0, %v3573_v31  ;;  %v3579_v36 = vld [vmem:[#allocation2 + $0x92] sm:$0xff]  ;;  %v3583_v39 = vld [vmem:[#allocation2 + $0xc2] sm:$0xff] }
 0x223   : > { %10532 = vmatmul.mubr.bf16.gmra.mxu0 %v13075_v54  ;;  %3016 = vst [vmem:[#allocation2 + $0x169] sm:$0xff] %v2929_v44  ;;  %v2932_v17 = vmax.f32 %v13079_v29, 0.0  ;;  %v2898_v32 = vadd.f32 %v12811_v28, %v2859_v7  ;;  %v3046_v61 = vld [vmem:[#allocation2 + $0x138] sm:$0xff]  ;;  %v13117_v18 = vpack.c.bf16 %v3576_v56, %v3575_v57  ;;  %v13138_v11 = vpack.c.bf16 %v3580_v33, %v3579_v36  ;;  %v11406_v34 = vld [vmem:[%s15032_s3 + $0x108] sm:$0xff]   ;;  %v11408_v22 = vld [vmem:[%s15032_s3 + $0x150] sm:$0xff]  }
 0x224   : > { %10488 = vmatmul.mubr.bf16.gmra.mxu1 %v3129_v4  ;;  %10535 = vmatprep.mubr.bf16.mxu0 %v13081_v26  ;;  %v3049_v5 = vld [vmem:[#allocation2 + $0x158] sm:$0xff]  ;;  %v3581_v15 = vld [vmem:[#allocation2 + $0xaa] sm:$0xff]  ;;  %v11409_v4 = vld [vmem:[%s15032_s3 + $0x100] sm:$0xff]  }
 0x225   : > { %10491 = vmatprep.mubr.bf16.mxu1 %v3130_v16  ;;  %3019 = vst [vmem:[#allocation2 + $0x189] sm:$0xff] %v2932_v17  ;;  %v2930_v62 = vmax.f32 %v2898_v32, 0.0  ;;  %v13093_v28 = vpack.c.bf16 %v3049_v5, %v3048_v14  ;;  %v11405_v16 = vld [vmem:[%s15032_s3 + $0x160] sm:$0xff]   ;;  %v3582_v40 = vld [vmem:[#allocation2 + $0xb2] sm:$0xff]  ;;  %v3584_v60 = vld [vmem:[#allocation2 + $0xca] sm:$0xff] }
 0x226   : > { %v13156_v49 = vpack.c.bf16 %v3582_v40, %v3581_v15  ;;  %v3585_v7 = vld [vmem:[#allocation2 + $0xda] sm:$0xff]  ;;  %v3586_v32 = vld [vmem:[#allocation2 + $0xe2] sm:$0xff]  ;;  %v3587_v63 = vld [vmem:[#allocation2 + $0xf2] sm:$0xff] }
 0x227   : > { %v3047_v48 = vld [vmem:[#allocation2 + $0x140] sm:$0xff]  ;;  %3017 = vst [vmem:[#allocation2 + $0x171] sm:$0xff] %v2930_v62  ;;  %v13091_v58 = vpack.c.bf16 %v2930_v62, %v2929_v44  ;;  %v11410_v44 = vld [vmem:[%s15032_s3 + $0x148] sm:$0xff]   ;;  %v13176_v62 = vpack.c.bf16 %v3586_v32, %v3585_v7  ;;  %v3590_v5 = vld [vmem:[#allocation2 + $0x112] sm:$0xff] }
 0x228   : > { %v13089_v27 = vpack.c.bf16 %v3047_v48, %v3046_v61  ;;  %v3588_v38 = vld [vmem:[#allocation2 + $0xfa] sm:$0xff]  ;;  %v3589_v48 = vld [vmem:[#allocation2 + $0x10a] sm:$0xff]  ;;  %v3591_v14 = vld [vmem:[#allocation2 + $0x122] sm:$0xff] }
 0x229   : > { %v11411_v61 = vld [vmem:[%s15032_s3 + $0x140] sm:$0xff]   ;;  %v3592_v10 = vld [vmem:[#allocation2 + $0x12a] sm:$0xff]  ;;  %v13190_v53 = vpack.c.bf16 %v3590_v5, %v3589_v48 }
 0x22a   : > { %v3050_v43 = vld [vmem:[#allocation2 + $0x168] sm:$0xff]  ;;  %v3596_v51 = vld [vmem:[#allocation2 + $0x15a] sm:$0xff]  ;;  %v11418_v40 = vld [vmem:[%s15032_s3 + $0x1f0] sm:$0xff]  }
 0x22b   : > { %10536 = vmatmul.mubr.bf16.gmra.mxu0 %v13089_v27  ;;  %v4179_v0 = vld [vmem:[#allocation2 + $0x19] sm:$0xff]  ;;  %v4186_v36 = vld [vmem:[#allocation2 + $0x69] sm:$0xff]  ;;  %v4188_v33 = vld [vmem:[#allocation2 + $0x81] sm:$0xff] }
 0x22c   : > { %10492 = vmatmul.mubr.bf16.gmra.mxu1 %v13091_v58  ;;  %10539 = vmatprep.mubr.bf16.mxu0 %v13093_v28  ;;  %v4182_v56 = vld [vmem:[#allocation2 + $0x39] sm:$0xff]  ;;  %v11419_v7 = vld [vmem:[%s15032_s3 + $0x190] sm:$0xff]  }
 0x22d   : > { %10559 = vmatprep.mubr.bf16.mxu1 %v3599_v50  ;;  %v11417_v50 = vld [vmem:[%s15032_s3 + $0x1f8] sm:$0xff]   ;;  %v11421_v32 = vld [vmem:[%s15032_s3 + $0x1e0] sm:$0xff]   ;;  %v11429_v29 = vld [vmem:[%s15032_s3 + $0x230] sm:$0xff]  }
 0x22e   : > { %v3051_v20 = vld [vmem:[#allocation2 + $0x170] sm:$0xff] }
 0x22f   : > { %v13098_v59 = vpack.c.bf16 %v3051_v20, %v3050_v43  ;;  %v3594_v43 = vld [vmem:[#allocation2 + $0x142] sm:$0xff]  ;;  %v3595_v20 = vld [vmem:[#allocation2 + $0x152] sm:$0xff] }
 0x233   : > { %10540 = vmatmul.mubr.bf16.gmra.mxu0 %v13098_v59 }
 0x234   : > { %10560 = vmatmul.mubr.bf16.vlgmr.msra.gmra.mxu1 %v13100_v24  ;;  %10607 = vmatprep.mubr.bf16.mxu0 %v12898_v1  ;;  %v11399_v1 = vld [vmem:[%s15032_s3 + $0x120] sm:$0xff]  }
 0x235   : > { %10640 = vmatpush3.bf16.msra.mxu1 %v13013_v52  ;;  %10563 = vmatprep.mubr.bf16.mxu1 %v13107_v45  ;;  %v11402_v52 = vld [vmem:[%s15032_s3 + $0x170] sm:$0xff]  }
 0x236   : > { %10641 = vmatprep.subr.bf16.mxu1 %v11397_v37 }
 0x239   : > { %10642 = vmatpush3.bf16.msra.mxu1 %v11397_v37  ;;  %v13200_v37 = vpack.c.bf16 %v3596_v51, %v3595_v20  ;;  %v4197_v20 = vld [vmem:[#allocation2 + $0xf1] sm:$0xff] }
 0x23a   : > { %10643 = vmatprep.subr.bf16.mxu1 %v11398_v3 }
 0x23b   : > { %10608 = vmatmul.mubr.bf16.vlgmr.msra.gmra.mxu0 %v12900_v6  ;;  %v11404_v6 = vld [vmem:[%s15032_s3 + $0x168] sm:$0xff]  }
 0x23c   : > { %10564 = vmatmul.mubr.bf16.gmra.mxu1 %v13115_v13  ;;  %10611 = vmatprep.mubr.bf16.mxu0 %v12941_v2  ;;  %v13136_v2 = vpack.c.bf16 %v3578_v41, %v3577_v23  ;;  %v11413_v41 = vld [vmem:[%s15032_s3 + $0x1b0] sm:$0xff]  }
 0x23d   : > { %10567 = vmatprep.mubr.bf16.mxu1 %v13117_v18  ;;  %10644 = vmatpush3.bf16.msra.mxu1 %v11398_v3  ;;  %v4180_v3 = vld [vmem:[#allocation2 + $0x21] sm:$0xff] }
 0x23e   : > { %10688 = vmatpush3.bf16.msra.mxu0 %v13049_v12  ;;  %10645 = vmatprep.subr.bf16.mxu1 %v11399_v1  ;;  %v11403_v12 = vld [vmem:[%s15032_s3 + $0x110] sm:$0xff]   ;;  %v4211_v57 = vpack.c.bf16 %v4180_v3, %v4179_v0  ;;  %v13299_v3 = vld [vmem:[#allocation2 + $0x139] sm:$0xff]  ;;  %v4201_v0 = vld [vmem:[#allocation2 + $0x121] sm:$0xff] }
 0x23f   : > { %10689 = vmatprep.subr.bf16.mxu0 %v11402_v52 }
 0x241   : > { %10646 = vmatpush3.bf16.msra.mxu1 %v11399_v1  ;;  %v3903_v1 = vld [vmem:[#allocation2 + $0x180] sm:$0xff] }
 0x242   : > { %10690 = vmatpush3.bf16.msra.mxu0 %v11402_v52  ;;  %10647 = vmatprep.subr.bf16.mxu1 %v11400_v19  ;;  %v4184_v52 = vld [vmem:[#allocation2 + $0x51] sm:$0xff] }
 0x243   : > { %10691 = vmatprep.subr.bf16.mxu0 %v11404_v6  ;;  %10612 = vmatmul.mubr.bf16.gmra.mxu0 %v12943_v46  ;;  %v11407_v46 = vld [vmem:[%s15032_s3 + $0x158] sm:$0xff]  }
 0x244   : > { %10568 = vmatmul.mubr.bf16.gmra.mxu1 %v13136_v2  ;;  %10615 = vmatprep.mubr.bf16.mxu0 %v12981_v47  ;;  %v13158_v47 = vpack.c.bf16 %v3584_v60, %v3583_v39  ;;  %v11416_v39 = vld [vmem:[%s15032_s3 + $0x198] sm:$0xff]   ;;  %v11420_v60 = vld [vmem:[%s15032_s3 + $0x1e8] sm:$0xff]  }
 0x245   : > { %10571 = vmatprep.mubr.bf16.mxu1 %v13138_v11  ;;  %10648 = vmatpush3.bf16.msra.mxu1 %v11400_v19 }
 0x246   : > { %10692 = vmatpush3.bf16.msra.mxu0 %v11404_v6  ;;  %10649 = vmatprep.subr.bf16.mxu1 %v11403_v12  ;;  %v4183_v6 = vld [vmem:[#allocation2 + $0x49] sm:$0xff] }
 0x247   : > { %10693 = vmatprep.subr.bf16.mxu0 %v11405_v16 }
 0x249   : > { %10650 = vmatpush3.bf16.msra.mxu1 %v11403_v12  ;;  %v4185_v12 = vld [vmem:[#allocation2 + $0x61] sm:$0xff] }
 0x24a   : > { %10694 = vmatpush3.bf16.msra.mxu0 %v11405_v16  ;;  %10651 = vmatprep.subr.bf16.mxu1 %v11406_v34  ;;  %v13227_v16 = vpack.c.bf16 %v4186_v36, %v4185_v12  ;;  %v11430_v36 = vld [vmem:[%s15032_s3 + $0x228] sm:$0xff]  }
 0x24b   : > { %10695 = vmatprep.subr.bf16.mxu0 %v11407_v46  ;;  %10616 = vmatmul.mubr.bf16.gmra.mxu0 %v12983_v30  ;;  %v11412_v30 = vld [vmem:[%s15032_s3 + $0x1b8] sm:$0xff]  }
 0x24c   : > { %10572 = vmatmul.mubr.bf16.gmra.mxu1 %v13156_v49  ;;  %10619 = vmatprep.mubr.bf16.mxu0 %v13023_v9  ;;  %v13178_v9 = vpack.c.bf16 %v3588_v38, %v3587_v63  ;;  %v11422_v63 = vld [vmem:[%s15032_s3 + $0x188] sm:$0xff]   ;;  %v11423_v38 = vld [vmem:[%s15032_s3 + $0x1d8] sm:$0xff]  }
 0x24d   : > { %10575 = vmatprep.mubr.bf16.mxu1 %v13158_v47  ;;  %10652 = vmatpush3.bf16.msra.mxu1 %v11406_v34  ;;  %v4187_v34 = vld [vmem:[#allocation2 + $0x79] sm:$0xff] }
 0x24e   : > { %10696 = vmatpush3.bf16.msra.mxu0 %v11407_v46  ;;  %10653 = vmatprep.subr.bf16.mxu1 %v11409_v4  ;;  %v13229_v15 = vpack.c.bf16 %v4188_v33, %v4187_v34  ;;  %v4190_v46 = vld [vmem:[#allocation2 + $0x99] sm:$0xff] }
 0x24f   : > { %10697 = vmatprep.subr.bf16.mxu0 %v11408_v22  ;;  %v4799_v33 = vld [vmem:[#allocation2 + $0x80] sm:$0xff]  ;;  %v4801_v34 = vld [vmem:[#allocation2 + $0x98] sm:$0xff] }
 0x251   : > { %10654 = vmatpush3.bf16.msra.mxu1 %v11409_v4 }
 0x252   : > { %10698 = vmatpush3.bf16.msra.mxu0 %v11408_v22  ;;  %10735 = vmatprep.subr.bf16.mxu1 %v11412_v30  ;;  %v4189_v22 = vld [vmem:[#allocation2 + $0x91] sm:$0xff] }
 0x253   : > { %10699 = vmatprep.subr.bf16.mxu0 %v11410_v44  ;;  %10620 = vmatmul.mubr.bf16.gmra.mxu0 %v13025_v35  ;;  %v13192_v35 = vpack.c.bf16 %v3592_v10, %v3591_v14  ;;  %v13247_v4 = vpack.c.bf16 %v4190_v46, %v4189_v22  ;;  %v11425_v14 = vld [vmem:[%s15032_s3 + $0x180] sm:$0xff]  }
 0x254   : > { %10576 = vmatmul.mubr.bf16.gmra.mxu1 %v13176_v62  ;;  %10623 = vmatprep.mubr.bf16.mxu0 %v13058_v25  ;;  %v3593_v25 = vld [vmem:[#allocation2 + $0x13a] sm:$0xff] }
 0x255   : > { %10579 = vmatprep.mubr.bf16.mxu1 %v13178_v9  ;;  %v13198_v8 = vpack.c.bf16 %v3594_v43, %v3593_v25  ;;  %v4198_v10 = vld [vmem:[#allocation2 + $0xf9] sm:$0xff]  ;;  %v11426_v25 = vld [vmem:[%s15032_s3 + $0x1c8] sm:$0xff]  }
 0x256   : > { %10700 = vmatpush3.bf16.msra.mxu0 %v11410_v44  ;;  %v11428_v43 = vld [vmem:[%s15032_s3 + $0x238] sm:$0xff]   ;;  %v13289_v51 = vpack.c.bf16 %v4198_v10, %v4197_v20 }
 0x257   : > { %10701 = vmatprep.subr.bf16.mxu0 %v11411_v61 }
 0x25a   : > { %10702 = vmatpush3.bf16.msra.mxu0 %v11411_v61  ;;  %v4193_v61 = vld [vmem:[#allocation2 + $0xc1] sm:$0xff] }
 0x25b   : > { %10783 = vmatprep.subr.bf16.mxu0 %v11417_v50  ;;  %10624 = vmatmul.mubr.bf16.gmra.mxu0 %v13060_v21  ;;  %v3597_v21 = vld [vmem:[#allocation2 + $0x16a] sm:$0xff] }
 0x25c   : > { %10580 = vmatmul.mubr.bf16.gmra.mxu1 %v13190_v53  ;;  %10627 = vmatprep.mubr.bf16.mxu0 %v13075_v54  ;;  %v3598_v54 = vld [vmem:[#allocation2 + $0x172] sm:$0xff] }
 0x25d   : > { %10583 = vmatprep.mubr.bf16.mxu1 %v13192_v35  ;;  %v13206_v31 = vpack.c.bf16 %v3598_v54, %v3597_v21  ;;  %v11427_v21 = vld [vmem:[%s15032_s3 + $0x1c0] sm:$0xff]   ;;  %v4202_v54 = vld [vmem:[#allocation2 + $0x129] sm:$0xff] }
 0x263   : > { %10628 = vmatmul.mubr.bf16.gmra.mxu0 %v13081_v26  ;;  %v3904_v26 = vld [vmem:[#allocation2 + $0x188] sm:$0xff] }
 0x264   : > { %10584 = vmatmul.mubr.bf16.gmra.mxu1 %v13198_v8  ;;  %10631 = vmatprep.mubr.bf16.mxu0 %v13089_v27  ;;  %v4181_v27 = vld [vmem:[#allocation2 + $0x31] sm:$0xff]  ;;  %v13211_v19 = vpack.c.bf16 %v3904_v26, %v3903_v1 }
 0x265   : > { %10587 = vmatprep.mubr.bf16.mxu1 %v13200_v37  ;;  %v13213_v23 = vpack.c.bf16 %v4182_v56, %v4181_v27  ;;  %v4792_v56 = vld [vmem:[#allocation2 + $0x30] sm:$0xff] }
 0x266   : > { %v4516_v27 = vld [vmem:[#allocation2 + $0x18a] sm:$0xff] }
 0x26b   : > { %10632 = vmatmul.mubr.bf16.gmra.mxu0 %v13093_v28  ;;  %v13220_v28 = vpack.c.bf16 %v4184_v52, %v4183_v6  ;;  %v4794_v52 = vld [vmem:[#allocation2 + $0x48] sm:$0xff] }
 0x26c   : > { %10588 = vmatmul.mubr.bf16.gmra.mxu1 %v13206_v31  ;;  %10635 = vmatprep.mubr.bf16.mxu0 %v13098_v59  ;;  %v11414_v59 = vld [vmem:[%s15032_s3 + $0x1a8] sm:$0xff]  }
 0x26d   : > { %10655 = vmatprep.mubr.bf16.mxu1 %v4211_v57  ;;  %v4223_v57 = vpack.c.bf16 %v13070_v55, %v13299_v3  ;;  %v13314_v55 = vld [vmem:[#allocation2 + $0x181] sm:$0xff] }
 0x273   : > { %10636 = vmatmul.mubr.bf16.gmra.mxu0 %v13211_v19 }
 0x274   : > { %10656 = vmatmul.mubr.bf16.vlgmr.msra.gmra.mxu1 %v13213_v23  ;;  %10703 = vmatprep.mubr.bf16.mxu0 %v13100_v24  ;;  %v11415_v24 = vld [vmem:[%s15032_s3 + $0x1a0] sm:$0xff]  }
 0x275   : > { %10736 = vmatpush3.bf16.msra.mxu1 %v11412_v30  ;;  %10659 = vmatprep.mubr.bf16.mxu1 %v13220_v28  ;;  %v4194_v30 = vld [vmem:[#allocation2 + $0xc9] sm:$0xff] }
 0x276   : > { %10737 = vmatprep.subr.bf16.mxu1 %v11413_v41  ;;  %v13267_v48 = vpack.c.bf16 %v4194_v30, %v4193_v61  ;;  %v4805_v61 = vld [vmem:[#allocation2 + $0xc8] sm:$0xff] }
 0x279   : > { %10738 = vmatpush3.bf16.msra.mxu1 %v11413_v41 }
 0x27a   : > { %10739 = vmatprep.subr.bf16.mxu1 %v11414_v59 }
 0x27b   : > { %10704 = vmatmul.mubr.bf16.vlgmr.msra.gmra.mxu0 %v13107_v45  ;;  %v4192_v45 = vld [vmem:[#allocation2 + $0xb1] sm:$0xff] }
 0x27c   : > { %10660 = vmatmul.mubr.bf16.gmra.mxu1 %v13227_v16  ;;  %10707 = vmatprep.mubr.bf16.mxu0 %v13115_v13  ;;  %v4191_v13 = vld [vmem:[#allocation2 + $0xa9] sm:$0xff] }
 0x27d   : > { %10663 = vmatprep.mubr.bf16.mxu1 %v13229_v15  ;;  %10740 = vmatpush3.bf16.msra.mxu1 %v11414_v59  ;;  %v13249_v44 = vpack.c.bf16 %v4192_v45, %v4191_v13 }
 0x27e   : > { %10784 = vmatpush3.bf16.msra.mxu0 %v11417_v50  ;;  %10741 = vmatprep.subr.bf16.mxu1 %v11415_v24  ;;  %v11424_v50 = vld [vmem:[%s15032_s3 + $0x1d0] sm:$0xff]  }
 0x27f   : > { %10785 = vmatprep.subr.bf16.mxu0 %v11418_v40 }
 0x281   : > { %10742 = vmatpush3.bf16.msra.mxu1 %v11415_v24  ;;  %v4798_v24 = vld [vmem:[#allocation2 + $0x78] sm:$0xff] }
 0x282   : > { %10786 = vmatpush3.bf16.msra.mxu0 %v11418_v40  ;;  %10743 = vmatprep.subr.bf16.mxu1 %v11416_v39  ;;  %v4827_v46 = vpack.c.bf16 %v4799_v33, %v4798_v24 }
 0x283   : > { %10787 = vmatprep.subr.bf16.mxu0 %v11420_v60  ;;  %10708 = vmatmul.mubr.bf16.gmra.mxu0 %v13117_v18  ;;  %v4196_v18 = vld [vmem:[#allocation2 + $0xe1] sm:$0xff] }
 0x284   : > { %10664 = vmatmul.mubr.bf16.gmra.mxu1 %v13247_v4  ;;  %10711 = vmatprep.mubr.bf16.mxu0 %v13136_v2  ;;  %v4195_v2 = vld [vmem:[#allocation2 + $0xd9] sm:$0xff] }
 0x285   : > { %10667 = vmatprep.mubr.bf16.mxu1 %v13249_v44  ;;  %10744 = vmatpush3.bf16.msra.mxu1 %v11416_v39  ;;  %v13269_v5 = vpack.c.bf16 %v4196_v18, %v4195_v2  ;;  %v4800_v39 = vld [vmem:[#allocation2 + $0x90] sm:$0xff] }
 0x286   : > { %10788 = vmatpush3.bf16.msra.mxu0 %v11420_v60  ;;  %10745 = vmatprep.subr.bf16.mxu1 %v11419_v7  ;;  %v4828_v60 = vpack.c.bf16 %v4801_v34, %v4800_v39  ;;  %v4811_v34 = vld [vmem:[#allocation2 + $0x110] sm:$0xff] }
 0x287   : > { %10789 = vmatprep.subr.bf16.mxu0 %v11421_v32 }
 0x289   : > { %10746 = vmatpush3.bf16.msra.mxu1 %v11419_v7 }
 0x28a   : > { %10790 = vmatpush3.bf16.msra.mxu0 %v11421_v32  ;;  %10747 = vmatprep.subr.bf16.mxu1 %v11422_v63 }
 0x28b   : > { %10791 = vmatprep.subr.bf16.mxu0 %v11423_v38  ;;  %10712 = vmatmul.mubr.bf16.gmra.mxu0 %v13138_v11  ;;  %v13287_v11 = vld [vmem:[#allocation2 + $0x109] sm:$0xff] }
 0x28c   : > { %10668 = vmatmul.mubr.bf16.gmra.mxu1 %v13267_v48  ;;  %10715 = vmatprep.mubr.bf16.mxu0 %v13156_v49  ;;  %v4221_v49 = vpack.c.bf16 %v13043_v42, %v13287_v11  ;;  %v13301_v42 = vpack.c.bf16 %v4202_v54, %v4201_v0 }
 0x28d   : > { %10671 = vmatprep.mubr.bf16.mxu1 %v13269_v5  ;;  %10748 = vmatpush3.bf16.msra.mxu1 %v11422_v63  ;;  %v4803_v63 = vld [vmem:[#allocation2 + $0xb0] sm:$0xff] }
 0x28e   : > { %10792 = vmatpush3.bf16.msra.mxu0 %v11423_v38  ;;  %10749 = vmatprep.subr.bf16.mxu1 %v11425_v14  ;;  %v11432_v38 = vld [vmem:[%s15032_s3 + $0x218] sm:$0xff]  }
 0x28f   : > { %10793 = vmatprep.subr.bf16.mxu0 %v11424_v50 }
 0x291   : > { %10750 = vmatpush3.bf16.msra.mxu1 %v11425_v14 }
 0x292   : > { %10794 = vmatpush3.bf16.msra.mxu0 %v11424_v50  ;;  %10831 = vmatprep.subr.bf16.mxu1 %v11428_v43  ;;  %v4802_v50 = vld [vmem:[#allocation2 + $0xa8] sm:$0xff] }
 0x293   : > { %10795 = vmatprep.subr.bf16.mxu0 %v11426_v25  ;;  %10716 = vmatmul.mubr.bf16.gmra.mxu0 %v13158_v47  ;;  %v4206_v47 = vld [vmem:[#allocation2 + $0x159] sm:$0xff]  ;;  %v4829_v10 = vpack.c.bf16 %v4803_v63, %v4802_v50  ;;  %v5117_v50 = vld [vmem:[#allocation2 + $0x111] sm:$0xff] }
 0x294   : > { %10672 = vmatmul.mubr.bf16.gmra.mxu1 %v13289_v51  ;;  %10719 = vmatprep.mubr.bf16.mxu0 %v13176_v62  ;;  %v4205_v62 = vld [vmem:[#allocation2 + $0x151] sm:$0xff] }
 0x295   : > { %10675 = vmatprep.mubr.bf16.mxu1 %v4221_v49  ;;  %v13308_v26 = vpack.c.bf16 %v4206_v47, %v4205_v62  ;;  %v11433_v49 = vld [vmem:[%s15032_s3 + $0x210] sm:$0xff]  }
 0x296   : > { %10796 = vmatpush3.bf16.msra.mxu0 %v11426_v25  ;;  %v4804_v25 = vld [vmem:[#allocation2 + $0xc0] sm:$0xff] }
 0x297   : > { %10797 = vmatprep.subr.bf16.mxu0 %v11427_v21  ;;  %v4830_v20 = vpack.c.bf16 %v4805_v61, %v4804_v25  ;;  %v4817_v25 = vld [vmem:[#allocation2 + $0x158] sm:$0xff] }
 0x29a   : > { %10798 = vmatpush3.bf16.msra.mxu0 %v11427_v21 }
 0x29b   : > { %10720 = vmatmul.mubr.bf16.gmra.mxu0 %v13178_v9  ;;  %v4793_v9 = vld [vmem:[#allocation2 + $0x38] sm:$0xff] }
 0x29c   : > { %10676 = vmatmul.mubr.bf16.gmra.mxu1 %v13301_v42  ;;  %10723 = vmatprep.mubr.bf16.mxu0 %v13190_v53  ;;  %v4226_v53 = vpack.c.bf16 %v2932_v17, %v13314_v55  ;;  %v4824_v1 = vpack.c.bf16 %v4793_v9, %v4792_v56  ;;  %v4796_v17 = vld [vmem:[#allocation2 + $0x60] sm:$0xff] }
 0x29d   : > { %10679 = vmatprep.mubr.bf16.mxu1 %v4223_v57  ;;  %v4807_v9 = vld [vmem:[#allocation2 + $0xe0] sm:$0xff] }
 0x2a3   : > { %10724 = vmatmul.mubr.bf16.gmra.mxu0 %v13192_v35  ;;  %v4515_v35 = vld [vmem:[#allocation2 + $0x182] sm:$0xff] }
 0x2a4   : > { %10680 = vmatmul.mubr.bf16.gmra.mxu1 %v13308_v26  ;;  %10727 = vmatprep.mubr.bf16.mxu0 %v13198_v8  ;;  %v4795_v8 = vld [vmem:[#allocation2 + $0x50] sm:$0xff]  ;;  %v13321_v41 = vpack.c.bf16 %v4516_v27, %v4515_v35  ;;  %v4806_v27 = vld [vmem:[#allocation2 + $0xd8] sm:$0xff] }
 0x2a5   : > { %10683 = vmatprep.mubr.bf16.mxu1 %v13091_v58  ;;  %v4797_v58 = vld [vmem:[#allocation2 + $0x68] sm:$0xff]  ;;  %v4825_v6 = vpack.c.bf16 %v4795_v8, %v4794_v52  ;;  %v4831_v52 = vpack.c.bf16 %v4807_v9, %v4806_v27 }
 0x2a6   : > { %v4826_v59 = vpack.c.bf16 %v4797_v58, %v4796_v17  ;;  %v4808_v58 = vld [vmem:[#allocation2 + $0xf0] sm:$0xff]  ;;  %v11435_v17 = vld [vmem:[%s15032_s3 + $0x200] sm:$0xff]  }
 0x2ab   : > { %10728 = vmatmul.mubr.bf16.gmra.mxu0 %v13200_v37 }
 0x2ac   : > { %10684 = vmatmul.mubr.bf16.gmra.mxu1 %v4226_v53  ;;  %10731 = vmatprep.mubr.bf16.mxu0 %v13206_v31  ;;  %v11434_v53 = vld [vmem:[%s15032_s3 + $0x208] sm:$0xff]  }
 0x2ad   : > { %10751 = vmatprep.mubr.bf16.mxu1 %v4824_v1  ;;  %v4809_v1 = vld [vmem:[#allocation2 + $0xf8] sm:$0xff] }
 0x2b2   : > { %v10465_v37 = vpop.f32.mrf.mxu1 }
 0x2b3   : > { %10732 = vmatmul.mubr.bf16.gmra.mxu0 %v13321_v41 }
 0x2b4   : > { %10752 = vmatmul.mubr.bf16.vlgmr.msra.gmra.mxu1 %v4825_v6  ;;  %10799 = vmatprep.mubr.bf16.mxu0 %v13213_v23  ;;  %v3231_v31 = vpop.f32.mrf.mxu1  ;;  %v11431_v23 = vld [vmem:[%s15032_s3 + $0x220] sm:$0xff]  }
 0x2b5   : > { %10832 = vmatpush3.bf16.msra.mxu1 %v11428_v43  ;;  %10755 = vmatprep.mubr.bf16.mxu1 %v4826_v59 }
 0x2b6   : > { %10833 = vmatprep.subr.bf16.mxu1 %v11429_v29  ;;  %v10466_v12 = vpop.f32.mrf.mxu1 }
 0x2b8   : > { %v3234_v40 = vpop.f32.mrf.mxu1 }
 0x2b9   : > { %10834 = vmatpush3.bf16.msra.mxu1 %v11429_v29  ;;  %v4832_v29 = vpack.c.bf16 %v4809_v1, %v4808_v58 }
 0x2ba   : > { %10835 = vmatprep.subr.bf16.mxu1 %v11430_v36  ;;  %v10513_v45 = vpop.f32.mrf.mxu0  ;;  %v10469_v22 = vpop.f32.mrf.mxu1 }
 0x2bb   : > { %10800 = vmatmul.mubr.bf16.vlgmr.msra.gmra.mxu0 %v13220_v28  ;;  %v13335_v13 = vadd.f32 %v10513_v45, %v10465_v37 }
 0x2bc   : > { %10756 = vmatmul.mubr.bf16.gmra.mxu1 %v4827_v46  ;;  %10803 = vmatprep.mubr.bf16.mxu0 %v13227_v16  ;;  %v3440_v7 = vpop.f32.mrf.mxu0  ;;  %v3247_v32 = vpop.f32.mrf.mxu1  ;;  %v4813_v46 = vld [vmem:[#allocation2 + $0x128] sm:$0xff] }
 0x2bd   : > { %10759 = vmatprep.mubr.bf16.mxu1 %v4828_v60  ;;  %10836 = vmatpush3.bf16.msra.mxu1 %v11430_v36  ;;  %v13338_v30 = vadd.f32 %v3440_v7, %v3231_v31 }
 0x2be   : > { %10837 = vmatprep.subr.bf16.mxu1 %v11431_v23  ;;  %v10514_v18 = vpop.f32.mrf.mxu0  ;;  %v10470_v28 = vpop.f32.mrf.mxu1 }
 0x2bf   : > { %v13343_v2 = vadd.f32 %v10514_v18, %v10466_v12 }
 0x2c0   : > { %v3443_v14 = vpop.f32.mrf.mxu0  ;;  %v3250_v16 = vpop.f32.mrf.mxu1 }
 0x2c1   : > { %10838 = vmatpush3.bf16.msra.mxu1 %v11431_v23  ;;  %v13345_v43 = vadd.f32 %v3443_v14, %v3234_v40  ;;  %v4815_v14 = vld [vmem:[#allocation2 + $0x140] sm:$0xff] }
 0x2c2   : > { %10839 = vmatprep.subr.bf16.mxu1 %v11432_v38  ;;  %v10517_v21 = vpop.f32.mrf.mxu0 }
 0x2c3   : > { %10804 = vmatmul.mubr.bf16.gmra.mxu0 %v13229_v15  ;;  %v10473_v54 = vpop.f32.mrf.mxu1  ;;  %v13351_v0 = vadd.f32 %v10517_v21, %v10469_v22  ;;  %v4812_v22 = vld [vmem:[#allocation2 + $0x120] sm:$0xff]  ;;  %v5139_v21 = vpack.c.bf16 %v5117_v50, %v13287_v11 }
 0x2c4   : > { %10760 = vmatmul.mubr.bf16.gmra.mxu1 %v4829_v10  ;;  %10807 = vmatprep.mubr.bf16.mxu0 %v13247_v4  ;;  %v3456_v57 = vpop.f32.mrf.mxu0  ;;  %v4834_v7 = vpack.c.bf16 %v4813_v46, %v4812_v22  ;;  %v5121_v11 = vld [vmem:[#allocation2 + $0x141] sm:$0xff] }
 0x2c5   : > { %10763 = vmatprep.mubr.bf16.mxu1 %v4830_v20  ;;  %v3263_v47 = vpop.f32.mrf.mxu1  ;;  %10840 = vmatpush3.bf16.msra.mxu1 %v11432_v38  ;;  %v13354_v62 = vadd.f32 %v3456_v57, %v3247_v32  ;;  %v11508_v22 = vld [vmem:[#allocation2] sm:$0xff] }
 0x2c6   : > { %10841 = vmatprep.subr.bf16.mxu1 %v11433_v49  ;;  %v10518_v56 = vpop.f32.mrf.mxu0 }
 0x2c7   : > { %v10474_v15 = vpop.f32.mrf.mxu1  ;;  %v13359_v35 = vadd.f32 %v10518_v56, %v10470_v28 }
 0x2c8   : > { %v3459_v8 = vpop.f32.mrf.mxu0 }
 0x2c9   : > { %v3266_v4 = vpop.f32.mrf.mxu1  ;;  %10842 = vmatpush3.bf16.msra.mxu1 %v11433_v49  ;;  %v13361_v6 = vadd.f32 %v3459_v8, %v3250_v16  ;;  %v4814_v49 = vld [vmem:[#allocation2 + $0x138] sm:$0xff] }
 0x2ca   : > { %10843 = vmatprep.subr.bf16.mxu1 %v11434_v53  ;;  %v4835_v57 = vpack.c.bf16 %v4815_v14, %v4814_v49 }
 0x2cb   : > { %v10521_v37 = vpop.f32.mrf.mxu0  ;;  %10808 = vmatmul.mubr.bf16.gmra.mxu0 %v13249_v44  ;;  %v10477_v59 = vpop.f32.mrf.mxu1  ;;  %v4810_v44 = vld [vmem:[#allocation2 + $0x108] sm:$0xff] }
 0x2cc   : > { %10764 = vmatmul.mubr.bf16.gmra.mxu1 %v4831_v52  ;;  %v13367_v31 = vadd.f32 %v10521_v37, %v10473_v54  ;;  %10811 = vmatprep.mubr.bf16.mxu0 %v13267_v48  ;;  %v4833_v45 = vpack.c.bf16 %v4811_v34, %v4810_v44 }
 0x2cd   : > { %10767 = vmatprep.mubr.bf16.mxu1 %v4832_v29  ;;  %v3472_v36 = vpop.f32.mrf.mxu0  ;;  %v3279_v33 = vpop.f32.mrf.mxu1  ;;  %10844 = vmatpush3.bf16.msra.mxu1 %v11434_v53 }
 0x2ce   : > { %v13370_v12 = vadd.f32 %v3472_v36, %v3263_v47  ;;  %10845 = vmatprep.subr.bf16.mxu1 %v11435_v17 }
 0x2cf   : > { %v10522_v24 = vpop.f32.mrf.mxu0  ;;  %v10478_v40 = vpop.f32.mrf.mxu1 }
 0x2d0   : > { %v13372_v39 = vadd.f32 %v10522_v24, %v10474_v15 }
 0x2d1   : > { %v3475_v60 = vpop.f32.mrf.mxu0  ;;  %v3282_v23 = vpop.f32.mrf.mxu1  ;;  %10846 = vmatpush3.bf16.msra.mxu1 %v11435_v17  ;;  %v4818_v17 = vld [vmem:[#allocation2 + $0x168] sm:$0xff] }
 0x2d2   : > { %v13374_v48 = vadd.f32 %v3475_v60, %v3266_v4  ;;  %v4819_v4 = vld [vmem:[#allocation2 + $0x170] sm:$0xff] }
 0x2d3   : > { %v10525_v32 = vpop.f32.mrf.mxu0  ;;  %10812 = vmatmul.mubr.bf16.gmra.mxu0 %v13269_v5  ;;  %v5125_v60 = vld [vmem:[#allocation2 + $0x171] sm:$0xff] }
 0x2d4   : > { %v10481_v63 = vpop.f32.mrf.mxu1  ;;  %10768 = vmatmul.mubr.bf16.gmra.mxu1 %v4833_v45  ;;  %v13377_v38 = vadd.f32 %v10525_v32, %v10477_v59  ;;  %10815 = vmatprep.mubr.bf16.mxu0 %v13289_v51  ;;  %v4816_v51 = vld [vmem:[#allocation2 + $0x150] sm:$0xff]  ;;  %v5141_v59 = vpack.c.bf16 %v5121_v11, %v13299_v3  ;;  %v5408_v11 = vld [vmem:[#allocation2 + $0x62] sm:$0xff] }
 0x2d5   : > { %10771 = vmatprep.mubr.bf16.mxu1 %v4834_v7  ;;  %v3488_v18 = vpop.f32.mrf.mxu0  ;;  %v4836_v9 = vpack.c.bf16 %v4817_v25, %v4816_v51  ;;  %v5127_v3 = vld [vmem:[#allocation2 + $0x189] sm:$0xff]  ;;  %v13407_v7 = vpack.c.bf16 %v11508_v22, %v11508_v22  ;;  %v5404_v32 = vld [vmem:[#allocation2 + $0x32] sm:$0xff]  ;;  %v5410_v22 = vld [vmem:[#allocation2 + $0x7a] sm:$0xff] }
 0x2d6   : > { %v3295_v28 = vpop.f32.mrf.mxu1  ;;  %v13380_v61 = vadd.f32 %v3488_v18, %v3279_v33  ;;  %v4837_v33 = vpack.c.bf16 %v4819_v4, %v4818_v17  ;;  %v5144_v14 = vpack.c.bf16 %v5127_v3, %v13314_v55  ;;  %v5409_v4 = vld [vmem:[#allocation2 + $0x6a] sm:$0xff] }
 0x2d7   : > { %v10526_v16 = vpop.f32.mrf.mxu0 }
 0x2d8   : > { %v10482_v10 = vpop.f32.mrf.mxu1  ;;  %v13382_v20 = vadd.f32 %v10526_v16, %v10478_v40 }
 0x2d9   : > { %v3491_v5 = vpop.f32.mrf.mxu0 }
 0x2da   : > { %v13385_v54 = vpop.f32.mrf.mxu1  ;;  %v13387_v47 = vadd.f32 %v3491_v5, %v3282_v23  ;;  %v5128_v5 = vld [vmem:[#allocation2 + $0x199] sm:$0xff] }
 0x2db   : > { %v10529_v53 = vpop.f32.mrf.mxu0  ;;  %10816 = vmatmul.mubr.bf16.gmra.mxu0 %v5139_v21  ;;  %v5129_v21 = vld [vmem:[#allocation2 + $0x1a1] sm:$0xff] }
 0x2dc   : > { %v10485_v56 = vpop.f32.mrf.mxu1  ;;  %10772 = vmatmul.mubr.bf16.gmra.mxu1 %v4835_v57  ;;  %v13389_v15 = vadd.f32 %v10529_v53, %v10481_v63  ;;  %10819 = vmatprep.mubr.bf16.mxu0 %v13301_v42  ;;  %v5405_v63 = vld [vmem:[#allocation2 + $0x3a] sm:$0xff]  ;;  %v5406_v53 = vld [vmem:[#allocation2 + $0x4a] sm:$0xff]  ;;  %v5145_v55 = vpack.c.bf16 %v5129_v21, %v5128_v5 }
 0x2dd   : > { %10775 = vmatprep.mubr.bf16.mxu1 %v4836_v9  ;;  %v3504_v1 = vpop.f32.mrf.mxu0  ;;  %v5436_v16 = vpack.c.bf16 %v5405_v63, %v5404_v32  ;;  %v5411_v32 = vld [vmem:[#allocation2 + $0x82] sm:$0xff] }
 0x2de   : > { %v3311_v27 = vpop.f32.mrf.mxu1  ;;  %v13392_v8 = vadd.f32 %v3504_v1, %v3295_v28  ;;  %v5124_v28 = vld [vmem:[#allocation2 + $0x169] sm:$0xff]  ;;  %v5439_v5 = vpack.c.bf16 %v5411_v32, %v5410_v22 }
 0x2df   : > { %v10530_v52 = vpop.f32.mrf.mxu0 }
 0x2e0   : > { %v10486_v58 = vpop.f32.mrf.mxu1  ;;  %v13394_v29 = vadd.f32 %v10530_v52, %v10482_v10 }
 0x2e1   : > { %v13396_v37 = vpop.f32.mrf.mxu0 }
 0x2e2   : > { %v13399_v36 = vpop.f32.mrf.mxu1 }
 0x2e3   : > { %v10533_v42 = vpop.f32.mrf.mxu0  ;;  %10820 = vmatmul.mubr.bf16.gmra.mxu0 %v5141_v59 }
 0x2e4   : > { %v10489_v34 = vpop.f32.mrf.mxu1  ;;  %10776 = vmatmul.mubr.bf16.gmra.mxu1 %v4837_v33  ;;  %v13401_v24 = vadd.f32 %v10533_v42, %v10485_v56  ;;  %10823 = vmatprep.mubr.bf16.mxu0 %v13308_v26  ;;  %v5143_v26 = vpack.c.bf16 %v5125_v60, %v5124_v28  ;;  %v5407_v56 = vld [vmem:[#allocation2 + $0x52] sm:$0xff]  ;;  %v5438_v33 = vpack.c.bf16 %v5409_v4, %v5408_v11  ;;  %v5414_v11 = vld [vmem:[#allocation2 + $0xaa] sm:$0xff] }
 0x2e5   : > { %10779 = vmatprep.mubr.bf16.mxu1 %v13211_v19  ;;  %v3520_v40 = vpop.f32.mrf.mxu0  ;;  %v5437_v59 = vpack.c.bf16 %v5407_v56, %v5406_v53  ;;  %v5415_v4 = vld [vmem:[#allocation2 + $0xb2] sm:$0xff] }
 0x2e6   : > { %v3327_v46 = vpop.f32.mrf.mxu1  ;;  %v13405_v44 = vadd.f32 %v3520_v40, %v3311_v27 }
 0x2e7   : > { %v10534_v23 = vpop.f32.mrf.mxu0 }
 0x2e8   : > { %v10490_v45 = vpop.f32.mrf.mxu1  ;;  %v13409_v18 = vadd.f32 %v10534_v23, %v10486_v58 }
 0x2e9   : > { %v13411_v50 = vpop.f32.mrf.mxu0 }
 0x2ea   : > { %v13413_v19 = vpop.f32.mrf.mxu1 }
 0x2eb   : > { %v10537_v10 = vpop.f32.mrf.mxu0  ;;  %10824 = vmatmul.mubr.bf16.gmra.mxu0 %v5143_v26  ;;  %v5412_v26 = vld [vmem:[#allocation2 + $0x92] sm:$0xff] }
 0x2ec   : > { %v10493_v25 = vpop.f32.mrf.mxu1  ;;  %10780 = vmatmul.mubr.bf16.gmra.mxu1 %v13407_v7  ;;  %v13417_v49 = vadd.f32 %v10537_v10, %v10489_v34  ;;  %10827 = vmatprep.mubr.bf16.mxu0 %v5144_v14  ;;  %v5413_v14 = vld [vmem:[#allocation2 + $0x9a] sm:$0xff] }
 0x2ed   : > { %10847 = vmatprep.mubr.bf16.mxu1 %v5436_v16  ;;  %v3536_v57 = vpop.f32.mrf.mxu0 }
 0x2ee   : > { %v3343_v51 = vpop.f32.mrf.mxu1  ;;  %v13419_v9 = vadd.f32 %v3536_v57, %v3327_v46  ;;  %v5440_v57 = vpack.c.bf16 %v5413_v14, %v5412_v26 }
 0x2ef   : > { %v10538_v1 = vpop.f32.mrf.mxu0 }
 0x2f0   : > { %v10494_v27 = vpop.f32.mrf.mxu1  ;;  %v13421_v52 = vadd.f32 %v10538_v1, %v10490_v45 }
 0x2f1   : > { %v13423_v58 = vpop.f32.mrf.mxu0 }
 0x2f2   : > { %v13425_v17 = vpop.f32.mrf.mxu1 }
 0x2f3   : > { %v10541_v42 = vpop.f32.mrf.mxu0  ;;  %10828 = vmatmul.mubr.bf16.gmra.mxu0 %v5145_v55 }
 0x2f4   : > { %v10561_v34 = vpop.f32.mrf.mxu1  ;;  %10848 = vmatmul.mubr.bf16.vlgmr.msra.gmra.mxu1 %v5437_v59  ;;  %v13427_v40 = vadd.f32 %v10541_v42, %v10493_v25  ;;  %v5417_v42 = vld [vmem:[#allocation2 + $0xca] sm:$0xff] }
 0x2f5   : > { %v3843_v46 = vadd.f32 %v10561_v34, %v13335_v13  ;;  %10851 = vmatprep.mubr.bf16.mxu1 %v5438_v33  ;;  %v3552_v60 = vpop.f32.mrf.mxu0  ;;  %v5416_v33 = vld [vmem:[#allocation2 + $0xc2] sm:$0xff] }
 0x2f6   : > { %v3714_v23 = vpop.f32.mrf.mxu1  ;;  %v13430_v3 = vadd.f32 %v3552_v60, %v3343_v51 }
 0x2f7   : > { %v3841_v45 = vadd.f32 %v3714_v23, %v13338_v30  ;;  %v10542_v63 = vpop.f32.mrf.mxu0  ;;  %v5441_v23 = vpack.c.bf16 %v5415_v4, %v5414_v11 }
 0x2f8   : > { %v10562_v28 = vpop.f32.mrf.mxu1  ;;  %v13433_v16 = vadd.f32 %v10542_v63, %v10494_v27 }
 0x2f9   : > { %v3844_v10 = vadd.f32 %v10562_v28, %v13343_v2  ;;  %v13436_v25 = vpop.f32.mrf.mxu0 }
 0x2fa   : > { %v3717_v13 = vpop.f32.mrf.mxu1 }
 0x2fb   : > { %v13439_v21 = vadd.f32 %v3717_v13, %v13345_v43  ;;  %v10609_v51 = vpop.f32.mrf.mxu0  ;;  %v5418_v13 = vld [vmem:[#allocation2 + $0xda] sm:$0xff] }
 0x2fc   : > { %v10565_v30 = vpop.f32.mrf.mxu1  ;;  %10852 = vmatmul.mubr.bf16.gmra.mxu1 %v5439_v5  ;;  %v13441_v53 = vadd.f32 %v10609_v51, %v3843_v46  ;;  %v5419_v5 = vld [vmem:[#allocation2 + $0xe2] sm:$0xff]  ;;  %v5420_v51 = vld [vmem:[#allocation2 + $0xf2] sm:$0xff] }
 0x2fd   : > { %v3847_v56 = vadd.f32 %v10565_v30, %v13351_v0  ;;  %10855 = vmatprep.mubr.bf16.mxu1 %v5440_v57  ;;  %v4020_v1 = vpop.f32.mrf.mxu0  ;;  %v5421_v30 = vld [vmem:[#allocation2 + $0xfa] sm:$0xff]  ;;  %v5443_v11 = vpack.c.bf16 %v5419_v5, %v5418_v13 }
 0x2fe   : > { %v3730_v55 = vpop.f32.mrf.mxu1  ;;  %v13444_v27 = vadd.f32 %v4020_v1, %v3841_v45  ;;  %v5442_v45 = vpack.c.bf16 %v5417_v42, %v5416_v33 }
 0x2ff   : > { %v3845_v2 = vadd.f32 %v3730_v55, %v13354_v62  ;;  %v10610_v59 = vpop.f32.mrf.mxu0 }
 0x300   : > { %v10566_v43 = vpop.f32.mrf.mxu1  ;;  %v13447_v34 = vadd.f32 %v10610_v59, %v3844_v10 }
 0x301   : > { %v3848_v46 = vadd.f32 %v10566_v43, %v13359_v35  ;;  %v13450_v60 = vpop.f32.mrf.mxu0 }
 0x302   : > { %v3733_v0 = vpop.f32.mrf.mxu1 }
 0x303   : > { %v13453_v22 = vadd.f32 %v3733_v0, %v13361_v6  ;;  %v10613_v32 = vpop.f32.mrf.mxu0 }
 0x304   : > { %v10569_v62 = vpop.f32.mrf.mxu1  ;;  %10856 = vmatmul.mubr.bf16.gmra.mxu1 %v5441_v23  ;;  %v13455_v63 = vadd.f32 %v10613_v32, %v3847_v56  ;;  %v5422_v23 = vld [vmem:[#allocation2 + $0x10a] sm:$0xff] }
 0x305   : > { %v3851_v28 = vadd.f32 %v10569_v62, %v13367_v31  ;;  %10859 = vmatprep.mubr.bf16.mxu1 %v5442_v45  ;;  %v4036_v26 = vpop.f32.mrf.mxu0  ;;  %v5423_v45 = vld [vmem:[#allocation2 + $0x112] sm:$0xff]  ;;  %v5424_v62 = vld [vmem:[#allocation2 + $0x122] sm:$0xff] }
 0x306   : > { %v3746_v14 = vpop.f32.mrf.mxu1  ;;  %v13458_v10 = vadd.f32 %v4036_v26, %v3845_v2  ;;  %v5444_v2 = vpack.c.bf16 %v5421_v30, %v5420_v51  ;;  %v5425_v26 = vld [vmem:[#allocation2 + $0x12a] sm:$0xff]  ;;  %v5445_v5 = vpack.c.bf16 %v5423_v45, %v5422_v23  ;;  %v5429_v23 = vld [vmem:[#allocation2 + $0x15a] sm:$0xff] }
 0x307   : > { %v3849_v35 = vadd.f32 %v3746_v14, %v13370_v12  ;;  %v10614_v57 = vpop.f32.mrf.mxu0 }
 0x308   : > { %v10570_v6 = vpop.f32.mrf.mxu1  ;;  %v13461_v1 = vadd.f32 %v10614_v57, %v3848_v46 }
 0x309   : > { %v3852_v56 = vadd.f32 %v10570_v6, %v13372_v39  ;;  %v13464_v55 = vpop.f32.mrf.mxu0 }
 0x30a   : > { %v3749_v31 = vpop.f32.mrf.mxu1 }
 0x30b   : > { %v13467_v4 = vadd.f32 %v3749_v31, %v13374_v48  ;;  %v10617_v59 = vpop.f32.mrf.mxu0 }
 0x30c   : > { %v10573_v12 = vpop.f32.mrf.mxu1  ;;  %10860 = vmatmul.mubr.bf16.gmra.mxu1 %v5443_v11  ;;  %v13469_v43 = vadd.f32 %v10617_v59, %v3851_v28  ;;  %v5427_v59 = vld [vmem:[#allocation2 + $0x142] sm:$0xff] }
 0x30d   : > { %v3855_v33 = vadd.f32 %v10573_v12, %v13377_v38  ;;  %10863 = vmatprep.mubr.bf16.mxu1 %v5444_v2  ;;  %v4052_v42 = vpop.f32.mrf.mxu0  ;;  %v5426_v2 = vld [vmem:[#allocation2 + $0x13a] sm:$0xff] }
 0x30e   : > { %v3762_v46 = vpop.f32.mrf.mxu1  ;;  %v13472_v0 = vadd.f32 %v4052_v42, %v3849_v35  ;;  %v5446_v35 = vpack.c.bf16 %v5425_v26, %v5424_v62 }
 0x30f   : > { %v3853_v39 = vadd.f32 %v3762_v46, %v13380_v61  ;;  %v10618_v32 = vpop.f32.mrf.mxu0  ;;  %v11436_v61 = vld [vmem:[%s15034_s5 + $0x78] sm:$0xff]  }
 0x310   : > { %v10574_v48 = vpop.f32.mrf.mxu1  ;;  %v13475_v14 = vadd.f32 %v10618_v32, %v3852_v56  ;;  %10879 = vmatprep.subr.bf16.mxu0 %v11436_v61  ;;  %v5428_v46 = vld [vmem:[#allocation2 + $0x152] sm:$0xff] }
 0x311   : > { %v3856_v28 = vadd.f32 %v10574_v48, %v13382_v20  ;;  %v13478_v13 = vpop.f32.mrf.mxu0  ;;  %10880 = vmatpush3.bf16.msra.mxu0 %v11436_v61  ;;  %v5447_v48 = vpack.c.bf16 %v5427_v59, %v5426_v2  ;;  %v5448_v62 = vpack.c.bf16 %v5429_v23, %v5428_v46 }
 0x312   : > { %v3765_v38 = vpop.f32.mrf.mxu1 }
 0x313   : > { %v13481_v57 = vadd.f32 %v3765_v38, %v13387_v47  ;;  %v10621_v6 = vpop.f32.mrf.mxu0 }
 0x314   : > { %v10577_v51 = vpop.f32.mrf.mxu1  ;;  %10864 = vmatmul.mubr.bf16.gmra.mxu1 %v5445_v5  ;;  %v13486_v30 = vadd.f32 %v10621_v6, %v3855_v33  ;;  %v5430_v6 = vld [vmem:[#allocation2 + $0x16a] sm:$0xff] }
 0x315   : > { %v3859_v56 = vadd.f32 %v10577_v51, %v13389_v15  ;;  %10867 = vmatprep.mubr.bf16.mxu1 %v5446_v35  ;;  %v4068_v20 = vpop.f32.mrf.mxu0  ;;  %v5431_v51 = vld [vmem:[#allocation2 + $0x172] sm:$0xff] }
 0x316   : > { %v3778_v31 = vpop.f32.mrf.mxu1  ;;  %v13489_v11 = vadd.f32 %v4068_v20, %v3853_v39 }
 0x317   : > { %v3857_v47 = vadd.f32 %v3778_v31, %v13392_v8  ;;  %v10622_v12 = vpop.f32.mrf.mxu0  ;;  %v11437_v8 = vld [vmem:[%s15034_s5 + $0x70] sm:$0xff]  }
 0x318   : > { %v10578_v42 = vpop.f32.mrf.mxu1  ;;  %v13492_v45 = vadd.f32 %v10622_v12, %v3856_v28  ;;  %10881 = vmatprep.subr.bf16.mxu0 %v11437_v8  ;;  %v5449_v12 = vpack.c.bf16 %v5431_v51, %v5430_v6  ;;  %v11439_v51 = vld [vmem:[%s15034_s5 + $0x60] sm:$0xff]  }
 0x319   : > { %v3860_v33 = vadd.f32 %v10578_v42, %v13394_v29  ;;  %v13495_v15 = vpop.f32.mrf.mxu0  ;;  %10882 = vmatpush3.bf16.msra.mxu0 %v11437_v8 }
 0x31a   : > { %v13497_v32 = vpop.f32.mrf.mxu1 }
 0x31b   : > { %v10625_v39 = vpop.f32.mrf.mxu0 }
 0x31c   : > { %v10581_v26 = vpop.f32.mrf.mxu1  ;;  %10868 = vmatmul.mubr.bf16.gmra.mxu1 %v5447_v48  ;;  %v13502_v38 = vadd.f32 %v10625_v39, %v3859_v56 }
 0x31d   : > { %v3863_v28 = vadd.f32 %v10581_v26, %v13401_v24  ;;  %10871 = vmatprep.mubr.bf16.mxu1 %v5448_v62  ;;  %v4084_v29 = vpop.f32.mrf.mxu0 }
 0x31e   : > { %v3794_v5 = vpop.f32.mrf.mxu1  ;;  %v13505_v35 = vadd.f32 %v4084_v29, %v3857_v47  ;;  %v11438_v47 = vld [vmem:[%s15034_s5 + $0x68] sm:$0xff]  }
 0x31f   : > { %v3861_v61 = vadd.f32 %v3794_v5, %v13405_v44  ;;  %v10626_v20 = vpop.f32.mrf.mxu0  ;;  %10883 = vmatprep.subr.bf16.mxu0 %v11438_v47 }
 0x320   : > { %v10582_v31 = vpop.f32.mrf.mxu1  ;;  %v13508_v2 = vadd.f32 %v10626_v20, %v3860_v33  ;;  %v5434_v33 = vld [vmem:[#allocation2 + $0x19a] sm:$0xff]  ;;  %10884 = vmatpush3.bf16.msra.mxu0 %v11438_v47 }
 0x321   : > { %v3864_v56 = vadd.f32 %v10582_v31, %v13409_v18  ;;  %v13511_v59 = vpop.f32.mrf.mxu0  ;;  %v5435_v18 = vld [vmem:[#allocation2 + $0x1a2] sm:$0xff]  ;;  %10885 = vmatprep.subr.bf16.mxu0 %v11439_v51 }
 0x322   : > { %v13513_v24 = vpop.f32.mrf.mxu1  ;;  %v5451_v5 = vpack.c.bf16 %v5435_v18, %v5434_v33 }
 0x323   : > { %v10629_v42 = vpop.f32.mrf.mxu0 }
 0x324   : > { %v10585_v46 = vpop.f32.mrf.mxu1  ;;  %10872 = vmatmul.mubr.bf16.gmra.mxu1 %v5449_v12  ;;  %v13518_v44 = vadd.f32 %v10629_v42, %v3863_v28  ;;  %10886 = vmatpush3.bf16.msra.mxu0 %v11439_v51  ;;  %v11441_v42 = vld [vmem:[%s15034_s5 + $0x38] sm:$0xff]  }
 0x325   : > { %v3867_v23 = vadd.f32 %v10585_v46, %v13417_v49  ;;  %10875 = vmatprep.mubr.bf16.mxu1 %v13321_v41  ;;  %v4100_v48 = vpop.f32.mrf.mxu0  ;;  %10927 = vmatprep.subr.bf16.mxu1 %v11441_v42 }
 0x326   : > { %v3810_v62 = vpop.f32.mrf.mxu1  ;;  %v13522_v8 = vadd.f32 %v4100_v48, %v3861_v61  ;;  %10928 = vmatpush3.bf16.msra.mxu1 %v11441_v42  ;;  %v11443_v42 = vld [vmem:[%s15034_s5 + $0x50] sm:$0xff]  }
 0x327   : > { %v3865_v39 = vadd.f32 %v3810_v62, %v13419_v9  ;;  %v10630_v26 = vpop.f32.mrf.mxu0  ;;  %v11442_v62 = vld [vmem:[%s15034_s5 + $0x30] sm:$0xff]  }
 0x328   : > { %v10586_v29 = vpop.f32.mrf.mxu1  ;;  %v13525_v6 = vadd.f32 %v10630_v26, %v3864_v56  ;;  %10929 = vmatprep.subr.bf16.mxu1 %v11442_v62 }
 0x329   : > { %v3868_v28 = vadd.f32 %v10586_v29, %v13421_v52  ;;  %v13528_v49 = vpop.f32.mrf.mxu0 }
 0x32a   : > { %15175 = vst [vmem:[#allocation9_spill] sm:$0xff] %v13528_v49  ;;  %v13530_v41 = vpop.f32.mrf.mxu1  ;;  %10930 = vmatpush3.bf16.msra.mxu1 %v11442_v62 }
 0x32b   : > { %15176 = vst [vmem:[#allocation37_spill] sm:$0xff] %v13530_v41  ;;  %v10633_v20 = vpop.f32.mrf.mxu0 }
 0x32c   : > { %v10589_v61 = vpop.f32.mrf.mxu1  ;;  %10876 = vmatmul.mubr.bf16.gmra.mxu1 %v5451_v5  ;;  %v13535_v31 = vadd.f32 %v10633_v20, %v3867_v23 }
 0x32d   : > { %v3871_v9 = vadd.f32 %v10589_v61, %v13427_v40  ;;  %v4116_v56 = vpop.f32.mrf.mxu0  ;;  %v11444_v61 = vld [vmem:[%s15034_s5 + $0x28] sm:$0xff]   ;;  %10943 = vmatprep.mubr.bf16.mxu1 %v13407_v7 }
 0x32e   : > { %v3826_v12 = vpop.f32.mrf.mxu1  ;;  %v13538_v52 = vadd.f32 %v4116_v56, %v3865_v39  ;;  %10931 = vmatprep.subr.bf16.mxu1 %v11444_v61 }
 0x32f   : > { %v3869_v47 = vadd.f32 %v3826_v12, %v13430_v3  ;;  %v10634_v46 = vpop.f32.mrf.mxu0  ;;  %v11440_v3 = vld [vmem:[%s15034_s5 + $0x58] sm:$0xff]   ;;  %10932 = vmatpush3.bf16.msra.mxu1 %v11444_v61 }
 0x330   : > { %v10590_v33 = vpop.f32.mrf.mxu1  ;;  %v13544_v18 = vadd.f32 %v10634_v46, %v3868_v28  ;;  %10887 = vmatprep.subr.bf16.mxu0 %v11440_v3  ;;  %v11445_v46 = vld [vmem:[%s15034_s5 + $0x20] sm:$0xff]  }
 0x331   : > { %v3872_v23 = vadd.f32 %v10590_v33, %v13433_v16  ;;  %v13547_v40 = vpop.f32.mrf.mxu0  ;;  %10888 = vmatpush3.bf16.msra.mxu0 %v11440_v3  ;;  %10933 = vmatprep.subr.bf16.mxu1 %v11445_v46 }
 0x332   : > { %15177 = vst [vmem:[#allocation10_spill] sm:$0xff] %v13547_v40  ;;  %v13549_v48 = vpop.f32.mrf.mxu1  ;;  %10889 = vmatprep.subr.bf16.mxu0 %v11443_v42  ;;  %v11450_v40 = vld [vmem:[%s15034_s5 + $0x8] sm:$0xff]  }
 0x333   : > { %15178 = vst [vmem:[#allocation39_spill] sm:$0xff] %v13549_v48  ;;  %v10637_v39 = vpop.f32.mrf.mxu0  ;;  %10934 = vmatpush3.bf16.msra.mxu1 %v11445_v46 }
 0x334   : > { %v10657_v26 = vpop.f32.mrf.mxu1  ;;  %v13557_v29 = vadd.f32 %v10637_v39, %v3871_v9 }
 0x335   : > { %v13560_v16 = vadd.f32 %v10657_v26, %v13441_v53  ;;  %v4132_v5 = vpop.f32.mrf.mxu0  ;;  %10890 = vmatpush3.bf16.msra.mxu0 %v11443_v42  ;;  %v11446_v26 = vld [vmem:[%s15034_s5 + $0x48] sm:$0xff]   ;;  %v11449_v42 = vld [vmem:[%s15034_s5 + $0x40] sm:$0xff]  }
 0x336   : > { %v4326_v28 = vpop.f32.mrf.mxu1  ;;  %v13562_v51 = vadd.f32 %v4132_v5, %v3869_v47  ;;  %v11447_v5 = vld [vmem:[%s15034_s5 + $0x18] sm:$0xff]   ;;  %10891 = vmatprep.subr.bf16.mxu0 %v11446_v26 }
 0x337   : > { %v13565_v20 = vadd.f32 %v4326_v28, %v13444_v27  ;;  %v10638_v9 = vpop.f32.mrf.mxu0  ;;  %10935 = vmatprep.subr.bf16.mxu1 %v11447_v5 }
 0x338   : > { %v10658_v56 = vpop.f32.mrf.mxu1  ;;  %v13570_v12 = vadd.f32 %v10638_v9, %v3872_v23  ;;  %10936 = vmatpush3.bf16.msra.mxu1 %v11447_v5 }
 0x339   : > { %v13573_v53 = vadd.f32 %v10658_v56, %v13447_v34  ;;  %v13578_v47 = vpop.f32.mrf.mxu0  ;;  %10892 = vmatpush3.bf16.msra.mxu0 %v11446_v26  ;;  %v11448_v56 = vld [vmem:[%s15034_s5 + $0x10] sm:$0xff]  }
 0x33a   : > { %15179 = vst [vmem:[#allocation7_spill] sm:$0xff] %v13578_v47  ;;  %v13580_v27 = vpop.f32.mrf.mxu1  ;;  %10937 = vmatprep.subr.bf16.mxu1 %v11448_v56  ;;  %10893 = vmatprep.subr.bf16.mxu0 %v11449_v42 }
 0x33b   : > { %v13585_v33 = vpop.f32.mrf.mxu0 }
 0x33c   : > { %v10661_v23 = vpop.f32.mrf.mxu1  ;;  %10938 = vmatpush3.bf16.msra.mxu1 %v11448_v56 }
 0x33d   : > { %v13588_v34 = vadd.f32 %v10661_v23, %v13455_v63  ;;  %v13590_v3 = vpop.f32.mrf.mxu0  ;;  %10894 = vmatpush3.bf16.msra.mxu0 %v11449_v42  ;;  %10939 = vmatprep.subr.bf16.mxu1 %v11450_v40 }
 0x33e   : > { %v4342_v62 = vpop.f32.mrf.mxu1 }
 0x33f   : > { %v13593_v39 = vadd.f32 %v4342_v62, %v13458_v10  ;;  %v13601_v28 = vpop.f32.mrf.mxu0  ;;  %v5932_v62 = vld [vmem:[#allocation3 + $0x1] sm:$0xff] }
 0x340   : > { %v10662_v63 = vpop.f32.mrf.mxu1  ;;  %10940 = vmatpush3.bf16.msra.mxu1 %v11450_v40 }
 0x341   : > { %v13604_v61 = vadd.f32 %v10662_v63, %v13461_v1  ;;  %v13606_v9 = vpop.f32.mrf.mxu0  ;;  %v5933_v63 = vld [vmem:[#allocation3 + $0x9] sm:$0xff] }
 0x342   : > { %v13608_v10 = vpop.f32.mrf.mxu1  ;;  %v5964_v47 = vpack.c.bf16 %v5933_v63, %v5932_v62 }
 0x343   : > { %v13616_v46 = vpop.f32.mrf.mxu0 }
 0x344   : > { %v10665_v1 = vpop.f32.mrf.mxu1  ;;  %10895 = vmatprep.mubr.bf16.mxu0 %v5964_v47 }
 0x345   : > { %v13619_v23 = vadd.f32 %v10665_v1, %v13469_v43  ;;  %v13621_v26 = vpop.f32.mrf.mxu0 }
 0x346   : > { %v4358_v5 = vpop.f32.mrf.mxu1 }
 0x347   : > { %v13624_v48 = vadd.f32 %v4358_v5, %v13472_v0  ;;  %v13629_v41 = vpop.f32.mrf.mxu0  ;;  %v11451_v0 = vld [vmem:[%s15034_s5] sm:$0xff]  }
 0x348   : > { %v10666_v43 = vpop.f32.mrf.mxu1  ;;  %10941 = vmatprep.subr.bf16.mxu1 %v11451_v0 }
 0x349   : > { %v13632_v1 = vadd.f32 %v10666_v43, %v13475_v14  ;;  %v13634_v49 = vpop.f32.mrf.mxu0  ;;  %10942 = vmatpush3.bf16.msra.mxu1 %v11451_v0 }
 0x34a   : > { %v13636_v56 = vpop.f32.mrf.mxu1 }
 0x34b   : > { %15180 = vst [vmem:[#allocation8_spill] sm:$0xff] %v13632_v1  ;;  %15181 = vst [vmem:[#allocation11_spill] sm:$0xff] %v13636_v56  ;;  %v13641_v42 = vpop.f32.mrf.mxu0 }
 0x34c   : > { %v10669_v62 = vpop.f32.mrf.mxu1 }
 0x34d   : > { %v13644_v63 = vadd.f32 %v10669_v62, %v13486_v30  ;;  %v13646_v47 = vpop.f32.mrf.mxu0  ;;  %v13660_v30 = vld [vmem:[%s15034_s5 + $0xb8] sm:$0xff]  }
 0x34e   : > { %15183 = vst [vmem:[#allocation13_spill] sm:$0xff] %v13646_v47  ;;  %v4374_v14 = vpop.f32.mrf.mxu1  ;;  %15187 = vst [vmem:[#allocation38_spill] sm:$0xff] %v13660_v30  ;;  %10975 = vmatprep.subr.bf16.mxu0 %v13660_v30 }
 0x34f   : > { %15182 = vst [vmem:[#allocation34_spill] sm:$0xff] %v13644_v63  ;;  %v13649_v5 = vadd.f32 %v4374_v14, %v13489_v11  ;;  %v13651_v43 = vpop.f32.mrf.mxu0 }
 0x350   : > { %15185 = vst [vmem:[#allocation35_spill] sm:$0xff] %v13651_v43  ;;  %v10670_v40 = vpop.f32.mrf.mxu1 }
 0x351   : > { %15184 = vst [vmem:[#allocation16_spill] sm:$0xff] %v13649_v5  ;;  %v13655_v56 = vadd.f32 %v10670_v40, %v13492_v45  ;;  %v13662_v62 = vpop.f32.mrf.mxu0 }
 0x352   : > { %15188 = vst [vmem:[#allocation12_spill] sm:$0xff] %v13662_v62  ;;  %v13664_v63 = vpop.f32.mrf.mxu1 }
 0x353   : > { %15186 = vst [vmem:[#allocation36_spill] sm:$0xff] %v13655_v56  ;;  %15189 = vst [vmem:[#allocation41_spill] sm:$0xff] %v13664_v63  ;;  %v13667_v11 = vpop.f32.mrf.mxu0 }
 0x354   : > { %15190 = vst [vmem:[#allocation43_spill] sm:$0xff] %v13667_v11  ;;  %v10673_v0 = vpop.f32.mrf.mxu1 }
 0x355   : > { %v13670_v14 = vadd.f32 %v10673_v0, %v13502_v38  ;;  %v13672_v7 = vpop.f32.mrf.mxu0 }
 0x356   : > { %15192 = vst [vmem:[#allocation45_spill] sm:$0xff] %v13672_v7  ;;  %v4390_v45 = vpop.f32.mrf.mxu1 }
 0x357   : > { %15191 = vst [vmem:[#allocation14_spill] sm:$0xff] %v13670_v14  ;;  %v13675_v40 = vadd.f32 %v4390_v45, %v13505_v35  ;;  %v13677_v56 = vpop.f32.mrf.mxu0 }
 0x358   : > { %15194 = vst [vmem:[#allocation47_spill] sm:$0xff] %v13677_v56  ;;  %v10674_v5 = vpop.f32.mrf.mxu1 }
 0x359   : > { %15193 = vst [vmem:[#allocation15_spill] sm:$0xff] %v13675_v40  ;;  %v13680_v62 = vadd.f32 %v10674_v5, %v13508_v2  ;;  %v13682_v63 = vpop.f32.mrf.mxu0 }
 0x35a   : > { %15196 = vst [vmem:[#allocation40_spill] sm:$0xff] %v13682_v63  ;;  %v13684_v30 = vpop.f32.mrf.mxu1 }
 0x35b   : > { %15195 = vst [vmem:[#allocation21_spill] sm:$0xff] %v13680_v62  ;;  %15197 = vst [vmem:[#allocation42_spill] sm:$0xff] %v13684_v30  ;;  %v13686_v11 = vpop.f32.mrf.mxu0 }
 0x35c   : > { %15198 = vst [vmem:[#allocation44_spill] sm:$0xff] %v13686_v11  ;;  %v10677_v38 = vpop.f32.mrf.mxu1 }
 0x35d   : > { %v13689_v0 = vadd.f32 %v10677_v38, %v13518_v44  ;;  %v13691_v14 = vpop.f32.mrf.mxu0 }
 0x35e   : > { %15200 = vst [vmem:[#allocation17_spill] sm:$0xff] %v13691_v14  ;;  %v4406_v35 = vpop.f32.mrf.mxu1 }
 0x35f   : > { %15199 = vst [vmem:[#allocation46_spill] sm:$0xff] %v13689_v0  ;;  %v13694_v45 = vadd.f32 %v4406_v35, %v13522_v8  ;;  %v13696_v40 = vpop.f32.mrf.mxu0 }
 0x360   : > { %15202 = vst [vmem:[#allocation28_spill] sm:$0xff] %v13696_v40  ;;  %v10678_v2 = vpop.f32.mrf.mxu1 }
 0x361   : > { %15201 = vst [vmem:[#allocation49_spill] sm:$0xff] %v13694_v45  ;;  %v13699_v5 = vadd.f32 %v10678_v2, %v13525_v6  ;;  %v13701_v62 = vpop.f32.mrf.mxu0 }
 0x362   : > { %15204 = vst [vmem:[#allocation18_spill] sm:$0xff] %v13701_v62  ;;  %v13703_v30 = vpop.f32.mrf.mxu1 }
 0x363   : > { %15203 = vst [vmem:[#allocation51_spill] sm:$0xff] %v13699_v5  ;;  %15205 = vst [vmem:[#allocation53_spill] sm:$0xff] %v13703_v30  ;;  %v13705_v11 = vpop.f32.mrf.mxu0 }
 0x364   : > { %15206 = vst [vmem:[#allocation19_spill] sm:$0xff] %v13705_v11  ;;  %v10681_v44 = vpop.f32.mrf.mxu1 }
 0x365   : > { %v13708_v38 = vadd.f32 %v10681_v44, %v13535_v31  ;;  %v13710_v0 = vpop.f32.mrf.mxu0 }
 0x366   : > { %15208 = vst [vmem:[#allocation20_spill] sm:$0xff] %v13710_v0  ;;  %v4422_v8 = vpop.f32.mrf.mxu1 }
 0x367   : > { %15207 = vst [vmem:[#allocation55_spill] sm:$0xff] %v13708_v38  ;;  %v13713_v35 = vadd.f32 %v4422_v8, %v13538_v52  ;;  %v13715_v45 = vpop.f32.mrf.mxu0 }
 0x368   : > { %15210 = vst [vmem:[#allocation48_spill] sm:$0xff] %v13715_v45  ;;  %v10682_v6 = vpop.f32.mrf.mxu1 }
 0x369   : > { %15209 = vst [vmem:[#allocation26_spill] sm:$0xff] %v13713_v35  ;;  %v13718_v2 = vadd.f32 %v10682_v6, %v13544_v18  ;;  %v13720_v5 = vpop.f32.mrf.mxu0  ;;  %v13737_v18 = vld [vmem:[%s15034_s5 + $0xf8] sm:$0xff]  }
 0x36a   : > { %15212 = vst [vmem:[#allocation52_spill] sm:$0xff] %v13720_v5  ;;  %v13722_v30 = vpop.f32.mrf.mxu1  ;;  %15218 = vst [vmem:[#allocation25_spill] sm:$0xff] %v13737_v18  ;;  %11023 = vmatprep.subr.bf16.mxu1 %v13737_v18 }
 0x36b   : > { %15211 = vst [vmem:[#allocation50_spill] sm:$0xff] %v13718_v2  ;;  %15213 = vst [vmem:[#allocation54_spill] sm:$0xff] %v13722_v30  ;;  %v13724_v11 = vpop.f32.mrf.mxu0 }
 0x36c   : > { %15214 = vst [vmem:[#allocation22_spill] sm:$0xff] %v13724_v11  ;;  %v10685_v31 = vpop.f32.mrf.mxu1 }
 0x36d   : > { %v13727_v44 = vadd.f32 %v10685_v31, %v13557_v29  ;;  %v13729_v38 = vpop.f32.mrf.mxu0 }
 0x36e   : > { %15216 = vst [vmem:[#allocation59_spill] sm:$0xff] %v13729_v38  ;;  %v4438_v52 = vpop.f32.mrf.mxu1 }
 0x36f   : > { %15215 = vst [vmem:[#allocation57_spill] sm:$0xff] %v13727_v44  ;;  %v13732_v8 = vadd.f32 %v4438_v52, %v13562_v51  ;;  %v13739_v6 = vpop.f32.mrf.mxu0 }
 0x370   : > { %15219 = vst [vmem:[#allocation56_spill] sm:$0xff] %v13739_v6  ;;  %v10686_v2 = vpop.f32.mrf.mxu1 }
 0x371   : > { %15217 = vst [vmem:[#allocation23_spill] sm:$0xff] %v13732_v8  ;;  %v13742_v35 = vadd.f32 %v10686_v2, %v13570_v12  ;;  %v13745_v29 = vpop.f32.mrf.mxu0 }
 0x372   : > { %15221 = vst [vmem:[#allocation62_spill] sm:$0xff] %v13745_v29  ;;  %v13747_v31 = vpop.f32.mrf.mxu1 }
 0x373   : > { %15220 = vst [vmem:[#allocation24_spill] sm:$0xff] %v13742_v35  ;;  %15222 = vst [vmem:[#allocation32_spill] sm:$0xff] %v13747_v31  ;;  %v13749_v44 = vpop.f32.mrf.mxu0 }
 0x374   : > { %15223 = vst [vmem:[#allocation58_spill] sm:$0xff] %v13749_v44  ;;  %v10753_v51 = vpop.f32.mrf.mxu1 }
 0x375   : > { %v13751_v52 = vpop.f32.mrf.mxu0 }
 0x376   : > { %15224 = vst [vmem:[#allocation60_spill] sm:$0xff] %v13751_v52  ;;  %v4939_v8 = vpop.f32.mrf.mxu1 }
 0x377   : > { %v13753_v38 = vpop.f32.mrf.mxu0 }
 0x378   : > { %15225 = vst [vmem:[#allocation61_spill] sm:$0xff] %v13753_v38  ;;  %v10754_v11 = vpop.f32.mrf.mxu1 }
 0x379   : > { %v13755_v6 = vpop.f32.mrf.mxu0 }
 0x37a   : > { %15226 = vst [vmem:[#allocation27_spill] sm:$0xff] %v13755_v6  ;;  %v13757_v30 = vpop.f32.mrf.mxu1 }
 0x37b   : > { %v10801_v12 = vpop.f32.mrf.mxu0 }
 0x37c   : > { %v13759_v2 = vpop.f32.mrf.mxu1 }
 0x37d   : > { %v5245_v35 = vpop.f32.mrf.mxu0 }
 0x37e   : > { %v13761_v29 = vpop.f32.mrf.mxu1 }
 0x37f   : > { %v10802_v31 = vpop.f32.mrf.mxu0 }
 0x380   : > { %v13763_v5 = vpop.f32.mrf.mxu1 }
 0x381   : > { %v13765_v44 = vpop.f32.mrf.mxu0 }
 0x382   : > { %v13767_v52 = vpop.f32.mrf.mxu1 }
 0x383   : > { %v13769_v45 = vpop.f32.mrf.mxu0 }
 0x384   : > { %v13771_v38 = vpop.f32.mrf.mxu1 }
 0x385   : > { %15227 = vst [vmem:[#allocation64_spill] sm:$0xff] %v13771_v38  ;;  %v13773_v6 = vpop.f32.mrf.mxu0 }
 0x386   : > { %v13775_v0 = vpop.f32.mrf.mxu1 }
 0x387   : > { %15228 = vst [vmem:[#allocation66_spill] sm:$0xff] %v13775_v0  ;;  %v13779_v40 = vpop.f32.mrf.mxu0 }
 0x388   : > { %v13777_v62 = vpop.f32.mrf.mxu1 }
 0x389   : > { %15229 = vst [vmem:[#allocation63_spill] sm:$0xff] %v13777_v62  ;;  %v13785_v63 = vpop.f32.mrf.mxu0 }
 0x38a   : > { %v13781_v18 = vpop.f32.mrf.mxu1  ;;  %15232 = vst [vmem:[#allocation30_spill] sm:$0xff] %v13785_v63 }
 0x38b   : > { %15230 = vst [vmem:[#allocation29_spill] sm:$0xff] %v13781_v18  ;;  %v13791_v43 = vpop.f32.mrf.mxu0 }
 0x38c   : > { %v13783_v14 = vpop.f32.mrf.mxu1  ;;  %15235 = vst [vmem:[#allocation65_spill] sm:$0xff] %v13791_v43 }
 0x38d   : > { %15231 = vst [vmem:[#allocation68_spill] sm:$0xff] %v13783_v14  ;;  %v13797_v0 = vpop.f32.mrf.mxu0 }
 0x38e   : > { %v13787_v56 = vpop.f32.mrf.mxu1  ;;  %15238 = vst [vmem:[#allocation33_spill] sm:$0xff] %v13797_v0 }
 0x38f   : > { %15233 = vst [vmem:[#allocation70_spill] sm:$0xff] %v13787_v56  ;;  %v13803_v18 = vpop.f32.mrf.mxu0 }
 0x390   : > { %v13789_v7 = vpop.f32.mrf.mxu1  ;;  %15241 = vst [vmem:[#allocation73_spill] sm:$0xff] %v13803_v18 }
 0x391   : > { %15234 = vst [vmem:[#allocation31_spill] sm:$0xff] %v13789_v7  ;;  %v13809_v56 = vpop.f32.mrf.mxu0 }
 0x392   : > { %v13793_v1 = vpop.f32.mrf.mxu1  ;;  %15244 = vst [vmem:[#allocation76_spill] sm:$0xff] %v13809_v56 }
 0x393   : > { %15236 = vst [vmem:[#allocation67_spill] sm:$0xff] %v13793_v1  ;;  %v13815_v1 = vpop.f32.mrf.mxu0 }
 0x394   : > { %v13795_v38 = vpop.f32.mrf.mxu1 }
 0x395   : > { %15237 = vst [vmem:[#allocation69_spill] sm:$0xff] %v13795_v38 }
 0x396   : > { %v13799_v62 = vpop.f32.mrf.mxu1 }
 0x397   : > { %15239 = vst [vmem:[#allocation71_spill] sm:$0xff] %v13799_v62  ;;  %v13821_v62 = vpop.f32.mrf.mxu0 }
 0x398   : > { %v13801_v47 = vpop.f32.mrf.mxu1  ;;  %15249 = vst [vmem:[#allocation81_spill] sm:$0xff] %v13821_v62 }
 0x399   : > { %15240 = vst [vmem:[#allocation72_spill] sm:$0xff] %v13801_v47 }
 0x39a   : > { %v13805_v14 = vpop.f32.mrf.mxu1 }
 0x39b   : > { %15242 = vst [vmem:[#allocation74_spill] sm:$0xff] %v13805_v14  ;;  %v13827_v14 = vpop.f32.mrf.mxu0 }
 0x39c   : > { %v13807_v63 = vpop.f32.mrf.mxu1  ;;  %15252 = vst [vmem:[#allocation84_spill] sm:$0xff] %v13827_v14 }
 0x39d   : > { %15243 = vst [vmem:[#allocation75_spill] sm:$0xff] %v13807_v63 }
 0x39e   : > { %v13811_v7 = vpop.f32.mrf.mxu1 }
 0x39f   : > { %15245 = vst [vmem:[#allocation77_spill] sm:$0xff] %v13811_v7  ;;  %v13833_v7 = vpop.f32.mrf.mxu0 }
 0x3a0   : > { %v13813_v43 = vpop.f32.mrf.mxu1  ;;  %15255 = vst [vmem:[#allocation87_spill] sm:$0xff] %v13833_v7 }
 0x3a1   : > { %15246 = vst [vmem:[#allocation78_spill] sm:$0xff] %v13813_v43  ;;  %v13845_v62 = vpop.f32.mrf.mxu0 }
 0x3a2   : > { %v13817_v38 = vpop.f32.mrf.mxu1 }
 0x3a3   : > { %15247 = vst [vmem:[#allocation79_spill] sm:$0xff] %v13817_v38  ;;  %v4761_v38 = vadd.f32 %v13585_v33, %v13560_v16  ;;  %v3508_v33 = vadd.f32 %v13396_v37, %v13385_v54  ;;  %v13868_v54 = vadd.f32 %v13436_v25, %v13425_v17  ;;  %v4765_v37 = vadd.f32 %v13616_v46, %v13588_v34 }
 0x3a4   : > { %v13819_v0 = vpop.f32.mrf.mxu1 }
 0x3a5   : > { %15248 = vst [vmem:[#allocation80_spill] sm:$0xff] %v13819_v0  ;;  %v5068_v14 = vadd.f32 %v10753_v51, %v4761_v38  ;;  %v13860_v38 = vpop.f32.mrf.mxu0 }
 0x3a6   : > { %v13823_v47 = vpop.f32.mrf.mxu1 }
 0x3a7   : > { %15250 = vst [vmem:[#allocation82_spill] sm:$0xff] %v13823_v47  ;;  %v4148_v47 = vadd.f32 %v13450_v60, %v13439_v21  ;;  %v5374_v7 = vadd.f32 %v10801_v12, %v5068_v14  ;;  %v13857_v21 = vld [vmem:[%s15033_s4] ss:$0 sm:$0xff]  ;;  %v13882_v34 = vpop.f32.mrf.mxu0 }
 0x3a8   : > { %v13825_v18 = vpop.f32.mrf.mxu1 }
 0x3a9   : > { %15251 = vst [vmem:[#allocation83_spill] sm:$0xff] %v13825_v18  ;;  %v4759_v18 = vadd.f32 %v13590_v3, %v13565_v20 }
 0x3aa   : > { %v13829_v63 = vpop.f32.mrf.mxu1 }
 0x3ab   : > { %15253 = vst [vmem:[#allocation85_spill] sm:$0xff] %v13829_v63  ;;  %v5066_v16 = vadd.f32 %v4939_v8, %v4759_v18  ;;  %v13900_v18 = vpop.f32.mrf.mxu0 }
 0x3ac   : > { %v13831_v56 = vpop.f32.mrf.mxu1 }
 0x3ad   : > { %15254 = vst [vmem:[#allocation86_spill] sm:$0xff] %v13831_v56  ;;  %v4762_v56 = vadd.f32 %v13601_v28, %v13573_v53  ;;  %v5372_v20 = vadd.f32 %v5245_v35, %v5066_v16  ;;  %v3540_v28 = vadd.f32 %v13423_v58, %v13413_v19  ;;  %v4763_v19 = vadd.f32 %v13621_v26, %v13593_v39  ;;  %v15258_v16 = vld [vmem:[#allocation9_spill] sm:$0xff] }
 0x3ae   : > { %v13835_v43 = vpop.f32.mrf.mxu1  ;;  %v5072_v58 = vadd.f32 %v13759_v2, %v4765_v37 }
 0x3af   : > { %15256 = vst [vmem:[#allocation88_spill] sm:$0xff] %v13835_v43  ;;  %v4454_v43 = vadd.f32 %v13580_v27, %v4148_v47  ;;  %v5069_v3 = vadd.f32 %v10754_v11, %v4762_v56  ;;  %v3524_v27 = vadd.f32 %v13411_v50, %v13399_v36  ;;  %v4152_v36 = vadd.f32 %v13464_v55, %v13453_v22 }
 0x3b0   : > { %v13839_v0 = vpop.f32.mrf.mxu1  ;;  %v4156_v50 = vadd.f32 %v13478_v13, %v13467_v4  ;;  %v4766_v22 = vadd.f32 %v13629_v41, %v13604_v61  ;;  %v5070_v4 = vadd.f32 %v13761_v29, %v4763_v19  ;;  %v5378_v39 = vadd.f32 %v13769_v45, %v5072_v58  ;;  %v15265_v19 = vld [vmem:[#allocation11_spill] sm:$0xff] }
 0x3b1   : > { %15257 = vst [vmem:[#allocation89_spill] sm:$0xff] %v13839_v0  ;;  %v4760_v60 = vadd.f32 %v13606_v9, %v4454_v43  ;;  %v5375_v9 = vadd.f32 %v10802_v31, %v5069_v3  ;;  %v4458_v55 = vadd.f32 %v13608_v10, %v4152_v36  ;;  %v3862_v51 = vadd.f32 %v13513_v24, %v3524_v27 }
 0x3b2   : > { %v13847_v63 = vpop.f32.mrf.mxu1  ;;  %v5073_v61 = vadd.f32 %v13763_v5, %v4766_v22  ;;  %v5376_v8 = vadd.f32 %v13773_v6, %v5070_v4  ;;  %v4462_v58 = vadd.f32 %v15265_v19, %v4156_v50  ;;  %v15268_v4 = vld [vmem:[#allocation10_spill] sm:$0xff] }
 0x3b3   : > { %v5067_v56 = vadd.f32 %v13757_v30, %v4760_v60  ;;  %v4764_v41 = vadd.f32 %v13634_v49, %v4458_v55  ;;  %v15259_v60 = vld [vmem:[#allocation13_spill] sm:$0xff]  ;;  %v15271_v50 = vld [vmem:[#allocation38_spill] sm:$0xff] }
 0x3b4   : > { %v10849_v0 = vpop.f32.mrf.mxu1  ;;  %v4767_v24 = vadd.f32 %v15259_v60, %v13624_v48  ;;  %v15263_v48 = vld [vmem:[#allocation8_spill] sm:$0xff]  ;;  %v15278_v60 = vld [vmem:[#allocation73_spill] sm:$0xff] }
 0x3b5   : > { %v5680_v53 = vadd.f32 %v10849_v0, %v5374_v7  ;;  %v5373_v25 = vadd.f32 %v13765_v44, %v5067_v56  ;;  %v3858_v7 = vadd.f32 %v13497_v32, %v3508_v33  ;;  %v4160_v44 = vadd.f32 %v13495_v15, %v13481_v57  ;;  %v15262_v56 = vld [vmem:[#allocation37_spill] sm:$0xff] }
 0x3b6   : > { %v5551_v47 = vpop.f32.mrf.mxu1  ;;  %v4769_v57 = vadd.f32 %v13641_v42, %v13619_v23  ;;  %v5379_v15 = vadd.f32 %v13779_v40, %v5073_v61  ;;  %v13910_v33 = vadd.f32 %v15258_v16, %v3862_v51  ;;  %v15261_v23 = vld [vmem:[#allocation64_spill] sm:$0xff]  ;;  %v15273_v51 = vld [vmem:[#allocation39_spill] sm:$0xff] }
 0x3b7   : > { %v5719_v43 = vadd.f32 %v13857_v21, %v5680_v53  ;;  %v5678_v11 = vadd.f32 %v5551_v47, %v5372_v20  ;;  %v13895_v32 = vadd.f32 %v13511_v59, %v3858_v7  ;;  %v5071_v59 = vadd.f32 %v13767_v52, %v4764_v41  ;;  %v15260_v20 = vld [vmem:[#allocation30_spill] sm:$0xff]  ;;  %v13916_v53 = vpop.f32.mrf.mxu0  ;;  %v15272_v41 = vld [vmem:[#allocation33_spill] sm:$0xff] }
 0x3b8   : > { %v10850_v17 = vpop.f32.mrf.mxu1  ;;  %v5076_v42 = vadd.f32 %v15261_v23, %v4769_v57  ;;  %v13944_v57 = vadd.f32 %v15273_v51, %v13868_v54  ;;  %v15280_v54 = vld [vmem:[#allocation45_spill] sm:$0xff]  ;;  %v15288_v51 = vld [vmem:[#allocation31_spill] sm:$0xff] }
 0x3b9   : > { %v5751_v46 = vmax.f32 %v5719_v43, 0.0  ;;  %v5717_v30 = vadd.f32 %v13857_v21, %v5678_v11  ;;  %v5681_v14 = vadd.f32 %v10850_v17, %v5375_v9  ;;  %v5377_v3 = vadd.f32 %v15260_v20, %v5071_v59  ;;  %v11453_v9 = vld [vmem:[%s15034_s5 + $0xb0] sm:$0xff]   ;;  %v15264_v11 = vld [vmem:[#allocation35_spill] sm:$0xff]  ;;  %v15266_v17 = vld [vmem:[#allocation66_spill] sm:$0xff] }
 0x3ba   : > { %v5554_v13 = vpop.f32.mrf.mxu1  ;;  %v3866_v43 = vadd.f32 %v15262_v56, %v3540_v28  ;;  %v4770_v36 = vadd.f32 %v15264_v11, %v15263_v48  ;;  %v15269_v28 = vld [vmem:[#allocation12_spill] sm:$0xff]  ;;  %v15275_v59 = vld [vmem:[#allocation43_spill] sm:$0xff] }
 0x3bb   : > { %5838 = vst [vmem:[#allocation3 + $0x31] sm:$0xff] %v5751_v46  ;;  %v5749_v26 = vmax.f32 %v5717_v30, 0.0  ;;  %v5720_v0 = vadd.f32 %v13857_v21, %v5681_v14  ;;  %v5679_v35 = vadd.f32 %v5554_v13, %v5373_v25  ;;  %v5074_v25 = vadd.f32 %v15266_v17, %v4767_v24  ;;  %v15267_v30 = vld [vmem:[#allocation65_spill] sm:$0xff]  ;;  %v15282_v56 = vld [vmem:[#allocation68_spill] sm:$0xff] }
 0x3bc   : > { %v10853_v10 = vpop.f32.mrf.mxu1  ;;  %v5382_v14 = vadd.f32 %v15267_v30, %v5076_v42  ;;  %v13930_v13 = vadd.f32 %v15268_v4, %v3866_v43  ;;  %v15285_v4 = vld [vmem:[#allocation70_spill] sm:$0xff] }
 0x3bd   : > { %5836 = vst [vmem:[#allocation3 + $0x19] sm:$0xff] %v5749_v26  ;;  %v5752_v45 = vmax.f32 %v5720_v0, 0.0  ;;  %v5718_v29 = vadd.f32 %v13857_v21, %v5679_v35  ;;  %v5684_v31 = vadd.f32 %v10853_v10, %v5378_v39  ;;  %v4768_v39 = vadd.f32 %v15269_v28, %v4462_v58  ;;  %v13936_v10 = vpop.f32.mrf.mxu0 }
 0x3be   : > { %v5567_v49 = vpop.f32.mrf.mxu1  ;;  %v5380_v61 = vadd.f32 %v15272_v41, %v5074_v25 }
 0x3bf   : > { %5839 = vst [vmem:[#allocation3 + $0x39] sm:$0xff] %v5752_v45  ;;  %v5750_v5 = vmax.f32 %v5718_v29, 0.0  ;;  %v5723_v6 = vadd.f32 %v13857_v21, %v5684_v31  ;;  %v5682_v12 = vadd.f32 %v5567_v49, %v5376_v8  ;;  %v5966_v2 = vpack.c.bf16 %v5752_v45, %v5751_v46  ;;  %v11454_v31 = vld [vmem:[%s15034_s5 + $0xa8] sm:$0xff]   ;;  %v13958_v19 = vpop.f32.mrf.mxu0 }
 0x3c0   : > { %v10854_v40 = vpop.f32.mrf.mxu1 }
 0x3c1   : > { %5837 = vst [vmem:[#allocation3 + $0x21] sm:$0xff] %v5750_v5  ;;  %v5755_v52 = vmax.f32 %v5723_v6, 0.0  ;;  %v5721_v27 = vadd.f32 %v13857_v21, %v5682_v12  ;;  %v5685_v37 = vadd.f32 %v10854_v40, %v5379_v15  ;;  %v5965_v47 = vpack.c.bf16 %v5750_v5, %v5749_v26  ;;  %v15270_v26 = vld [vmem:[#allocation63_spill] sm:$0xff]  ;;  %v15274_v15 = vld [vmem:[#allocation34_spill] sm:$0xff]  ;;  %v15276_v5 = vld [vmem:[#allocation41_spill] sm:$0xff] }
 0x3c2   : > { %v5570_v46 = vpop.f32.mrf.mxu1  ;;  %v5077_v0 = vadd.f32 %v15270_v26, %v4770_v36  ;;  %v4773_v49 = vadd.f32 %v15275_v59, %v15274_v15  ;;  %v4466_v6 = vadd.f32 %v15276_v5, %v4160_v44  ;;  %v15277_v12 = vld [vmem:[#allocation29_spill] sm:$0xff]  ;;  %v15279_v40 = vld [vmem:[#allocation16_spill] sm:$0xff]  ;;  %v5872_v30 = vld [vmem:[#allocation3 + $0x30] sm:$0xff]  ;;  %v13987_v5 = vpop.f32.mrf.mxu0 }
 0x3c3   : > { %5842 = vst [vmem:[#allocation3 + $0x61] sm:$0xff] %v5755_v52  ;;  %v5753_v7 = vmax.f32 %v5721_v27, 0.0  ;;  %v5724_v22 = vadd.f32 %v13857_v21, %v5685_v37  ;;  %v5683_v55 = vadd.f32 %v5570_v46, %v5377_v3  ;;  %10896 = vmatmul.mubr.bf16.vlgmr.msra.gmra.mxu0 %v5965_v47  ;;  %v4771_v27 = vadd.f32 %v15280_v54, %v15279_v40  ;;  %v15281_v37 = vld [vmem:[#allocation76_spill] sm:$0xff]  ;;  %v11455_v26 = vld [vmem:[%s15034_s5 + $0xa0] sm:$0xff]   ;;  %v15289_v59 = vld [vmem:[#allocation81_spill] sm:$0xff] }
 0x3c4   : > { %v10857_v35 = vpop.f32.mrf.mxu1  ;;  %10976 = vmatpush3.bf16.msra.mxu0 %v15271_v50  ;;  %10899 = vmatprep.mubr.bf16.mxu0 %v5966_v2  ;;  %v5075_v2 = vadd.f32 %v15277_v12, %v4768_v39  ;;  %v5383_v24 = vadd.f32 %v15278_v60, %v5077_v0  ;;  %v5080_v43 = vadd.f32 %v15282_v56, %v4773_v49  ;;  %v5870_v48 = vld [vmem:[#allocation3 + $0x18] sm:$0xff]  ;;  %v11456_v54 = vld [vmem:[%s15034_s5 + $0x98] sm:$0xff]  }
 0x3c5   : > { %5840 = vst [vmem:[#allocation3 + $0x49] sm:$0xff] %v5753_v7  ;;  %v5756_v8 = vmax.f32 %v5724_v22, 0.0  ;;  %v5722_v45 = vadd.f32 %v13857_v21, %v5683_v55  ;;  %v5688_v29 = vadd.f32 %v10857_v35, %v5382_v14  ;;  %10977 = vmatprep.subr.bf16.mxu0 %v11453_v9  ;;  %v15283_v14 = vld [vmem:[#allocation36_spill] sm:$0xff]  ;;  %v15284_v22 = vld [vmem:[#allocation47_spill] sm:$0xff]  ;;  %v5078_v28 = vadd.f32 %v15285_v4, %v4771_v27  ;;  %v15295_v27 = vld [vmem:[#allocation25_spill] sm:$0xff] }
 0x3c6   : > { %v5583_v16 = vpop.f32.mrf.mxu1  ;;  %v5873_v42 = vld [vmem:[#allocation3 + $0x38] sm:$0xff]  ;;  %v5381_v47 = vadd.f32 %v15281_v37, %v5075_v2  ;;  %v4774_v55 = vadd.f32 %v15284_v22, %v15283_v14  ;;  %v5386_v0 = vadd.f32 %v13815_v1, %v5080_v43  ;;  %v15300_v14 = vld [vmem:[#allocation69_spill] sm:$0xff] }
 0x3c7   : > { %5843 = vst [vmem:[#allocation3 + $0x69] sm:$0xff] %v5756_v8  ;;  %v5754_v20 = vmax.f32 %v5722_v45, 0.0  ;;  %v13952_v3 = vadd.f32 %v13857_v21, %v5688_v29  ;;  %v5686_v23 = vadd.f32 %v5583_v16, %v5380_v61  ;;  %v5968_v36 = vpack.c.bf16 %v5756_v8, %v5755_v52  ;;  %v11458_v61 = vld [vmem:[%s15034_s5 + $0xf0] sm:$0xff]   ;;  %v15287_v45 = vld [vmem:[#allocation42_spill] sm:$0xff] }
 0x3c8   : > { %v10858_v44 = vpop.f32.mrf.mxu1  ;;  %v5871_v11 = vld [vmem:[#allocation3 + $0x20] sm:$0xff]  ;;  %10978 = vmatpush3.bf16.msra.mxu0 %v11453_v9  ;;  %v13969_v52 = vpack.c.bf16 %v5873_v42, %v5872_v30  ;;  %v4470_v29 = vadd.f32 %v15287_v45, %v13895_v32  ;;  %v5081_v15 = vadd.f32 %v15288_v51, %v4774_v55  ;;  %v5384_v49 = vadd.f32 %v15289_v59, %v5078_v28  ;;  %v15301_v45 = vld [vmem:[#allocation71_spill] sm:$0xff] }
 0x3c9   : > { %5841 = vst [vmem:[#allocation3 + $0x51] sm:$0xff] %v5754_v20  ;;  %v5759_v58 = vmax.f32 %v13952_v3, 0.0  ;;  %v13962_v17 = vadd.f32 %v13857_v21, %v5686_v23  ;;  %v5689_v25 = vadd.f32 %v10858_v44, %v5383_v24  ;;  %v13964_v46 = vpack.c.bf16 %v5871_v11, %v5870_v48  ;;  %10979 = vmatprep.subr.bf16.mxu0 %v11454_v31  ;;  %v15286_v8 = vld [vmem:[#allocation40_spill] sm:$0xff]  ;;  %v15292_v24 = vld [vmem:[#allocation15_spill] sm:$0xff]  ;;  %v15297_v11 = vld [vmem:[#allocation21_spill] sm:$0xff] }
 0x3ca   : > { %v5586_v9 = vpop.f32.mrf.mxu1  ;;  %v5967_v39 = vpack.c.bf16 %v5754_v20, %v5753_v7  ;;  %v4772_v7 = vadd.f32 %v15286_v8, %v4466_v6  ;;  %v15290_v6 = vld [vmem:[#allocation14_spill] sm:$0xff]  ;;  %v15291_v60 = vld [vmem:[#allocation44_spill] sm:$0xff]  ;;  %v15293_v20 = vld [vmem:[#allocation17_spill] sm:$0xff] }
 0x3cb   : > { %5846 = vst [vmem:[#allocation3 + $0x91] sm:$0xff] %v5759_v58  ;;  %v5757_v35 = vmax.f32 %v13962_v17, 0.0  ;;  %v5728_v50 = vadd.f32 %v13857_v21, %v5689_v25  ;;  %v5687_v41 = vadd.f32 %v5586_v9, %v5381_v47  ;;  %10944 = vmatmul.mubr.bf16.vlgmr.msra.gmra.mxu1 %v13964_v46  ;;  %v4777_v32 = vadd.f32 %v15291_v60, %v15290_v6  ;;  %v15294_v23 = vld [vmem:[#allocation67_spill] sm:$0xff]  ;;  %v15296_v37 = vld [vmem:[#allocation84_spill] sm:$0xff]  ;;  %v15303_v6 = vld [vmem:[#allocation53_spill] sm:$0xff] }
 0x3cc   : > { %v10861_v1 = vpop.f32.mrf.mxu1  ;;  %10947 = vmatprep.mubr.bf16.mxu1 %v13969_v52  ;;  %10900 = vmatmul.mubr.bf16.gmra.mxu0 %v5967_v39  ;;  %v4775_v3 = vadd.f32 %v15293_v20, %v15292_v24  ;;  %v5079_v42 = vadd.f32 %v15294_v23, %v4772_v7  ;;  %v5387_v47 = vadd.f32 %v15296_v37, %v5081_v15  ;;  %v11460_v48 = vld [vmem:[%s15034_s5 + $0xe8] sm:$0xff]   ;;  %v5874_v4 = vld [vmem:[#allocation3 + $0x48] sm:$0xff]  ;;  %v14010_v39 = vpop.f32.mrf.mxu0  ;;  %v5876_v7 = vld [vmem:[#allocation3 + $0x60] sm:$0xff] }
 0x3cd   : > { %5844 = vst [vmem:[#allocation3 + $0x79] sm:$0xff] %v5757_v35  ;;  %v5760_v12 = vmax.f32 %v5728_v50, 0.0  ;;  %v5726_v2 = vadd.f32 %v13857_v21, %v5687_v41  ;;  %v5692_v16 = vadd.f32 %v10861_v1, %v5386_v0  ;;  %10903 = vmatprep.mubr.bf16.mxu0 %v5968_v36  ;;  %10980 = vmatpush3.bf16.msra.mxu0 %v11454_v31  ;;  %v15298_v36 = vld [vmem:[#allocation28_spill] sm:$0xff]  ;;  %v15299_v25 = vld [vmem:[#allocation87_spill] sm:$0xff]  ;;  %v15307_v37 = vld [vmem:[#allocation49_spill] sm:$0xff] }
 0x3ce   : > { %v5599_v40 = vpop.f32.mrf.mxu1  ;;  %10981 = vmatprep.subr.bf16.mxu0 %v11455_v26  ;;  %11024 = vmatpush3.bf16.msra.mxu1 %v15295_v27  ;;  %v5877_v44 = vld [vmem:[#allocation3 + $0x68] sm:$0xff]  ;;  %v4778_v17 = vadd.f32 %v15298_v36, %v15297_v11  ;;  %v5385_v30 = vadd.f32 %v15299_v25, %v5079_v42  ;;  %v5084_v22 = vadd.f32 %v15300_v14, %v4777_v32  ;;  %v15304_v32 = vld [vmem:[#allocation72_spill] sm:$0xff]  ;;  %v15306_v27 = vld [vmem:[#allocation19_spill] sm:$0xff] }
 0x3cf   : > { %5847 = vst [vmem:[#allocation3 + $0x99] sm:$0xff] %v5760_v12  ;;  %v5758_v31 = vmax.f32 %v5726_v2, 0.0  ;;  %v14001_v56 = vadd.f32 %v13857_v21, %v5692_v16  ;;  %v5690_v43 = vadd.f32 %v5599_v40, %v5384_v49  ;;  %11025 = vmatprep.subr.bf16.mxu1 %v11458_v61  ;;  %v5970_v9 = vpack.c.bf16 %v5760_v12, %v5759_v58  ;;  %v11459_v58 = vld [vmem:[%s15034_s5 + $0x90] sm:$0xff]   ;;  %v15310_v14 = vld [vmem:[#allocation51_spill] sm:$0xff] }
 0x3d0   : > { %v10862_v55 = vpop.f32.mrf.mxu1  ;;  %v5875_v28 = vld [vmem:[#allocation3 + $0x50] sm:$0xff]  ;;  %v5082_v51 = vadd.f32 %v15301_v45, %v4775_v3  ;;  %v14019_v1 = vpack.c.bf16 %v5877_v44, %v5876_v7  ;;  %v5390_v49 = vadd.f32 %v13845_v62, %v5084_v22  ;;  %v4474_v60 = vadd.f32 %v15303_v6, %v13910_v33  ;;  %v14037_v3 = vpop.f32.mrf.mxu0 }
 0x3d1   : > { %5845 = vst [vmem:[#allocation3 + $0x81] sm:$0xff] %v5758_v31  ;;  %v5763_v0 = vmax.f32 %v14001_v56, 0.0  ;;  %v14014_v50 = vadd.f32 %v13857_v21, %v5690_v43  ;;  %v5693_v41 = vadd.f32 %v10862_v55, %v5387_v47  ;;  %v14016_v8 = vpack.c.bf16 %v5875_v28, %v5874_v4  ;;  %10982 = vmatpush3.bf16.msra.mxu0 %v11455_v26  ;;  %v15308_v47 = vld [vmem:[#allocation20_spill] sm:$0xff]  ;;  %v15309_v56 = vld [vmem:[#allocation74_spill] sm:$0xff]  ;;  %v15312_v4 = vld [vmem:[#allocation75_spill] sm:$0xff] }
 0x3d2   : > { %v5602_v15 = vpop.f32.mrf.mxu1  ;;  %v5969_v59 = vpack.c.bf16 %v5758_v31, %v5757_v35  ;;  %10983 = vmatprep.subr.bf16.mxu0 %v11456_v54  ;;  %11026 = vmatpush3.bf16.msra.mxu1 %v11458_v61  ;;  %v11461_v35 = vld [vmem:[%s15034_s5 + $0xe0] sm:$0xff]   ;;  %v5085_v62 = vadd.f32 %v15304_v32, %v4778_v17  ;;  %v5388_v20 = vadd.f32 %v13860_v38, %v5082_v51  ;;  %v11462_v38 = vld [vmem:[%s15034_s5 + $0x88] sm:$0xff]   ;;  %v14059_v7 = vpop.f32.mrf.mxu0 }
 0x3d3   : > { %5850 = vst [vmem:[#allocation3 + $0xc1] sm:$0xff] %v5763_v0  ;;  %v5761_v12 = vmax.f32 %v14014_v50, 0.0  ;;  %v5732_v2 = vadd.f32 %v13857_v21, %v5693_v41  ;;  %v5691_v26 = vadd.f32 %v5602_v15, %v5385_v30  ;;  %10948 = vmatmul.mubr.bf16.gmra.mxu1 %v14016_v8  ;;  %11027 = vmatprep.subr.bf16.mxu1 %v11460_v48  ;;  %v15302_v61 = vld [vmem:[#allocation18_spill] sm:$0xff] }
 0x3d4   : > { %v4776_v16 = vadd.f32 %v15302_v61, %v4470_v29  ;;  %v10865_v24 = vpop.f32.mrf.mxu1  ;;  %10951 = vmatprep.mubr.bf16.mxu1 %v14019_v1  ;;  %10904 = vmatmul.mubr.bf16.gmra.mxu0 %v5969_v59  ;;  %v15305_v29 = vld [vmem:[#allocation46_spill] sm:$0xff]  ;;  %v4779_v31 = vadd.f32 %v15308_v47, %v15307_v37  ;;  %v5391_v11 = vadd.f32 %v13882_v34, %v5085_v62 }
 0x3d5   : > { %5848 = vst [vmem:[#allocation3 + $0xa9] sm:$0xff] %v5761_v12  ;;  %v5764_v23 = vmax.f32 %v5732_v2, 0.0  ;;  %v5730_v42 = vadd.f32 %v13857_v21, %v5691_v26  ;;  %v5696_v40 = vadd.f32 %v10865_v24, %v5390_v49  ;;  %10907 = vmatprep.mubr.bf16.mxu0 %v5970_v9  ;;  %10984 = vmatpush3.bf16.msra.mxu0 %v11456_v54  ;;  %v11463_v30 = vld [vmem:[%s15034_s5 + $0xd8] sm:$0xff]   ;;  %v5878_v9 = vld [vmem:[#allocation3 + $0x78] sm:$0xff]  ;;  %v5880_v49 = vld [vmem:[#allocation3 + $0x90] sm:$0xff] }
 0x3d6   : > { %v4781_v33 = vadd.f32 %v15306_v27, %v15305_v29  ;;  %v5083_v43 = vadd.f32 %v15309_v56, %v4776_v16  ;;  %v5615_v44 = vpop.f32.mrf.mxu1  ;;  %10985 = vmatprep.subr.bf16.mxu0 %v11459_v58  ;;  %11028 = vmatpush3.bf16.msra.mxu1 %v11460_v48  ;;  %v5881_v25 = vld [vmem:[#allocation3 + $0x98] sm:$0xff]  ;;  %v14086_v27 = vpop.f32.mrf.mxu0  ;;  %v15319_v56 = vld [vmem:[#allocation26_spill] sm:$0xff] }
 0x3d7   : > { %5851 = vst [vmem:[#allocation3 + $0xc9] sm:$0xff] %v5764_v23  ;;  %v5762_v36 = vmax.f32 %v5730_v42, 0.0  ;;  %v14050_v54 = vadd.f32 %v13857_v21, %v5696_v40  ;;  %v5694_v17 = vadd.f32 %v5615_v44, %v5388_v20  ;;  %11029 = vmatprep.subr.bf16.mxu1 %v11461_v35  ;;  %v15311_v48 = vld [vmem:[#allocation48_spill] sm:$0xff]  ;;  %v5972_v41 = vpack.c.bf16 %v5764_v23, %v5763_v0  ;;  %v11465_v0 = vld [vmem:[%s15034_s5 + $0x80] sm:$0xff]  }
 0x3d8   : > { %v4782_v22 = vadd.f32 %v15311_v48, %v15310_v14  ;;  %v5389_v55 = vadd.f32 %v13900_v18, %v5083_v43  ;;  %v5088_v28 = vadd.f32 %v15312_v4, %v4781_v33  ;;  %v10866_v34 = vpop.f32.mrf.mxu1  ;;  %v5879_v50 = vld [vmem:[#allocation3 + $0x80] sm:$0xff]  ;;  %v14068_v61 = vpack.c.bf16 %v5881_v25, %v5880_v49  ;;  %v15315_v20 = vld [vmem:[#allocation54_spill] sm:$0xff]  ;;  %v15320_v43 = vld [vmem:[#allocation59_spill] sm:$0xff] }
 0x3d9   : > { %5849 = vst [vmem:[#allocation3 + $0xb1] sm:$0xff] %v5762_v36  ;;  %v5767_v45 = vmax.f32 %v14050_v54, 0.0  ;;  %v14063_v51 = vadd.f32 %v13857_v21, %v5694_v17  ;;  %v5697_v15 = vadd.f32 %v10866_v34, %v5391_v11  ;;  %v14065_v59 = vpack.c.bf16 %v5879_v50, %v5878_v9  ;;  %10986 = vmatpush3.bf16.msra.mxu0 %v11459_v58  ;;  %v15313_v18 = vld [vmem:[#allocation77_spill] sm:$0xff]  ;;  %v15316_v42 = vld [vmem:[#allocation78_spill] sm:$0xff]  ;;  %v15321_v11 = vld [vmem:[#allocation79_spill] sm:$0xff] }
 0x3da   : > { %v5086_v2 = vadd.f32 %v15313_v18, %v4779_v31  ;;  %v5618_v26 = vpop.f32.mrf.mxu1  ;;  %v5971_v16 = vpack.c.bf16 %v5762_v36, %v5761_v12  ;;  %11030 = vmatpush3.bf16.msra.mxu1 %v11461_v35  ;;  %10987 = vmatprep.subr.bf16.mxu0 %v11462_v38  ;;  %v5394_v6 = vadd.f32 %v13916_v53, %v5088_v28  ;;  %v11464_v12 = vld [vmem:[%s15034_s5 + $0xd0] sm:$0xff]   ;;  %v15318_v31 = vld [vmem:[#allocation22_spill] sm:$0xff] }
 0x3db   : > { %5854 = vst [vmem:[#allocation3 + $0xf1] sm:$0xff] %v5767_v45  ;;  %v5765_v32 = vmax.f32 %v14063_v51, 0.0  ;;  %v5736_v62 = vadd.f32 %v13857_v21, %v5697_v15  ;;  %v5695_v58 = vadd.f32 %v5618_v26, %v5389_v55  ;;  %10952 = vmatmul.mubr.bf16.gmra.mxu1 %v14065_v59  ;;  %11031 = vmatprep.subr.bf16.mxu1 %v11463_v30  ;;  %v15314_v35 = vld [vmem:[#allocation52_spill] sm:$0xff]  ;;  %v14112_v15 = vpop.f32.mrf.mxu0 }
 0x3dc   : > { %v4780_v24 = vadd.f32 %v15314_v35, %v4474_v60  ;;  %v4478_v23 = vadd.f32 %v15315_v20, %v13930_v13  ;;  %v5089_v53 = vadd.f32 %v15316_v42, %v4782_v22  ;;  %v10869_v40 = vpop.f32.mrf.mxu1  ;;  %10955 = vmatprep.mubr.bf16.mxu1 %v14068_v61  ;;  %10908 = vmatmul.mubr.bf16.gmra.mxu0 %v5971_v16  ;;  %v15317_v60 = vld [vmem:[#allocation55_spill] sm:$0xff]  ;;  %v15322_v22 = vld [vmem:[#allocation50_spill] sm:$0xff]  ;;  %v15323_v55 = vld [vmem:[#allocation56_spill] sm:$0xff] }
 0x3dd   : > { %v5392_v29 = vadd.f32 %v13936_v10, %v5086_v2  ;;  %5852 = vst [vmem:[#allocation3 + $0xd9] sm:$0xff] %v5765_v32  ;;  %v5768_v33 = vmax.f32 %v5736_v62, 0.0  ;;  %v5734_v37 = vadd.f32 %v13857_v21, %v5695_v58  ;;  %v5700_v47 = vadd.f32 %v10869_v40, %v5394_v6  ;;  %10911 = vmatprep.mubr.bf16.mxu0 %v5972_v41  ;;  %v14097_v10 = vld [vmem:[%s15034_s5 + $0x138] sm:$0xff]   ;;  %v15324_v34 = vld [vmem:[#allocation80_spill] sm:$0xff] }
 0x3de   : > { %10988 = vmatpush3.bf16.msra.mxu0 %v11462_v38  ;;  %v4785_v13 = vadd.f32 %v15318_v31, %v15317_v60  ;;  %v4783_v44 = vadd.f32 %v15320_v43, %v15319_v56  ;;  %v5087_v36 = vadd.f32 %v15321_v11, %v4780_v24  ;;  %v5631_v54 = vpop.f32.mrf.mxu1  ;;  %11032 = vmatpush3.bf16.msra.mxu1 %v11463_v30  ;;  %v5885_v48 = vld [vmem:[#allocation3 + $0xc8] sm:$0xff]  ;;  %v11466_v30 = vld [vmem:[%s15034_s5 + $0xc8] sm:$0xff]   ;;  %v5884_v16 = vld [vmem:[#allocation3 + $0xc0] sm:$0xff] }
 0x3df   : > { %10989 = vmatprep.subr.bf16.mxu0 %v11465_v0  ;;  %v5395_v17 = vadd.f32 %v13958_v19, %v5089_v53  ;;  %5855 = vst [vmem:[#allocation3 + $0xf9] sm:$0xff] %v5768_v33  ;;  %v14100_v38 = vmax.f32 %v5734_v37, 0.0  ;;  %v14103_v25 = vadd.f32 %v13857_v21, %v5700_v47  ;;  %v5698_v14 = vadd.f32 %v5631_v54, %v5392_v29  ;;  %v5882_v50 = vld [vmem:[#allocation3 + $0xa8] sm:$0xff]  ;;  %v15328_v29 = vld [vmem:[#allocation83_spill] sm:$0xff]  ;;  %v5357_v47 = vpop.f32.mrf.mxu0 }
 0x3e0   : > { %11033 = vmatprep.subr.bf16.mxu1 %v11464_v12  ;;  %v4786_v4 = vadd.f32 %v15323_v55, %v15322_v22  ;;  %v5393_v28 = vadd.f32 %v13987_v5, %v5087_v36  ;;  %v5092_v19 = vadd.f32 %v15324_v34, %v4785_v13  ;;  %v10870_v9 = vpop.f32.mrf.mxu1  ;;  %v5883_v41 = vld [vmem:[#allocation3 + $0xb0] sm:$0xff]  ;;  %v5974_v51 = vpack.c.bf16 %v5768_v33, %v5767_v45  ;;  %v15329_v56 = vld [vmem:[#allocation57_spill] sm:$0xff] }
 0x3e1   : > { %5853 = vst [vmem:[#allocation3 + $0xe1] sm:$0xff] %v14100_v38  ;;  %v5771_v49 = vmax.f32 %v14103_v25, 0.0  ;;  %v14117_v18 = vadd.f32 %v13857_v21, %v5698_v14  ;;  %v5701_v2 = vadd.f32 %v10870_v9, %v5395_v17  ;;  %v14119_v26 = vpack.c.bf16 %v5883_v41, %v5882_v50  ;;  %v15325_v5 = vld [vmem:[#allocation82_spill] sm:$0xff]  ;;  %v15332_v11 = vld [vmem:[#allocation85_spill] sm:$0xff]  ;;  %v15333_v55 = vld [vmem:[#allocation23_spill] sm:$0xff] }
 0x3e2   : > { %10990 = vmatpush3.bf16.msra.mxu0 %v11465_v0  ;;  %v5090_v6 = vadd.f32 %v15325_v5, %v4783_v44  ;;  %v5634_v62 = vpop.f32.mrf.mxu1  ;;  %v14122_v58 = vpack.c.bf16 %v5885_v48, %v5884_v16  ;;  %v5973_v45 = vpack.c.bf16 %v14100_v38, %v5765_v32  ;;  %11034 = vmatpush3.bf16.msra.mxu1 %v11464_v12  ;;  %v11467_v0 = vld [vmem:[%s15034_s5 + $0xc0] sm:$0xff]   ;;  %v15331_v44 = vld [vmem:[#allocation32_spill] sm:$0xff]  ;;  %v14149_v22 = vld [vmem:[%s15034_s5 + $0x178] sm:$0xff]  }
 0x3e3   : > { %11071 = vmatprep.subr.bf16.mxu0 %v14097_v10  ;;  %v5398_v35 = vadd.f32 %v14010_v39, %v5092_v19  ;;  %5858 = vst [vmem:[#allocation3 + $0x121] sm:$0xff] %v5771_v49  ;;  %v5769_v24 = vmax.f32 %v14117_v18, 0.0  ;;  %v5740_v20 = vadd.f32 %v13857_v21, %v5701_v2  ;;  %v5699_v42 = vadd.f32 %v5634_v62, %v5393_v28  ;;  %v15326_v32 = vld [vmem:[#allocation7_spill] sm:$0xff]  ;;  %v15327_v53 = vld [vmem:[#allocation62_spill] sm:$0xff]  ;;  %v15336_v62 = vld [vmem:[#allocation24_spill] sm:$0xff] }
 0x3e4   : > { %10956 = vmatmul.mubr.bf16.gmra.mxu1 %v14119_v26  ;;  %11035 = vmatprep.subr.bf16.mxu1 %v11466_v30  ;;  %v4176_v12 = vadd.f32 %v15326_v32, %v13944_v57  ;;  %v4784_v40 = vadd.f32 %v15327_v53, %v4478_v23  ;;  %v5093_v39 = vadd.f32 %v15328_v29, %v4786_v4  ;;  %v10873_v33 = vpop.f32.mrf.mxu1  ;;  %v15330_v43 = vld [vmem:[#allocation58_spill] sm:$0xff]  ;;  %v15334_v4 = vld [vmem:[#allocation60_spill] sm:$0xff] }
 0x3e5   : > { %10959 = vmatprep.mubr.bf16.mxu1 %v14122_v58  ;;  %10912 = vmatmul.mubr.bf16.gmra.mxu0 %v5973_v45  ;;  %v5396_v37 = vadd.f32 %v14037_v3, %v5090_v6  ;;  %5856 = vst [vmem:[#allocation3 + $0x109] sm:$0xff] %v5769_v24  ;;  %v5772_v60 = vmax.f32 %v5740_v20, 0.0  ;;  %v5738_v31 = vadd.f32 %v13857_v21, %v5699_v42  ;;  %v5886_v9 = vld [vmem:[#allocation3 + $0xd8] sm:$0xff]  ;;  %v5888_v6 = vld [vmem:[#allocation3 + $0xf0] sm:$0xff]  ;;  %v15337_v45 = vld [vmem:[#allocation61_spill] sm:$0xff] }
 0x3e6   : > { %v5704_v13 = vadd.f32 %v10873_v33, %v5398_v35  ;;  %10915 = vmatprep.mubr.bf16.mxu0 %v5974_v51  ;;  %v4789_v57 = vadd.f32 %v15330_v43, %v15329_v56  ;;  %v4482_v23 = vadd.f32 %v15331_v44, %v4176_v12  ;;  %v5091_v36 = vadd.f32 %v15332_v11, %v4784_v40  ;;  %v5647_v54 = vpop.f32.mrf.mxu1  ;;  %v5889_v48 = vld [vmem:[#allocation3 + $0xf8] sm:$0xff]  ;;  %v10830_v51 = vpop.f32.mrf.mxu0 }
 0x3e7   : > { %11036 = vmatpush3.bf16.msra.mxu1 %v11466_v30  ;;  %v5399_v17 = vadd.f32 %v14059_v7, %v5093_v39  ;;  %5859 = vst [vmem:[#allocation3 + $0x129] sm:$0xff] %v5772_v60  ;;  %v5770_v3 = vmax.f32 %v5738_v31, 0.0  ;;  %v5702_v14 = vadd.f32 %v5647_v54, %v5396_v37  ;;  %v4787_v28 = vadd.f32 %v15334_v4, %v15333_v55  ;;  %v15335_v30 = vld [vmem:[#allocation86_spill] sm:$0xff]  ;;  %v15338_v20 = vld [vmem:[#allocation88_spill] sm:$0xff]  ;;  %v15339_v39 = vld [vmem:[#allocation27_spill] sm:$0xff] }
 0x3e8   : > { %v5743_v25 = vadd.f32 %v13857_v21, %v5704_v13  ;;  %11037 = vmatprep.subr.bf16.mxu1 %v11467_v0  ;;  %v5397_v34 = vadd.f32 %v14086_v27, %v5091_v36  ;;  %v5096_v19 = vadd.f32 %v15335_v30, %v4789_v57  ;;  %v10874_v7 = vpop.f32.mrf.mxu1  ;;  %v5887_v50 = vld [vmem:[#allocation3 + $0xe0] sm:$0xff]  ;;  %v5976_v41 = vpack.c.bf16 %v5772_v60, %v5771_v49 }
 0x3e9   : > { %5857 = vst [vmem:[#allocation3 + $0x111] sm:$0xff] %v5770_v3  ;;  %v5741_v2 = vadd.f32 %v13857_v21, %v5702_v14  ;;  %v5705_v16 = vadd.f32 %v10874_v7, %v5399_v17  ;;  %v14156_v5 = vpack.c.bf16 %v5887_v50, %v5886_v9  ;;  %v4790_v35 = vadd.f32 %v15337_v45, %v15336_v62  ;;  %v15340_v37 = vld [vmem:[#allocation89_spill] sm:$0xff] }
 0x3ea   : > { %v5775_v18 = vmax.f32 %v5743_v25, 0.0  ;;  %v5094_v27 = vadd.f32 %v15338_v20, %v4787_v28  ;;  %v5650_v42 = vpop.f32.mrf.mxu1  ;;  %v14161_v32 = vpack.c.bf16 %v5889_v48, %v5888_v6  ;;  %v14163_v12 = vpack.c.bf16 %v5770_v3, %v5769_v24  ;;  %v5892_v28 = vld [vmem:[#allocation3 + $0x120] sm:$0xff] }
 0x3eb   : > { %11038 = vmatpush3.bf16.msra.mxu1 %v11467_v0  ;;  %v5402_v49 = vadd.f32 %v14112_v15, %v5096_v19  ;;  %v5773_v53 = vmax.f32 %v5741_v2, 0.0  ;;  %v5744_v40 = vadd.f32 %v13857_v21, %v5705_v16  ;;  %v5703_v29 = vadd.f32 %v5650_v42, %v5397_v34  ;;  %v5360_v15 = vpop.f32.mrf.mxu0  ;;  %v6416_v2 = vld [vmem:[#allocation3 + $0xa] sm:$0xff] }
 0x3ec   : > { %5862 = vst [vmem:[#allocation3 + $0x151] sm:$0xff] %v5775_v18  ;;  %10960 = vmatmul.mubr.bf16.gmra.mxu1 %v14156_v5  ;;  %11119 = vmatprep.subr.bf16.mxu1 %v14149_v22  ;;  %v4788_v33 = vadd.f32 %v15339_v39, %v4482_v23  ;;  %v5097_v60 = vadd.f32 %v15340_v37, %v4790_v35  ;;  %v10877_v31 = vpop.f32.mrf.mxu1  ;;  %v5890_v3 = vld [vmem:[#allocation3 + $0x108] sm:$0xff]  ;;  %v6420_v37 = vld [vmem:[#allocation3 + $0x3a] sm:$0xff] }
 0x3ed   : > { %10963 = vmatprep.mubr.bf16.mxu1 %v14161_v32  ;;  %10916 = vmatmul.mubr.bf16.gmra.mxu0 %v14163_v12  ;;  %v5400_v24 = vadd.f32 %v5357_v47, %v5094_v27  ;;  %5860 = vst [vmem:[#allocation3 + $0x139] sm:$0xff] %v5773_v53  ;;  %v14173_v0 = vmax.f32 %v5744_v40, 0.0  ;;  %v5742_v13 = vadd.f32 %v13857_v21, %v5703_v29  ;;  %v6418_v40 = vld [vmem:[#allocation3 + $0x22] sm:$0xff]  ;;  %v6419_v29 = vld [vmem:[#allocation3 + $0x32] sm:$0xff] }
 0x3ee   : > { %v5708_v56 = vadd.f32 %v10877_v31, %v5402_v49  ;;  %10919 = vmatprep.mubr.bf16.mxu0 %v5976_v41  ;;  %v5095_v43 = vadd.f32 %v13847_v63, %v4788_v33  ;;  %v5663_v57 = vpop.f32.mrf.mxu1  ;;  %v5403_v44 = vadd.f32 %v10830_v51, %v5097_v60  ;;  %v5893_v54 = vld [vmem:[#allocation3 + $0x128] sm:$0xff] }
 0x3ef   : > { %5863 = vst [vmem:[#allocation3 + $0x159] sm:$0xff] %v14173_v0  ;;  %v5774_v23 = vmax.f32 %v5742_v13, 0.0  ;;  %v5706_v36 = vadd.f32 %v5663_v57, %v5400_v24  ;;  %v5978_v14 = vpack.c.bf16 %v14173_v0, %v5775_v18  ;;  %v14183_v30 = vpack.c.bf16 %v5893_v54, %v5892_v28  ;;  %v6415_v18 = vld [vmem:[#allocation3 + $0x2] sm:$0xff]  ;;  %v11470_v13 = vld [vmem:[%s15034_s5 + $0x128] sm:$0xff]  }
 0x3f0   : > { %v5747_v11 = vadd.f32 %v13857_v21, %v5708_v56  ;;  %v5401_v47 = vadd.f32 %v5360_v15, %v5095_v43  ;;  %v10878_v17 = vpop.f32.mrf.mxu1  ;;  %v5891_v25 = vld [vmem:[#allocation3 + $0x110] sm:$0xff]  ;;  %v6447_v49 = vpack.c.bf16 %v6416_v2, %v6415_v18  ;;  %v11469_v24 = vld [vmem:[%s15034_s5 + $0x130] sm:$0xff]   ;;  %v14211_v15 = vpack.c.bf16 %v6420_v37, %v6419_v29  ;;  %v11482_v18 = vld [vmem:[%s15034_s5 + $0x148] sm:$0xff]  }
 0x3f1   : > { %5861 = vst [vmem:[#allocation3 + $0x141] sm:$0xff] %v5774_v23  ;;  %v5745_v55 = vadd.f32 %v13857_v21, %v5706_v36  ;;  %v5709_v63 = vadd.f32 %v10878_v17, %v5403_v44  ;;  %v14181_v4 = vpack.c.bf16 %v5891_v25, %v5890_v3  ;;  %v14185_v19 = vpack.c.bf16 %v5774_v23, %v5773_v53  ;;  %v6421_v56 = vld [vmem:[#allocation3 + $0x4a] sm:$0xff]  ;;  %v6422_v43 = vld [vmem:[#allocation3 + $0x52] sm:$0xff]  ;;  %v6423_v57 = vld [vmem:[#allocation3 + $0x62] sm:$0xff] }
 0x3f2   : > { %v5779_v48 = vmax.f32 %v5747_v11, 0.0  ;;  %v5666_v34 = vpop.f32.mrf.mxu1  ;;  %v6424_v44 = vld [vmem:[#allocation3 + $0x6a] sm:$0xff]  ;;  %v14220_v23 = vpack.c.bf16 %v6422_v43, %v6421_v56  ;;  %v11474_v11 = vld [vmem:[%s15034_s5 + $0x170] sm:$0xff]  }
 0x3f3   : > { %v5777_v7 = vmax.f32 %v5745_v55, 0.0  ;;  %v5748_v9 = vadd.f32 %v13857_v21, %v5709_v63  ;;  %v5707_v50 = vadd.f32 %v5666_v34, %v5401_v47  ;;  %v5896_v27 = vld [vmem:[#allocation3 + $0x150] sm:$0xff]  ;;  %v11472_v36 = vld [vmem:[%s15034_s5 + $0x118] sm:$0xff]   ;;  %v11476_v47 = vld [vmem:[%s15034_s5 + $0x168] sm:$0xff]  }
 0x3f4   : > { %5866 = vst [vmem:[#allocation3 + $0x181] sm:$0xff] %v5779_v48  ;;  %10964 = vmatmul.mubr.bf16.gmra.mxu1 %v14181_v4  ;;  %v5894_v45 = vld [vmem:[#allocation3 + $0x138] sm:$0xff]  ;;  %v6426_v54 = vld [vmem:[#allocation3 + $0x82] sm:$0xff] }
 0x3f5   : > { %10967 = vmatprep.mubr.bf16.mxu1 %v14183_v30  ;;  %10920 = vmatmul.mubr.bf16.gmra.mxu0 %v14185_v19  ;;  %5864 = vst [vmem:[#allocation3 + $0x169] sm:$0xff] %v5777_v7  ;;  %v5780_v41 = vmax.f32 %v5748_v9, 0.0  ;;  %v5746_v51 = vadd.f32 %v13857_v21, %v5707_v50  ;;  %v6417_v21 = vld [vmem:[#allocation3 + $0x1a] sm:$0xff]  ;;  %v6430_v55 = vld [vmem:[#allocation3 + $0xb2] sm:$0xff]  ;;  %v11479_v63 = vld [vmem:[%s15034_s5 + $0x158] sm:$0xff]  }
 0x3f6   : > { %10923 = vmatprep.mubr.bf16.mxu0 %v5978_v14  ;;  %v5897_v6 = vld [vmem:[#allocation3 + $0x158] sm:$0xff]  ;;  %v14205_v31 = vpack.c.bf16 %v6418_v40, %v6417_v21  ;;  %v11475_v25 = vld [vmem:[%s15034_s5 + $0x110] sm:$0xff]   ;;  %v11477_v14 = vld [vmem:[%s15034_s5 + $0x160] sm:$0xff]  }
 0x3f7   : > { %5867 = vst [vmem:[#allocation3 + $0x189] sm:$0xff] %v5780_v41  ;;  %v5778_v16 = vmax.f32 %v5746_v51, 0.0  ;;  %v14192_v62 = vpack.c.bf16 %v5780_v41, %v5779_v48  ;;  %v14198_v53 = vpack.c.bf16 %v5897_v6, %v5896_v27  ;;  %v6428_v17 = vld [vmem:[#allocation3 + $0x9a] sm:$0xff]  ;;  %v6429_v48 = vld [vmem:[#allocation3 + $0xaa] sm:$0xff]  ;;  %v6431_v28 = vld [vmem:[#allocation3 + $0xc2] sm:$0xff] }
 0x3f8   : > { %v5895_v35 = vld [vmem:[#allocation3 + $0x140] sm:$0xff]  ;;  %v14261_v34 = vpack.c.bf16 %v6430_v55, %v6429_v48  ;;  %v6438_v27 = vld [vmem:[#allocation3 + $0x112] sm:$0xff]  ;;  %v6440_v21 = vld [vmem:[#allocation3 + $0x12a] sm:$0xff] }
 0x3f9   : > { %5865 = vst [vmem:[#allocation3 + $0x171] sm:$0xff] %v5778_v16  ;;  %v14194_v20 = vpack.c.bf16 %v5895_v35, %v5894_v45  ;;  %v14196_v42 = vpack.c.bf16 %v5778_v16, %v5777_v7  ;;  %v11481_v7 = vld [vmem:[%s15034_s5 + $0x100] sm:$0xff]   ;;  %v11480_v50 = vld [vmem:[%s15034_s5 + $0x150] sm:$0xff]  }
 0x3fa   : > { %v6433_v41 = vld [vmem:[#allocation3 + $0xda] sm:$0xff]  ;;  %v6434_v51 = vld [vmem:[#allocation3 + $0xe2] sm:$0xff]  ;;  %v11483_v45 = vld [vmem:[%s15034_s5 + $0x140] sm:$0xff]  }
 0x3fb   : > { %v6436_v2 = vld [vmem:[#allocation3 + $0xfa] sm:$0xff]  ;;  %v14283_v16 = vpack.c.bf16 %v6434_v51, %v6433_v41  ;;  %v6437_v35 = vld [vmem:[#allocation3 + $0x10a] sm:$0xff] }
 0x3fc   : > { %10968 = vmatmul.mubr.bf16.gmra.mxu1 %v14194_v20  ;;  %v5898_v39 = vld [vmem:[#allocation3 + $0x168] sm:$0xff]  ;;  %v14300_v40 = vpack.c.bf16 %v6438_v27, %v6437_v35  ;;  %v6441_v29 = vld [vmem:[#allocation3 + $0x13a] sm:$0xff]  ;;  %v11497_v27 = vld [vmem:[%s15034_s5 + $0x180] sm:$0xff]  }
 0x3fd   : > { %10971 = vmatprep.mubr.bf16.mxu1 %v14198_v53  ;;  %10924 = vmatmul.mubr.bf16.gmra.mxu0 %v14196_v42  ;;  %v6444_v37 = vld [vmem:[#allocation3 + $0x15a] sm:$0xff] }
 0x3fe   : > { %10991 = vmatprep.mubr.bf16.mxu0 %v6447_v49  ;;  %v6439_v49 = vld [vmem:[#allocation3 + $0x122] sm:$0xff]  ;;  %v7035_v48 = vld [vmem:[#allocation3 + $0x79] sm:$0xff] }
 0x3ff   : > { %v7028_v56 = vld [vmem:[#allocation3 + $0x21] sm:$0xff] }
 0x400   : > { %v5899_v33 = vld [vmem:[#allocation3 + $0x170] sm:$0xff]  ;;  %v11491_v41 = vld [vmem:[%s15034_s5 + $0x190] sm:$0xff]  }
 0x401   : > { %v14203_v60 = vpack.c.bf16 %v5899_v33, %v5898_v39  ;;  %v6442_v39 = vld [vmem:[#allocation3 + $0x142] sm:$0xff]  ;;  %v6443_v33 = vld [vmem:[#allocation3 + $0x152] sm:$0xff] }
 0x404   : > { %10972 = vmatmul.mubr.bf16.gmra.mxu1 %v14203_v60 }
 0x405   : > { %11039 = vmatprep.mubr.bf16.mxu1 %v13964_v46  ;;  %10992 = vmatmul.mubr.bf16.vlgmr.msra.gmra.mxu0 %v14205_v31  ;;  %v11471_v46 = vld [vmem:[%s15034_s5 + $0x120] sm:$0xff]  }
 0x406   : > { %11072 = vmatpush3.bf16.msra.mxu0 %v14097_v10  ;;  %10995 = vmatprep.mubr.bf16.mxu0 %v14211_v15  ;;  %v14226_v10 = vpack.c.bf16 %v6424_v44, %v6423_v57  ;;  %v7027_v57 = vld [vmem:[#allocation3 + $0x19] sm:$0xff] }
 0x407   : > { %11073 = vmatprep.subr.bf16.mxu0 %v11469_v24  ;;  %v7059_v44 = vpack.c.bf16 %v7028_v56, %v7027_v57  ;;  %v7645_v56 = vld [vmem:[#allocation3 + $0x68] sm:$0xff] }
 0x40a   : > { %11074 = vmatpush3.bf16.msra.mxu0 %v11469_v24  ;;  %v14309_v24 = vpack.c.bf16 %v6442_v39, %v6441_v29  ;;  %v7045_v29 = vld [vmem:[#allocation3 + $0xf1] sm:$0xff] }
 0x40b   : > { %11075 = vmatprep.subr.bf16.mxu0 %v11470_v13 }
 0x40c   : > { %11040 = vmatmul.mubr.bf16.vlgmr.msra.gmra.mxu1 %v13969_v52  ;;  %v6425_v52 = vld [vmem:[#allocation3 + $0x7a] sm:$0xff] }
 0x40d   : > { %11043 = vmatprep.mubr.bf16.mxu1 %v14016_v8  ;;  %10996 = vmatmul.mubr.bf16.gmra.mxu0 %v14220_v23  ;;  %v6427_v8 = vld [vmem:[#allocation3 + $0x92] sm:$0xff]  ;;  %v14241_v3 = vpack.c.bf16 %v6426_v54, %v6425_v52 }
 0x40e   : > { %10999 = vmatprep.mubr.bf16.mxu0 %v14226_v10  ;;  %11076 = vmatpush3.bf16.msra.mxu0 %v11470_v13  ;;  %v14312_v13 = vpack.c.bf16 %v6444_v37, %v6443_v33  ;;  %v7029_v52 = vld [vmem:[#allocation3 + $0x31] sm:$0xff]  ;;  %v7050_v33 = vld [vmem:[#allocation3 + $0x129] sm:$0xff]  ;;  %v7049_v37 = vld [vmem:[#allocation3 + $0x121] sm:$0xff] }
 0x40f   : > { %11077 = vmatprep.subr.bf16.mxu0 %v11471_v46  ;;  %11120 = vmatpush3.bf16.msra.mxu1 %v14149_v22  ;;  %v14247_v22 = vpack.c.bf16 %v6428_v17, %v6427_v8  ;;  %v11486_v8 = vld [vmem:[%s15034_s5 + $0x1a8] sm:$0xff]   ;;  %v7034_v17 = vld [vmem:[#allocation3 + $0x69] sm:$0xff] }
 0x410   : > { %11121 = vmatprep.subr.bf16.mxu1 %v11474_v11 }
 0x412   : > { %11078 = vmatpush3.bf16.msra.mxu0 %v11471_v46  ;;  %v6751_v46 = vld [vmem:[#allocation3 + $0x180] sm:$0xff] }
 0x413   : > { %11079 = vmatprep.subr.bf16.mxu0 %v11472_v36  ;;  %11122 = vmatpush3.bf16.msra.mxu1 %v11474_v11  ;;  %v7032_v11 = vld [vmem:[#allocation3 + $0x51] sm:$0xff] }
 0x414   : > { %11044 = vmatmul.mubr.bf16.gmra.mxu1 %v14019_v1  ;;  %11123 = vmatprep.subr.bf16.mxu1 %v11476_v47  ;;  %v11478_v1 = vld [vmem:[%s15034_s5 + $0x108] sm:$0xff]  }
 0x415   : > { %11047 = vmatprep.mubr.bf16.mxu1 %v14065_v59  ;;  %11000 = vmatmul.mubr.bf16.gmra.mxu0 %v14241_v3  ;;  %v6432_v59 = vld [vmem:[#allocation3 + $0xca] sm:$0xff] }
 0x416   : > { %11003 = vmatprep.mubr.bf16.mxu0 %v14247_v22  ;;  %11080 = vmatpush3.bf16.msra.mxu0 %v11472_v36  ;;  %v14267_v9 = vpack.c.bf16 %v6432_v59, %v6431_v28  ;;  %v11488_v28 = vld [vmem:[%s15034_s5 + $0x198] sm:$0xff]   ;;  %v11492_v59 = vld [vmem:[%s15034_s5 + $0x1e8] sm:$0xff]  }
 0x417   : > { %11081 = vmatprep.subr.bf16.mxu0 %v11475_v25  ;;  %11124 = vmatpush3.bf16.msra.mxu1 %v11476_v47  ;;  %v7031_v47 = vld [vmem:[#allocation3 + $0x49] sm:$0xff] }
 0x418   : > { %11125 = vmatprep.subr.bf16.mxu1 %v11477_v14 }
 0x41a   : > { %11082 = vmatpush3.bf16.msra.mxu0 %v11475_v25  ;;  %v7036_v25 = vld [vmem:[#allocation3 + $0x81] sm:$0xff] }
 0x41b   : > { %11126 = vmatpush3.bf16.msra.mxu1 %v11477_v14  ;;  %11083 = vmatprep.subr.bf16.mxu0 %v11478_v1  ;;  %v7033_v14 = vld [vmem:[#allocation3 + $0x61] sm:$0xff]  ;;  %v14345_v55 = vpack.c.bf16 %v7036_v25, %v7035_v48 }
 0x41c   : > { %11048 = vmatmul.mubr.bf16.gmra.mxu1 %v14068_v61  ;;  %11127 = vmatprep.subr.bf16.mxu1 %v11479_v63  ;;  %v14278_v61 = vld [vmem:[%s15034_s5 + $0x1b8] sm:$0xff]  }
 0x41d   : > { %11051 = vmatprep.mubr.bf16.mxu1 %v14119_v26  ;;  %11004 = vmatmul.mubr.bf16.gmra.mxu0 %v14261_v34  ;;  %v6435_v26 = vld [vmem:[#allocation3 + $0xf2] sm:$0xff] }
 0x41e   : > { %11007 = vmatprep.mubr.bf16.mxu0 %v14267_v9  ;;  %11084 = vmatpush3.bf16.msra.mxu0 %v11478_v1  ;;  %v14287_v6 = vpack.c.bf16 %v6436_v2, %v6435_v26  ;;  %v14339_v1 = vpack.c.bf16 %v7034_v17, %v7033_v14  ;;  %v7042_v26 = vld [vmem:[#allocation3 + $0xc9] sm:$0xff] }
 0x41f   : > { %11128 = vmatpush3.bf16.msra.mxu1 %v11479_v63  ;;  %11085 = vmatprep.subr.bf16.mxu0 %v11481_v7  ;;  %v11490_v63 = vld [vmem:[%s15034_s5 + $0x1f0] sm:$0xff]   ;;  %v11495_v2 = vld [vmem:[%s15034_s5 + $0x1d8] sm:$0xff]  }
 0x420   : > { %11129 = vmatprep.subr.bf16.mxu1 %v11480_v50 }
 0x422   : > { %11086 = vmatpush3.bf16.msra.mxu0 %v11481_v7  ;;  %v7040_v7 = vld [vmem:[#allocation3 + $0xb1] sm:$0xff] }
 0x423   : > { %11130 = vmatpush3.bf16.msra.mxu1 %v11480_v50  ;;  %11167 = vmatprep.subr.bf16.mxu0 %v14278_v61 }
 0x424   : > { %11052 = vmatmul.mubr.bf16.gmra.mxu1 %v14122_v58  ;;  %11131 = vmatprep.subr.bf16.mxu1 %v11482_v18  ;;  %v14298_v58 = vld [vmem:[%s15034_s5 + $0x1f8] sm:$0xff]  }
 0x425   : > { %11055 = vmatprep.mubr.bf16.mxu1 %v14156_v5  ;;  %11008 = vmatmul.mubr.bf16.gmra.mxu0 %v14283_v16  ;;  %v14303_v5 = vpack.c.bf16 %v6440_v21, %v6439_v49  ;;  %v11496_v49 = vld [vmem:[%s15034_s5 + $0x1d0] sm:$0xff]  }
 0x426   : > { %11011 = vmatprep.mubr.bf16.mxu0 %v14287_v6  ;;  %v7046_v21 = vld [vmem:[#allocation3 + $0xf9] sm:$0xff] }
 0x427   : > { %11132 = vmatpush3.bf16.msra.mxu1 %v11482_v18  ;;  %v11493_v18 = vld [vmem:[%s15034_s5 + $0x1e0] sm:$0xff]   ;;  %v14401_v39 = vpack.c.bf16 %v7046_v21, %v7045_v29 }
 0x428   : > { %11133 = vmatprep.subr.bf16.mxu1 %v11483_v45 }
 0x42b   : > { %11134 = vmatpush3.bf16.msra.mxu1 %v11483_v45  ;;  %v14380_v45 = vld [vmem:[#allocation3 + $0xd9] sm:$0xff] }
 0x42c   : > { %11056 = vmatmul.mubr.bf16.gmra.mxu1 %v14161_v32  ;;  %11215 = vmatprep.subr.bf16.mxu1 %v14298_v58  ;;  %v6445_v32 = vld [vmem:[#allocation3 + $0x16a] sm:$0xff] }
 0x42d   : > { %11059 = vmatprep.mubr.bf16.mxu1 %v14181_v4  ;;  %11012 = vmatmul.mubr.bf16.gmra.mxu0 %v14300_v40  ;;  %v6446_v4 = vld [vmem:[#allocation3 + $0x172] sm:$0xff] }
 0x42e   : > { %11015 = vmatprep.mubr.bf16.mxu0 %v14303_v5  ;;  %v14317_v43 = vpack.c.bf16 %v6446_v4, %v6445_v32  ;;  %v14410_v32 = vpack.c.bf16 %v7050_v33, %v7049_v37  ;;  %v7364_v4 = vld [vmem:[#allocation3 + $0x18a] sm:$0xff] }
 0x434   : > { %11060 = vmatmul.mubr.bf16.gmra.mxu1 %v14183_v30  ;;  %v6752_v30 = vld [vmem:[#allocation3 + $0x188] sm:$0xff] }
 0x435   : > { %11063 = vmatprep.mubr.bf16.mxu1 %v14194_v20  ;;  %11016 = vmatmul.mubr.bf16.gmra.mxu0 %v14309_v24  ;;  %v7030_v20 = vld [vmem:[#allocation3 + $0x39] sm:$0xff]  ;;  %v14322_v36 = vpack.c.bf16 %v6752_v30, %v6751_v46 }
 0x436   : > { %11019 = vmatprep.mubr.bf16.mxu0 %v14312_v13  ;;  %v14324_v54 = vpack.c.bf16 %v7030_v20, %v7029_v52  ;;  %v11502_v30 = vld [vmem:[%s15034_s5 + $0x228] sm:$0xff]   ;;  %v7647_v46 = vld [vmem:[#allocation3 + $0x80] sm:$0xff] }
 0x43c   : > { %11064 = vmatmul.mubr.bf16.gmra.mxu1 %v14198_v53  ;;  %v11485_v53 = vld [vmem:[%s15034_s5 + $0x1b0] sm:$0xff]  }
 0x43d   : > { %11067 = vmatprep.mubr.bf16.mxu1 %v14203_v60  ;;  %11020 = vmatmul.mubr.bf16.gmra.mxu0 %v14317_v43  ;;  %v14330_v60 = vpack.c.bf16 %v7032_v11, %v7031_v47  ;;  %v7649_v11 = vld [vmem:[#allocation3 + $0x98] sm:$0xff] }
 0x43e   : > { %11087 = vmatprep.mubr.bf16.mxu0 %v7059_v44  ;;  %v7644_v44 = vld [vmem:[#allocation3 + $0x60] sm:$0xff]  ;;  %v7646_v47 = vld [vmem:[#allocation3 + $0x78] sm:$0xff] }
 0x444   : > { %11068 = vmatmul.mubr.bf16.gmra.mxu1 %v14322_v36 }
 0x445   : > { %11135 = vmatprep.mubr.bf16.mxu1 %v14205_v31  ;;  %11088 = vmatmul.mubr.bf16.vlgmr.msra.gmra.mxu0 %v14324_v54  ;;  %v11487_v31 = vld [vmem:[%s15034_s5 + $0x1a0] sm:$0xff]  }
 0x446   : > { %11168 = vmatpush3.bf16.msra.mxu0 %v14278_v61  ;;  %11091 = vmatprep.mubr.bf16.mxu0 %v14330_v60  ;;  %v7039_v61 = vld [vmem:[#allocation3 + $0xa9] sm:$0xff] }
 0x447   : > { %11169 = vmatprep.subr.bf16.mxu0 %v11485_v53  ;;  %v14366_v51 = vpack.c.bf16 %v7040_v7, %v7039_v61  ;;  %v7653_v61 = vld [vmem:[#allocation3 + $0xc8] sm:$0xff] }
 0x44a   : > { %11170 = vmatpush3.bf16.msra.mxu0 %v11485_v53  ;;  %v7675_v53 = vpack.c.bf16 %v7647_v46, %v7646_v47  ;;  %v7659_v46 = vld [vmem:[#allocation3 + $0x110] sm:$0xff] }
 0x44b   : > { %11171 = vmatprep.subr.bf16.mxu0 %v11486_v8 }
 0x44c   : > { %11136 = vmatmul.mubr.bf16.vlgmr.msra.gmra.mxu1 %v14211_v15  ;;  %v7038_v15 = vld [vmem:[#allocation3 + $0x99] sm:$0xff] }
 0x44d   : > { %11139 = vmatprep.mubr.bf16.mxu1 %v14220_v23  ;;  %11092 = vmatmul.mubr.bf16.gmra.mxu0 %v14339_v1  ;;  %v7037_v23 = vld [vmem:[#allocation3 + $0x91] sm:$0xff] }
 0x44e   : > { %11095 = vmatprep.mubr.bf16.mxu0 %v14345_v55  ;;  %11172 = vmatpush3.bf16.msra.mxu0 %v11486_v8  ;;  %v14360_v50 = vpack.c.bf16 %v7038_v15, %v7037_v23  ;;  %v7648_v8 = vld [vmem:[#allocation3 + $0x90] sm:$0xff]  ;;  %v11504_v15 = vld [vmem:[%s15034_s5 + $0x218] sm:$0xff]  }
 0x44f   : > { %11173 = vmatprep.subr.bf16.mxu0 %v11487_v31  ;;  %11216 = vmatpush3.bf16.msra.mxu1 %v14298_v58  ;;  %v7067_v58 = vpack.c.bf16 %v14100_v38, %v14380_v45  ;;  %v11498_v38 = vld [vmem:[%s15034_s5 + $0x1c8] sm:$0xff]   ;;  %v7676_v25 = vpack.c.bf16 %v7649_v11, %v7648_v8 }
 0x450   : > { %11217 = vmatprep.subr.bf16.mxu1 %v11490_v63 }
 0x452   : > { %11174 = vmatpush3.bf16.msra.mxu0 %v11487_v31 }
 0x453   : > { %11175 = vmatprep.subr.bf16.mxu0 %v11488_v28  ;;  %11218 = vmatpush3.bf16.msra.mxu1 %v11490_v63 }
 0x454   : > { %11140 = vmatmul.mubr.bf16.gmra.mxu1 %v14226_v10  ;;  %11219 = vmatprep.subr.bf16.mxu1 %v11492_v59  ;;  %v11494_v10 = vld [vmem:[%s15034_s5 + $0x188] sm:$0xff]  }
 0x455   : > { %11143 = vmatprep.mubr.bf16.mxu1 %v14241_v3  ;;  %11096 = vmatmul.mubr.bf16.gmra.mxu0 %v14360_v50  ;;  %v7041_v3 = vld [vmem:[#allocation3 + $0xc1] sm:$0xff] }
 0x456   : > { %11099 = vmatprep.mubr.bf16.mxu0 %v14366_v51  ;;  %11176 = vmatpush3.bf16.msra.mxu0 %v11488_v28  ;;  %v14382_v35 = vpack.c.bf16 %v7042_v26, %v7041_v3  ;;  %v11505_v3 = vld [vmem:[%s15034_s5 + $0x210] sm:$0xff]  }
 0x457   : > { %11177 = vmatprep.subr.bf16.mxu0 %v11491_v41  ;;  %11220 = vmatpush3.bf16.msra.mxu1 %v11492_v59 }
 0x458   : > { %11221 = vmatprep.subr.bf16.mxu1 %v11493_v18 }
 0x45a   : > { %11178 = vmatpush3.bf16.msra.mxu0 %v11491_v41  ;;  %v7650_v41 = vld [vmem:[#allocation3 + $0xa8] sm:$0xff] }
 0x45b   : > { %11222 = vmatpush3.bf16.msra.mxu1 %v11493_v18  ;;  %11179 = vmatprep.subr.bf16.mxu0 %v11494_v10 }
 0x45c   : > { %11144 = vmatmul.mubr.bf16.gmra.mxu1 %v14247_v22  ;;  %11223 = vmatprep.subr.bf16.mxu1 %v11495_v2  ;;  %v11500_v22 = vld [vmem:[%s15034_s5 + $0x238] sm:$0xff]  }
 0x45d   : > { %11147 = vmatprep.mubr.bf16.mxu1 %v14261_v34  ;;  %11100 = vmatmul.mubr.bf16.gmra.mxu0 %v14382_v35  ;;  %v11499_v34 = vld [vmem:[%s15034_s5 + $0x1c0] sm:$0xff]  }
 0x45e   : > { %11103 = vmatprep.mubr.bf16.mxu0 %v7067_v58  ;;  %11180 = vmatpush3.bf16.msra.mxu0 %v11494_v10 }
 0x45f   : > { %11224 = vmatpush3.bf16.msra.mxu1 %v11495_v2  ;;  %11181 = vmatprep.subr.bf16.mxu0 %v11497_v27  ;;  %v7652_v2 = vld [vmem:[#allocation3 + $0xc0] sm:$0xff] }
 0x460   : > { %11225 = vmatprep.subr.bf16.mxu1 %v11496_v49  ;;  %v7678_v58 = vpack.c.bf16 %v7653_v61, %v7652_v2  ;;  %v7665_v2 = vld [vmem:[#allocation3 + $0x158] sm:$0xff] }
 0x462   : > { %11182 = vmatpush3.bf16.msra.mxu0 %v11497_v27 }
 0x463   : > { %11226 = vmatpush3.bf16.msra.mxu1 %v11496_v49  ;;  %11263 = vmatprep.subr.bf16.mxu0 %v11500_v22 }
 0x464   : > { %11148 = vmatmul.mubr.bf16.gmra.mxu1 %v14267_v9  ;;  %11227 = vmatprep.subr.bf16.mxu1 %v11498_v38  ;;  %v14416_v9 = vld [vmem:[#allocation3 + $0x151] sm:$0xff] }
 0x465   : > { %11151 = vmatprep.mubr.bf16.mxu1 %v14283_v16  ;;  %11104 = vmatmul.mubr.bf16.gmra.mxu0 %v14401_v39  ;;  %v7641_v16 = vld [vmem:[#allocation3 + $0x38] sm:$0xff] }
 0x466   : > { %11107 = vmatprep.mubr.bf16.mxu0 %v14163_v12  ;;  %v7072_v12 = vpack.c.bf16 %v14173_v0, %v14416_v9  ;;  %v7643_v0 = vld [vmem:[#allocation3 + $0x50] sm:$0xff] }
 0x467   : > { %11228 = vmatpush3.bf16.msra.mxu1 %v11498_v38 }
 0x468   : > { %11229 = vmatprep.subr.bf16.mxu1 %v11499_v34 }
 0x46b   : > { %11230 = vmatpush3.bf16.msra.mxu1 %v11499_v34  ;;  %v11506_v34 = vld [vmem:[%s15034_s5 + $0x208] sm:$0xff]  }
 0x46c   : > { %11152 = vmatmul.mubr.bf16.gmra.mxu1 %v14287_v6  ;;  %v7640_v6 = vld [vmem:[#allocation3 + $0x30] sm:$0xff] }
 0x46d   : > { %11155 = vmatprep.mubr.bf16.mxu1 %v14300_v40  ;;  %11108 = vmatmul.mubr.bf16.gmra.mxu0 %v14410_v32  ;;  %v7672_v40 = vpack.c.bf16 %v7641_v16, %v7640_v6  ;;  %v7657_v16 = vld [vmem:[#allocation3 + $0xf8] sm:$0xff] }
 0x46e   : > { %11111 = vmatprep.mubr.bf16.mxu0 %v14185_v19  ;;  %v7363_v19 = vld [vmem:[#allocation3 + $0x182] sm:$0xff]  ;;  %v7654_v6 = vld [vmem:[#allocation3 + $0xd8] sm:$0xff] }
 0x474   : > { %11156 = vmatmul.mubr.bf16.gmra.mxu1 %v14303_v5  ;;  %v14426_v5 = vpack.c.bf16 %v7364_v4, %v7363_v19 }
 0x475   : > { %11159 = vmatprep.mubr.bf16.mxu1 %v14309_v24  ;;  %11112 = vmatmul.mubr.bf16.gmra.mxu0 %v7072_v12  ;;  %v7642_v24 = vld [vmem:[#allocation3 + $0x48] sm:$0xff] }
 0x476   : > { %11115 = vmatprep.mubr.bf16.mxu0 %v14196_v42  ;;  %v7673_v57 = vpack.c.bf16 %v7643_v0, %v7642_v24  ;;  %v11501_v42 = vld [vmem:[%s15034_s5 + $0x230] sm:$0xff]   ;;  %v7656_v0 = vld [vmem:[#allocation3 + $0xf0] sm:$0xff] }
 0x47c   : > { %11160 = vmatmul.mubr.bf16.gmra.mxu1 %v14312_v13 }
 0x47d   : > { %11163 = vmatprep.mubr.bf16.mxu1 %v14317_v43  ;;  %11116 = vmatmul.mubr.bf16.gmra.mxu0 %v14192_v62  ;;  %v7674_v43 = vpack.c.bf16 %v7645_v56, %v7644_v44  ;;  %v11507_v56 = vld [vmem:[%s15034_s5 + $0x200] sm:$0xff]  }
 0x47e   : > { %11183 = vmatprep.mubr.bf16.mxu0 %v7672_v40 }
 0x483   : > { %v10897_v13 = vpop.f32.mrf.mxu0 }
 0x484   : > { %11164 = vmatmul.mubr.bf16.gmra.mxu1 %v14426_v5 }
 0x485   : > { %11231 = vmatprep.mubr.bf16.mxu1 %v14324_v54  ;;  %11184 = vmatmul.mubr.bf16.vlgmr.msra.gmra.mxu0 %v7673_v57  ;;  %v6079_v62 = vpop.f32.mrf.mxu0  ;;  %v11503_v54 = vld [vmem:[%s15034_s5 + $0x220] sm:$0xff]   ;;  %v7680_v57 = vpack.c.bf16 %v7657_v16, %v7656_v0  ;;  %v7971_v0 = vld [vmem:[#allocation3 + $0x159] sm:$0xff] }
 0x486   : > { %11264 = vmatpush3.bf16.msra.mxu0 %v11500_v22  ;;  %11187 = vmatprep.mubr.bf16.mxu0 %v7674_v43 }
 0x487   : > { %11265 = vmatprep.subr.bf16.mxu0 %v11501_v42  ;;  %v10898_v20 = vpop.f32.mrf.mxu0 }
 0x489   : > { %v6082_v52 = vpop.f32.mrf.mxu0 }
 0x48a   : > { %11266 = vmatpush3.bf16.msra.mxu0 %v11501_v42 }
 0x48b   : > { %11267 = vmatprep.subr.bf16.mxu0 %v11502_v30  ;;  %v10945_v17 = vpop.f32.mrf.mxu1 }
 0x48c   : > { %11232 = vmatmul.mubr.bf16.vlgmr.msra.gmra.mxu1 %v14330_v60  ;;  %v14440_v14 = vadd.f32 %v10945_v17, %v10897_v13  ;;  %v10901_v48 = vpop.f32.mrf.mxu0  ;;  %v7651_v60 = vld [vmem:[#allocation3 + $0xb0] sm:$0xff] }
 0x48d   : > { %11235 = vmatprep.mubr.bf16.mxu1 %v14339_v1  ;;  %11188 = vmatmul.mubr.bf16.gmra.mxu0 %v7675_v53  ;;  %v6288_v31 = vpop.f32.mrf.mxu1  ;;  %v7677_v26 = vpack.c.bf16 %v7651_v60, %v7650_v41 }
 0x48e   : > { %11191 = vmatprep.mubr.bf16.mxu0 %v7676_v25  ;;  %11268 = vmatpush3.bf16.msra.mxu0 %v11502_v30  ;;  %v14443_v63 = vadd.f32 %v6288_v31, %v6079_v62  ;;  %v6095_v28 = vpop.f32.mrf.mxu0  ;;  %v7961_v62 = vld [vmem:[#allocation3 + $0xe1] sm:$0xff] }
 0x48f   : > { %11269 = vmatprep.subr.bf16.mxu0 %v11503_v54  ;;  %v10946_v59 = vpop.f32.mrf.mxu1  ;;  %v7985_v53 = vpack.c.bf16 %v7961_v62, %v14380_v45  ;;  %v7660_v25 = vld [vmem:[#allocation3 + $0x120] sm:$0xff]  ;;  %v7965_v45 = vld [vmem:[#allocation3 + $0x111] sm:$0xff] }
 0x490   : > { %v14448_v7 = vadd.f32 %v10946_v59, %v10898_v20  ;;  %v10902_v23 = vpop.f32.mrf.mxu0 }
 0x491   : > { %v6291_v1 = vpop.f32.mrf.mxu1 }
 0x492   : > { %11270 = vmatpush3.bf16.msra.mxu0 %v11503_v54  ;;  %v14450_v18 = vadd.f32 %v6291_v1, %v6082_v52  ;;  %v6098_v10 = vpop.f32.mrf.mxu0  ;;  %v7661_v52 = vld [vmem:[#allocation3 + $0x128] sm:$0xff]  ;;  %v7663_v1 = vld [vmem:[#allocation3 + $0x140] sm:$0xff] }
 0x493   : > { %11271 = vmatprep.subr.bf16.mxu0 %v11504_v15  ;;  %v10949_v27 = vpop.f32.mrf.mxu1  ;;  %v7682_v31 = vpack.c.bf16 %v7661_v52, %v7660_v25 }
 0x494   : > { %11236 = vmatmul.mubr.bf16.gmra.mxu1 %v14345_v55  ;;  %v14456_v49 = vadd.f32 %v10949_v27, %v10901_v48  ;;  %v10905_v22 = vpop.f32.mrf.mxu0  ;;  %v7655_v55 = vld [vmem:[#allocation3 + $0xe0] sm:$0xff] }
 0x495   : > { %11239 = vmatprep.mubr.bf16.mxu1 %v14360_v50  ;;  %11192 = vmatmul.mubr.bf16.gmra.mxu0 %v7677_v26  ;;  %v6304_v21 = vpop.f32.mrf.mxu1  ;;  %v7679_v4 = vpack.c.bf16 %v7655_v55, %v7654_v6  ;;  %v7969_v6 = vld [vmem:[#allocation3 + $0x141] sm:$0xff] }
 0x496   : > { %11195 = vmatprep.mubr.bf16.mxu0 %v7678_v58  ;;  %11272 = vmatpush3.bf16.msra.mxu0 %v11504_v15  ;;  %v14459_v38 = vadd.f32 %v6304_v21, %v6095_v28  ;;  %v6111_v29 = vpop.f32.mrf.mxu0  ;;  %v7662_v58 = vld [vmem:[#allocation3 + $0x138] sm:$0xff] }
 0x497   : > { %11273 = vmatprep.subr.bf16.mxu0 %v11505_v3  ;;  %v10950_v33 = vpop.f32.mrf.mxu1  ;;  %v7683_v21 = vpack.c.bf16 %v7663_v1, %v7662_v58  ;;  %v8253_v1 = vld [vmem:[#allocation3 + $0x3a] sm:$0xff] }
 0x498   : > { %v14464_v37 = vadd.f32 %v10950_v33, %v10902_v23  ;;  %v10906_v12 = vpop.f32.mrf.mxu0 }
 0x499   : > { %v6307_v50 = vpop.f32.mrf.mxu1 }
 0x49a   : > { %11274 = vmatpush3.bf16.msra.mxu0 %v11505_v3  ;;  %v14466_v40 = vadd.f32 %v6307_v50, %v6098_v10  ;;  %v6114_v19 = vpop.f32.mrf.mxu0  ;;  %v7964_v10 = vld [vmem:[#allocation3 + $0x109] sm:$0xff] }
 0x49b   : > { %11275 = vmatprep.subr.bf16.mxu0 %v11506_v34  ;;  %v10953_v24 = vpop.f32.mrf.mxu1  ;;  %v7987_v27 = vpack.c.bf16 %v7965_v45, %v7964_v10  ;;  %v11509_v45 = vld [vmem:[#allocation2] sm:$0xff] }
 0x49c   : > { %11240 = vmatmul.mubr.bf16.gmra.mxu1 %v14366_v51  ;;  %v14472_v44 = vadd.f32 %v10953_v24, %v10905_v22  ;;  %v10909_v42 = vpop.f32.mrf.mxu0 }
 0x49d   : > { %11243 = vmatprep.mubr.bf16.mxu1 %v14382_v35  ;;  %11196 = vmatmul.mubr.bf16.gmra.mxu0 %v7679_v4  ;;  %v6320_v13 = vpop.f32.mrf.mxu1  ;;  %v7658_v35 = vld [vmem:[#allocation3 + $0x108] sm:$0xff] }
 0x49e   : > { %11199 = vmatprep.mubr.bf16.mxu0 %v7680_v57  ;;  %11276 = vmatpush3.bf16.msra.mxu0 %v11506_v34  ;;  %v14475_v43 = vadd.f32 %v6320_v13, %v6111_v29  ;;  %v6127_v30 = vpop.f32.mrf.mxu0  ;;  %v7681_v17 = vpack.c.bf16 %v7659_v46, %v7658_v35  ;;  %v7664_v29 = vld [vmem:[#allocation3 + $0x150] sm:$0xff]  ;;  %v7968_v57 = vld [vmem:[#allocation3 + $0x139] sm:$0xff] }
 0x49f   : > { %11277 = vmatprep.subr.bf16.mxu0 %v11507_v56  ;;  %v10954_v20 = vpop.f32.mrf.mxu1  ;;  %v7684_v33 = vpack.c.bf16 %v7665_v2, %v7664_v29  ;;  %v7989_v62 = vpack.c.bf16 %v7969_v6, %v7968_v57  ;;  %v7974_v2 = vld [vmem:[#allocation3 + $0x181] sm:$0xff] }
 0x4a0   : > { %v14477_v11 = vadd.f32 %v10954_v20, %v10906_v12  ;;  %v10910_v51 = vpop.f32.mrf.mxu0 }
 0x4a1   : > { %v6323_v47 = vpop.f32.mrf.mxu1 }
 0x4a2   : > { %11278 = vmatpush3.bf16.msra.mxu0 %v11507_v56  ;;  %v14480_v8 = vadd.f32 %v6323_v47, %v6114_v19  ;;  %v6130_v54 = vpop.f32.mrf.mxu0  ;;  %v7667_v56 = vld [vmem:[#allocation3 + $0x170] sm:$0xff] }
 0x4a4   : > { %v10957_v48 = vpop.f32.mrf.mxu1  ;;  %11244 = vmatmul.mubr.bf16.gmra.mxu1 %v7985_v53 }
 0x4a5   : > { %v14482_v28 = vadd.f32 %v10957_v48, %v10909_v42  ;;  %11247 = vmatprep.mubr.bf16.mxu1 %v14401_v39  ;;  %v10913_v15 = vpop.f32.mrf.mxu0  ;;  %11200 = vmatmul.mubr.bf16.gmra.mxu0 %v7681_v17  ;;  %v7973_v17 = vld [vmem:[#allocation3 + $0x171] sm:$0xff] }
 0x4a6   : > { %v6336_v59 = vpop.f32.mrf.mxu1  ;;  %11203 = vmatprep.mubr.bf16.mxu0 %v7682_v31  ;;  %v7975_v31 = vld [vmem:[#allocation3 + $0x189] sm:$0xff] }
 0x4a7   : > { %v14485_v60 = vadd.f32 %v6336_v59, %v6127_v30  ;;  %v6143_v23 = vpop.f32.mrf.mxu0  ;;  %v7666_v30 = vld [vmem:[#allocation3 + $0x168] sm:$0xff] }
 0x4a8   : > { %v10958_v61 = vpop.f32.mrf.mxu1 }
 0x4a9   : > { %v14487_v41 = vadd.f32 %v10958_v61, %v10910_v51  ;;  %v10914_v26 = vpop.f32.mrf.mxu0  ;;  %v7685_v51 = vpack.c.bf16 %v7667_v56, %v7666_v30  ;;  %v8252_v61 = vld [vmem:[#allocation3 + $0x32] sm:$0xff] }
 0x4aa   : > { %v6339_v3 = vpop.f32.mrf.mxu1  ;;  %v8255_v56 = vld [vmem:[#allocation3 + $0x52] sm:$0xff] }
 0x4ab   : > { %v14489_v22 = vadd.f32 %v6339_v3, %v6130_v54  ;;  %v6146_v39 = vpop.f32.mrf.mxu0 }
 0x4ac   : > { %v10961_v34 = vpop.f32.mrf.mxu1  ;;  %11248 = vmatmul.mubr.bf16.gmra.mxu1 %v7987_v27 }
 0x4ad   : > { %v14491_v55 = vadd.f32 %v10961_v34, %v10913_v15  ;;  %11251 = vmatprep.mubr.bf16.mxu1 %v14410_v32  ;;  %v10917_v12 = vpop.f32.mrf.mxu0  ;;  %11204 = vmatmul.mubr.bf16.gmra.mxu0 %v7683_v21  ;;  %v7990_v32 = vpack.c.bf16 %v7971_v0, %v14416_v9  ;;  %v7972_v9 = vld [vmem:[#allocation3 + $0x169] sm:$0xff]  ;;  %v7976_v34 = vld [vmem:[#allocation3 + $0x199] sm:$0xff] }
 0x4ae   : > { %v6352_v16 = vpop.f32.mrf.mxu1  ;;  %11207 = vmatprep.mubr.bf16.mxu0 %v7684_v33  ;;  %v7977_v33 = vld [vmem:[#allocation3 + $0x1a1] sm:$0xff]  ;;  %v8254_v0 = vld [vmem:[#allocation3 + $0x4a] sm:$0xff] }
 0x4af   : > { %v14494_v50 = vadd.f32 %v6352_v16, %v6143_v23  ;;  %v6159_v19 = vpop.f32.mrf.mxu0  ;;  %v7687_v23 = vpack.c.bf16 %v11509_v45, %v11509_v45 }
 0x4b0   : > { %v10962_v4 = vpop.f32.mrf.mxu1 }
 0x4b1   : > { %v14496_v24 = vadd.f32 %v10962_v4, %v10914_v26  ;;  %v10918_v42 = vpop.f32.mrf.mxu0  ;;  %v7991_v26 = vpack.c.bf16 %v7973_v17, %v7972_v9  ;;  %v7993_v4 = vpack.c.bf16 %v7977_v33, %v7976_v34 }
 0x4b2   : > { %v6355_v13 = vpop.f32.mrf.mxu1 }
 0x4b3   : > { %v14498_v20 = vadd.f32 %v6355_v13, %v6146_v39  ;;  %v6162_v46 = vpop.f32.mrf.mxu0  ;;  %v8284_v39 = vpack.c.bf16 %v8253_v1, %v8252_v61  ;;  %v8256_v13 = vld [vmem:[#allocation3 + $0x62] sm:$0xff] }
 0x4b4   : > { %v10965_v52 = vpop.f32.mrf.mxu1  ;;  %11252 = vmatmul.mubr.bf16.gmra.mxu1 %v7989_v62  ;;  %v8257_v62 = vld [vmem:[#allocation3 + $0x6a] sm:$0xff]  ;;  %v8259_v61 = vld [vmem:[#allocation3 + $0x82] sm:$0xff] }
 0x4b5   : > { %v14501_v47 = vadd.f32 %v10965_v52, %v10917_v12  ;;  %11255 = vmatprep.mubr.bf16.mxu1 %v7990_v32  ;;  %v10921_v53 = vpop.f32.mrf.mxu0  ;;  %11208 = vmatmul.mubr.bf16.gmra.mxu0 %v7685_v51  ;;  %v8285_v51 = vpack.c.bf16 %v8255_v56, %v8254_v0 }
 0x4b6   : > { %v6368_v35 = vpop.f32.mrf.mxu1  ;;  %11211 = vmatprep.mubr.bf16.mxu0 %v14322_v36  ;;  %v7992_v36 = vpack.c.bf16 %v7975_v31, %v7974_v2  ;;  %v8261_v2 = vld [vmem:[#allocation3 + $0x9a] sm:$0xff] }
 0x4b7   : > { %v14504_v54 = vadd.f32 %v6368_v35, %v6159_v19  ;;  %v6175_v25 = vpop.f32.mrf.mxu0 }
 0x4b8   : > { %v10966_v48 = vpop.f32.mrf.mxu1 }
 0x4b9   : > { %v14506_v15 = vadd.f32 %v10966_v48, %v10918_v42  ;;  %v10922_v59 = vpop.f32.mrf.mxu0 }
 0x4ba   : > { %v6371_v10 = vpop.f32.mrf.mxu1 }
 0x4bb   : > { %v14508_v3 = vadd.f32 %v6371_v10, %v6162_v46  ;;  %v6178_v27 = vpop.f32.mrf.mxu0 }
 0x4bc   : > { %v10969_v58 = vpop.f32.mrf.mxu1  ;;  %11256 = vmatmul.mubr.bf16.gmra.mxu1 %v7991_v26  ;;  %v8260_v26 = vld [vmem:[#allocation3 + $0x92] sm:$0xff] }
 0x4bd   : > { %v14510_v21 = vadd.f32 %v10969_v58, %v10921_v53  ;;  %11259 = vmatprep.mubr.bf16.mxu1 %v7992_v36  ;;  %v10925_v29 = vpop.f32.mrf.mxu0  ;;  %11212 = vmatmul.mubr.bf16.gmra.mxu0 %v7687_v23  ;;  %v8286_v53 = vpack.c.bf16 %v8257_v62, %v8256_v13  ;;  %v8258_v23 = vld [vmem:[#allocation3 + $0x7a] sm:$0xff]  ;;  %v8288_v33 = vpack.c.bf16 %v8261_v2, %v8260_v26  ;;  %v8263_v13 = vld [vmem:[#allocation3 + $0xb2] sm:$0xff] }
 0x4be   : > { %v6384_v12 = vpop.f32.mrf.mxu1  ;;  %11279 = vmatprep.mubr.bf16.mxu0 %v8284_v39  ;;  %v8287_v39 = vpack.c.bf16 %v8259_v61, %v8258_v23  ;;  %v8266_v2 = vld [vmem:[#allocation3 + $0xda] sm:$0xff] }
 0x4bf   : > { %v14512_v16 = vadd.f32 %v6384_v12, %v6175_v25  ;;  %v6191_v6 = vpop.f32.mrf.mxu0 }
 0x4c0   : > { %v10970_v19 = vpop.f32.mrf.mxu1 }
 0x4c1   : > { %v14514_v57 = vadd.f32 %v10970_v19, %v10922_v59  ;;  %v10926_v42 = vpop.f32.mrf.mxu0 }
 0x4c2   : > { %v6387_v30 = vpop.f32.mrf.mxu1 }
 0x4c3   : > { %v14516_v32 = vadd.f32 %v6387_v30, %v6178_v27  ;;  %v6194_v46 = vpop.f32.mrf.mxu0  ;;  %v8264_v30 = vld [vmem:[#allocation3 + $0xc2] sm:$0xff] }
 0x4c4   : > { %v10973_v52 = vpop.f32.mrf.mxu1  ;;  %11260 = vmatmul.mubr.bf16.gmra.mxu1 %v7993_v4 }
 0x4c5   : > { %v14518_v35 = vadd.f32 %v10973_v52, %v10925_v29  ;;  %v10993_v17 = vpop.f32.mrf.mxu0  ;;  %11280 = vmatmul.mubr.bf16.vlgmr.msra.gmra.mxu0 %v8285_v51 }
 0x4c6   : > { %v6400_v25 = vpop.f32.mrf.mxu1  ;;  %v6691_v48 = vadd.f32 %v10993_v17, %v14440_v14  ;;  %11283 = vmatprep.mubr.bf16.mxu0 %v8286_v53 }
 0x4c7   : > { %v14521_v31 = vadd.f32 %v6400_v25, %v6191_v6  ;;  %v6562_v9 = vpop.f32.mrf.mxu0 }
 0x4c8   : > { %v10974_v59 = vpop.f32.mrf.mxu1  ;;  %v6689_v45 = vadd.f32 %v6562_v9, %v14443_v63 }
 0x4c9   : > { %v14524_v1 = vadd.f32 %v10974_v59, %v10926_v42  ;;  %v10994_v10 = vpop.f32.mrf.mxu0  ;;  %v8262_v42 = vld [vmem:[#allocation3 + $0xaa] sm:$0xff] }
 0x4ca   : > { %v6403_v36 = vpop.f32.mrf.mxu1  ;;  %v6692_v27 = vadd.f32 %v10994_v10, %v14448_v7  ;;  %v8289_v17 = vpack.c.bf16 %v8263_v13, %v8262_v42 }
 0x4cb   : > { %v14527_v58 = vadd.f32 %v6403_v36, %v6194_v46  ;;  %v6565_v14 = vpop.f32.mrf.mxu0  ;;  %v8265_v46 = vld [vmem:[#allocation3 + $0xca] sm:$0xff]  ;;  %v8267_v36 = vld [vmem:[#allocation3 + $0xe2] sm:$0xff] }
 0x4cc   : > { %v11041_v29 = vpop.f32.mrf.mxu1  ;;  %v6690_v34 = vadd.f32 %v6565_v14, %v14450_v18  ;;  %v8290_v9 = vpack.c.bf16 %v8265_v46, %v8264_v30  ;;  %v8268_v14 = vld [vmem:[#allocation3 + $0xf2] sm:$0xff]  ;;  %v8270_v46 = vld [vmem:[#allocation3 + $0x10a] sm:$0xff] }
 0x4cd   : > { %v14530_v12 = vadd.f32 %v11041_v29, %v6691_v48  ;;  %v10997_v63 = vpop.f32.mrf.mxu0  ;;  %11284 = vmatmul.mubr.bf16.gmra.mxu0 %v8287_v39  ;;  %v8269_v39 = vld [vmem:[#allocation3 + $0xfa] sm:$0xff] }
 0x4ce   : > { %v6868_v6 = vpop.f32.mrf.mxu1  ;;  %v6695_v19 = vadd.f32 %v10997_v63, %v14456_v49  ;;  %11287 = vmatprep.mubr.bf16.mxu0 %v8288_v33  ;;  %v8291_v63 = vpack.c.bf16 %v8267_v36, %v8266_v2 }
 0x4cf   : > { %v14533_v4 = vadd.f32 %v6868_v6, %v6689_v45  ;;  %v6578_v0 = vpop.f32.mrf.mxu0 }
 0x4d0   : > { %v11042_v7 = vpop.f32.mrf.mxu1  ;;  %v6693_v56 = vadd.f32 %v6578_v0, %v14459_v38  ;;  %v8292_v0 = vpack.c.bf16 %v8269_v39, %v8268_v14  ;;  %v8274_v39 = vld [vmem:[#allocation3 + $0x13a] sm:$0xff] }
 0x4d1   : > { %v14536_v62 = vadd.f32 %v11042_v7, %v6692_v27  ;;  %v10998_v18 = vpop.f32.mrf.mxu0 }
 0x4d2   : > { %v6871_v51 = vpop.f32.mrf.mxu1  ;;  %v6696_v52 = vadd.f32 %v10998_v18, %v14464_v37 }
 0x4d3   : > { %v14539_v53 = vadd.f32 %v6871_v51, %v6690_v34  ;;  %v6581_v49 = vpop.f32.mrf.mxu0  ;;  %v8271_v51 = vld [vmem:[#allocation3 + $0x112] sm:$0xff] }
 0x4d4   : > { %v11045_v25 = vpop.f32.mrf.mxu1  ;;  %v6694_v48 = vadd.f32 %v6581_v49, %v14466_v40  ;;  %v8272_v49 = vld [vmem:[#allocation3 + $0x122] sm:$0xff] }
 0x4d5   : > { %v14542_v59 = vadd.f32 %v11045_v25, %v6695_v19  ;;  %v11001_v38 = vpop.f32.mrf.mxu0  ;;  %11288 = vmatmul.mubr.bf16.gmra.mxu0 %v8289_v17  ;;  %v8273_v17 = vld [vmem:[#allocation3 + $0x12a] sm:$0xff] }
 0x4d6   : > { %v6884_v45 = vpop.f32.mrf.mxu1  ;;  %v6699_v23 = vadd.f32 %v11001_v38, %v14472_v44  ;;  %11291 = vmatprep.mubr.bf16.mxu0 %v8290_v9  ;;  %v8293_v38 = vpack.c.bf16 %v8271_v51, %v8270_v46 }
 0x4d7   : > { %v14545_v61 = vadd.f32 %v6884_v45, %v6693_v56  ;;  %v6594_v10 = vpop.f32.mrf.mxu0 }
 0x4d8   : > { %v11046_v37 = vpop.f32.mrf.mxu1  ;;  %v6697_v26 = vadd.f32 %v6594_v10, %v14475_v43  ;;  %v8294_v10 = vpack.c.bf16 %v8273_v17, %v8272_v49  ;;  %v8278_v17 = vld [vmem:[#allocation3 + $0x16a] sm:$0xff] }
 0x4d9   : > { %v14548_v27 = vadd.f32 %v11046_v37, %v6696_v52  ;;  %v11002_v40 = vpop.f32.mrf.mxu0 }
 0x4da   : > { %v6887_v29 = vpop.f32.mrf.mxu1  ;;  %v6700_v34 = vadd.f32 %v11002_v40, %v14477_v11 }
 0x4db   : > { %v14551_v33 = vadd.f32 %v6887_v29, %v6694_v48  ;;  %v6597_v44 = vpop.f32.mrf.mxu0  ;;  %v8275_v29 = vld [vmem:[#allocation3 + $0x142] sm:$0xff] }
 0x4dc   : > { %v11049_v6 = vpop.f32.mrf.mxu1  ;;  %v6698_v19 = vadd.f32 %v6597_v44, %v14480_v8  ;;  %v8276_v44 = vld [vmem:[#allocation3 + $0x152] sm:$0xff] }
 0x4dd   : > { %v14554_v7 = vadd.f32 %v11049_v6, %v6699_v23  ;;  %v11005_v43 = vpop.f32.mrf.mxu0  ;;  %11292 = vmatmul.mubr.bf16.gmra.mxu0 %v8291_v63  ;;  %v8277_v63 = vld [vmem:[#allocation3 + $0x15a] sm:$0xff] }
 0x4de   : > { %v6900_v56 = vpop.f32.mrf.mxu1  ;;  %v6703_v42 = vadd.f32 %v11005_v43, %v14482_v28  ;;  %11295 = vmatprep.mubr.bf16.mxu0 %v8292_v0  ;;  %v8295_v43 = vpack.c.bf16 %v8275_v29, %v8274_v39 }
 0x4df   : > { %v14557_v13 = vadd.f32 %v6900_v56, %v6697_v26  ;;  %v6610_v18 = vpop.f32.mrf.mxu0 }
 0x4e0   : > { %v11050_v11 = vpop.f32.mrf.mxu1  ;;  %v6701_v30 = vadd.f32 %v6610_v18, %v14485_v60  ;;  %v8296_v18 = vpack.c.bf16 %v8277_v63, %v8276_v44 }
 0x4e1   : > { %v14560_v52 = vadd.f32 %v11050_v11, %v6700_v34  ;;  %v11006_v8 = vpop.f32.mrf.mxu0 }
 0x4e2   : > { %v6903_v25 = vpop.f32.mrf.mxu1  ;;  %v6704_v48 = vadd.f32 %v11006_v8, %v14487_v41 }
 0x4e3   : > { %v14563_v9 = vadd.f32 %v6903_v25, %v6698_v19  ;;  %v6613_v28 = vpop.f32.mrf.mxu0  ;;  %v8279_v25 = vld [vmem:[#allocation3 + $0x172] sm:$0xff] }
 0x4e4   : > { %v11053_v45 = vpop.f32.mrf.mxu1  ;;  %v6702_v23 = vadd.f32 %v6613_v28, %v14489_v22 }
 0x4e5   : > { %v14566_v37 = vadd.f32 %v11053_v45, %v6703_v42  ;;  %v11009_v60 = vpop.f32.mrf.mxu0  ;;  %11296 = vmatmul.mubr.bf16.gmra.mxu0 %v8293_v38 }
 0x4e6   : > { %v6916_v26 = vpop.f32.mrf.mxu1  ;;  %v6707_v2 = vadd.f32 %v11009_v60, %v14491_v55  ;;  %11299 = vmatprep.mubr.bf16.mxu0 %v8294_v10  ;;  %v8297_v10 = vpack.c.bf16 %v8279_v25, %v8278_v17 }
 0x4e7   : > { %v14569_v36 = vadd.f32 %v6916_v26, %v6701_v30  ;;  %v6626_v40 = vpop.f32.mrf.mxu0 }
 0x4e8   : > { %v11054_v41 = vpop.f32.mrf.mxu1  ;;  %v6705_v14 = vadd.f32 %v6626_v40, %v14494_v50 }
 0x4e9   : > { %v14572_v34 = vadd.f32 %v11054_v41, %v6704_v48  ;;  %v11010_v22 = vpop.f32.mrf.mxu0  ;;  %v8282_v41 = vld [vmem:[#allocation3 + $0x19a] sm:$0xff] }
 0x4ea   : > { %v6919_v6 = vpop.f32.mrf.mxu1  ;;  %v6708_v19 = vadd.f32 %v11010_v22, %v14496_v24 }
 0x4eb   : > { %v14575_v0 = vadd.f32 %v6919_v6, %v6702_v23  ;;  %v6629_v55 = vpop.f32.mrf.mxu0 }
 0x4ec   : > { %v11057_v56 = vpop.f32.mrf.mxu1  ;;  %v6706_v42 = vadd.f32 %v6629_v55, %v14498_v20 }
 0x4ed   : > { %v14578_v11 = vadd.f32 %v11057_v56, %v6707_v2  ;;  %v11013_v50 = vpop.f32.mrf.mxu0  ;;  %11300 = vmatmul.mubr.bf16.gmra.mxu0 %v8295_v43 }
 0x4ee   : > { %v6932_v30 = vpop.f32.mrf.mxu1  ;;  %v6711_v46 = vadd.f32 %v11013_v50, %v14501_v47  ;;  %11303 = vmatprep.mubr.bf16.mxu0 %v8296_v18 }
 0x4ef   : > { %v14581_v51 = vadd.f32 %v6932_v30, %v6705_v14  ;;  %v6642_v8 = vpop.f32.mrf.mxu0  ;;  %v8283_v14 = vld [vmem:[#allocation3 + $0x1a2] sm:$0xff] }
 0x4f0   : > { %v11058_v24 = vpop.f32.mrf.mxu1  ;;  %v6709_v49 = vadd.f32 %v6642_v8, %v14504_v54  ;;  %v8299_v63 = vpack.c.bf16 %v8283_v14, %v8282_v41 }
 0x4f1   : > { %v14584_v48 = vadd.f32 %v11058_v24, %v6708_v19  ;;  %v11014_v20 = vpop.f32.mrf.mxu0 }
 0x4f2   : > { %v6935_v28 = vpop.f32.mrf.mxu1  ;;  %v6712_v38 = vadd.f32 %v11014_v20, %v14506_v15 }
 0x4f3   : > { %v14587_v45 = vadd.f32 %v6935_v28, %v6706_v42  ;;  %v6645_v23 = vpop.f32.mrf.mxu0 }
 0x4f4   : > { %v11061_v47 = vpop.f32.mrf.mxu1  ;;  %v6710_v60 = vadd.f32 %v6645_v23, %v14508_v3 }
 0x4f5   : > { %v14590_v26 = vadd.f32 %v11061_v47, %v6711_v46  ;;  %v11017_v2 = vpop.f32.mrf.mxu0  ;;  %11304 = vmatmul.mubr.bf16.gmra.mxu0 %v8297_v10 }
 0x4f6   : > { %v6948_v54 = vpop.f32.mrf.mxu1  ;;  %v6715_v40 = vadd.f32 %v11017_v2, %v14510_v21  ;;  %11307 = vmatprep.mubr.bf16.mxu0 %v14426_v5 }
 0x4f7   : > { %v14594_v39 = vadd.f32 %v6948_v54, %v6709_v49  ;;  %v6658_v15 = vpop.f32.mrf.mxu0 }
 0x4f8   : > { %v11062_v29 = vpop.f32.mrf.mxu1  ;;  %v6713_v22 = vadd.f32 %v6658_v15, %v14512_v16 }
 0x4f9   : > { %v14597_v44 = vadd.f32 %v11062_v29, %v6712_v38  ;;  %v11018_v3 = vpop.f32.mrf.mxu0 }
 0x4fa   : > { %v6951_v6 = vpop.f32.mrf.mxu1  ;;  %v6716_v19 = vadd.f32 %v11018_v3, %v14514_v57 }
 0x4fb   : > { %v14600_v55 = vadd.f32 %v6951_v6, %v6710_v60  ;;  %v6661_v21 = vpop.f32.mrf.mxu0 }
 0x4fc   : > { %v11065_v43 = vpop.f32.mrf.mxu1  ;;  %v6714_v5 = vadd.f32 %v6661_v21, %v14516_v32 }
 0x4fd   : > { %v14603_v56 = vadd.f32 %v11065_v43, %v6715_v40  ;;  %v11021_v42 = vpop.f32.mrf.mxu0  ;;  %11308 = vmatmul.mubr.bf16.gmra.mxu0 %v8299_v63 }
 0x4fe   : > { %v6964_v18 = vpop.f32.mrf.mxu1  ;;  %v6719_v16 = vadd.f32 %v11021_v42, %v14518_v35 }
 0x4ff   : > { %v14606_v50 = vadd.f32 %v6964_v18, %v6713_v22  ;;  %v6674_v30 = vpop.f32.mrf.mxu0 }
 0x500   : > { %v11066_v46 = vpop.f32.mrf.mxu1  ;;  %v6717_v8 = vadd.f32 %v6674_v30, %v14521_v31 }
 0x501   : > { %v14609_v57 = vadd.f32 %v11066_v46, %v6716_v19  ;;  %v11022_v24 = vpop.f32.mrf.mxu0 }
 0x502   : > { %v6967_v49 = vpop.f32.mrf.mxu1  ;;  %v6720_v17 = vadd.f32 %v11022_v24, %v14524_v1 }
 0x503   : > { %v14612_v32 = vadd.f32 %v6967_v49, %v6714_v5  ;;  %v6677_v25 = vpop.f32.mrf.mxu0 }
 0x504   : > { %v11069_v20 = vpop.f32.mrf.mxu1  ;;  %v6718_v28 = vadd.f32 %v6677_v25, %v14527_v58 }
 0x505   : > { %v14615_v38 = vadd.f32 %v11069_v20, %v6719_v16  ;;  %v11089_v35 = vpop.f32.mrf.mxu0 }
 0x506   : > { %v6980_v23 = vpop.f32.mrf.mxu1  ;;  %v7303_v10 = vadd.f32 %v11089_v35, %v14530_v12 }
 0x507   : > { %v14618_v47 = vadd.f32 %v6980_v23, %v6717_v8  ;;  %v7174_v31 = vpop.f32.mrf.mxu0 }
 0x508   : > { %v11070_v60 = vpop.f32.mrf.mxu1  ;;  %v7301_v2 = vadd.f32 %v7174_v31, %v14533_v4 }
 0x509   : > { %v14621_v54 = vadd.f32 %v11070_v60, %v6720_v17  ;;  %v11090_v1 = vpop.f32.mrf.mxu0 }
 0x50a   : > { %v6983_v40 = vpop.f32.mrf.mxu1  ;;  %v7304_v41 = vadd.f32 %v11090_v1, %v14536_v62 }
 0x50b   : > { %v14624_v14 = vadd.f32 %v6983_v40, %v6718_v28  ;;  %v7177_v58 = vpop.f32.mrf.mxu0 }
 0x50c   : > { %v11137_v15 = vpop.f32.mrf.mxu1  ;;  %v14627_v29 = vadd.f32 %v7177_v58, %v14539_v53 }
 0x50d   : > { %v14629_v12 = vadd.f32 %v11137_v15, %v7303_v10  ;;  %v11093_v22 = vpop.f32.mrf.mxu0 }
 0x50e   : > { %v7480_v3 = vpop.f32.mrf.mxu1  ;;  %v7307_v63 = vadd.f32 %v11093_v22, %v14542_v59 }
 0x50f   : > { %v14632_v4 = vadd.f32 %v7480_v3, %v7301_v2  ;;  %v7190_v6 = vpop.f32.mrf.mxu0 }
 0x510   : > { %v11138_v19 = vpop.f32.mrf.mxu1  ;;  %v14635_v21 = vadd.f32 %v7190_v6, %v14545_v61 }
 0x511   : > { %v14637_v62 = vadd.f32 %v11138_v19, %v7304_v41  ;;  %v11094_v43 = vpop.f32.mrf.mxu0 }
 0x512   : > { %v14639_v5 = vpop.f32.mrf.mxu1  ;;  %v7308_v53 = vadd.f32 %v11094_v43, %v14548_v27 }
 0x513   : > { %v7193_v42 = vpop.f32.mrf.mxu0 }
 0x514   : > { %v11141_v18 = vpop.f32.mrf.mxu1  ;;  %v14643_v16 = vadd.f32 %v7193_v42, %v14551_v33 }
 0x515   : > { %v14645_v59 = vadd.f32 %v11141_v18, %v7307_v63  ;;  %v11097_v30 = vpop.f32.mrf.mxu0 }
 0x516   : > { %v14647_v46 = vpop.f32.mrf.mxu1  ;;  %v7311_v61 = vadd.f32 %v11097_v30, %v14554_v7 }
 0x517   : > { %v7206_v8 = vpop.f32.mrf.mxu0 }
 0x518   : > { %v11142_v24 = vpop.f32.mrf.mxu1  ;;  %v14651_v49 = vadd.f32 %v7206_v8, %v14557_v13 }
 0x519   : > { %v14653_v17 = vadd.f32 %v11142_v24, %v7308_v53  ;;  %v11098_v27 = vpop.f32.mrf.mxu0 }
 0x51a   : > { %v14655_v25 = vpop.f32.mrf.mxu1  ;;  %v7312_v33 = vadd.f32 %v11098_v27, %v14560_v52 }
 0x51b   : > { %v7209_v20 = vpop.f32.mrf.mxu0 }
 0x51c   : > { %v11145_v28 = vpop.f32.mrf.mxu1  ;;  %v14659_v35 = vadd.f32 %v7209_v20, %v14563_v9 }
 0x51d   : > { %v14661_v23 = vadd.f32 %v11145_v28, %v7311_v61  ;;  %v11101_v7 = vpop.f32.mrf.mxu0 }
 0x51e   : > { %v14663_v10 = vpop.f32.mrf.mxu1  ;;  %v7315_v13 = vadd.f32 %v11101_v7, %v14566_v37 }
 0x51f   : > { %v7222_v31 = vpop.f32.mrf.mxu0 }
 0x520   : > { %v11146_v60 = vpop.f32.mrf.mxu1  ;;  %v14667_v2 = vadd.f32 %v7222_v31, %v14569_v36 }
 0x521   : > { %v14669_v1 = vadd.f32 %v11146_v60, %v7312_v33  ;;  %v11102_v52 = vpop.f32.mrf.mxu0 }
 0x522   : > { %v14671_v40 = vpop.f32.mrf.mxu1  ;;  %v7316_v9 = vadd.f32 %v11102_v52, %v14572_v34 }
 0x523   : > { %v7225_v41 = vpop.f32.mrf.mxu0 }
 0x524   : > { %v11149_v58 = vpop.f32.mrf.mxu1  ;;  %v14675_v15 = vadd.f32 %v7225_v41, %v14575_v0 }
 0x525   : > { %v14677_v22 = vadd.f32 %v11149_v58, %v7315_v13  ;;  %v11105_v37 = vpop.f32.mrf.mxu0 }
 0x526   : > { %v14679_v3 = vpop.f32.mrf.mxu1  ;;  %v7319_v36 = vadd.f32 %v11105_v37, %v14578_v11 }
 0x527   : > { %v7238_v63 = vpop.f32.mrf.mxu0 }
 0x528   : > { %v11150_v6 = vpop.f32.mrf.mxu1  ;;  %v14683_v19 = vadd.f32 %v7238_v63, %v14581_v51 }
 0x529   : > { %v14685_v43 = vadd.f32 %v11150_v6, %v7316_v9  ;;  %v11106_v34 = vpop.f32.mrf.mxu0 }
 0x52a   : > { %v14687_v53 = vpop.f32.mrf.mxu1  ;;  %v7320_v0 = vadd.f32 %v11106_v34, %v14584_v48 }
 0x52b   : > { %v7241_v42 = vpop.f32.mrf.mxu0 }
 0x52c   : > { %v11153_v18 = vpop.f32.mrf.mxu1  ;;  %v14691_v30 = vadd.f32 %v7241_v42, %v14587_v45 }
 0x52d   : > { %v14693_v61 = vadd.f32 %v11153_v18, %v7319_v36  ;;  %v11109_v11 = vpop.f32.mrf.mxu0 }
 0x52e   : > { %v14695_v8 = vpop.f32.mrf.mxu1  ;;  %v7323_v51 = vadd.f32 %v11109_v11, %v14590_v26 }
 0x52f   : > { %v7254_v24 = vpop.f32.mrf.mxu0 }
 0x530   : > { %v11154_v27 = vpop.f32.mrf.mxu1  ;;  %v14699_v33 = vadd.f32 %v7254_v24, %v14594_v39 }
 0x531   : > { %v14701_v20 = vadd.f32 %v11154_v27, %v7320_v0  ;;  %v11110_v48 = vpop.f32.mrf.mxu0 }
 0x532   : > { %15341 = vst [vmem:[#allocation9_spill] sm:$0xff] %v14699_v33  ;;  %v14703_v28 = vpop.f32.mrf.mxu1  ;;  %v7324_v45 = vadd.f32 %v11110_v48, %v14597_v44 }
 0x533   : > { %v7257_v7 = vpop.f32.mrf.mxu0 }
 0x534   : > { %v11157_v13 = vpop.f32.mrf.mxu1  ;;  %v14707_v31 = vadd.f32 %v7257_v7, %v14600_v55 }
 0x535   : > { %v14709_v60 = vadd.f32 %v11157_v13, %v7323_v51  ;;  %v11113_v26 = vpop.f32.mrf.mxu0 }
 0x536   : > { %15342 = vst [vmem:[#allocation13_spill] sm:$0xff] %v14707_v31  ;;  %v14711_v52 = vpop.f32.mrf.mxu1  ;;  %v7327_v39 = vadd.f32 %v11113_v26, %v14603_v56 }
 0x537   : > { %15343 = vst [vmem:[#allocation30_spill] sm:$0xff] %v14711_v52  ;;  %v7270_v9 = vpop.f32.mrf.mxu0 }
 0x538   : > { %v11158_v41 = vpop.f32.mrf.mxu1  ;;  %v14715_v58 = vadd.f32 %v7270_v9, %v14606_v50 }
 0x539   : > { %v14717_v37 = vadd.f32 %v11158_v41, %v7324_v45  ;;  %v11114_v44 = vpop.f32.mrf.mxu0 }
 0x53a   : > { %15344 = vst [vmem:[#allocation64_spill] sm:$0xff] %v14715_v58  ;;  %v14719_v36 = vpop.f32.mrf.mxu1  ;;  %v7328_v55 = vadd.f32 %v11114_v44, %v14609_v57 }
 0x53b   : > { %15345 = vst [vmem:[#allocation37_spill] sm:$0xff] %v14719_v36  ;;  %v7273_v63 = vpop.f32.mrf.mxu0 }
 0x53c   : > { %v11161_v6 = vpop.f32.mrf.mxu1  ;;  %v14723_v34 = vadd.f32 %v7273_v63, %v14612_v32 }
 0x53d   : > { %v14725_v0 = vadd.f32 %v11161_v6, %v7327_v39  ;;  %v11117_v56 = vpop.f32.mrf.mxu0 }
 0x53e   : > { %15346 = vst [vmem:[#allocation8_spill] sm:$0xff] %v14723_v34  ;;  %v14727_v42 = vpop.f32.mrf.mxu1  ;;  %v7331_v50 = vadd.f32 %v11117_v56, %v14615_v38 }
 0x53f   : > { %15347 = vst [vmem:[#allocation35_spill] sm:$0xff] %v14727_v42  ;;  %v7286_v18 = vpop.f32.mrf.mxu0 }
 0x540   : > { %v11162_v11 = vpop.f32.mrf.mxu1  ;;  %v14731_v51 = vadd.f32 %v7286_v18, %v14618_v47 }
 0x541   : > { %v14733_v24 = vadd.f32 %v11162_v11, %v7328_v55  ;;  %v11118_v57 = vpop.f32.mrf.mxu0 }
 0x542   : > { %15348 = vst [vmem:[#allocation11_spill] sm:$0xff] %v14731_v51  ;;  %v14735_v27 = vpop.f32.mrf.mxu1  ;;  %v7332_v32 = vadd.f32 %v11118_v57, %v14621_v54 }
 0x543   : > { %15349 = vst [vmem:[#allocation66_spill] sm:$0xff] %v14735_v27  ;;  %v7289_v48 = vpop.f32.mrf.mxu0 }
 0x544   : > { %v11165_v45 = vpop.f32.mrf.mxu1  ;;  %v14739_v7 = vadd.f32 %v7289_v48, %v14624_v14 }
 0x545   : > { %v14741_v13 = vadd.f32 %v11165_v45, %v7331_v50  ;;  %v11185_v38 = vpop.f32.mrf.mxu0 }
 0x546   : > { %15350 = vst [vmem:[#allocation65_spill] sm:$0xff] %v14739_v7  ;;  %v14743_v26 = vpop.f32.mrf.mxu1  ;;  %v14746_v47 = vadd.f32 %v11185_v38, %v14629_v12 }
 0x547   : > { %15351 = vst [vmem:[#allocation10_spill] sm:$0xff] %v14743_v26  ;;  %v7787_v39 = vpop.f32.mrf.mxu0 }
 0x548   : > { %v11166_v9 = vpop.f32.mrf.mxu1  ;;  %v14749_v41 = vadd.f32 %v7787_v39, %v14632_v4 }
 0x549   : > { %v7638_v44 = vadd.f32 %v11166_v9, %v7332_v32  ;;  %v11186_v54 = vpop.f32.mrf.mxu0 }
 0x54a   : > { %v14751_v55 = vpop.f32.mrf.mxu1  ;;  %v14754_v14 = vadd.f32 %v11186_v54, %v14637_v62 }
 0x54b   : > { %15352 = vst [vmem:[#allocation12_spill] sm:$0xff] %v14751_v55  ;;  %v14756_v63 = vpop.f32.mrf.mxu0 }
 0x54c   : > { %v11233_v6 = vpop.f32.mrf.mxu1 }
 0x54d   : > { %v11189_v56 = vpop.f32.mrf.mxu0 }
 0x54e   : > { %v8093_v50 = vpop.f32.mrf.mxu1  ;;  %v14759_v12 = vadd.f32 %v11189_v56, %v14645_v59 }
 0x54f   : > { %v14761_v18 = vpop.f32.mrf.mxu0 }
 0x550   : > { %v11234_v11 = vpop.f32.mrf.mxu1 }
 0x551   : > { %v11190_v4 = vpop.f32.mrf.mxu0 }
 0x552   : > { %v14763_v57 = vpop.f32.mrf.mxu1  ;;  %v14766_v32 = vadd.f32 %v11190_v4, %v14653_v17 }
 0x553   : > { %v14768_v48 = vpop.f32.mrf.mxu0 }
 0x554   : > { %v14770_v62 = vpop.f32.mrf.mxu1 }
 0x555   : > { %v11193_v45 = vpop.f32.mrf.mxu0 }
 0x556   : > { %v14773_v38 = vadd.f32 %v11193_v45, %v14661_v23  ;;  %v14775_v39 = vpop.f32.mrf.mxu1 }
 0x557   : > { %v14777_v59 = vpop.f32.mrf.mxu0 }
 0x558   : > { %v14782_v56 = vpop.f32.mrf.mxu1 }
 0x559   : > { %v11194_v9 = vpop.f32.mrf.mxu0 }
 0x55a   : > { %v14780_v54 = vadd.f32 %v11194_v9, %v14669_v1  ;;  %v14789_v7 = vpop.f32.mrf.mxu1 }
 0x55b   : > { %v14784_v17 = vpop.f32.mrf.mxu0 }
 0x55c   : > { %v14796_v51 = vpop.f32.mrf.mxu1 }
 0x55d   : > { %v11197_v4 = vpop.f32.mrf.mxu0 }
 0x55e   : > { %v14787_v55 = vadd.f32 %v11197_v4, %v14677_v22  ;;  %v14803_v34 = vpop.f32.mrf.mxu1 }
 0x55f   : > { %v14791_v23 = vpop.f32.mrf.mxu0 }
 0x560   : > { %v14810_v58 = vpop.f32.mrf.mxu1 }
 0x561   : > { %v11198_v45 = vpop.f32.mrf.mxu0 }
 0x562   : > { %v14794_v26 = vadd.f32 %v11198_v45, %v14685_v43  ;;  %v14817_v31 = vpop.f32.mrf.mxu1 }
 0x563   : > { %v14798_v1 = vpop.f32.mrf.mxu0 }
 0x564   : > { %v14824_v33 = vpop.f32.mrf.mxu1 }
 0x565   : > { %v11201_v9 = vpop.f32.mrf.mxu0 }
 0x566   : > { %v14801_v27 = vadd.f32 %v11201_v9, %v14693_v61 }
 0x567   : > { %v14805_v22 = vpop.f32.mrf.mxu0 }
 0x568   : > { %15353 = vst [vmem:[#allocation63_spill] sm:$0xff] %v14801_v27 }
 0x569   : > { %v11202_v4 = vpop.f32.mrf.mxu0 }
 0x56a   : > { %v14808_v42 = vadd.f32 %v11202_v4, %v14701_v20 }
 0x56b   : > { %v14812_v43 = vpop.f32.mrf.mxu0 }
 0x56c   : > { %15354 = vst [vmem:[#allocation38_spill] sm:$0xff] %v14808_v42  ;;  %15355 = vst [vmem:[#allocation33_spill] sm:$0xff] %v14812_v43  ;;  %v14831_v43 = vpop.f32.mrf.mxu1 }
 0x56d   : > { %v11205_v45 = vpop.f32.mrf.mxu0 }
 0x56e   : > { %v14815_v36 = vadd.f32 %v11205_v45, %v14709_v60 }
 0x56f   : > { %v14819_v61 = vpop.f32.mrf.mxu0 }
 0x570   : > { %15356 = vst [vmem:[#allocation39_spill] sm:$0xff] %v14815_v36  ;;  %15357 = vst [vmem:[#allocation34_spill] sm:$0xff] %v14819_v61  ;;  %v14838_v61 = vpop.f32.mrf.mxu1 }
 0x571   : > { %v11206_v9 = vpop.f32.mrf.mxu0 }
 0x572   : > { %v14822_v52 = vadd.f32 %v11206_v9, %v14717_v37 }
 0x573   : > { %v14826_v20 = vpop.f32.mrf.mxu0 }
 0x574   : > { %15358 = vst [vmem:[#allocation43_spill] sm:$0xff] %v14822_v52  ;;  %15359 = vst [vmem:[#allocation41_spill] sm:$0xff] %v14826_v20  ;;  %v14845_v20 = vpop.f32.mrf.mxu1 }
 0x575   : > { %v11209_v4 = vpop.f32.mrf.mxu0 }
 0x576   : > { %v14829_v42 = vadd.f32 %v11209_v4, %v14725_v0 }
 0x577   : > { %v14833_v60 = vpop.f32.mrf.mxu0 }
 0x578   : > { %15360 = vst [vmem:[#allocation29_spill] sm:$0xff] %v14829_v42  ;;  %15361 = vst [vmem:[#allocation73_spill] sm:$0xff] %v14833_v60  ;;  %v14851_v60 = vpop.f32.mrf.mxu1 }
 0x579   : > { %v11210_v45 = vpop.f32.mrf.mxu0 }
 0x57a   : > { %v14836_v36 = vadd.f32 %v11210_v45, %v14733_v24  ;;  %v7608_v45 = vadd.f32 %v14639_v5, %v14627_v29  ;;  %v7611_v29 = vadd.f32 %v14647_v46, %v14635_v21 }
 0x57b   : > { %v14840_v37 = vpop.f32.mrf.mxu0 }
 0x57c   : > { %15362 = vst [vmem:[#allocation16_spill] sm:$0xff] %v14836_v36  ;;  %15363 = vst [vmem:[#allocation45_spill] sm:$0xff] %v14840_v37  ;;  %v8222_v37 = vadd.f32 %v11233_v6, %v14746_v47 }
 0x57d   : > { %v11213_v9 = vpop.f32.mrf.mxu0 }
 0x57e   : > { %v14843_v52 = vadd.f32 %v11213_v9, %v14741_v13  ;;  %v8220_v13 = vadd.f32 %v8093_v50, %v14749_v41  ;;  %v14859_v9 = vpop.f32.mrf.mxu1 }
 0x57f   : > { %v14847_v0 = vpop.f32.mrf.mxu0 }
 0x580   : > { %15364 = vst [vmem:[#allocation76_spill] sm:$0xff] %v14843_v52  ;;  %15365 = vst [vmem:[#allocation68_spill] sm:$0xff] %v14847_v0  ;;  %v8223_v0 = vadd.f32 %v11234_v11, %v14754_v14  ;;  %v14872_v6 = vpop.f32.mrf.mxu1  ;;  %v8558_v11 = vld [vmem:[#allocation2 + $0x19] sm:$0xff] }
 0x581   : > { %v11214_v4 = vpop.f32.mrf.mxu0 }
 0x582   : > { %v14849_v42 = vadd.f32 %v11214_v4, %v7638_v44  ;;  %v7915_v44 = vadd.f32 %v14756_v63, %v7608_v45  ;;  %v7918_v63 = vadd.f32 %v14761_v18, %v7611_v29  ;;  %v8560_v18 = vld [vmem:[#allocation2 + $0x31] sm:$0xff] }
 0x583   : > { %v14853_v27 = vpop.f32.mrf.mxu0 }
 0x584   : > { %15366 = vst [vmem:[#allocation36_spill] sm:$0xff] %v14849_v42  ;;  %15367 = vst [vmem:[#allocation47_spill] sm:$0xff] %v14853_v27  ;;  %v14866_v27 = vld [vmem:[%s15035_s6] ss:$0 sm:$0xff]  ;;  %v8221_v5 = vadd.f32 %v14763_v57, %v7915_v44  ;;  %v14883_v57 = vpop.f32.mrf.mxu1 }
 0x585   : > { %v11281_v24 = vpop.f32.mrf.mxu0 }
 0x586   : > { %v8528_v4 = vadd.f32 %v11281_v24, %v8222_v37  ;;  %v8224_v24 = vadd.f32 %v14775_v39, %v7918_v63  ;;  %v7615_v39 = vadd.f32 %v14663_v10, %v14651_v49 }
 0x587   : > { %v8399_v52 = vpop.f32.mrf.mxu0 }
 0x588   : > { %v8526_v42 = vadd.f32 %v8399_v52, %v8220_v13  ;;  %v8599_v52 = vadd.f32 %v14866_v27, %v8528_v4  ;;  %v7922_v10 = vadd.f32 %v14777_v59, %v7615_v39 }
 0x589   : > { %v11282_v36 = vpop.f32.mrf.mxu0 }
 0x58a   : > { %v8597_v47 = vadd.f32 %v14866_v27, %v8526_v42  ;;  %v8529_v41 = vadd.f32 %v11282_v36, %v8223_v0  ;;  %v7612_v36 = vadd.f32 %v14655_v25, %v14643_v16  ;;  %v8226_v42 = vadd.f32 %v14770_v62, %v14759_v12  ;;  %v8559_v0 = vld [vmem:[#allocation2 + $0x21] sm:$0xff]  ;;  %v8561_v16 = vld [vmem:[#allocation2 + $0x39] sm:$0xff] }
 0x58b   : > { %v8402_v14 = vpop.f32.mrf.mxu0  ;;  %v8631_v44 = vadd.f32 %v8599_v52, %v8560_v18  ;;  %v8230_v18 = vadd.f32 %v14796_v51, %v14773_v38 }
 0x58c   : > { %v8527_v50 = vadd.f32 %v8402_v14, %v8221_v5  ;;  %v8629_v45 = vadd.f32 %v8597_v47, %v8558_v11  ;;  %v8600_v21 = vadd.f32 %v14866_v27, %v8529_v41  ;;  %v8227_v5 = vadd.f32 %v14782_v56, %v14766_v32  ;;  %v8562_v11 = vld [vmem:[#allocation2 + $0x49] sm:$0xff] }
 0x58d   : > { %v11285_v37 = vpop.f32.mrf.mxu0  ;;  %v7919_v47 = vadd.f32 %v14768_v48, %v7612_v36  ;;  %v8663_v32 = vmax.f32 %v8631_v44, 0.0  ;;  %v8228_v36 = vadd.f32 %v14803_v34, %v7922_v10  ;;  %v8231_v34 = vadd.f32 %v14810_v58, %v14780_v54  ;;  %v8566_v54 = vld [vmem:[#allocation2 + $0x79] sm:$0xff] }
 0x58e   : > { %v8598_v46 = vadd.f32 %v14866_v27, %v8527_v50  ;;  %v8532_v25 = vadd.f32 %v11285_v37, %v8226_v42  ;;  %v8661_v12 = vmax.f32 %v8629_v45, 0.0  ;;  %v8632_v62 = vadd.f32 %v8600_v21, %v8561_v16  ;;  %v14892_v50 = vpop.f32.mrf.mxu1 }
 0x58f   : > { %v8415_v13 = vpop.f32.mrf.mxu0  ;;  %v8225_v52 = vadd.f32 %v14789_v7, %v7919_v47  ;;  %v7616_v21 = vadd.f32 %v14671_v40, %v14659_v35  ;;  %v8563_v35 = vld [vmem:[#allocation2 + $0x51] sm:$0xff] }
 0x590   : > { %v8630_v4 = vadd.f32 %v8598_v46, %v8559_v0  ;;  %v8530_v29 = vadd.f32 %v8415_v13, %v8224_v24  ;;  %v8603_v37 = vadd.f32 %v14866_v27, %v8532_v25  ;;  %v8664_v7 = vmax.f32 %v8632_v62, 0.0  ;;  %v14901_v0 = vpop.f32.mrf.mxu1  ;;  %v8565_v62 = vld [vmem:[#allocation2 + $0x69] sm:$0xff] }
 0x591   : > { %v11286_v41 = vpop.f32.mrf.mxu0  ;;  %v7619_v25 = vadd.f32 %v14679_v3, %v14667_v2 }
 0x592   : > { %v8662_v14 = vmax.f32 %v8630_v4, 0.0  ;;  %v8601_v63 = vadd.f32 %v14866_v27, %v8530_v29  ;;  %v8533_v24 = vadd.f32 %v11286_v41, %v8227_v5  ;;  %v7923_v4 = vadd.f32 %v14784_v17, %v7616_v21  ;;  %v8564_v29 = vld [vmem:[#allocation2 + $0x61] sm:$0xff] }
 0x593   : > { %v8418_v49 = vpop.f32.mrf.mxu0  ;;  %v8635_v47 = vadd.f32 %v8603_v37, %v8564_v29  ;;  %v7926_v58 = vadd.f32 %v14791_v23, %v7619_v25  ;;  %v7623_v29 = vadd.f32 %v14695_v8, %v14683_v19 }
 0x594   : > { %v8693_v56 = vadd.f32 %v8662_v14, %v8661_v12  ;;  %v8633_v48 = vadd.f32 %v8601_v63, %v8562_v11  ;;  %v8531_v46 = vadd.f32 %v8418_v49, %v8225_v52  ;;  %v8604_v59 = vadd.f32 %v14866_v27, %v8533_v24  ;;  %v14912_v14 = vpop.f32.mrf.mxu1 }
 0x595   : > { %v11289_v45 = vpop.f32.mrf.mxu0  ;;  %v8229_v41 = vadd.f32 %v14817_v31, %v7923_v4  ;;  %v8667_v10 = vmax.f32 %v8635_v47, 0.0 }
 0x596   : > { %v8694_v42 = vadd.f32 %v8693_v56, %v8663_v32  ;;  %v8602_v13 = vadd.f32 %v14866_v27, %v8531_v46  ;;  %v8665_v39 = vmax.f32 %v8633_v48, 0.0  ;;  %v8536_v51 = vadd.f32 %v11289_v45, %v8230_v18  ;;  %v14922_v45 = vpop.f32.mrf.mxu1 }
 0x597   : > { %v8431_v44 = vpop.f32.mrf.mxu0  ;;  %v8636_v63 = vadd.f32 %v8604_v59, %v8565_v62  ;;  %v7620_v56 = vadd.f32 %v14687_v53, %v14675_v15  ;;  %v8232_v48 = vadd.f32 %v14831_v43, %v7926_v58  ;;  %v8234_v46 = vadd.f32 %v14824_v33, %v14787_v55  ;;  %v8568_v53 = vld [vmem:[#allocation2 + $0x91] sm:$0xff] }
 0x598   : > { %v8695_v5 = vadd.f32 %v8694_v42, %v8664_v7  ;;  %v8534_v40 = vadd.f32 %v8431_v44, %v8228_v36  ;;  %v8634_v16 = vadd.f32 %v8602_v13, %v8563_v35  ;;  %v8607_v2 = vadd.f32 %v14866_v27, %v8536_v51  ;;  %v8567_v7 = vld [vmem:[#allocation2 + $0x81] sm:$0xff]  ;;  %v8570_v51 = vld [vmem:[#allocation2 + $0xa9] sm:$0xff] }
 0x599   : > { %v11290_v38 = vpop.f32.mrf.mxu0  ;;  %v8668_v23 = vmax.f32 %v8636_v63, 0.0  ;;  %v8235_v18 = vadd.f32 %v14838_v61, %v14794_v26  ;;  %v7927_v15 = vadd.f32 %v14798_v1, %v7620_v56  ;;  %v14932_v26 = vpop.f32.mrf.mxu1  ;;  %v15368_v63 = vld [vmem:[#allocation63_spill] sm:$0xff] }
 0x59a   : > { %v8696_v12 = vadd.f32 %v8695_v5, %v8665_v39  ;;  %v8605_v17 = vadd.f32 %v14866_v27, %v8534_v40  ;;  %v8666_v52 = vmax.f32 %v8634_v16, 0.0  ;;  %v8537_v11 = vadd.f32 %v11290_v38, %v8231_v34  ;;  %v8569_v5 = vld [vmem:[#allocation2 + $0x99] sm:$0xff] }
 0x59b   : > { %v8434_v24 = vpop.f32.mrf.mxu0  ;;  %v8639_v13 = vadd.f32 %v8607_v2, %v8568_v53  ;;  %v8233_v39 = vadd.f32 %v14845_v20, %v7927_v15  ;;  %v7930_v16 = vadd.f32 %v14805_v22, %v7623_v29  ;;  %v15370_v2 = vld [vmem:[#allocation33_spill] sm:$0xff] }
 0x59c   : > { %v8535_v49 = vadd.f32 %v8434_v24, %v8229_v41  ;;  %v8697_v32 = vadd.f32 %v8696_v12, %v8666_v52  ;;  %v8637_v3 = vadd.f32 %v8605_v17, %v8566_v54  ;;  %v8608_v36 = vadd.f32 %v14866_v27, %v8537_v11  ;;  %v14942_v11 = vpop.f32.mrf.mxu1  ;;  %v8571_v54 = vld [vmem:[#allocation2 + $0xb1] sm:$0xff] }
 0x59d   : > { %v11293_v31 = vpop.f32.mrf.mxu0  ;;  %v8671_v25 = vmax.f32 %v8639_v13, 0.0  ;;  %v7624_v12 = vadd.f32 %v14703_v28, %v14691_v30  ;;  %v8236_v62 = vadd.f32 %v14859_v9, %v7930_v16  ;;  %v8238_v52 = vadd.f32 %v14851_v60, %v15368_v63  ;;  %v8572_v28 = vld [vmem:[#allocation2 + $0xc1] sm:$0xff]  ;;  %v8576_v63 = vld [vmem:[#allocation2 + $0xf1] sm:$0xff] }
 0x59e   : > { %v8606_v37 = vadd.f32 %v14866_v27, %v8535_v49  ;;  %v8698_v21 = vadd.f32 %v8697_v32, %v8667_v10  ;;  %v8669_v44 = vmax.f32 %v8637_v3, 0.0  ;;  %v8540_v33 = vadd.f32 %v11293_v31, %v8234_v46  ;;  %v15369_v10 = vld [vmem:[#allocation38_spill] sm:$0xff]  ;;  %v15371_v46 = vld [vmem:[#allocation9_spill] sm:$0xff] }
 0x59f   : > { %v8447_v42 = vpop.f32.mrf.mxu0  ;;  %v8640_v61 = vadd.f32 %v8608_v36, %v8569_v5  ;;  %v8239_v32 = vadd.f32 %v14872_v6, %v15369_v10  ;;  %v7931_v30 = vadd.f32 %v15370_v2, %v7624_v12  ;;  %v11258_v6 = vpop.f32.mrf.mxu1  ;;  %v15373_v13 = vld [vmem:[#allocation34_spill] sm:$0xff]  ;;  %v15380_v10 = vld [vmem:[#allocation35_spill] sm:$0xff] }
 0x5a0   : > { %v8638_v43 = vadd.f32 %v8606_v37, %v8567_v7  ;;  %v8538_v59 = vadd.f32 %v8447_v42, %v8232_v48  ;;  %v8699_v4 = vadd.f32 %v8698_v21, %v8668_v23  ;;  %v8611_v19 = vadd.f32 %v14866_v27, %v8540_v33  ;;  %v15372_v23 = vld [vmem:[#allocation30_spill] sm:$0xff]  ;;  %v8573_v7 = vld [vmem:[#allocation2 + $0xc9] sm:$0xff] }
 0x5a1   : > { %v11294_v55 = vpop.f32.mrf.mxu0  ;;  %v8672_v22 = vmax.f32 %v8640_v61, 0.0  ;;  %v7627_v21 = vadd.f32 %v15372_v23, %v15371_v46  ;;  %v8237_v36 = vadd.f32 %v14883_v57, %v7931_v30  ;;  %v15374_v57 = vld [vmem:[#allocation13_spill] sm:$0xff]  ;;  %v8578_v46 = vld [vmem:[#allocation2 + $0x109] sm:$0xff] }
 0x5a2   : > { %v8670_v35 = vmax.f32 %v8638_v43, 0.0  ;;  %v8609_v40 = vadd.f32 %v14866_v27, %v8538_v59  ;;  %v8700_v1 = vadd.f32 %v8699_v4, %v8669_v44  ;;  %v8541_v34 = vadd.f32 %v11294_v55, %v8235_v18  ;;  %v8574_v4 = vld [vmem:[#allocation2 + $0xd9] sm:$0xff] }
 0x5a3   : > { %v8450_v47 = vpop.f32.mrf.mxu0  ;;  %v8643_v31 = vadd.f32 %v8611_v19, %v8572_v28  ;;  %v7934_v44 = vadd.f32 %v15373_v13, %v7627_v21  ;;  %v8575_v19 = vld [vmem:[#allocation2 + $0xe1] sm:$0xff]  ;;  %v8577_v30 = vld [vmem:[#allocation2 + $0xf9] sm:$0xff] }
 0x5a4   : > { %v8539_v38 = vadd.f32 %v8450_v47, %v8233_v39  ;;  %v8701_v41 = vadd.f32 %v8700_v1, %v8670_v35  ;;  %v8641_v8 = vadd.f32 %v8609_v40, %v8570_v51  ;;  %v8612_v58 = vadd.f32 %v14866_v27, %v8541_v34  ;;  %v15375_v40 = vld [vmem:[#allocation37_spill] sm:$0xff]  ;;  %v15376_v47 = vld [vmem:[#allocation39_spill] sm:$0xff]  ;;  %v8192_v51 = vpop.f32.mrf.mxu1 }
 0x5a5   : > { %v11297_v20 = vpop.f32.mrf.mxu0  ;;  %v8675_v55 = vmax.f32 %v8643_v31, 0.0  ;;  %v7628_v1 = vadd.f32 %v15375_v40, %v15374_v57  ;;  %v8240_v61 = vadd.f32 %v14901_v0, %v7934_v44  ;;  %v8242_v16 = vadd.f32 %v14892_v50, %v15376_v47  ;;  %v15384_v13 = vld [vmem:[#allocation29_spill] sm:$0xff] }
 0x5a6   : > { %v8610_v17 = vadd.f32 %v14866_v27, %v8539_v38  ;;  %v8702_v24 = vadd.f32 %v8701_v41, %v8671_v25  ;;  %v8673_v56 = vmax.f32 %v8641_v8, 0.0  ;;  %v8544_v60 = vadd.f32 %v11297_v20, %v8238_v52  ;;  %v15377_v20 = vld [vmem:[#allocation43_spill] sm:$0xff]  ;;  %v15386_v40 = vld [vmem:[#allocation45_spill] sm:$0xff] }
 0x5a7   : > { %v8463_v49 = vpop.f32.mrf.mxu0  ;;  %v8644_v53 = vadd.f32 %v8612_v58, %v8573_v7  ;;  %v8243_v12 = vadd.f32 %v14912_v14, %v15377_v20  ;;  %v11261_v14 = vpop.f32.mrf.mxu1  ;;  %v8246_v44 = vadd.f32 %v14932_v26, %v15384_v13  ;;  %v15387_v26 = vld [vmem:[#allocation11_spill] sm:$0xff] }
 0x5a8   : > { %v8642_v9 = vadd.f32 %v8610_v17, %v8571_v54  ;;  %v8542_v3 = vadd.f32 %v8463_v49, %v8236_v62  ;;  %v8703_v48 = vadd.f32 %v8702_v24, %v8672_v22  ;;  %v8615_v39 = vadd.f32 %v14866_v27, %v8544_v60  ;;  %v15378_v62 = vld [vmem:[#allocation41_spill] sm:$0xff]  ;;  %v15379_v49 = vld [vmem:[#allocation64_spill] sm:$0xff] }
 0x5a9   : > { %v11298_v37 = vpop.f32.mrf.mxu0  ;;  %v8676_v38 = vmax.f32 %v8644_v53, 0.0  ;;  %v7935_v17 = vadd.f32 %v15378_v62, %v7628_v1  ;;  %v15381_v60 = vld [vmem:[#allocation73_spill] sm:$0xff] }
 0x5aa   : > { %v8674_v42 = vmax.f32 %v8642_v9, 0.0  ;;  %v8613_v18 = vadd.f32 %v14866_v27, %v8542_v3  ;;  %v8704_v15 = vadd.f32 %v8703_v48, %v8673_v56  ;;  %v8545_v43 = vadd.f32 %v11298_v37, %v8239_v32 }
 0x5ab   : > { %v8466_v59 = vpop.f32.mrf.mxu0  ;;  %v8647_v22 = vadd.f32 %v8615_v39, %v8576_v63  ;;  %v7631_v32 = vadd.f32 %v15380_v10, %v15379_v49  ;;  %v8241_v2 = vadd.f32 %v14922_v45, %v7935_v17  ;;  %v15382_v45 = vld [vmem:[#allocation8_spill] sm:$0xff] }
 0x5ac   : > { %v8543_v33 = vadd.f32 %v8466_v59, %v8237_v36  ;;  %v8705_v29 = vadd.f32 %v8704_v15, %v8674_v42  ;;  %v8645_v5 = vadd.f32 %v8613_v18, %v8574_v4  ;;  %v8616_v41 = vadd.f32 %v14866_v27, %v8545_v43  ;;  %v15383_v15 = vld [vmem:[#allocation66_spill] sm:$0xff]  ;;  %v8205_v4 = vpop.f32.mrf.mxu1  ;;  %v8579_v39 = vld [vmem:[#allocation2 + $0x111] sm:$0xff] }
 0x5ad   : > { %v11301_v35 = vpop.f32.mrf.mxu0  ;;  %v7938_v37 = vadd.f32 %v15381_v60, %v7631_v32  ;;  %v8679_v21 = vmax.f32 %v8647_v22, 0.0  ;;  %v7632_v53 = vadd.f32 %v15383_v15, %v15382_v45  ;;  %v8584_v15 = vld [vmem:[#allocation2 + $0x151] sm:$0xff] }
 0x5ae   : > { %v8614_v34 = vadd.f32 %v14866_v27, %v8543_v33  ;;  %v8706_v25 = vadd.f32 %v8705_v29, %v8675_v55  ;;  %v8677_v24 = vmax.f32 %v8645_v5, 0.0  ;;  %v8548_v54 = vadd.f32 %v11301_v35, %v8242_v16  ;;  %v15385_v35 = vld [vmem:[#allocation16_spill] sm:$0xff]  ;;  %v11262_v63 = vpop.f32.mrf.mxu1 }
 0x5af   : > { %v8479_v8 = vpop.f32.mrf.mxu0  ;;  %v8648_v31 = vadd.f32 %v8616_v41, %v8577_v30  ;;  %v8244_v43 = vadd.f32 %v14942_v11, %v7938_v37  ;;  %v8247_v57 = vadd.f32 %v11258_v6, %v15385_v35  ;;  %v7939_v1 = vadd.f32 %v15386_v40, %v7632_v53 }
 0x5b0   : > { %v8646_v52 = vadd.f32 %v8614_v34, %v8575_v19  ;;  %v8546_v0 = vadd.f32 %v8479_v8, %v8240_v61  ;;  %v8707_v58 = vadd.f32 %v8706_v25, %v8676_v38  ;;  %v8619_v7 = vadd.f32 %v14866_v27, %v8548_v54  ;;  %v8580_v61 = vld [vmem:[#allocation2 + $0x121] sm:$0xff]  ;;  %v8582_v54 = vld [vmem:[#allocation2 + $0x139] sm:$0xff]  ;;  %v8208_v60 = vpop.f32.mrf.mxu1 }
 0x5b1   : > { %v11302_v50 = vpop.f32.mrf.mxu0  ;;  %v8680_v33 = vmax.f32 %v8648_v31, 0.0  ;;  %v15388_v19 = vld [vmem:[#allocation10_spill] sm:$0xff]  ;;  %v8245_v20 = vadd.f32 %v8192_v51, %v7939_v1  ;;  %v15390_v51 = vld [vmem:[#allocation65_spill] sm:$0xff]  ;;  %v8586_v1 = vld [vmem:[#allocation2 + $0x169] sm:$0xff] }
 0x5b2   : > { %v8678_v28 = vmax.f32 %v8646_v52, 0.0  ;;  %v8617_v9 = vadd.f32 %v14866_v27, %v8546_v0  ;;  %v8708_v3 = vadd.f32 %v8707_v58, %v8677_v24  ;;  %v8549_v56 = vadd.f32 %v11302_v50, %v8243_v12  ;;  %v8581_v12 = vld [vmem:[#allocation2 + $0x129] sm:$0xff] }
 0x5b3   : > { %v8482_v48 = vpop.f32.mrf.mxu0  ;;  %v8651_v11 = vadd.f32 %v8619_v7, %v8580_v61  ;;  %v7635_v8 = vadd.f32 %v15388_v19, %v15387_v26  ;;  %v15389_v24 = vld [vmem:[#allocation68_spill] sm:$0xff]  ;;  %v15393_v7 = vld [vmem:[#allocation47_spill] sm:$0xff] }
 0x5b4   : > { %v8547_v23 = vadd.f32 %v8482_v48, %v8241_v2  ;;  %v8709_v36 = vadd.f32 %v8708_v3, %v8678_v28  ;;  %v8649_v42 = vadd.f32 %v8617_v9, %v8578_v46  ;;  %v8620_v29 = vadd.f32 %v14866_v27, %v8549_v56  ;;  %v15391_v28 = vld [vmem:[#allocation12_spill] sm:$0xff] }
 0x5b5   : > { %v11305_v18 = vpop.f32.mrf.mxu0  ;;  %v7942_v58 = vadd.f32 %v15389_v24, %v7635_v8  ;;  %v8683_v49 = vmax.f32 %v8651_v11, 0.0  ;;  %v7636_v9 = vadd.f32 %v15391_v28, %v15390_v51  ;;  %v15392_v56 = vld [vmem:[#allocation76_spill] sm:$0xff]  ;;  %v8588_v8 = vld [vmem:[#allocation2 + $0x181] sm:$0xff] }
 0x5b6   : > { %v8618_v59 = vadd.f32 %v14866_v27, %v8547_v23  ;;  %v8710_v55 = vadd.f32 %v8709_v36, %v8679_v21  ;;  %v8681_v16 = vmax.f32 %v8649_v42, 0.0  ;;  %v8552_v25 = vadd.f32 %v11305_v18, %v8246_v44  ;;  %v8583_v21 = vld [vmem:[#allocation2 + $0x141] sm:$0xff]  ;;  %v15394_v18 = vld [vmem:[#allocation36_spill] sm:$0xff] }
 0x5b7   : > { %v8495_v5 = vpop.f32.mrf.mxu0  ;;  %v8652_v52 = vadd.f32 %v8620_v29, %v8581_v12  ;;  %v8248_v3 = vadd.f32 %v8205_v4, %v7942_v58  ;;  %v8250_v48 = vadd.f32 %v11261_v14, %v15392_v56  ;;  %v7943_v42 = vadd.f32 %v15393_v7, %v7636_v9  ;;  %v8587_v19 = vld [vmem:[#allocation2 + $0x171] sm:$0xff] }
 0x5b8   : > { %v8650_v34 = vadd.f32 %v8618_v59, %v8579_v39  ;;  %v8550_v47 = vadd.f32 %v8495_v5, %v8244_v43  ;;  %v8711_v38 = vadd.f32 %v8710_v55, %v8680_v33  ;;  %v8623_v32 = vadd.f32 %v14866_v27, %v8552_v25  ;;  %v8585_v55 = vld [vmem:[#allocation2 + $0x159] sm:$0xff] }
 0x5b9   : > { %v11306_v41 = vpop.f32.mrf.mxu0  ;;  %v8684_v37 = vmax.f32 %v8652_v52, 0.0  ;;  %v8251_v45 = vadd.f32 %v11262_v63, %v15394_v18  ;;  %v8249_v14 = vadd.f32 %v8208_v60, %v7943_v42  ;;  %v8589_v63 = vld [vmem:[#allocation2 + $0x189] sm:$0xff] }
 0x5ba   : > { %v8682_v62 = vmax.f32 %v8650_v34, 0.0  ;;  %v8621_v17 = vadd.f32 %v14866_v27, %v8550_v47  ;;  %v8712_v6 = vadd.f32 %v8711_v38, %v8681_v16  ;;  %v8553_v0 = vadd.f32 %v11306_v41, %v8247_v57 }
 0x5bb   : > { %v8498_v22 = vpop.f32.mrf.mxu0  ;;  %v8655_v59 = vadd.f32 %v8623_v32, %v8584_v15 }
 0x5bc   : > { %v8551_v50 = vadd.f32 %v8498_v22, %v8245_v20  ;;  %v8713_v10 = vadd.f32 %v8712_v6, %v8682_v62  ;;  %v8653_v2 = vadd.f32 %v8621_v17, %v8582_v54  ;;  %v8624_v23 = vadd.f32 %v14866_v27, %v8553_v0 }
 0x5bd   : > { %v11309_v30 = vpop.f32.mrf.mxu0  ;;  %v8687_v34 = vmax.f32 %v8655_v59, 0.0 }
 0x5be   : > { %v8622_v31 = vadd.f32 %v14866_v27, %v8551_v50  ;;  %v8714_v46 = vadd.f32 %v8713_v10, %v8683_v49  ;;  %v8685_v13 = vmax.f32 %v8653_v2, 0.0  ;;  %v8556_v4 = vadd.f32 %v11309_v30, %v8250_v48 }
 0x5bf   : > { %v8511_v36 = vpop.f32.mrf.mxu0  ;;  %v8656_v35 = vadd.f32 %v8624_v23, %v8585_v55 }
 0x5c0   : > { %v8654_v53 = vadd.f32 %v8622_v31, %v8583_v21  ;;  %v8554_v43 = vadd.f32 %v8511_v36, %v8248_v3  ;;  %v8715_v44 = vadd.f32 %v8714_v46, %v8684_v37  ;;  %v8627_v11 = vadd.f32 %v14866_v27, %v8556_v4 }
 0x5c1   : > { %v11310_v33 = vpop.f32.mrf.mxu0  ;;  %v8688_v25 = vmax.f32 %v8656_v35, 0.0 }
 0x5c2   : > { %v8686_v29 = vmax.f32 %v8654_v53, 0.0  ;;  %v8625_v39 = vadd.f32 %v14866_v27, %v8554_v43  ;;  %v8716_v5 = vadd.f32 %v8715_v44, %v8685_v13  ;;  %v8557_v57 = vadd.f32 %v11310_v33, %v8251_v45 }
 0x5c3   : > { %v8514_v40 = vpop.f32.mrf.mxu0  ;;  %v8659_v12 = vadd.f32 %v8627_v11, %v8588_v8 }
 0x5c4   : > { %v8555_v61 = vadd.f32 %v8514_v40, %v8249_v14  ;;  %v8717_v47 = vadd.f32 %v8716_v5, %v8686_v29  ;;  %v8657_v16 = vadd.f32 %v8625_v39, %v8586_v1  ;;  %v8628_v26 = vadd.f32 %v14866_v27, %v8557_v57 }
 0x5c5   : > { %v8691_v22 = vmax.f32 %v8659_v12, 0.0 }
 0x5c6   : > { %v8626_v38 = vadd.f32 %v14866_v27, %v8555_v61  ;;  %v8718_v41 = vadd.f32 %v8717_v47, %v8687_v34  ;;  %v8689_v62 = vmax.f32 %v8657_v16, 0.0  ;;  %v8660_v0 = vadd.f32 %v8628_v26, %v8589_v63 }
 0x5c8   : > { %v8658_v20 = vadd.f32 %v8626_v38, %v8587_v19  ;;  %v8719_v17 = vadd.f32 %v8718_v41, %v8688_v25  ;;  %v8692_v58 = vmax.f32 %v8660_v0, 0.0 }
 0x5ca   : > { %v8690_v6 = vmax.f32 %v8658_v20, 0.0  ;;  %v8720_v52 = vadd.f32 %v8719_v17, %v8689_v62 }
 0x5cc   : > { %v8721_v24 = vadd.f32 %v8720_v52, %v8690_v6 }
 0x5ce   : > { %v8722_v54 = vadd.f32 %v8721_v24, %v8691_v22 }
 0x5d0   : > { %v8723_v50 = vadd.f32 %v8722_v54, %v8692_v58 }
 0x5d2   : > { %v8724_v49 = vrot.slane %v8723_v50, 4 }
 0x5d4   : > { %v8725_v10 = vadd.f32 %v8724_v49, %v8723_v50 }
 0x5d6   : > { %v8726_v27 = vrot.slane %v8725_v10, 2 }
 0x5d8   : > { %v8727_v32 = vadd.f32 %v8726_v27, %v8725_v10 }
 0x5da   : > { %v8728_v2 = vrot.slane %v8727_v32, 1 }
 0x5dc   : > { %v8729_v30 = vadd.f32 %v8728_v2, %v8727_v32 }
 0x5de   : > { %v8731_v51 = vmul.f32 0.00390625, %v8729_v30 }
 0x5e0   : > { %8732 = vst [vmem:[%s270_s8] sm:$0x1] %v8731_v51 }
 0x5e1   : > { %11523 = shalt.err (!%p11520_p3)
}
 0x5e2   : > { %s11524_s19 = scalar_lea.hbm %s8744_s15, 16  ;;  %s11528_s22 = scalar_lea.hbm %s15036_s7, 32 }
 0x5e3   : > { %p11525_p4 = scmp.ne.s32.totalorder %s8744_s15, %s11524_s19  ;;  %p11529_p9 = scmp.lt.s32.totalorder %s8744_s15, %s15036_s7 }
 0x5e4   : > { %p11530_p10 = scmp.lt.s32.totalorder %s11528_s22, %s11524_s19 }
 0x5e5   : > { %p11526_p7 = pnand %p11525_p4, %p11653_p5 }
 0x5e6   : > { %p11531_p11 = por %p11530_p10, %p11529_p9 }
 0x5e7   : > { %p11527_p8 = pneg %p11526_p7 }
 0x5e9   : > { %p11532_p12 = pnand %p11531_p11, %p11527_p8 }
 0x5eb   : > { %11535 = shalt.err (!%p11532_p12)
}
 0x5ec   : > { %11324 = dma.vmem_to_hbm [thread:$0]  (%p11653_p5), %s8747_s9, 16, %s8744_s15, %s8734_s16  }
 0x5ed PF: > { %p11330_p13 = scmp.ge.s32.totalorder %s11570_s27, 2  ;;  %s8758_s13 = sand.u32 1, %s11558_s24  }
 0x5ee   : > { %s8759_s14 = scalar_lea.sflag [#allocation5], %s8758_s13 }
 0x5ef   : > { %p11327_p0 = pnand %p11330_p13, %p11657_p6 }
 0x5f1   : > { %p11328_p1 = pneg %p11327_p0 }
 0x5f3   : > { %11553 = dma.done.wait (%p11328_p1), %s8759_s14, 16  }
 0x5f4   : > { %11555 = vsyncadd (%p11328_p1), %s8759_s14, 4294967280  ;;  %p17_p2 = scmp.ge.s32.totalorder %s11640_s30, 4   ;;  %s15395_s24 = smov %s11562_s25 }
 0x5f5   : > { %s15396_s25 = smov %s11566_s26  ;;  %s15397_s26 = smov %s11651_s10 }
 0x5f6   : > { %s15398_s27 = smov %s11640_s30  ;;  %19 = sbr.rel (!%p17_p2) target bundleno = 3 (0x3), region = 113 }
 0x5fb   :  { %8763 = vsyncpa [#allocation5], 1 }
 0x5fc   :  { %8765 = vsyncpa [#allocation5 + $0x1], 1 }

</bundles_post_ra>
